<compile_context>
chip_gen: v5e
topology: v5e:2x2
jax: 0.10.0
libtpu: 0.0.40
codegen_flags: <defaults>
</compile_context>

<pallas_src>
import functools

import jax
import jax.numpy as jnp
from jax.experimental import pallas as pl
from jax.experimental.pallas import tpu as pltpu

DIM = 2048      # fixed by ReadUnit's .view(-1, 2048) and Tucker((2048, 2048), ...)
MM_DIM = 50     # Tucker mm_dim


@functools.lru_cache(maxsize=None)
def _vmem_limit_bytes():
    """Generation-gated scoped-VMEM limit: ~half of physical, clamped to [32, 64] MiB."""
    try:
        cap = int(pltpu.get_tpu_info().vmem_capacity_bytes)
    except Exception:
        cap = 64 * 1024 * 1024          # conservative fallback (treat as v7x-sized part)
    return int(min(max(cap // 2, 32 * 1024 * 1024), 64 * 1024 * 1024))


def _round_up(n, m):
    return ((n + m - 1) // m) * m


def _row_tiling(n):
    """(row_tile, padded_rows) for K3: keep tiles big, pad N instead of shrinking tiles."""
    if n <= 512:
        tn = max(16, _round_up(n, 16))          # 16: bf16 sublane packing
        return tn, tn                           # single full-extent block
    for t in (512, 256):
        if n % t == 0:
            return t, n
    tn = 512
    return tn, _round_up(n, tn)


def _pick_dt(d, s, budget_bytes):
    """Largest D-tile whose double-buffered f32 know block fits the budget (dt=D for small S)."""
    cap = max(128, budget_bytes // (2 * s * 4))
    for t in (2048, 1024, 512, 256, 128):
        if t <= d and d % t == 0 and t <= cap:
            return t
    return d    # full-extent fallback is always legal


# ----------------------------- K1: mem linear (bf16 weight stream) -----------------------------

def _mem_linear_kernel(x_ref, w_ref, b_ref, o_ref):
    # bf16 x bf16 on the MXU with f32 accumulation; HBM-bound on the (bf16) weight tile.
    o_ref[...] = jnp.dot(x_ref[...], w_ref[...],
                         preferred_element_type=jnp.float32) + b_ref[...]


def mem_linear(x_bf16, w_bf16, b, *, tn=1024):
    n, k = x_bf16.shape
    m = w_bf16.shape[1]
    tn = min(tn, m)
    assert m % tn == 0
    return pl.pallas_call(
        _mem_linear_kernel,
        out_shape=jax.ShapeDtypeStruct((n, m), jnp.float32),
        grid=(m // tn,),
        in_specs=[
            pl.BlockSpec((n, k), lambda j: (0, 0)),
            pl.BlockSpec((k, tn), lambda j: (0, j)),
            pl.BlockSpec((1, tn), lambda j: (0, j)),
        ],
        out_specs=pl.BlockSpec((n, tn), lambda j: (0, j)),
        compiler_params=pltpu.CompilerParams(
            dimension_semantics=("parallel",),          # >=2 steps -> both v7x TCs used
            vmem_limit_bytes=_vmem_limit_bytes()),
    )(x_bf16, w_bf16, b)


# ----------------------------- K3: fused Tucker attention logits -----------------------------

def _tucker_attn_kernel(s_ref, v_ref, w0_ref, b0_ref, c0_ref, o_ref):
    # x0 = Tucker's shared linear0 applied to the s_matrix rows (bf16 MXU, f32 accumulate).
    x0 = jnp.dot(s_ref[...], w0_ref[...], preferred_element_type=jnp.float32) + b0_ref[...]
    # Bilinear(x0, x1) + Linear(50,1) collapse exactly to a per-row dot with the folded control
    # vector V[n % B] plus the constant bb.wo + bo (VPU multiply + lane reduce).
    o_ref[...] = jnp.sum(x0 * v_ref[...], axis=-1, keepdims=True) + c0_ref[...]


def tucker_attn(s_flat, v_rows, w0_bf16, b0, c0, *, tn):
    n_pad = s_flat.shape[0]
    assert n_pad % tn == 0
    return pl.pallas_call(
        _tucker_attn_kernel,
        out_shape=jax.ShapeDtypeStruct((n_pad, 1), jnp.float32),
        grid=(n_pad // tn,),
        in_specs=[
            pl.BlockSpec((tn, DIM), lambda t: (t, 0)),
            pl.BlockSpec((tn, MM_DIM), lambda t: (t, 0)),
            pl.BlockSpec((DIM, MM_DIM), lambda t: (0, 0)),
            pl.BlockSpec((1, MM_DIM), lambda t: (0, 0)),
            pl.BlockSpec((1, 1), lambda t: (0, 0)),
        ],
        out_specs=pl.BlockSpec((tn, 1), lambda t: (t, 0)),
        compiler_params=pltpu.CompilerParams(
            dimension_semantics=("parallel",),
            vmem_limit_bytes=_vmem_limit_bytes()),
    )(s_flat, v_rows, w0_bf16, b0, c0)


# ----------------------------- K4: softmax + weighted read -----------------------------

def _softmax_read_kernel(lg_ref, know_ref, o_ref, p_ref):
    # Softmax once per batch row, hoisted into VMEM scratch at the first D-tile.
    @pl.when(pl.program_id(1) == 0)
    def _():
        x = lg_ref[0]                                              # (1, S)
        x = x - jnp.max(x, axis=-1, keepdims=True)
        e = jnp.exp(x)
        p_ref[...] = e * pl.reciprocal(jnp.sum(e, axis=-1, keepdims=True), approx=True)
    # Weighted read over the native (D-tile, S) layout of `know` (no HBM transpose of know).
    # TODO(synk): at very large S an (S, dt)-layout know copy + MXU matmul would beat this
    # lane-dim contraction; at small/medium S it is not worth an extra pass over know.
    o_ref[0] = jnp.einsum('qs,ds->qd', p_ref[...], know_ref[0],
                          preferred_element_type=jnp.float32)      # (1, dt): lane-dense output


def softmax_read(logits_b1s, know):
    b, d, s = know.shape
    dt = _pick_dt(d, s, _vmem_limit_bytes() // 4)
    out = pl.pallas_call(
        _softmax_read_kernel,
        out_shape=jax.ShapeDtypeStruct((b, 1, d), jnp.float32),
        grid=(b, d // dt),
        in_specs=[
            pl.BlockSpec((1, 1, s), lambda i, j: (i, 0, 0)),
            pl.BlockSpec((1, dt, s), lambda i, j: (i, j, 0)),
        ],
        out_specs=pl.BlockSpec((1, 1, dt), lambda i, j: (i, 0, j)),
        scratch_shapes=[pltpu.VMEM((1, s), jnp.float32)],
        compiler_params=pltpu.CompilerParams(
            dimension_semantics=("parallel", "arbitrary"),   # D axis sequential: scratch reuse
            vmem_limit_bytes=_vmem_limit_bytes()),
    )(logits_b1s, know)
    return out[:, 0, :]


# ----------------------------- parameters & forward -----------------------------

def init_params(key):
    ks = jax.random.split(key, 7)
    # self.mem = linear(dim, dim): xavier_uniform weight, zero bias; stored (in, out) in bf16.
    a_mem = (6.0 / (DIM + DIM)) ** 0.5
    w_mem = jax.random.uniform(ks[0], (DIM, DIM), jnp.float32, -a_mem, a_mem)
    b_mem = jnp.zeros((1, DIM), jnp.float32)
    # Tucker linear0 (shared with linear1): Linear(2048, 50), default torch init.
    a0 = 1.0 / (DIM ** 0.5)
    w0 = jax.random.uniform(ks[1], (DIM, MM_DIM), jnp.float32, -a0, a0)
    b0 = jax.random.uniform(ks[2], (1, MM_DIM), jnp.float32, -a0, a0)
    # Tucker bilinear: weight (out=50, in1=50, in2=50), bias (50,).
    ab = 1.0 / (MM_DIM ** 0.5)
    wb = jax.random.uniform(ks[3], (MM_DIM, MM_DIM, MM_DIM), jnp.float32, -ab, ab)
    bb = jax.random.uniform(ks[4], (1, MM_DIM), jnp.float32, -ab, ab)
    # Tucker linear_out: Linear(50, 1).
    wo = jax.random.uniform(ks[5], (MM_DIM, 1), jnp.float32, -ab, ab)
    bo = jax.random.uniform(ks[6], (1, 1), jnp.float32, -ab, ab)
    # Init-time folds:
    #   wfold[j, i] = sum_k wo[k] * Wb[k, i, j]                (50, 50)
    #   w0f = w0 @ wfold, b0f = b0 @ wfold                     control side of the Tucker
    #   c0  = bb @ wo + bo                                     (1, 1) constant
    wfold = jnp.einsum('k,kij->ji', wo[:, 0], wb)
    w0f = w0 @ wfold
    b0f = b0 @ wfold
    c0 = bb @ wo + bo
    return dict(w_mem_bf16=w_mem.astype(jnp.bfloat16), b_mem=b_mem,
                w0=w0, w0_bf16=w0.astype(jnp.bfloat16), b0=b0,
                wb=wb, bb=bb, wo=wo, bo=bo,
                w0f=w0f, b0f=b0f, c0=c0)


@jax.jit
def read_unit_forward(params, memory, know, control):
    # memory, control: lists of (B, DIM) states (module uses the last one);
    # know: (B, DIM, S) in the torch (batch, channel, spatial) layout.
    b, d, s = know.shape
    n = b * s
    mem_last = memory[-1]
    ctrl_last = control[-1]

    # K1: self.mem(memory[-1]) — bf16 streamed weight, f32 accumulation.
    mem = mem_linear(mem_last.astype(jnp.bfloat16), params['w_mem_bf16'], params['b_mem'])  # (B, D)

    # Control side of the Tucker, fully folded at init: one tiny XLA matmul (K2 kernel removed).
    v = ctrl_last @ params['w0f'] + params['b0f']                                           # (B, 50)
    v_rows = jnp.tile(v, (s, 1))                # row n -> V[n % B]  (same pairing as .repeat(S, 1))

    # XLA glue: the torch .view(-1, 2048) on the (B, D, S) layout forces one relayout of `know`;
    # the mem broadcast-multiply and the bf16 downcast fuse into that single pass.
    s_flat = (mem[:, :, None] * know).astype(jnp.bfloat16).reshape(n, DIM)                  # (N, 2048)

    # Pad N to a big row tile instead of shrinking tiles (padded rows sliced off below).
    tn, n_pad = _row_tiling(n)
    if n_pad != n:
        s_flat = jnp.pad(s_flat, ((0, n_pad - n), (0, 0)))
        v_rows = jnp.pad(v_rows, ((0, n_pad - n), (0, 0)))

    # K3: attn[n] = (s_flat[n] @ w0 + b0) . V[n % B] + (bb.wo + bo)
    attn = tucker_attn(s_flat, v_rows, params['w0_bf16'], params['b0'], params['c0'], tn=tn)

    # .view(S, B).transpose(0, 1) -> softmax over S -> weighted read on native know layout.
    attn_bs = attn[:n, 0].reshape(s, b).T                                                   # (B, S)
    read = softmax_read(attn_bs.reshape(b, 1, s), know)                                     # (B, D)
    return read


# ----------------------------- pure-JAX reference (explicit Tucker) -----------------------------

def _reference_forward(params, memory, know, control):
    b, d, s = know.shape
    mem = memory[-1] @ params['w_mem_bf16'].astype(jnp.float32) + params['b_mem']
    s_flat = (mem[:, :, None] * know).reshape(-1, DIM)
    x0 = s_flat @ params['w0'] + params['b0']
    x1 = jnp.tile(control[-1], (s, 1)) @ params['w0'] + params['b0']
    z = jnp.einsum('ni,kij,nj->nk', x0, params['wb'], x1) + params['bb']
    attn = z @ params['wo'] + params['bo']
    attn = attn.reshape(s, b).T
    p = jax.nn.softmax(attn, axis=1)
    return jnp.einsum('bs,bds->bd', p, know)


if __name__ == "__main__":
    key = jax.random.PRNGKey(0)
    kp, km, kk, kc = jax.random.split(key, 4)
    B, S = 2, 8      # DIM=2048 is fixed by the module
    params = init_params(kp)
    memory = [jax.random.normal(km, (B, DIM), jnp.float32)]
    know = jax.random.normal(kk, (B, DIM, S), jnp.float32)
    control = [jax.random.normal(kc, (B, DIM), jnp.float32)]

    read = read_unit_forward(params, memory, know, control)
    jax.block_until_ready(read)
    assert read.shape == (B, DIM) and read.dtype == jnp.float32

    # Numerical check against the explicit (un-fused) Tucker reference.
    # Loose tolerance: bf16 weight/activation streaming + approx softmax reciprocal vs f32 XLA.
    ref = _reference_forward(params, memory, know, control)
    err = float(jnp.max(jnp.abs(read - ref)))
    assert err < 1e-1, f"mismatch vs reference: max abs err = {err}"
    print("KERNEL_OK")
</pallas_src>

<mosaic_0001>
module attributes {stable_mosaic.version = 11 : i64} {
  func.func @_mem_linear_kernel(%arg0: i32, %arg1: memref<2x2048xbf16, #tpu.memory_space<vmem>>, %arg2: memref<2048x1024xbf16, #tpu.memory_space<vmem>>, %arg3: memref<1x1024xf32, #tpu.memory_space<vmem>>, %arg4: memref<2x1024xf32, #tpu.memory_space<vmem>>) attributes {dimension_semantics = [#tpu.dimension_semantics<parallel>], iteration_bounds = array<i64: 2>, scalar_prefetch = 0 : i64, scratch_operands = 0 : i64, tpu.core_type = #tpu.core_type<tc>, window_params = [{pipeline_mode = #tpu.pipeline_mode<synchronous>, transform_indices = @transform_0, window_bounds = array<i64: 2, 2048>}, {transform_indices = @transform_1, window_bounds = array<i64: 2048, 1024>}, {transform_indices = @transform_2, window_bounds = array<i64: 1, 1024>}, {transform_indices = @transform_3, window_bounds = array<i64: 2, 1024>}]} {
    %c0 = arith.constant 0 : index
    %c0_0 = arith.constant 0 : index
    %0 = vector.load %arg1[%c0, %c0_0] : memref<2x2048xbf16, #tpu.memory_space<vmem>>, vector<2x2048xbf16>
    %c0_1 = arith.constant 0 : index
    %c0_2 = arith.constant 0 : index
    %1 = vector.load %arg2[%c0_1, %c0_2] : memref<2048x1024xbf16, #tpu.memory_space<vmem>>, vector<2048x1024xbf16>
    %cst = arith.constant dense<0.000000e+00> : vector<2x1024xf32>
    %2 = tpu.matmul %0, %1, %cst {dimension_numbers = #tpu.dot_dimension_numbers<[1], [0], [0], [1], [0, 0, 1, 1], [], []>} : vector<2x2048xbf16>, vector<2048x1024xbf16>, vector<2x1024xf32> -> vector<2x1024xf32>
    %c0_3 = arith.constant 0 : index
    %c0_4 = arith.constant 0 : index
    %3 = vector.load %arg3[%c0_3, %c0_4] : memref<1x1024xf32, #tpu.memory_space<vmem>>, vector<1x1024xf32>
    %4 = vector.broadcast %3 : vector<1x1024xf32> to vector<2x1024xf32>
    %5 = arith.addf %2, %4 : vector<2x1024xf32>
    %c0_5 = arith.constant 0 : index
    %c0_6 = arith.constant 0 : index
    %6 = vector.load %arg4[%c0_5, %c0_6] : memref<2x1024xf32, #tpu.memory_space<vmem>>, vector<2x1024xf32>
    tpu.vector_store %arg4[%c0_5, %c0_6], %5 {strides = array<i32>} : memref<2x1024xf32, #tpu.memory_space<vmem>>, vector<2x1024xf32>,
    return
  }
  func.func @transform_0(%arg0: i32) -> (i32, i32) {
    %c0_i32 = arith.constant 0 : i32
    %c0_i32_0 = arith.constant 0 : i32
    %c0_i32_1 = arith.constant 0 : i32
    return %c0_i32, %c0_i32_0 : i32, i32
  }
  func.func @transform_1(%arg0: i32) -> (i32, i32) {
    %c0_i32 = arith.constant 0 : i32
    %c0_i32_0 = arith.constant 0 : i32
    return %c0_i32, %arg0 : i32, i32
  }
  func.func @transform_2(%arg0: i32) -> (i32, i32) {
    %c0_i32 = arith.constant 0 : i32
    %c0_i32_0 = arith.constant 0 : i32
    return %c0_i32, %arg0 : i32, i32
  }
  func.func @transform_3(%arg0: i32) -> (i32, i32) {
    %c0_i32 = arith.constant 0 : i32
    %c0_i32_0 = arith.constant 0 : i32
    return %c0_i32, %arg0 : i32, i32
  }
}

module attributes {stable_mosaic.version = 11 : i64} {
  func.func @_tucker_attn_kernel(%arg0: i32, %arg1: memref<16x2048xbf16, #tpu.memory_space<vmem>>, %arg2: memref<16x50xf32, #tpu.memory_space<vmem>>, %arg3: memref<2048x50xbf16, #tpu.memory_space<vmem>>, %arg4: memref<1x50xf32, #tpu.memory_space<vmem>>, %arg5: memref<1x1xf32, #tpu.memory_space<vmem>>, %arg6: memref<16x1xf32, #tpu.memory_space<vmem>>) attributes {dimension_semantics = [#tpu.dimension_semantics<parallel>], iteration_bounds = array<i64: 1>, scalar_prefetch = 0 : i64, scratch_operands = 0 : i64, tpu.core_type = #tpu.core_type<tc>, window_params = [{transform_indices = @transform_0, window_bounds = array<i64: 16, 2048>}, {transform_indices = @transform_1, window_bounds = array<i64: 16, 50>}, {pipeline_mode = #tpu.pipeline_mode<synchronous>, transform_indices = @transform_2, window_bounds = array<i64: 2048, 50>}, {pipeline_mode = #tpu.pipeline_mode<synchronous>, transform_indices = @transform_3, window_bounds = array<i64: 1, 50>}, {pipeline_mode = #tpu.pipeline_mode<synchronous>, transform_indices = @transform_4, window_bounds = array<i64: 1, 1>}, {transform_indices = @transform_5, window_bounds = array<i64: 16, 1>}]} {
    %c0 = arith.constant 0 : index
    %c0_0 = arith.constant 0 : index
    %0 = vector.load %arg1[%c0, %c0_0] : memref<16x2048xbf16, #tpu.memory_space<vmem>>, vector<16x2048xbf16>
    %c0_1 = arith.constant 0 : index
    %c0_2 = arith.constant 0 : index
    %1 = vector.load %arg3[%c0_1, %c0_2] : memref<2048x50xbf16, #tpu.memory_space<vmem>>, vector<2048x50xbf16>
    %cst = arith.constant dense<0.000000e+00> : vector<16x50xf32>
    %2 = tpu.matmul %0, %1, %cst {dimension_numbers = #tpu.dot_dimension_numbers<[1], [0], [0], [1], [0, 0, 1, 1], [], []>} : vector<16x2048xbf16>, vector<2048x50xbf16>, vector<16x50xf32> -> vector<16x50xf32>
    %c0_3 = arith.constant 0 : index
    %c0_4 = arith.constant 0 : index
    %3 = vector.load %arg4[%c0_3, %c0_4] : memref<1x50xf32, #tpu.memory_space<vmem>>, vector<1x50xf32>
    %4 = vector.broadcast %3 : vector<1x50xf32> to vector<16x50xf32>
    %5 = arith.addf %2, %4 : vector<16x50xf32>
    %c0_5 = arith.constant 0 : index
    %c0_6 = arith.constant 0 : index
    %6 = vector.load %arg2[%c0_5, %c0_6] : memref<16x50xf32, #tpu.memory_space<vmem>>, vector<16x50xf32>
    %7 = arith.mulf %5, %6 : vector<16x50xf32>
    %cst_7 = arith.constant dense<0.000000e+00> : vector<16xf32>
    %8 = vector.multi_reduction <add>, %7, %cst_7 [1] : vector<16x50xf32> to vector<16xf32>
    %9 = vector.shape_cast %8 : vector<16xf32> to vector<16x1xf32>
    %c0_8 = arith.constant 0 : index
    %c0_9 = arith.constant 0 : index
    %10 = vector.load %arg5[%c0_8, %c0_9] : memref<1x1xf32, #tpu.memory_space<vmem>>, vector<1x1xf32>
    %11 = vector.broadcast %10 : vector<1x1xf32> to vector<16x1xf32>
    %12 = arith.addf %9, %11 : vector<16x1xf32>
    %c0_10 = arith.constant 0 : index
    %c0_11 = arith.constant 0 : index
    %13 = vector.load %arg6[%c0_10, %c0_11] : memref<16x1xf32, #tpu.memory_space<vmem>>, vector<16x1xf32>
    tpu.vector_store %arg6[%c0_10, %c0_11], %12 {strides = array<i32>} : memref<16x1xf32, #tpu.memory_space<vmem>>, vector<16x1xf32>,
    return
  }
  func.func @transform_0(%arg0: i32) -> (i32, i32) {
    %c0_i32 = arith.constant 0 : i32
    %c0_i32_0 = arith.constant 0 : i32
    return %arg0, %c0_i32 : i32, i32
  }
  func.func @transform_1(%arg0: i32) -> (i32, i32) {
    %c0_i32 = arith.constant 0 : i32
    %c0_i32_0 = arith.constant 0 : i32
    return %arg0, %c0_i32 : i32, i32
  }
  func.func @transform_2(%arg0: i32) -> (i32, i32) {
    %c0_i32 = arith.constant 0 : i32
    %c0_i32_0 = arith.constant 0 : i32
    %c0_i32_1 = arith.constant 0 : i32
    return %c0_i32, %c0_i32_0 : i32, i32
  }
  func.func @transform_3(%arg0: i32) -> (i32, i32) {
    %c0_i32 = arith.constant 0 : i32
    %c0_i32_0 = arith.constant 0 : i32
    %c0_i32_1 = arith.constant 0 : i32
    return %c0_i32, %c0_i32_0 : i32, i32
  }
  func.func @transform_4(%arg0: i32) -> (i32, i32) {
    %c0_i32 = arith.constant 0 : i32
    %c0_i32_0 = arith.constant 0 : i32
    %c0_i32_1 = arith.constant 0 : i32
    return %c0_i32, %c0_i32_0 : i32, i32
  }
  func.func @transform_5(%arg0: i32) -> (i32, i32) {
    %c0_i32 = arith.constant 0 : i32
    %c0_i32_0 = arith.constant 0 : i32
    return %arg0, %c0_i32 : i32, i32
  }
}

module attributes {stable_mosaic.version = 11 : i64} {
  func.func @_softmax_read_kernel(%arg0: i32, %arg1: i32, %arg2: memref<1x1x8xf32, #tpu.memory_space<vmem>>, %arg3: memref<1x2048x8xf32, #tpu.memory_space<vmem>>, %arg4: memref<1x1x2048xf32, #tpu.memory_space<vmem>>, %arg5: memref<1x8xf32, #tpu.memory_space<vmem>>) attributes {dimension_semantics = [#tpu.dimension_semantics<parallel>, #tpu.dimension_semantics<arbitrary>], iteration_bounds = array<i64: 2, 1>, scalar_prefetch = 0 : i64, scratch_operands = 1 : i64, tpu.core_type = #tpu.core_type<tc>, window_params = [{transform_indices = @transform_0, window_bounds = array<i64: 1, 1, 8>}, {transform_indices = @transform_1, window_bounds = array<i64: 1, 2048, 8>}, {transform_indices = @transform_2, window_bounds = array<i64: 1, 1, 2048>}]} {
    %c0_i32 = arith.constant 0 : i32
    %0 = arith.cmpi eq, %arg1, %c0_i32 : i32
    %1 = arith.extui %0 : i1 to i32
    %c0_i32_0 = arith.constant 0 : i32
    %2 = arith.cmpi ne, %1, %c0_i32_0 : i32
    scf.if %2 {
      %c0_8 = arith.constant 0 : index
      %c0_9 = arith.constant 0 : index
      %c0_10 = arith.constant 0 : index
      %10 = vector.load %arg2[%c0_8, %c0_9, %c0_10] : memref<1x1x8xf32, #tpu.memory_space<vmem>>, vector<1x1x8xf32>
      %11 = vector.shape_cast %10 : vector<1x1x8xf32> to vector<1x8xf32>
      %cst_11 = arith.constant dense<0xFF800000> : vector<1xf32>
      %12 = vector.multi_reduction <maximumf>, %11, %cst_11 [1] : vector<1x8xf32> to vector<1xf32>
      %13 = vector.shape_cast %12 : vector<1xf32> to vector<1x1xf32>
      %14 = vector.broadcast %13 : vector<1x1xf32> to vector<1x8xf32>
      %15 = arith.subf %11, %14 : vector<1x8xf32>
      %16 = math.exp %15 : vector<1x8xf32>
      %cst_12 = arith.constant dense<0.000000e+00> : vector<1xf32>
      %17 = vector.multi_reduction <add>, %16, %cst_12 [1] : vector<1x8xf32> to vector<1xf32>
      %18 = vector.shape_cast %17 : vector<1xf32> to vector<1x1xf32>
      %19 = tpu.reciprocal %18 {approx = true} : vector<1x1xf32> -> vector<1x1xf32>
      %20 = vector.broadcast %19 : vector<1x1xf32> to vector<1x8xf32>
      %21 = arith.mulf %16, %20 : vector<1x8xf32>
      %c0_13 = arith.constant 0 : index
      %c0_14 = arith.constant 0 : index
      %22 = vector.load %arg5[%c0_13, %c0_14] : memref<1x8xf32, #tpu.memory_space<vmem>>, vector<1x8xf32>
      tpu.vector_store %arg5[%c0_13, %c0_14], %21 {strides = array<i32>} : memref<1x8xf32, #tpu.memory_space<vmem>>, vector<1x8xf32>,
    } else {
    }
    %c0 = arith.constant 0 : index
    %c0_1 = arith.constant 0 : index
    %3 = vector.load %arg5[%c0, %c0_1] : memref<1x8xf32, #tpu.memory_space<vmem>>, vector<1x8xf32>
    %c0_2 = arith.constant 0 : index
    %c0_3 = arith.constant 0 : index
    %c0_4 = arith.constant 0 : index
    %4 = vector.load %arg3[%c0_2, %c0_3, %c0_4] : memref<1x2048x8xf32, #tpu.memory_space<vmem>>, vector<1x2048x8xf32>
    %5 = vector.shape_cast %4 : vector<1x2048x8xf32> to vector<2048x8xf32>
    "tpu.trace_start"() <{level = 10 : i32, message = "qs,ds->qd"}> : () -> ()
    %cst = arith.constant dense<0.000000e+00> : vector<1x2048xf32>
    %6 = tpu.matmul %3, %5, %cst {dimension_numbers = #tpu.dot_dimension_numbers<[1], [1], [0], [0], [0, 0, 1, 0], [], []>} : vector<1x8xf32>, vector<2048x8xf32>, vector<1x2048xf32> -> vector<1x2048xf32>
    "tpu.trace_stop"() : () -> ()
    %c0_5 = arith.constant 0 : index
    %c0_6 = arith.constant 0 : index
    %c0_7 = arith.constant 0 : index
    %7 = vector.load %arg4[%c0_5, %c0_6, %c0_7] : memref<1x1x2048xf32, #tpu.memory_space<vmem>>, vector<1x1x2048xf32>
    %8 = vector.shape_cast %7 : vector<1x1x2048xf32> to vector<1x2048xf32>
    %9 = vector.shape_cast %6 : vector<1x2048xf32> to vector<1x1x2048xf32>
    tpu.vector_store %arg4[%c0_5, %c0_6, %c0_7], %9 {strides = array<i32>} : memref<1x1x2048xf32, #tpu.memory_space<vmem>>, vector<1x1x2048xf32>,
    return
  }
  func.func @transform_0(%arg0: i32, %arg1: i32) -> (i32, i32, i32) {
    %c0_i32 = arith.constant 0 : i32
    %c0_i32_0 = arith.constant 0 : i32
    %c0_i32_1 = arith.constant 0 : i32
    return %arg0, %c0_i32, %c0_i32_0 : i32, i32, i32
  }
  func.func @transform_1(%arg0: i32, %arg1: i32) -> (i32, i32, i32) {
    %c0_i32 = arith.constant 0 : i32
    %c0_i32_0 = arith.constant 0 : i32
    return %arg0, %arg1, %c0_i32 : i32, i32, i32
  }
  func.func @transform_2(%arg0: i32, %arg1: i32) -> (i32, i32, i32) {
    %c0_i32 = arith.constant 0 : i32
    %c0_i32_0 = arith.constant 0 : i32
    return %arg0, %c0_i32, %arg1 : i32, i32, i32
  }
}

</mosaic_0001>

<bundles_post_ra>
// kernel: squeeze.2
= control target key start
LH: loop header
LB: loop body
LE: loop exit
PB: predicated region body
PF: predicated region fallthrough
CT: control target
= control target key end

     0   :  { %s66_s8 = smov 122   ;;  %s67_s9 = smov 118   ;;  %vm7_vm0 = vcmask 15360   ;;  %s117_s0 = inlined_call_operand.vmem [shape: f32[16], index: 0, kind: input, shape index: {}]   ;;  %s118_s1 = inlined_call_operand.vmem [shape: f32[8,2], index: 1, kind: output, shape index: {}]  }
   0x1   :  { %v4_v0 = vld [vmem:[%s117_s0] sm:$0x1]  ;;  %s65_s0 = smov 126   ;;  %s68_s10 = smov 124  }
   0x2   :  { %5 = vst [vmem:[#allocation0] sm:$0x1] %v4_v0  ;;  %s69_s11 = smov 120   ;;  %s70_s12 = smov 116  }
   0x3   :  { %s71_s13 = smov 114  }
   0x9   :  { %v9_v1 = vld [vmem:[#allocation0] sm:$0x1]  }
   0xa   :  { %v21_v2 = vld [vmem:[#allocation0] sm:$0x1]   ;;  %10 = vrot.lane.b32.xlu0 %v9_v1, %s65_s0 }
   0xb   :  { %22 = vrot.lane.b32.xlu1 %v21_v2, %s66_s8  ;;  %v33_v3 = vld [vmem:[#allocation0] sm:$0x1]  }
   0xc   :  { %34 = vrot.lane.b32.xlu2 %v33_v3, %s67_s9  ;;  %v15_v4 = vld [vmem:[#allocation0] sm:$0x1]  }
   0xd   :  { %v27_v5 = vld [vmem:[#allocation0] sm:$0x1]  }
   0xe   :  { %v39_v6 = vld [vmem:[#allocation0] sm:$0x1]  }
   0xf   :  { %v45_v7 = vld [vmem:[#allocation0] sm:$0x1]  }
  0x10   :  { %v6_v8 = vld [vmem:[#allocation0] sm:$0x1]  }
  0x11   :  { %8 = vst.msk [vmem:[%s118_s1] sm:$0x1] %vm7_vm0, %v6_v8  }
  0x12   :  { %16 = vrot.lane.b32.xlu0 %v15_v4, %s68_s10 }
  0x13   :  { %28 = vrot.lane.b32.xlu1 %v27_v5, %s69_s11 }
  0x14   :  { %40 = vrot.lane.b32.xlu2 %v39_v6, %s70_s12 }
  0x1a   :  { %46 = vrot.lane.b32.xlu0 %v45_v7, %s71_s13 }
  0x66   :  { %v35_v9 = vpop.permute.xlu2 %34  }
  0x67   :  { %55 = vst.msk [vmem:[%s118_s1 + $0x5] sm:$0x1] %vm7_vm0, %v35_v9  }
  0x6e   :  { %v41_v10 = vpop.permute.xlu2 %40  }
  0x6f   :  { %56 = vst.msk [vmem:[%s118_s1 + $0x6] sm:$0x1] %vm7_vm0, %v41_v10  }
  0x7c   :  { %v11_v11 = vpop.permute.xlu0 %10  }
  0x7d   :  { %v23_v12 = vpop.permute.xlu1 %22   ;;  %51 = vst.msk [vmem:[%s118_s1 + $0x1] sm:$0x1] %vm7_vm0, %v11_v11  }
  0x7e   :  { %53 = vst.msk [vmem:[%s118_s1 + $0x3] sm:$0x1] %vm7_vm0, %v23_v12  }
  0x84   :  { %v17_v13 = vpop.permute.xlu0 %16  }
  0x85   :  { %v29_v14 = vpop.permute.xlu1 %28   ;;  %52 = vst.msk [vmem:[%s118_s1 + $0x2] sm:$0x1] %vm7_vm0, %v17_v13  }
  0x86   :  { %54 = vst.msk [vmem:[%s118_s1 + $0x4] sm:$0x1] %vm7_vm0, %v29_v14  }
  0x8c   :  { %v47_v15 = vpop.permute.xlu0 %46  }
  0x8d   :  { %57 = vst.msk [vmem:[%s118_s1 + $0x7] sm:$0x1] %vm7_vm0, %v47_v15  }

// kernel: read_unit_forward.4
= control target key start
LH: loop header
LB: loop body
LE: loop exit
PB: predicated region body
PF: predicated region fallthrough
CT: control target
= control target key end

     0   :  { %s2687_s0 = inlined_call_operand.vmem [shape: bf16[16,2048], index: 0, kind: input, shape index: {}]   ;;  %s2688_s1 = inlined_call_operand.vmem [shape: f32[16,50], index: 1, kind: input, shape index: {}]   ;;  %s2689_s2 = inlined_call_operand.vmem [shape: bf16[2048,50], index: 2, kind: input, shape index: {}]   ;;  %s2690_s3 = inlined_call_operand.hbm [shape: f32[1,50], index: 3, kind: input, shape index: {}]   ;;  %s2691_s4 = inlined_call_operand.<no memory space> [shape: f32[1,1], index: 4, kind: input, shape index: {}]   ;;  %s2692_s5 = inlined_call_operand.vmem [shape: f32[16,1], index: 5, kind: output, shape index: {}]  }
   0x1   :  { %v10_v0 = vstv %s2691_s4 }
   0x2   :  { %11 = vst [vmem:[#allocation2] sm:$0x1] %v10_v0 }
   0x3   :  { %12 = vsyncpa [#allocation4], 0  ;;  %s24_s22 = sshll.u32 %s2690_s3, 4  ;;  %s2158_s23 = smov [#allocation3]   ;;  %s25_s22 = int_to_ptr.hbm [resolvable:$true] %s24_s22 }
   0x4   :  { %s26_s24 = sshll.u32 %s2158_s23, 4  ;;  %s27_s24 = int_to_ptr.vmem [resolvable:$true] %s26_s24 }
   0x5   :  { %29 = dma.hbm_to_vmem [thread:$0]  %s25_s22, 16, %s27_s24, [#allocation4]  }
   0x6   :  { %2156 = dma.done.wait [#allocation4], 16  }
   0x7   :  { %2157 = vsyncadd [#allocation4], 4294967280  ;;  %v2008_v1 = vld [vmem:[%s2689_s2 + $0x38] sm:$0xff]  ;;  %v2007_v5 = vld [vmem:[%s2689_s2 + $0x30] sm:$0xff]  ;;  %vm1388_vm0 = vcmask 408576   ;;  %vm1401_vm1 = vcmask 7168  }
   0x8   :  { %v2016_v2 = vld [vmem:[%s2689_s2 + $0x78] sm:$0xff]  ;;  %1160 = vmatpush.bf16.msra.mxu0 %v2008_v1  ;;  %v2015_v6 = vld [vmem:[%s2689_s2 + $0x70] sm:$0xff]  ;;  %v2006_v9 = vld [vmem:[%s2689_s2 + $0x28] sm:$0xff] }
   0x9   :  { %v2024_v3 = vld [vmem:[%s2689_s2 + $0xb8] sm:$0xff]  ;;  %1174 = vmatpush.bf16.msra.mxu1 %v2016_v2  ;;  %v2023_v7 = vld [vmem:[%s2689_s2 + $0xb0] sm:$0xff]  ;;  %v2014_v10 = vld [vmem:[%s2689_s2 + $0x68] sm:$0xff] }
   0xa   :  { %v2032_v4 = vld [vmem:[%s2689_s2 + $0xf8] sm:$0xff]  ;;  %1188 = vmatpush.bf16.msra.mxu2 %v2024_v3  ;;  %v2031_v8 = vld [vmem:[%s2689_s2 + $0xf0] sm:$0xff]  ;;  %v2022_v11 = vld [vmem:[%s2689_s2 + $0xa8] sm:$0xff] }
   0xb   :  { %1202 = vmatpush.bf16.msra.mxu3 %v2032_v4  ;;  %v2030_v12 = vld [vmem:[%s2689_s2 + $0xe8] sm:$0xff]  ;;  %v2005_v13 = vld [vmem:[%s2689_s2 + $0x20] sm:$0xff]  ;;  %v2004_v17 = vld [vmem:[%s2689_s2 + $0x18] sm:$0xff] }
   0xc   :  { %1161 = vmatpush.bf16.msra.mxu0 %v2007_v5  ;;  %v2013_v14 = vld [vmem:[%s2689_s2 + $0x60] sm:$0xff]  ;;  %v2012_v18 = vld [vmem:[%s2689_s2 + $0x58] sm:$0xff]  ;;  %v2003_v21 = vld [vmem:[%s2689_s2 + $0x10] sm:$0xff] }
   0xd   :  { %1175 = vmatpush.bf16.msra.mxu1 %v2015_v6  ;;  %v2021_v15 = vld [vmem:[%s2689_s2 + $0xa0] sm:$0xff]  ;;  %v2020_v19 = vld [vmem:[%s2689_s2 + $0x98] sm:$0xff]  ;;  %v2011_v22 = vld [vmem:[%s2689_s2 + $0x50] sm:$0xff] }
   0xe   :  { %1189 = vmatpush.bf16.msra.mxu2 %v2023_v7  ;;  %v2029_v16 = vld [vmem:[%s2689_s2 + $0xe0] sm:$0xff]  ;;  %v2028_v20 = vld [vmem:[%s2689_s2 + $0xd8] sm:$0xff]  ;;  %v2019_v23 = vld [vmem:[%s2689_s2 + $0x90] sm:$0xff] }
   0xf   :  { %1203 = vmatpush.bf16.msra.mxu3 %v2031_v8  ;;  %v2027_v24 = vld [vmem:[%s2689_s2 + $0xd0] sm:$0xff]  ;;  %v2002_v25 = vld [vmem:[%s2689_s2 + $0x8] sm:$0xff]  ;;  %v2001_v29 = vld [vmem:[%s2689_s2] sm:$0xff] }
  0x10   :  { %1162 = vmatpush.bf16.msra.mxu0 %v2006_v9  ;;  %v2010_v26 = vld [vmem:[%s2689_s2 + $0x48] sm:$0xff]  ;;  %v2009_v30 = vld [vmem:[%s2689_s2 + $0x40] sm:$0xff]  ;;  %v2040_v33 = vld [vmem:[%s2689_s2 + $0x138] sm:$0xff] }
  0x11   :  { %1176 = vmatpush.bf16.msra.mxu1 %v2014_v10  ;;  %v2018_v27 = vld [vmem:[%s2689_s2 + $0x88] sm:$0xff]  ;;  %v2017_v31 = vld [vmem:[%s2689_s2 + $0x80] sm:$0xff]  ;;  %v2048_v34 = vld [vmem:[%s2689_s2 + $0x178] sm:$0xff] }
  0x12   :  { %1190 = vmatpush.bf16.msra.mxu2 %v2022_v11  ;;  %v2026_v28 = vld [vmem:[%s2689_s2 + $0xc8] sm:$0xff]  ;;  %v2025_v32 = vld [vmem:[%s2689_s2 + $0xc0] sm:$0xff]  ;;  %v2056_v43 = vld [vmem:[%s2689_s2 + $0x1b8] sm:$0xff] }
  0x13   :  { %1204 = vmatpush.bf16.msra.mxu3 %v2030_v12  ;;  %v1411_v35 = vld [vmem:[%s2687_s0] sm:$0xf]  ;;  %v1419_v37 = vld [vmem:[%s2687_s0 + $0x8] sm:$0xf]  ;;  %v1985_v39 = vld [vmem:[%s2687_s0 + $0x4] sm:$0xf] }
  0x14   :  { %1163 = vmatpush.bf16.msra.mxu0 %v2005_v13  ;;  %v1993_v36 = vld [vmem:[%s2687_s0 + $0x3c] sm:$0xf0]  ;;  %v1994_v38 = vld [vmem:[%s2687_s0 + $0x44] sm:$0xf0]  ;;  %v1413_v40 = vld [vmem:[%s2687_s0 + $0x40] sm:$0xf0] }
  0x15   :  { %1177 = vmatpush.bf16.msra.mxu1 %v2013_v14  ;;  %v1986_v41 = vld [vmem:[%s2687_s0 + $0xc] sm:$0xf]  ;;  %v2064_v44 = vld [vmem:[%s2689_s2 + $0x1f8] sm:$0xff]  ;;  %v1412_v45 = vor.u32 %v1993_v36, %v1411_v35  ;;  %v1420_v46 = vor.u32 %v1994_v38, %v1419_v37  ;;  %v1416_v47 = vor.u32 %v1985_v39, %v1413_v40  ;;  %v2039_v49 = vld [vmem:[%s2689_s2 + $0x130] sm:$0xff] }
  0x16   :  { %1191 = vmatpush.bf16.msra.mxu2 %v2021_v15  ;;  %v1421_v42 = vld [vmem:[%s2687_s0 + $0x48] sm:$0xf0]  ;;  %v2047_v50 = vld [vmem:[%s2689_s2 + $0x170] sm:$0xff]  ;;  %v2037_v57 = vld [vmem:[%s2689_s2 + $0x120] sm:$0xff] }
  0x17   :  { %1205 = vmatpush.bf16.msra.mxu3 %v2029_v16  ;;  %v1424_v48 = vor.u32 %v1986_v41, %v1421_v42  ;;  %v2055_v51 = vld [vmem:[%s2689_s2 + $0x1b0] sm:$0xff]  ;;  %v2038_v53 = vld [vmem:[%s2689_s2 + $0x128] sm:$0xff]  ;;  %v2045_v58 = vld [vmem:[%s2689_s2 + $0x160] sm:$0xff] }
  0x18   :  { %1164 = vmatpush.bf16.msra.mxu0 %v2004_v17  ;;  %v2063_v52 = vld [vmem:[%s2689_s2 + $0x1f0] sm:$0xff]  ;;  %v2046_v54 = vld [vmem:[%s2689_s2 + $0x168] sm:$0xff]  ;;  %v2053_v59 = vld [vmem:[%s2689_s2 + $0x1a0] sm:$0xff] }
  0x19   :  { %1178 = vmatpush.bf16.msra.mxu1 %v2012_v18  ;;  %v2054_v55 = vld [vmem:[%s2689_s2 + $0x1a8] sm:$0xff]  ;;  %v2061_v60 = vld [vmem:[%s2689_s2 + $0x1e0] sm:$0xff]  ;;  %v2036_v61 = vld [vmem:[%s2689_s2 + $0x118] sm:$0xff] }
  0x1a   :  { %1192 = vmatpush.bf16.msra.mxu2 %v2020_v19  ;;  %v2062_v56 = vld [vmem:[%s2689_s2 + $0x1e8] sm:$0xff]  ;;  %v2044_v62 = vld [vmem:[%s2689_s2 + $0x158] sm:$0xff]  ;;  %v2035_v1 = vld [vmem:[%s2689_s2 + $0x110] sm:$0xff] }
  0x1b   :  { %1206 = vmatpush.bf16.msra.mxu3 %v2028_v20  ;;  %v2052_v63 = vld [vmem:[%s2689_s2 + $0x198] sm:$0xff]  ;;  %v2043_v2 = vld [vmem:[%s2689_s2 + $0x150] sm:$0xff]  ;;  %v2034_v5 = vld [vmem:[%s2689_s2 + $0x108] sm:$0xff] }
  0x1c   :  { %1165 = vmatpush.bf16.msra.mxu0 %v2003_v21  ;;  %v2060_v0 = vld [vmem:[%s2689_s2 + $0x1d8] sm:$0xff]  ;;  %v2051_v3 = vld [vmem:[%s2689_s2 + $0x190] sm:$0xff]  ;;  %v2042_v6 = vld [vmem:[%s2689_s2 + $0x148] sm:$0xff] }
  0x1d   :  { %1179 = vmatpush.bf16.msra.mxu1 %v2011_v22  ;;  %v2059_v4 = vld [vmem:[%s2689_s2 + $0x1d0] sm:$0xff]  ;;  %v2050_v7 = vld [vmem:[%s2689_s2 + $0x188] sm:$0xff]  ;;  %v2033_v9 = vld [vmem:[%s2689_s2 + $0x100] sm:$0xff] }
  0x1e   :  { %1193 = vmatpush.bf16.msra.mxu2 %v2019_v23  ;;  %v2058_v8 = vld [vmem:[%s2689_s2 + $0x1c8] sm:$0xff]  ;;  %v2041_v10 = vld [vmem:[%s2689_s2 + $0x140] sm:$0xff]  ;;  %v2072_v13 = vld [vmem:[%s2689_s2 + $0x238] sm:$0xff] }
  0x1f   :  { %1207 = vmatpush.bf16.msra.mxu3 %v2027_v24  ;;  %v2049_v11 = vld [vmem:[%s2689_s2 + $0x180] sm:$0xff]  ;;  %v2080_v14 = vld [vmem:[%s2689_s2 + $0x278] sm:$0xff]  ;;  %v1427_v15 = vld [vmem:[%s2687_s0 + $0x10] sm:$0xf] }
  0x20   :  { %1166 = vmatpush.bf16.msra.mxu0 %v2002_v25  ;;  %v2057_v12 = vld [vmem:[%s2689_s2 + $0x1c0] sm:$0xff]  ;;  %v1995_v16 = vld [vmem:[%s2687_s0 + $0x4c] sm:$0xf0]  ;;  %v1435_v17 = vld [vmem:[%s2687_s0 + $0x18] sm:$0xf] }
  0x21   :  { %1180 = vmatpush.bf16.msra.mxu1 %v2010_v26  ;;  %v1996_v18 = vld [vmem:[%s2687_s0 + $0x54] sm:$0xf0]  ;;  %v1987_v19 = vld [vmem:[%s2687_s0 + $0x14] sm:$0xf]  ;;  %v1988_v21 = vld [vmem:[%s2687_s0 + $0x1c] sm:$0xf]  ;;  %v1428_v25 = vor.u32 %v1995_v16, %v1427_v15 }
  0x22   :  { %1194 = vmatpush.bf16.msra.mxu2 %v2018_v27  ;;  %v1429_v20 = vld [vmem:[%s2687_s0 + $0x50] sm:$0xf0]  ;;  %v1437_v22 = vld [vmem:[%s2687_s0 + $0x58] sm:$0xf0]  ;;  %v1436_v26 = vor.u32 %v1996_v18, %v1435_v17  ;;  %v2086_v35 = vld [vmem:[%s2689_s2 + $0x2a8] sm:$0xff] }
  0x23   :  { %1208 = vmatpush.bf16.msra.mxu3 %v2026_v28  ;;  %v2088_v23 = vld [vmem:[%s2689_s2 + $0x2b8] sm:$0xff]  ;;  %v1432_v27 = vor.u32 %v1987_v19, %v1429_v20  ;;  %v1440_v28 = vor.u32 %v1988_v21, %v1437_v22  ;;  %v2094_v36 = vld [vmem:[%s2689_s2 + $0x2e8] sm:$0xff]  ;;  %v2069_v37 = vld [vmem:[%s2689_s2 + $0x220] sm:$0xff] }
  0x24   :  { %1167 = vmatpush.bf16.msra.mxu0 %v2001_v29  ;;  %v2096_v24 = vld [vmem:[%s2689_s2 + $0x2f8] sm:$0xff]  ;;  %v2071_v29 = vld [vmem:[%s2689_s2 + $0x230] sm:$0xff]  ;;  %v2077_v38 = vld [vmem:[%s2689_s2 + $0x260] sm:$0xff] }
  0x25   :  { %1181 = vmatpush.bf16.msra.mxu1 %v2009_v30  ;;  %v2079_v30 = vld [vmem:[%s2689_s2 + $0x270] sm:$0xff]  ;;  %v2085_v39 = vld [vmem:[%s2689_s2 + $0x2a0] sm:$0xff]  ;;  %v2068_v41 = vld [vmem:[%s2689_s2 + $0x218] sm:$0xff] }
  0x26   :  { %1195 = vmatpush.bf16.msra.mxu2 %v2017_v31  ;;  %v2087_v31 = vld [vmem:[%s2689_s2 + $0x2b0] sm:$0xff]  ;;  %v2093_v40 = vld [vmem:[%s2689_s2 + $0x2e0] sm:$0xff]  ;;  %v2076_v42 = vld [vmem:[%s2689_s2 + $0x258] sm:$0xff] }
  0x27   :  { %1209 = vmatpush.bf16.msra.mxu3 %v2025_v32  ;;  %1168 = vmatmul.bf16.vlgmr.msra.gmra.mxu0 %v1412_v45  ;;  %v2095_v32 = vld [vmem:[%s2689_s2 + $0x2f0] sm:$0xff]  ;;  %v2118_v15 = vld [vmem:[%s2689_s2 + $0x3a8] sm:$0xff]  ;;  %v2101_v17 = vld [vmem:[%s2689_s2 + $0x320] sm:$0xff] }
  0x28   :  { %1216 = vmatpush.bf16.msrb.mxu0 %v2040_v33  ;;  %1182 = vmatmul.bf16.vlgmr.msra.gmra.mxu1 %v1416_v47  ;;  %v2070_v33 = vld [vmem:[%s2689_s2 + $0x228] sm:$0xff]  ;;  %v2067_v45 = vld [vmem:[%s2689_s2 + $0x210] sm:$0xff]  ;;  %v2109_v18 = vld [vmem:[%s2689_s2 + $0x360] sm:$0xff] }
  0x29   :  { %1230 = vmatpush.bf16.msrb.mxu1 %v2048_v34  ;;  %1196 = vmatmul.bf16.vlgmr.msra.gmra.mxu2 %v1420_v46  ;;  %v2078_v34 = vld [vmem:[%s2689_s2 + $0x268] sm:$0xff]  ;;  %v2075_v46 = vld [vmem:[%s2689_s2 + $0x250] sm:$0xff]  ;;  %v2117_v19 = vld [vmem:[%s2689_s2 + $0x3a0] sm:$0xff] }
  0x2a   :  { %1244 = vmatpush.bf16.msrb.mxu2 %v2056_v43  ;;  %1210 = vmatmul.bf16.vlgmr.msra.gmra.mxu3 %v1424_v48  ;;  %v2084_v43 = vld [vmem:[%s2689_s2 + $0x298] sm:$0xff]  ;;  %v2083_v47 = vld [vmem:[%s2689_s2 + $0x290] sm:$0xff]  ;;  %v2126_v16 = vld [vmem:[%s2689_s2 + $0x3e8] sm:$0xff] }
  0x2b   :  { %1258 = vmatpush.bf16.msrb.mxu3 %v2064_v44  ;;  %v2092_v44 = vld [vmem:[%s2689_s2 + $0x2d8] sm:$0xff]  ;;  %v2091_v48 = vld [vmem:[%s2689_s2 + $0x2d0] sm:$0xff]  ;;  %v2125_v20 = vld [vmem:[%s2689_s2 + $0x3e0] sm:$0xff] }
  0x2c   :  { %1217 = vmatpush.bf16.msrb.mxu0 %v2039_v49  ;;  %v2066_v49 = vld [vmem:[%s2689_s2 + $0x208] sm:$0xff]  ;;  %v2100_v21 = vld [vmem:[%s2689_s2 + $0x318] sm:$0xff] }
  0x2d   :  { %1231 = vmatpush.bf16.msrb.mxu1 %v2047_v50  ;;  %v2074_v50 = vld [vmem:[%s2689_s2 + $0x248] sm:$0xff]  ;;  %v2108_v22 = vld [vmem:[%s2689_s2 + $0x358] sm:$0xff] }
  0x2e   :  { %1245 = vmatpush.bf16.msrb.mxu2 %v2055_v51  ;;  %v2082_v51 = vld [vmem:[%s2689_s2 + $0x288] sm:$0xff] }
  0x2f   :  { %1259 = vmatpush.bf16.msrb.mxu3 %v2063_v52  ;;  %v2090_v52 = vld [vmem:[%s2689_s2 + $0x2c8] sm:$0xff] }
  0x30   :  { %1218 = vmatpush.bf16.msrb.mxu0 %v2038_v53  ;;  %v2065_v53 = vld [vmem:[%s2689_s2 + $0x200] sm:$0xff] }
  0x31   :  { %1232 = vmatpush.bf16.msrb.mxu1 %v2046_v54  ;;  %v2073_v54 = vld [vmem:[%s2689_s2 + $0x240] sm:$0xff] }
  0x32   :  { %1246 = vmatpush.bf16.msrb.mxu2 %v2054_v55  ;;  %v2081_v55 = vld [vmem:[%s2689_s2 + $0x280] sm:$0xff] }
  0x33   :  { %1260 = vmatpush.bf16.msrb.mxu3 %v2062_v56  ;;  %v2089_v56 = vld [vmem:[%s2689_s2 + $0x2c0] sm:$0xff] }
  0x34   :  { %1219 = vmatpush.bf16.msrb.mxu0 %v2037_v57  ;;  %v2104_v57 = vld [vmem:[%s2689_s2 + $0x338] sm:$0xff] }
  0x35   :  { %1233 = vmatpush.bf16.msrb.mxu1 %v2045_v58  ;;  %v2112_v58 = vld [vmem:[%s2689_s2 + $0x378] sm:$0xff] }
  0x36   :  { %1247 = vmatpush.bf16.msrb.mxu2 %v2053_v59  ;;  %v1443_v59 = vld [vmem:[%s2687_s0 + $0x20] sm:$0xf] }
  0x37   :  { %1261 = vmatpush.bf16.msrb.mxu3 %v2061_v60  ;;  %v1997_v60 = vld [vmem:[%s2687_s0 + $0x5c] sm:$0xf0] }
  0x38   :  { %1220 = vmatpush.bf16.msrb.mxu0 %v2036_v61  ;;  %v1451_v61 = vld [vmem:[%s2687_s0 + $0x28] sm:$0xf] }
  0x39   :  { %1234 = vmatpush.bf16.msrb.mxu1 %v2044_v62  ;;  %v1998_v62 = vld [vmem:[%s2687_s0 + $0x64] sm:$0xf0] }
  0x3a   :  { %1248 = vmatpush.bf16.msrb.mxu2 %v2052_v63  ;;  %v1989_v63 = vld [vmem:[%s2687_s0 + $0x24] sm:$0xf] }
  0x3b   :  { %1262 = vmatpush.bf16.msrb.mxu3 %v2060_v0  ;;  %v1445_v0 = vld [vmem:[%s2687_s0 + $0x60] sm:$0xf0] }
  0x3c   :  { %1221 = vmatpush.bf16.msrb.mxu0 %v2035_v1  ;;  %v1990_v1 = vld [vmem:[%s2687_s0 + $0x2c] sm:$0xf] }
  0x3d   :  { %1235 = vmatpush.bf16.msrb.mxu1 %v2043_v2  ;;  %v1453_v2 = vld [vmem:[%s2687_s0 + $0x68] sm:$0xf0] }
  0x3e   :  { %1249 = vmatpush.bf16.msrb.mxu2 %v2051_v3  ;;  %v2120_v3 = vld [vmem:[%s2689_s2 + $0x3b8] sm:$0xff] }
  0x3f   :  { %1263 = vmatpush.bf16.msrb.mxu3 %v2059_v4  ;;  %v2128_v4 = vld [vmem:[%s2689_s2 + $0x3f8] sm:$0xff] }
  0x40   :  { %1222 = vmatpush.bf16.msrb.mxu0 %v2034_v5  ;;  %v1444_v5 = vor.u32 %v1997_v60, %v1443_v59 }
  0x41   :  { %1236 = vmatpush.bf16.msrb.mxu1 %v2042_v6  ;;  %v1452_v6 = vor.u32 %v1998_v62, %v1451_v61 }
  0x42   :  { %1250 = vmatpush.bf16.msrb.mxu2 %v2050_v7  ;;  %v1448_v7 = vor.u32 %v1989_v63, %v1445_v0 }
  0x43   :  { %1264 = vmatpush.bf16.msrb.mxu3 %v2058_v8  ;;  %v1456_v8 = vor.u32 %v1990_v1, %v1453_v2 }
  0x44   :  { %1223 = vmatpush.bf16.msrb.mxu0 %v2033_v9  ;;  %v2103_v9 = vld [vmem:[%s2689_s2 + $0x330] sm:$0xff] }
  0x45   :  { %1237 = vmatpush.bf16.msrb.mxu1 %v2041_v10  ;;  %v2111_v10 = vld [vmem:[%s2689_s2 + $0x370] sm:$0xff] }
  0x46   :  { %1251 = vmatpush.bf16.msrb.mxu2 %v2049_v11  ;;  %v2119_v11 = vld [vmem:[%s2689_s2 + $0x3b0] sm:$0xff] }
  0x47   :  { %1265 = vmatpush.bf16.msrb.mxu3 %v2057_v12  ;;  %1224 = vmatmul.bf16.vlgmr.msrb.gmra.mxu0 %v1428_v25  ;;  %v2127_v12 = vld [vmem:[%s2689_s2 + $0x3f0] sm:$0xff] }
  0x48   :  { %1272 = vmatpush.bf16.msra.mxu0 %v2072_v13  ;;  %1238 = vmatmul.bf16.vlgmr.msrb.gmra.mxu1 %v1432_v27  ;;  %v2102_v13 = vld [vmem:[%s2689_s2 + $0x328] sm:$0xff]  ;;  %v2099_v25 = vld [vmem:[%s2689_s2 + $0x310] sm:$0xff] }
  0x49   :  { %1286 = vmatpush.bf16.msra.mxu1 %v2080_v14  ;;  %1252 = vmatmul.bf16.vlgmr.msrb.gmra.mxu2 %v1436_v26  ;;  %v2110_v14 = vld [vmem:[%s2689_s2 + $0x368] sm:$0xff]  ;;  %v2107_v26 = vld [vmem:[%s2689_s2 + $0x350] sm:$0xff] }
  0x4a   :  { %1300 = vmatpush.bf16.msra.mxu2 %v2088_v23  ;;  %1266 = vmatmul.bf16.vlgmr.msrb.gmra.mxu3 %v1440_v28  ;;  %v2116_v23 = vld [vmem:[%s2689_s2 + $0x398] sm:$0xff]  ;;  %v2115_v27 = vld [vmem:[%s2689_s2 + $0x390] sm:$0xff] }
  0x4b   :  { %1314 = vmatpush.bf16.msra.mxu3 %v2096_v24  ;;  %v2124_v24 = vld [vmem:[%s2689_s2 + $0x3d8] sm:$0xff]  ;;  %v2123_v28 = vld [vmem:[%s2689_s2 + $0x3d0] sm:$0xff] }
  0x4c   :  { %1273 = vmatpush.bf16.msra.mxu0 %v2071_v29  ;;  %v2098_v29 = vld [vmem:[%s2689_s2 + $0x308] sm:$0xff] }
  0x4d   :  { %1287 = vmatpush.bf16.msra.mxu1 %v2079_v30  ;;  %v2106_v30 = vld [vmem:[%s2689_s2 + $0x348] sm:$0xff] }
  0x4e   :  { %1301 = vmatpush.bf16.msra.mxu2 %v2087_v31  ;;  %v2114_v31 = vld [vmem:[%s2689_s2 + $0x388] sm:$0xff] }
  0x4f   :  { %1315 = vmatpush.bf16.msra.mxu3 %v2095_v32  ;;  %v2122_v32 = vld [vmem:[%s2689_s2 + $0x3c8] sm:$0xff] }
  0x50   :  { %1274 = vmatpush.bf16.msra.mxu0 %v2070_v33  ;;  %v2097_v33 = vld [vmem:[%s2689_s2 + $0x300] sm:$0xff] }
  0x51   :  { %1288 = vmatpush.bf16.msra.mxu1 %v2078_v34  ;;  %v2105_v34 = vld [vmem:[%s2689_s2 + $0x340] sm:$0xff] }
  0x52   :  { %1302 = vmatpush.bf16.msra.mxu2 %v2086_v35  ;;  %v2113_v35 = vld [vmem:[%s2689_s2 + $0x380] sm:$0xff] }
  0x53   :  { %1316 = vmatpush.bf16.msra.mxu3 %v2094_v36  ;;  %v2121_v36 = vld [vmem:[%s2689_s2 + $0x3c0] sm:$0xff] }
  0x54   :  { %1275 = vmatpush.bf16.msra.mxu0 %v2069_v37  ;;  %v1459_v37 = vld [vmem:[%s2687_s0 + $0x30] sm:$0xf] }
  0x55   :  { %1289 = vmatpush.bf16.msra.mxu1 %v2077_v38  ;;  %v1999_v38 = vld [vmem:[%s2687_s0 + $0x6c] sm:$0xf0] }
  0x56   :  { %1303 = vmatpush.bf16.msra.mxu2 %v2085_v39  ;;  %v1991_v39 = vld [vmem:[%s2687_s0 + $0x34] sm:$0xf] }
  0x57   :  { %1317 = vmatpush.bf16.msra.mxu3 %v2093_v40  ;;  %v1461_v40 = vld [vmem:[%s2687_s0 + $0x70] sm:$0xf0] }
  0x58   :  { %1276 = vmatpush.bf16.msra.mxu0 %v2068_v41  ;;  %v1467_v41 = vld [vmem:[%s2687_s0 + $0x38] sm:$0xf] }
  0x59   :  { %1290 = vmatpush.bf16.msra.mxu1 %v2076_v42  ;;  %v2000_v42 = vld [vmem:[%s2687_s0 + $0x74] sm:$0xf0] }
  0x5a   :  { %1304 = vmatpush.bf16.msra.mxu2 %v2084_v43  ;;  %v1992_v43 = vld [vmem:[%s2687_s0 + $0x3c] sm:$0xf] }
  0x5b   :  { %1318 = vmatpush.bf16.msra.mxu3 %v2092_v44  ;;  %v1469_v44 = vld [vmem:[%s2687_s0 + $0x78] sm:$0xf0] }
  0x5c   :  { %1277 = vmatpush.bf16.msra.mxu0 %v2067_v45  ;;  %v1460_v45 = vor.u32 %v1999_v38, %v1459_v37 }
  0x5d   :  { %1291 = vmatpush.bf16.msra.mxu1 %v2075_v46  ;;  %v1464_v46 = vor.u32 %v1991_v39, %v1461_v40 }
  0x5e   :  { %1305 = vmatpush.bf16.msra.mxu2 %v2083_v47  ;;  %v1468_v47 = vor.u32 %v2000_v42, %v1467_v41  ;;  %v1384_v42 = vld [vmem:[%s2688_s1] sm:$0xff] }
  0x5f   :  { %1319 = vmatpush.bf16.msra.mxu3 %v2091_v48  ;;  %v1472_v48 = vor.u32 %v1992_v43, %v1469_v44 }
  0x60   :  { %1278 = vmatpush.bf16.msra.mxu0 %v2066_v49 }
  0x61   :  { %1292 = vmatpush.bf16.msra.mxu1 %v2074_v50 }
  0x62   :  { %1306 = vmatpush.bf16.msra.mxu2 %v2082_v51 }
  0x63   :  { %1320 = vmatpush.bf16.msra.mxu3 %v2090_v52 }
  0x64   :  { %1279 = vmatpush.bf16.msra.mxu0 %v2065_v53 }
  0x65   :  { %1293 = vmatpush.bf16.msra.mxu1 %v2073_v54  ;;  %v2130_v54 = vld [vmem:[#allocation3] ss:$0 sm:$0xff] }
  0x66   :  { %1307 = vmatpush.bf16.msra.mxu2 %v2081_v55 }
  0x67   :  { %1321 = vmatpush.bf16.msra.mxu3 %v2089_v56  ;;  %1280 = vmatmul.bf16.vlgmr.msra.gmra.mxu0 %v1444_v5 }
  0x68   :  { %1328 = vmatpush.bf16.msrb.mxu0 %v2104_v57  ;;  %1294 = vmatmul.bf16.vlgmr.msra.gmra.mxu1 %v1448_v7 }
  0x69   :  { %1342 = vmatpush.bf16.msrb.mxu1 %v2112_v58  ;;  %1308 = vmatmul.bf16.vlgmr.msra.gmra.mxu2 %v1452_v6 }
  0x6a   :  { %1356 = vmatpush.bf16.msrb.mxu2 %v2120_v3  ;;  %1322 = vmatmul.bf16.vlgmr.msra.gmra.mxu3 %v1456_v8 }
  0x6b   :  { %1370 = vmatpush.bf16.msrb.mxu3 %v2128_v4 }
  0x6c   :  { %1329 = vmatpush.bf16.msrb.mxu0 %v2103_v9 }
  0x6d   :  { %1343 = vmatpush.bf16.msrb.mxu1 %v2111_v10 }
  0x6e   :  { %1357 = vmatpush.bf16.msrb.mxu2 %v2119_v11 }
  0x6f   :  { %1371 = vmatpush.bf16.msrb.mxu3 %v2127_v12 }
  0x70   :  { %1330 = vmatpush.bf16.msrb.mxu0 %v2102_v13 }
  0x71   :  { %1344 = vmatpush.bf16.msrb.mxu1 %v2110_v14 }
  0x72   :  { %1358 = vmatpush.bf16.msrb.mxu2 %v2118_v15 }
  0x73   :  { %1372 = vmatpush.bf16.msrb.mxu3 %v2126_v16 }
  0x74   :  { %1331 = vmatpush.bf16.msrb.mxu0 %v2101_v17 }
  0x75   :  { %1345 = vmatpush.bf16.msrb.mxu1 %v2109_v18 }
  0x76   :  { %1359 = vmatpush.bf16.msrb.mxu2 %v2117_v19 }
  0x77   :  { %1373 = vmatpush.bf16.msrb.mxu3 %v2125_v20 }
  0x78   :  { %1332 = vmatpush.bf16.msrb.mxu0 %v2100_v21 }
  0x79   :  { %1346 = vmatpush.bf16.msrb.mxu1 %v2108_v22 }
  0x7a   :  { %1360 = vmatpush.bf16.msrb.mxu2 %v2116_v23 }
  0x7b   :  { %1374 = vmatpush.bf16.msrb.mxu3 %v2124_v24 }
  0x7c   :  { %1333 = vmatpush.bf16.msrb.mxu0 %v2099_v25 }
  0x7d   :  { %1347 = vmatpush.bf16.msrb.mxu1 %v2107_v26 }
  0x7e   :  { %1361 = vmatpush.bf16.msrb.mxu2 %v2115_v27 }
  0x7f   :  { %1375 = vmatpush.bf16.msrb.mxu3 %v2123_v28 }
  0x80   :  { %1334 = vmatpush.bf16.msrb.mxu0 %v2098_v29 }
  0x81   :  { %1348 = vmatpush.bf16.msrb.mxu1 %v2106_v30 }
  0x82   :  { %1362 = vmatpush.bf16.msrb.mxu2 %v2114_v31 }
  0x83   :  { %1376 = vmatpush.bf16.msrb.mxu3 %v2122_v32 }
  0x84   :  { %1335 = vmatpush.bf16.msrb.mxu0 %v2097_v33 }
  0x85   :  { %1349 = vmatpush.bf16.msrb.mxu1 %v2105_v34 }
  0x86   :  { %1363 = vmatpush.bf16.msrb.mxu2 %v2113_v35 }
  0x87   :  { %1377 = vmatpush.bf16.msrb.mxu3 %v2121_v36  ;;  %1336 = vmatmul.bf16.vlgmr.msrb.gmra.mxu0 %v1460_v45 }
  0x88   :  { %1350 = vmatmul.bf16.vlgmr.msrb.gmra.mxu1 %v1464_v46 }
  0x89   :  { %1364 = vmatmul.bf16.vlgmr.msrb.gmra.mxu2 %v1468_v47 }
  0x8a   :  { %1378 = vmatmul.bf16.vlgmr.msrb.gmra.mxu3 %v1472_v48 }
  0xa4   :  { %v1169_v49 = vpop.f32.mrf.mxu0 }
  0xa5   :  { %v1183_v50 = vpop.f32.mrf.mxu1  ;;  %v1170_v56 = vadd.f32 %v2130_v54, %v1169_v49 }
  0xa7   :  { %v1184_v59 = vadd.f32 %v1183_v50, %v1170_v56  ;;  %v2131_v56 = vld [vmem:[#allocation2] ss:$0 sm:$0xff] }
  0xac   :  { %v1197_v51 = vpop.f32.mrf.mxu2  ;;  %v1171_v53 = vpop.f32.mrf.mxu0 }
  0xad   :  { %v1211_v52 = vpop.f32.mrf.mxu3  ;;  %v1185_v55 = vpop.f32.mrf.mxu1  ;;  %v1198_v62 = vadd.f32 %v1197_v51, %v1184_v59  ;;  %v1172_v63 = vadd.f32 %v2130_v54, %v1171_v53 }
  0xaf   :  { %v1212_v2 = vadd.f32 %v1211_v52, %v1198_v62  ;;  %v1186_v3 = vadd.f32 %v1185_v55, %v1172_v63  ;;  %v1385_v52 = vld [vmem:[%s2688_s1 + $0x8] sm:$0xff] }
  0xb4   :  { %v1199_v57 = vpop.f32.mrf.mxu2 }
  0xb5   :  { %v1213_v58 = vpop.f32.mrf.mxu3  ;;  %v1200_v7 = vadd.f32 %v1199_v57, %v1186_v3 }
  0xb7   :  { %v1214_v11 = vadd.f32 %v1213_v58, %v1200_v7 }
  0xc4   :  { %v1225_v60 = vpop.f32.mrf.mxu0 }
  0xc5   :  { %v1239_v61 = vpop.f32.mrf.mxu1  ;;  %v1226_v5 = vadd.f32 %v1225_v60, %v1212_v2 }
  0xc7   :  { %v1240_v8 = vadd.f32 %v1239_v61, %v1226_v5 }
  0xcc   :  { %v1253_v0 = vpop.f32.mrf.mxu2  ;;  %v1227_v4 = vpop.f32.mrf.mxu0 }
  0xcd   :  { %v1267_v1 = vpop.f32.mrf.mxu3  ;;  %v1241_v6 = vpop.f32.mrf.mxu1  ;;  %v1254_v13 = vadd.f32 %v1253_v0, %v1240_v8  ;;  %v1228_v15 = vadd.f32 %v1227_v4, %v1214_v11 }
  0xcf   :  { %v1268_v16 = vadd.f32 %v1267_v1, %v1254_v13  ;;  %v1242_v19 = vadd.f32 %v1241_v6, %v1228_v15 }
  0xd4   :  { %v1255_v9 = vpop.f32.mrf.mxu2 }
  0xd5   :  { %v1269_v10 = vpop.f32.mrf.mxu3  ;;  %v1256_v21 = vadd.f32 %v1255_v9, %v1242_v19 }
  0xd7   :  { %v1270_v25 = vadd.f32 %v1269_v10, %v1256_v21 }
  0xe4   :  { %v1281_v12 = vpop.f32.mrf.mxu0 }
  0xe5   :  { %v1295_v14 = vpop.f32.mrf.mxu1  ;;  %v1282_v20 = vadd.f32 %v1281_v12, %v1268_v16 }
  0xe7   :  { %v1296_v23 = vadd.f32 %v1295_v14, %v1282_v20 }
  0xec   :  { %v1309_v17 = vpop.f32.mrf.mxu2  ;;  %v1283_v22 = vpop.f32.mrf.mxu0 }
  0xed   :  { %v1323_v18 = vpop.f32.mrf.mxu3  ;;  %v1297_v24 = vpop.f32.mrf.mxu1  ;;  %v1310_v26 = vadd.f32 %v1309_v17, %v1296_v23  ;;  %v1284_v27 = vadd.f32 %v1283_v22, %v1270_v25 }
  0xef   :  { %v1324_v30 = vadd.f32 %v1323_v18, %v1310_v26  ;;  %v1298_v32 = vadd.f32 %v1297_v24, %v1284_v27 }
  0xf4   :  { %v1311_v28 = vpop.f32.mrf.mxu2 }
  0xf5   :  { %v1325_v29 = vpop.f32.mrf.mxu3  ;;  %v1312_v35 = vadd.f32 %v1311_v28, %v1298_v32 }
  0xf7   :  { %v1326_v39 = vadd.f32 %v1325_v29, %v1312_v35 }
 0x104   :  { %v1337_v31 = vpop.f32.mrf.mxu0 }
 0x105   :  { %v1338_v33 = vadd.f32 %v1337_v31, %v1324_v30  ;;  %v1351_v34 = vpop.f32.mrf.mxu1 }
 0x107   :  { %v1352_v36 = vadd.f32 %v1351_v34, %v1338_v33 }
 0x10c   :  { %v1365_v37 = vpop.f32.mrf.mxu2  ;;  %v1339_v41 = vpop.f32.mrf.mxu0 }
 0x10d   :  { %v1379_v38 = vpop.f32.mrf.mxu3  ;;  %v1366_v40 = vadd.f32 %v1365_v37, %v1352_v36  ;;  %v1340_v44 = vadd.f32 %v1339_v41, %v1326_v39  ;;  %v1353_v46 = vpop.f32.mrf.mxu1 }
 0x10f   :  { %v1380_v43 = vadd.f32 %v1379_v38, %v1366_v40  ;;  %v1354_v47 = vadd.f32 %v1353_v46, %v1340_v44 }
 0x111   :  { %v1386_v45 = vmul.f32 %v1384_v42, %v1380_v43 }
 0x113   :  { %v1389_v48 = vsel %vm1388_vm0, %v1386_v45, 0.0 }
 0x114   :  { %v1367_v49 = vpop.f32.mrf.mxu2  ;;  %1390 = vadd.xlane.f32.xlu0 %v1389_v48 }
 0x115   :  { %v1368_v50 = vadd.f32 %v1367_v49, %v1354_v47  ;;  %v1381_v51 = vpop.f32.mrf.mxu3 }
 0x117   :  { %v1382_v53 = vadd.f32 %v1381_v51, %v1368_v50 }
 0x119   :  { %v1387_v54 = vmul.f32 %v1385_v52, %v1382_v53 }
 0x11b   :  { %v1392_v55 = vsel %vm1388_vm0, %v1387_v54, 0.0 }
 0x11c   :  { %1393 = vadd.xlane.f32.xlu0 %v1392_v55 }
 0x187   :  { %v1391_v57 = vpop.xlane.xlu0 %1390 }
 0x188   :  { %v1399_v58 = vadd.f32 %v2131_v56, %v1391_v57 }
 0x18a   :  { %1402 = vst.msk [vmem:[%s2692_s5] sm:$0xff] %vm1401_vm1, %v1399_v58 }
 0x18f   :  { %v1394_v59 = vpop.xlane.xlu0 %1393 }
 0x190   :  { %v1400_v60 = vadd.f32 %v2131_v56, %v1394_v59 }
 0x192   :  { %1403 = vst.msk [vmem:[%s2692_s5 + $0x8] sm:$0xff] %vm1401_vm1, %v1400_v60 }
 0x193   :  { %1408 = vsyncpa [#allocation4], 1 }

// kernel: read_unit_forward.5
= control target key start
LH: loop header
LB: loop body
LE: loop exit
PB: predicated region body
PF: predicated region fallthrough
CT: control target
= control target key end

     0   :  { %s2057_s9 = smov 0   ;;  %s2059_s10 = smov 0   ;;  %s2667_s0 = inlined_call_operand.vmem [shape: f32[2,1,8], index: 0, kind: input, shape index: {}]   ;;  %s2668_s1 = inlined_call_operand.vmem [shape: f32[2,2048,8], index: 1, kind: input, shape index: {}]   ;;  %s2669_s2 = inlined_call_operand.vmem [shape: f32[2,1,2048], index: 2, kind: output, shape index: {}]  }
   0x1   :  { %s2061_s11 = smov 0  }
   0x2 LB: > { %s24_s12 = sadd.s32 1, %s2036_s10  ;;  %p1711_p0 = scmp.ge.s32.totalorder %s2040_s11, 1  ;;  %s2040_s11 = sphi %s2061_s11, %s12_s11   ;;  %s2036_s10 = sphi %s2059_s10, %s2671_s10   ;;  %s2032_s9 = sphi %s2057_s9, %s2670_s9  }
   0x3   : > { %p26_p1 = scmp.ge.s32.totalorder %s24_s12, 2  ;;  %p141_p2 = scmp.lt.s32.totalorder %s2040_s11, 3 }
   0x5   : > { %s2673_s12 = smov (%p26_p1, %s24_s12), 0  ;;  %p142_p3 = pnand %p1711_p0, %p141_p2 }
   0x6   : > { %p173_p4 = scmp.lt.s32.totalorder (!%p142_p3), %s2032_s9, 1 }
   0x7   : > { %145 = sbr.rel (%p142_p3) target bundleno = 545 (0x221), region = 28 }
   0xc   : > { %s2675_s9 = smov (!%p173_p4, %s2032_s9), 1  ;;  %vm200_vm0 = vcmask 57344   ;;  %vm470_vm1 = vcmask 64512   ;;  %vm1594_vm2 = vcmask 1042434   ;;  %vm1592_vm3 = vcmask 1040384  }
   0xd   : > { %s175_s15 = scalar_lea.vmem %s2667_s0, %s2675_s9  ;;  %s1989_s16 = sshll.u32 %s2675_s9, 11  ;;  %vm1596_vm4 = vcmask 1041408   ;;  %vm1598_vm5 = vcmask 1044484   ;;  %vm1600_vm6 = vcmask 1046534   ;;  %vm1602_vm7 = vcmask 1045508  }
   0xe   : > { %v199_v0 = vld [vmem:[%s175_s15] sm:$0x1]  ;;  %s2086_s19 = scalar_lea.vmem %s2668_s1, %s1989_s16  ;;  %s1714_s20 = sshll.u32 %s2675_s9, 4  ;;  %vm1604_vm8 = vcmask 1043456  }
   0xf   : > { %v201_v1 = vsel %vm200_vm0, %v199_v0, -inf  ;;  %v229_v2 = vld [vmem:[%s2086_s19 + $0x78] sm:$0xff]  ;;  %v228_v6 = vld [vmem:[%s2086_s19 + $0x70] sm:$0xff]  ;;  %v227_v10 = vld [vmem:[%s2086_s19 + $0x68] sm:$0xff]  ;;  %s193_s23 = scalar_lea.vmem %s2669_s2, %s1714_s20 }
  0x10   : > { %202 = vmax.xlane.f32.xlu0 %v201_v1  ;;  %v245_v3 = vld [vmem:[%s2086_s19 + $0xf8] sm:$0xff]  ;;  %1715 = vmatpush.xpose.msk.msra.mxu0 %vm470_vm1, %v229_v2  ;;  %v244_v7 = vld [vmem:[%s2086_s19 + $0xf0] sm:$0xff]  ;;  %v243_v11 = vld [vmem:[%s2086_s19 + $0xe8] sm:$0xff] }
  0x11   : > { %v261_v4 = vld [vmem:[%s2086_s19 + $0x178] sm:$0xff]  ;;  %1732 = vmatpush.xpose.msk.msra.mxu1 %vm470_vm1, %v245_v3  ;;  %v260_v8 = vld [vmem:[%s2086_s19 + $0x170] sm:$0xff]  ;;  %v259_v12 = vld [vmem:[%s2086_s19 + $0x168] sm:$0xff] }
  0x12   : > { %v277_v5 = vld [vmem:[%s2086_s19 + $0x1f8] sm:$0xff]  ;;  %1749 = vmatpush.xpose.msk.msra.mxu2 %vm470_vm1, %v261_v4  ;;  %v276_v9 = vld [vmem:[%s2086_s19 + $0x1f0] sm:$0xff]  ;;  %v275_v13 = vld [vmem:[%s2086_s19 + $0x1e8] sm:$0xff] }
  0x13   : > { %1766 = vmatpush.xpose.msk.msra.mxu3 %vm470_vm1, %v277_v5  ;;  %v226_v14 = vld [vmem:[%s2086_s19 + $0x60] sm:$0xff]  ;;  %v225_v18 = vld [vmem:[%s2086_s19 + $0x58] sm:$0xff]  ;;  %v224_v22 = vld [vmem:[%s2086_s19 + $0x50] sm:$0xff] }
  0x14   : > { %1716 = vmatpush.xpose.msk.msra.mxu0 %vm470_vm1, %v228_v6  ;;  %v242_v15 = vld [vmem:[%s2086_s19 + $0xe0] sm:$0xff]  ;;  %v241_v19 = vld [vmem:[%s2086_s19 + $0xd8] sm:$0xff]  ;;  %v240_v23 = vld [vmem:[%s2086_s19 + $0xd0] sm:$0xff] }
  0x15   : > { %1733 = vmatpush.xpose.msk.msra.mxu1 %vm470_vm1, %v244_v7  ;;  %v258_v16 = vld [vmem:[%s2086_s19 + $0x160] sm:$0xff]  ;;  %v257_v20 = vld [vmem:[%s2086_s19 + $0x158] sm:$0xff]  ;;  %v256_v25 = vld [vmem:[%s2086_s19 + $0x150] sm:$0xff] }
  0x16   : > { %1750 = vmatpush.xpose.msk.msra.mxu2 %vm470_vm1, %v260_v8  ;;  %v274_v17 = vld [vmem:[%s2086_s19 + $0x1e0] sm:$0xff]  ;;  %v273_v21 = vld [vmem:[%s2086_s19 + $0x1d8] sm:$0xff]  ;;  %v272_v26 = vld [vmem:[%s2086_s19 + $0x1d0] sm:$0xff] }
  0x17   : > { %1767 = vmatpush.xpose.msk.msra.mxu3 %vm470_vm1, %v276_v9  ;;  %v223_v29 = vld [vmem:[%s2086_s19 + $0x48] sm:$0xff]  ;;  %v222_v33 = vld [vmem:[%s2086_s19 + $0x40] sm:$0xff]  ;;  %v221_v38 = vld [vmem:[%s2086_s19 + $0x38] sm:$0xff] }
  0x18   : > { %1717 = vmatpush.xpose.msk.msra.mxu0 %vm470_vm1, %v227_v10  ;;  %v239_v30 = vld [vmem:[%s2086_s19 + $0xc8] sm:$0xff]  ;;  %v238_v34 = vld [vmem:[%s2086_s19 + $0xc0] sm:$0xff]  ;;  %v237_v39 = vld [vmem:[%s2086_s19 + $0xb8] sm:$0xff] }
  0x19   : > { %1734 = vmatpush.xpose.msk.msra.mxu1 %vm470_vm1, %v243_v11  ;;  %v255_v31 = vld [vmem:[%s2086_s19 + $0x148] sm:$0xff]  ;;  %v254_v35 = vld [vmem:[%s2086_s19 + $0x140] sm:$0xff]  ;;  %v253_v41 = vld [vmem:[%s2086_s19 + $0x138] sm:$0xff] }
  0x1a   : > { %1751 = vmatpush.xpose.msk.msra.mxu2 %vm470_vm1, %v259_v12  ;;  %v271_v32 = vld [vmem:[%s2086_s19 + $0x1c8] sm:$0xff]  ;;  %v270_v36 = vld [vmem:[%s2086_s19 + $0x1c0] sm:$0xff]  ;;  %v269_v42 = vld [vmem:[%s2086_s19 + $0x1b8] sm:$0xff] }
  0x1b   : > { %1768 = vmatpush.xpose.msk.msra.mxu3 %vm470_vm1, %v275_v13  ;;  %v220_v43 = vld [vmem:[%s2086_s19 + $0x30] sm:$0xff]  ;;  %v219_v47 = vld [vmem:[%s2086_s19 + $0x28] sm:$0xff]  ;;  %v218_v51 = vld [vmem:[%s2086_s19 + $0x20] sm:$0xff] }
  0x1c   : > { %1718 = vmatpush.xpose.msk.msra.mxu0 %vm470_vm1, %v226_v14  ;;  %v236_v44 = vld [vmem:[%s2086_s19 + $0xb0] sm:$0xff]  ;;  %v235_v48 = vld [vmem:[%s2086_s19 + $0xa8] sm:$0xff]  ;;  %v234_v52 = vld [vmem:[%s2086_s19 + $0xa0] sm:$0xff] }
  0x1d   : > { %1735 = vmatpush.xpose.msk.msra.mxu1 %vm470_vm1, %v242_v15  ;;  %v252_v45 = vld [vmem:[%s2086_s19 + $0x130] sm:$0xff]  ;;  %v251_v49 = vld [vmem:[%s2086_s19 + $0x128] sm:$0xff]  ;;  %v250_v53 = vld [vmem:[%s2086_s19 + $0x120] sm:$0xff] }
  0x1e   : > { %1752 = vmatpush.xpose.msk.msra.mxu2 %vm470_vm1, %v258_v16  ;;  %v268_v46 = vld [vmem:[%s2086_s19 + $0x1b0] sm:$0xff]  ;;  %v267_v50 = vld [vmem:[%s2086_s19 + $0x1a8] sm:$0xff]  ;;  %v266_v54 = vld [vmem:[%s2086_s19 + $0x1a0] sm:$0xff] }
  0x1f   : > { %1769 = vmatpush.xpose.msk.msra.mxu3 %vm470_vm1, %v274_v17  ;;  %v217_v55 = vld [vmem:[%s2086_s19 + $0x18] sm:$0xff]  ;;  %v216_v59 = vld [vmem:[%s2086_s19 + $0x10] sm:$0xff]  ;;  %v215_v63 = vld [vmem:[%s2086_s19 + $0x8] sm:$0xff] }
  0x20   : > { %1719 = vmatpush.xpose.msk.msra.mxu0 %vm470_vm1, %v225_v18  ;;  %v233_v56 = vld [vmem:[%s2086_s19 + $0x98] sm:$0xff]  ;;  %v232_v60 = vld [vmem:[%s2086_s19 + $0x90] sm:$0xff]  ;;  %v247_v1 = vld [vmem:[%s2086_s19 + $0x108] sm:$0xff] }
  0x21   : > { %1736 = vmatpush.xpose.msk.msra.mxu1 %vm470_vm1, %v241_v19  ;;  %v249_v57 = vld [vmem:[%s2086_s19 + $0x118] sm:$0xff]  ;;  %v248_v61 = vld [vmem:[%s2086_s19 + $0x110] sm:$0xff]  ;;  %v263_v2 = vld [vmem:[%s2086_s19 + $0x188] sm:$0xff] }
  0x22   : > { %1753 = vmatpush.xpose.msk.msra.mxu2 %vm470_vm1, %v257_v20  ;;  %v265_v58 = vld [vmem:[%s2086_s19 + $0x198] sm:$0xff]  ;;  %v264_v62 = vld [vmem:[%s2086_s19 + $0x190] sm:$0xff]  ;;  %v214_v3 = vld [vmem:[%s2086_s19] sm:$0xff] }
  0x23   : > { %1770 = vmatpush.xpose.msk.msra.mxu3 %vm470_vm1, %v273_v21  ;;  %v230_v4 = vld [vmem:[%s2086_s19 + $0x80] sm:$0xff]  ;;  %v293_v7 = vld [vmem:[%s2086_s19 + $0x278] sm:$0xff]  ;;  %v292_v11 = vld [vmem:[%s2086_s19 + $0x270] sm:$0xff] }
  0x24   : > { %1720 = vmatpush.xpose.msk.msra.mxu0 %vm470_vm1, %v224_v22  ;;  %v246_v5 = vld [vmem:[%s2086_s19 + $0x100] sm:$0xff]  ;;  %v309_v8 = vld [vmem:[%s2086_s19 + $0x2f8] sm:$0xff]  ;;  %v308_v12 = vld [vmem:[%s2086_s19 + $0x2f0] sm:$0xff] }
  0x25   : > { %1737 = vmatpush.xpose.msk.msra.mxu1 %vm470_vm1, %v240_v23  ;;  %v262_v6 = vld [vmem:[%s2086_s19 + $0x180] sm:$0xff]  ;;  %v325_v9 = vld [vmem:[%s2086_s19 + $0x378] sm:$0xff]  ;;  %v324_v13 = vld [vmem:[%s2086_s19 + $0x370] sm:$0xff] }
  0x26   : > { %1754 = vmatpush.xpose.msk.msra.mxu2 %vm470_vm1, %v256_v25  ;;  %v341_v10 = vld [vmem:[%s2086_s19 + $0x3f8] sm:$0xff]  ;;  %v340_v14 = vld [vmem:[%s2086_s19 + $0x3f0] sm:$0xff]  ;;  %v291_v15 = vld [vmem:[%s2086_s19 + $0x268] sm:$0xff] }
  0x27   : > { %1771 = vmatpush.xpose.msk.msra.mxu3 %vm470_vm1, %v272_v26  ;;  %v307_v16 = vld [vmem:[%s2086_s19 + $0x2e8] sm:$0xff]  ;;  %v290_v19 = vld [vmem:[%s2086_s19 + $0x260] sm:$0xff]  ;;  %v289_v23 = vld [vmem:[%s2086_s19 + $0x258] sm:$0xff] }
  0x28   : > { %1721 = vmatpush.xpose.msk.msra.mxu0 %vm470_vm1, %v223_v29  ;;  %v323_v17 = vld [vmem:[%s2086_s19 + $0x368] sm:$0xff]  ;;  %v306_v20 = vld [vmem:[%s2086_s19 + $0x2e0] sm:$0xff]  ;;  %v321_v25 = vld [vmem:[%s2086_s19 + $0x358] sm:$0xff] }
  0x29   : > { %1738 = vmatpush.xpose.msk.msra.mxu1 %vm470_vm1, %v239_v30  ;;  %v339_v18 = vld [vmem:[%s2086_s19 + $0x3e8] sm:$0xff]  ;;  %v322_v21 = vld [vmem:[%s2086_s19 + $0x360] sm:$0xff]  ;;  %v337_v26 = vld [vmem:[%s2086_s19 + $0x3d8] sm:$0xff] }
  0x2a   : > { %1755 = vmatpush.xpose.msk.msra.mxu2 %vm470_vm1, %v255_v31  ;;  %v338_v22 = vld [vmem:[%s2086_s19 + $0x3e0] sm:$0xff]  ;;  %v320_v29 = vld [vmem:[%s2086_s19 + $0x350] sm:$0xff]  ;;  %v287_v31 = vld [vmem:[%s2086_s19 + $0x248] sm:$0xff] }
  0x2b   : > { %1772 = vmatpush.xpose.msk.msra.mxu3 %vm470_vm1, %v271_v32  ;;  %v336_v30 = vld [vmem:[%s2086_s19 + $0x3d0] sm:$0xff]  ;;  %v303_v32 = vld [vmem:[%s2086_s19 + $0x2c8] sm:$0xff] }
  0x2c   : > { %1722 = vmatpush.xpose.msk.msra.mxu0 %vm470_vm1, %v222_v33  ;;  %v319_v33 = vld [vmem:[%s2086_s19 + $0x348] sm:$0xff] }
  0x2d   : > { %1739 = vmatpush.xpose.msk.msra.mxu1 %vm470_vm1, %v238_v34  ;;  %v335_v34 = vld [vmem:[%s2086_s19 + $0x3c8] sm:$0xff] }
  0x2e   : > { %1756 = vmatpush.xpose.msk.msra.mxu2 %vm470_vm1, %v254_v35  ;;  %v286_v35 = vld [vmem:[%s2086_s19 + $0x240] sm:$0xff] }
  0x2f   : > { %1773 = vmatpush.xpose.msk.msra.mxu3 %vm470_vm1, %v270_v36  ;;  %v302_v36 = vld [vmem:[%s2086_s19 + $0x2c0] sm:$0xff] }
  0x30   : > { %1723 = vmatpush.xpose.msk.msra.mxu0 %vm470_vm1, %v221_v38  ;;  %v318_v38 = vld [vmem:[%s2086_s19 + $0x340] sm:$0xff] }
  0x31   : > { %1740 = vmatpush.xpose.msk.msra.mxu1 %vm470_vm1, %v237_v39  ;;  %v334_v39 = vld [vmem:[%s2086_s19 + $0x3c0] sm:$0xff] }
  0x32   : > { %1757 = vmatpush.xpose.msk.msra.mxu2 %vm470_vm1, %v253_v41  ;;  %v301_v41 = vld [vmem:[%s2086_s19 + $0x2b8] sm:$0xff] }
  0x33   : > { %1774 = vmatpush.xpose.msk.msra.mxu3 %vm470_vm1, %v269_v42  ;;  %v317_v42 = vld [vmem:[%s2086_s19 + $0x338] sm:$0xff] }
  0x34   : > { %1724 = vmatpush.xpose.msk.msra.mxu0 %vm470_vm1, %v220_v43  ;;  %v333_v43 = vld [vmem:[%s2086_s19 + $0x3b8] sm:$0xff] }
  0x35   : > { %1741 = vmatpush.xpose.msk.msra.mxu1 %vm470_vm1, %v236_v44  ;;  %v284_v44 = vld [vmem:[%s2086_s19 + $0x230] sm:$0xff] }
  0x36   : > { %1758 = vmatpush.xpose.msk.msra.mxu2 %vm470_vm1, %v252_v45  ;;  %v300_v45 = vld [vmem:[%s2086_s19 + $0x2b0] sm:$0xff] }
  0x37   : > { %1775 = vmatpush.xpose.msk.msra.mxu3 %vm470_vm1, %v268_v46  ;;  %v316_v46 = vld [vmem:[%s2086_s19 + $0x330] sm:$0xff] }
  0x38   : > { %1725 = vmatpush.xpose.msk.msra.mxu0 %vm470_vm1, %v219_v47  ;;  %v332_v47 = vld [vmem:[%s2086_s19 + $0x3b0] sm:$0xff] }
  0x39   : > { %1742 = vmatpush.xpose.msk.msra.mxu1 %vm470_vm1, %v235_v48  ;;  %v283_v48 = vld [vmem:[%s2086_s19 + $0x228] sm:$0xff] }
  0x3a   : > { %1759 = vmatpush.xpose.msk.msra.mxu2 %vm470_vm1, %v251_v49  ;;  %v299_v49 = vld [vmem:[%s2086_s19 + $0x2a8] sm:$0xff] }
  0x3b   : > { %1776 = vmatpush.xpose.msk.msra.mxu3 %vm470_vm1, %v267_v50  ;;  %v315_v50 = vld [vmem:[%s2086_s19 + $0x328] sm:$0xff] }
  0x3c   : > { %1726 = vmatpush.xpose.msk.msra.mxu0 %vm470_vm1, %v218_v51  ;;  %v331_v51 = vld [vmem:[%s2086_s19 + $0x3a8] sm:$0xff] }
  0x3d   : > { %1743 = vmatpush.xpose.msk.msra.mxu1 %vm470_vm1, %v234_v52  ;;  %v282_v52 = vld [vmem:[%s2086_s19 + $0x220] sm:$0xff] }
  0x3e   : > { %1760 = vmatpush.xpose.msk.msra.mxu2 %vm470_vm1, %v250_v53  ;;  %v298_v53 = vld [vmem:[%s2086_s19 + $0x2a0] sm:$0xff] }
  0x3f   : > { %1777 = vmatpush.xpose.msk.msra.mxu3 %vm470_vm1, %v266_v54  ;;  %v314_v54 = vld [vmem:[%s2086_s19 + $0x320] sm:$0xff] }
  0x40   : > { %1727 = vmatpush.xpose.msk.msra.mxu0 %vm470_vm1, %v217_v55  ;;  %v330_v55 = vld [vmem:[%s2086_s19 + $0x3a0] sm:$0xff] }
  0x41   : > { %1744 = vmatpush.xpose.msk.msra.mxu1 %vm470_vm1, %v233_v56  ;;  %v281_v56 = vld [vmem:[%s2086_s19 + $0x218] sm:$0xff] }
  0x42   : > { %1761 = vmatpush.xpose.msk.msra.mxu2 %vm470_vm1, %v249_v57  ;;  %v297_v57 = vld [vmem:[%s2086_s19 + $0x298] sm:$0xff] }
  0x43   : > { %1778 = vmatpush.xpose.msk.msra.mxu3 %vm470_vm1, %v265_v58  ;;  %v313_v58 = vld [vmem:[%s2086_s19 + $0x318] sm:$0xff] }
  0x44   : > { %1728 = vmatpush.xpose.msk.msra.mxu0 %vm470_vm1, %v216_v59  ;;  %v329_v59 = vld [vmem:[%s2086_s19 + $0x398] sm:$0xff] }
  0x45   : > { %1745 = vmatpush.xpose.msk.msra.mxu1 %vm470_vm1, %v232_v60  ;;  %v280_v60 = vld [vmem:[%s2086_s19 + $0x210] sm:$0xff] }
  0x46   : > { %1762 = vmatpush.xpose.msk.msra.mxu2 %vm470_vm1, %v248_v61  ;;  %v296_v61 = vld [vmem:[%s2086_s19 + $0x290] sm:$0xff] }
  0x47   : > { %1779 = vmatpush.xpose.msk.msra.mxu3 %vm470_vm1, %v264_v62  ;;  %v312_v62 = vld [vmem:[%s2086_s19 + $0x310] sm:$0xff] }
  0x48   : > { %1729 = vmatpush.xpose.msk.msra.mxu0 %vm470_vm1, %v215_v63  ;;  %v328_v63 = vld [vmem:[%s2086_s19 + $0x390] sm:$0xff] }
  0x4a   : > { %1763 = vmatpush.xpose.msk.msra.mxu2 %vm470_vm1, %v247_v1  ;;  %v295_v1 = vld [vmem:[%s2086_s19 + $0x288] sm:$0xff] }
  0x4b   : > { %1780 = vmatpush.xpose.msk.msra.mxu3 %vm470_vm1, %v263_v2  ;;  %v311_v2 = vld [vmem:[%s2086_s19 + $0x308] sm:$0xff] }
  0x4c   : > { %1730 = vmatpush.xpose.msk.msra.mxu0 %vm470_vm1, %v214_v3  ;;  %v327_v3 = vld [vmem:[%s2086_s19 + $0x388] sm:$0xff] }
  0x4e   : > { %1764 = vmatpush.xpose.msk.msra.mxu2 %vm470_vm1, %v246_v5  ;;  %v294_v5 = vld [vmem:[%s2086_s19 + $0x280] sm:$0xff] }
  0x4f   : > { %1781 = vmatpush.xpose.msk.msra.mxu3 %vm470_vm1, %v262_v6  ;;  %v310_v6 = vld [vmem:[%s2086_s19 + $0x300] sm:$0xff] }
  0x50   : > { %1783 = vmatpush.xpose.msk.msrb.mxu0 %vm470_vm1, %v293_v7  ;;  %v326_v7 = vld [vmem:[%s2086_s19 + $0x380] sm:$0xff] }
  0x52   : > { %1817 = vmatpush.xpose.msk.msrb.mxu2 %vm470_vm1, %v325_v9 }
  0x53   : > { %1834 = vmatpush.xpose.msk.msrb.mxu3 %vm470_vm1, %v341_v10 }
  0x54   : > { %1784 = vmatpush.xpose.msk.msrb.mxu0 %vm470_vm1, %v292_v11 }
  0x56   : > { %1818 = vmatpush.xpose.msk.msrb.mxu2 %vm470_vm1, %v324_v13  ;;  %v373_v13 = vld [vmem:[%s2086_s19 + $0x4f8] sm:$0xff] }
  0x57   : > { %1835 = vmatpush.xpose.msk.msrb.mxu3 %vm470_vm1, %v340_v14  ;;  %v389_v14 = vld [vmem:[%s2086_s19 + $0x578] sm:$0xff] }
  0x58   : > { %1785 = vmatpush.xpose.msk.msrb.mxu0 %vm470_vm1, %v291_v15  ;;  %v405_v15 = vld [vmem:[%s2086_s19 + $0x5f8] sm:$0xff] }
  0x5a   : > { %1819 = vmatpush.xpose.msk.msrb.mxu2 %vm470_vm1, %v323_v17  ;;  %v388_v17 = vld [vmem:[%s2086_s19 + $0x570] sm:$0xff] }
  0x5b   : > { %1836 = vmatpush.xpose.msk.msrb.mxu3 %vm470_vm1, %v339_v18  ;;  %v404_v18 = vld [vmem:[%s2086_s19 + $0x5f0] sm:$0xff] }
  0x5c   : > { %1786 = vmatpush.xpose.msk.msrb.mxu0 %vm470_vm1, %v290_v19  ;;  %v355_v19 = vld [vmem:[%s2086_s19 + $0x468] sm:$0xff] }
  0x5e   : > { %1820 = vmatpush.xpose.msk.msrb.mxu2 %vm470_vm1, %v322_v21  ;;  %v387_v21 = vld [vmem:[%s2086_s19 + $0x568] sm:$0xff] }
  0x5f   : > { %1837 = vmatpush.xpose.msk.msrb.mxu3 %vm470_vm1, %v338_v22  ;;  %v403_v22 = vld [vmem:[%s2086_s19 + $0x5e8] sm:$0xff] }
  0x60   : > { %1787 = vmatpush.xpose.msk.msrb.mxu0 %vm470_vm1, %v289_v23  ;;  %v354_v23 = vld [vmem:[%s2086_s19 + $0x460] sm:$0xff] }
  0x62   : > { %1821 = vmatpush.xpose.msk.msrb.mxu2 %vm470_vm1, %v321_v25  ;;  %v386_v25 = vld [vmem:[%s2086_s19 + $0x560] sm:$0xff] }
  0x63   : > { %1838 = vmatpush.xpose.msk.msrb.mxu3 %vm470_vm1, %v337_v26  ;;  %v402_v26 = vld [vmem:[%s2086_s19 + $0x5e0] sm:$0xff] }
  0x66   : > { %1822 = vmatpush.xpose.msk.msrb.mxu2 %vm470_vm1, %v320_v29  ;;  %v385_v29 = vld [vmem:[%s2086_s19 + $0x558] sm:$0xff] }
  0x67   : > { %1839 = vmatpush.xpose.msk.msrb.mxu3 %vm470_vm1, %v336_v30  ;;  %v401_v30 = vld [vmem:[%s2086_s19 + $0x5d8] sm:$0xff] }
  0x6a   : > { %1823 = vmatpush.xpose.msk.msrb.mxu2 %vm470_vm1, %v319_v33  ;;  %v384_v33 = vld [vmem:[%s2086_s19 + $0x550] sm:$0xff] }
  0x6b   : > { %1840 = vmatpush.xpose.msk.msrb.mxu3 %vm470_vm1, %v335_v34  ;;  %v400_v34 = vld [vmem:[%s2086_s19 + $0x5d0] sm:$0xff] }
  0x6e   : > { %1824 = vmatpush.xpose.msk.msrb.mxu2 %vm470_vm1, %v318_v38  ;;  %v383_v38 = vld [vmem:[%s2086_s19 + $0x548] sm:$0xff] }
  0x6f   : > { %1841 = vmatpush.xpose.msk.msrb.mxu3 %vm470_vm1, %v334_v39  ;;  %v399_v39 = vld [vmem:[%s2086_s19 + $0x5c8] sm:$0xff] }
  0x72   : > { %1825 = vmatpush.xpose.msk.msrb.mxu2 %vm470_vm1, %v317_v42  ;;  %v382_v42 = vld [vmem:[%s2086_s19 + $0x540] sm:$0xff] }
  0x73   : > { %1842 = vmatpush.xpose.msk.msrb.mxu3 %vm470_vm1, %v333_v43  ;;  %v398_v43 = vld [vmem:[%s2086_s19 + $0x5c0] sm:$0xff] }
  0x76   : > { %1826 = vmatpush.xpose.msk.msrb.mxu2 %vm470_vm1, %v316_v46  ;;  %v381_v46 = vld [vmem:[%s2086_s19 + $0x538] sm:$0xff] }
  0x77   : > { %1843 = vmatpush.xpose.msk.msrb.mxu3 %vm470_vm1, %v332_v47  ;;  %v397_v47 = vld [vmem:[%s2086_s19 + $0x5b8] sm:$0xff] }
  0x7a   : > { %1827 = vmatpush.xpose.msk.msrb.mxu2 %vm470_vm1, %v315_v50  ;;  %v380_v50 = vld [vmem:[%s2086_s19 + $0x530] sm:$0xff] }
  0x7b   : > { %1844 = vmatpush.xpose.msk.msrb.mxu3 %vm470_vm1, %v331_v51  ;;  %v396_v51 = vld [vmem:[%s2086_s19 + $0x5b0] sm:$0xff] }
  0x7e   : > { %1828 = vmatpush.xpose.msk.msrb.mxu2 %vm470_vm1, %v314_v54  ;;  %v379_v54 = vld [vmem:[%s2086_s19 + $0x528] sm:$0xff] }
  0x7f   : > { %1845 = vmatpush.xpose.msk.msrb.mxu3 %vm470_vm1, %v330_v55  ;;  %v395_v55 = vld [vmem:[%s2086_s19 + $0x5a8] sm:$0xff] }
  0x82   : > { %1829 = vmatpush.xpose.msk.msrb.mxu2 %vm470_vm1, %v313_v58  ;;  %v378_v58 = vld [vmem:[%s2086_s19 + $0x520] sm:$0xff] }
  0x83   : > { %v203_v24 = vpop.xlane.xlu0 %202  ;;  %1846 = vmatpush.xpose.msk.msrb.mxu3 %vm470_vm1, %v329_v59  ;;  %v394_v59 = vld [vmem:[%s2086_s19 + $0x5a0] sm:$0xff] }
  0x84   : > { %v204_v27 = vsub.f32 %v199_v0, %v203_v24  ;;  %v231_v0 = vld [vmem:[%s2086_s19 + $0x88] sm:$0xff]  ;;  %v305_v24 = vld [vmem:[%s2086_s19 + $0x2d8] sm:$0xff] }
  0x85   : > { %1746 = vmatpush.xpose.msk.msra.mxu1 %vm470_vm1, %v231_v0  ;;  %v279_v0 = vld [vmem:[%s2086_s19 + $0x208] sm:$0xff] }
  0x86   : > { %v205_v28 = vmul.f32 1.442695, %v204_v27  ;;  %v288_v27 = vld [vmem:[%s2086_s19 + $0x250] sm:$0xff]  ;;  %1830 = vmatpush.xpose.msk.msrb.mxu2 %vm470_vm1, %v312_v62  ;;  %v377_v62 = vld [vmem:[%s2086_s19 + $0x518] sm:$0xff] }
  0x87   : > { %1788 = vmatpush.xpose.msk.msrb.mxu0 %vm470_vm1, %v288_v27  ;;  %1847 = vmatpush.xpose.msk.msrb.mxu3 %vm470_vm1, %v328_v63  ;;  %v353_v27 = vld [vmem:[%s2086_s19 + $0x458] sm:$0xff] }
  0x88   : > { %2014 = vpow2.f32 %v205_v28  ;;  %v304_v28 = vld [vmem:[%s2086_s19 + $0x2d0] sm:$0xff]  ;;  %v393_v63 = vld [vmem:[%s2086_s19 + $0x598] sm:$0xff] }
  0x89   : > { %1747 = vmatpush.xpose.msk.msra.mxu1 %vm470_vm1, %v230_v4  ;;  %v278_v4 = vld [vmem:[%s2086_s19 + $0x200] sm:$0xff] }
  0x8a   : > { %1831 = vmatpush.xpose.msk.msrb.mxu2 %vm470_vm1, %v311_v2  ;;  %v376_v2 = vld [vmem:[%s2086_s19 + $0x510] sm:$0xff] }
  0x8b   : > { %1789 = vmatpush.xpose.msk.msrb.mxu0 %vm470_vm1, %v287_v31  ;;  %1848 = vmatpush.xpose.msk.msrb.mxu3 %vm470_vm1, %v327_v3  ;;  %v352_v31 = vld [vmem:[%s2086_s19 + $0x450] sm:$0xff] }
  0x8c   : > { %v392_v3 = vld [vmem:[%s2086_s19 + $0x590] sm:$0xff] }
  0x8d   : > { %1800 = vmatpush.xpose.msk.msrb.mxu1 %vm470_vm1, %v309_v8 }
  0x8e   : > { %v2150_v37 = vpop.eup %2014  ;;  %1832 = vmatpush.xpose.msk.msrb.mxu2 %vm470_vm1, %v310_v6  ;;  %v375_v6 = vld [vmem:[%s2086_s19 + $0x508] sm:$0xff] }
  0x8f   : > { %v207_v40 = vsel %vm200_vm0, %v2150_v37, 0.0  ;;  %1790 = vmatpush.xpose.msk.msrb.mxu0 %vm470_vm1, %v286_v35  ;;  %1849 = vmatpush.xpose.msk.msrb.mxu3 %vm470_vm1, %v326_v7  ;;  %v351_v35 = vld [vmem:[%s2086_s19 + $0x448] sm:$0xff] }
  0x90   : > { %208 = vadd.xlane.f32.xlu0 %v207_v40  ;;  %v285_v40 = vld [vmem:[%s2086_s19 + $0x238] sm:$0xff]  ;;  %v391_v7 = vld [vmem:[%s2086_s19 + $0x588] sm:$0xff] }
  0x91   : > { %1801 = vmatpush.xpose.msk.msrb.mxu1 %vm470_vm1, %v308_v12  ;;  %v357_v12 = vld [vmem:[%s2086_s19 + $0x478] sm:$0xff] }
  0x93   : > { %1791 = vmatpush.xpose.msk.msrb.mxu0 %vm470_vm1, %v285_v40  ;;  %v350_v40 = vld [vmem:[%s2086_s19 + $0x440] sm:$0xff] }
  0x95   : > { %1802 = vmatpush.xpose.msk.msrb.mxu1 %vm470_vm1, %v307_v16  ;;  %v372_v16 = vld [vmem:[%s2086_s19 + $0x4f0] sm:$0xff] }
  0x97   : > { %1792 = vmatpush.xpose.msk.msrb.mxu0 %vm470_vm1, %v284_v44  ;;  %v349_v44 = vld [vmem:[%s2086_s19 + $0x438] sm:$0xff] }
  0x99   : > { %1803 = vmatpush.xpose.msk.msrb.mxu1 %vm470_vm1, %v306_v20  ;;  %v371_v20 = vld [vmem:[%s2086_s19 + $0x4e8] sm:$0xff] }
  0x9b   : > { %1793 = vmatpush.xpose.msk.msrb.mxu0 %vm470_vm1, %v283_v48  ;;  %v348_v48 = vld [vmem:[%s2086_s19 + $0x430] sm:$0xff] }
  0x9d   : > { %1804 = vmatpush.xpose.msk.msrb.mxu1 %vm470_vm1, %v305_v24  ;;  %v370_v24 = vld [vmem:[%s2086_s19 + $0x4e0] sm:$0xff] }
  0x9f   : > { %1794 = vmatpush.xpose.msk.msrb.mxu0 %vm470_vm1, %v282_v52  ;;  %v347_v52 = vld [vmem:[%s2086_s19 + $0x428] sm:$0xff] }
  0xa1   : > { %1805 = vmatpush.xpose.msk.msrb.mxu1 %vm470_vm1, %v304_v28  ;;  %v369_v28 = vld [vmem:[%s2086_s19 + $0x4d8] sm:$0xff] }
  0xa3   : > { %1795 = vmatpush.xpose.msk.msrb.mxu0 %vm470_vm1, %v281_v56  ;;  %v346_v56 = vld [vmem:[%s2086_s19 + $0x420] sm:$0xff] }
  0xa5   : > { %1806 = vmatpush.xpose.msk.msrb.mxu1 %vm470_vm1, %v303_v32  ;;  %v368_v32 = vld [vmem:[%s2086_s19 + $0x4d0] sm:$0xff] }
  0xa7   : > { %1796 = vmatpush.xpose.msk.msrb.mxu0 %vm470_vm1, %v280_v60  ;;  %v345_v60 = vld [vmem:[%s2086_s19 + $0x418] sm:$0xff] }
  0xa9   : > { %1807 = vmatpush.xpose.msk.msrb.mxu1 %vm470_vm1, %v302_v36  ;;  %v367_v36 = vld [vmem:[%s2086_s19 + $0x4c8] sm:$0xff] }
  0xab   : > { %1797 = vmatpush.xpose.msk.msrb.mxu0 %vm470_vm1, %v279_v0  ;;  %v344_v0 = vld [vmem:[%s2086_s19 + $0x410] sm:$0xff] }
  0xad   : > { %1808 = vmatpush.xpose.msk.msrb.mxu1 %vm470_vm1, %v301_v41  ;;  %v366_v41 = vld [vmem:[%s2086_s19 + $0x4c0] sm:$0xff] }
  0xaf   : > { %1798 = vmatpush.xpose.msk.msrb.mxu0 %vm470_vm1, %v278_v4  ;;  %v343_v4 = vld [vmem:[%s2086_s19 + $0x408] sm:$0xff] }
  0xb1   : > { %1809 = vmatpush.xpose.msk.msrb.mxu1 %vm470_vm1, %v300_v45  ;;  %v365_v45 = vld [vmem:[%s2086_s19 + $0x4b8] sm:$0xff] }
  0xb5   : > { %1810 = vmatpush.xpose.msk.msrb.mxu1 %vm470_vm1, %v299_v49  ;;  %v364_v49 = vld [vmem:[%s2086_s19 + $0x4b0] sm:$0xff] }
  0xb9   : > { %1811 = vmatpush.xpose.msk.msrb.mxu1 %vm470_vm1, %v298_v53  ;;  %v363_v53 = vld [vmem:[%s2086_s19 + $0x4a8] sm:$0xff] }
  0xbd   : > { %1812 = vmatpush.xpose.msk.msrb.mxu1 %vm470_vm1, %v297_v57  ;;  %v362_v57 = vld [vmem:[%s2086_s19 + $0x4a0] sm:$0xff] }
  0xc1   : > { %1813 = vmatpush.xpose.msk.msrb.mxu1 %vm470_vm1, %v296_v61  ;;  %v361_v61 = vld [vmem:[%s2086_s19 + $0x498] sm:$0xff] }
  0xc5   : > { %1814 = vmatpush.xpose.msk.msrb.mxu1 %vm470_vm1, %v295_v1  ;;  %v360_v1 = vld [vmem:[%s2086_s19 + $0x490] sm:$0xff] }
  0xc9   : > { %1815 = vmatpush.xpose.msk.msrb.mxu1 %vm470_vm1, %v294_v5  ;;  %v359_v5 = vld [vmem:[%s2086_s19 + $0x488] sm:$0xff] }
 0x103   : > { %v209_v8 = vpop.xlane.xlu0 %208 }
 0x104   : > { %2016 = vrcp.f32 %v209_v8  ;;  %v342_v8 = vld [vmem:[%s2086_s19 + $0x400] sm:$0xff] }
 0x10a   : > { %v2017_v9 = vpop.eup %2016 }
 0x10b   : > { %v211_v10 = vmul.f32 %v2017_v9, %v2150_v37  ;;  %v356_v37 = vld [vmem:[%s2086_s19 + $0x470] sm:$0xff]  ;;  %v358_v9 = vld [vmem:[%s2086_s19 + $0x480] sm:$0xff] }
 0x10d   : > { %212 = vst.msk [vmem:[#allocation2] sm:$0x1] %vm200_vm0, %v211_v10  ;;  %v374_v10 = vld [vmem:[%s2086_s19 + $0x500] sm:$0xff] }
 0x114   : > { %v2350_v11 = vld [vmem:[#allocation2] sm:$0x1] }
 0x115   : > { %1731 = vmatmul.msk.f32.vlgmr.msra.gmra.mxu0 %vm470_vm1, %v2350_v11  ;;  %1748 = vmatmul.msk.f32.vlgmr.msra.gmra.mxu1 %vm470_vm1, %v2350_v11 }
 0x116   : > { %1765 = vmatmul.msk.f32.vlgmr.msra.gmra.mxu2 %vm470_vm1, %v2350_v11  ;;  %1782 = vmatmul.msk.f32.vlgmr.msra.gmra.mxu3 %vm470_vm1, %v2350_v11 }
 0x117   : > { %1851 = vmatpush.xpose.msk.msra.mxu0 %vm470_vm1, %v357_v12  ;;  %1868 = vmatpush.xpose.msk.msra.mxu1 %vm470_vm1, %v373_v13  ;;  %v390_v12 = vld [vmem:[%s2086_s19 + $0x580] sm:$0xff]  ;;  %v421_v13 = vld [vmem:[%s2086_s19 + $0x678] sm:$0xff] }
 0x118   : > { %1885 = vmatpush.xpose.msk.msra.mxu2 %vm470_vm1, %v389_v14  ;;  %1902 = vmatpush.xpose.msk.msra.mxu3 %vm470_vm1, %v405_v15  ;;  %v437_v14 = vld [vmem:[%s2086_s19 + $0x6f8] sm:$0xff] }
 0x119   : > { %v453_v15 = vld [vmem:[%s2086_s19 + $0x778] sm:$0xff] }
 0x11b   : > { %1852 = vmatpush.xpose.msk.msra.mxu0 %vm470_vm1, %v356_v37  ;;  %1869 = vmatpush.xpose.msk.msra.mxu1 %vm470_vm1, %v372_v16  ;;  %v469_v37 = vld [vmem:[%s2086_s19 + $0x7f8] sm:$0xff]  ;;  %v420_v16 = vld [vmem:[%s2086_s19 + $0x670] sm:$0xff] }
 0x11c   : > { %1886 = vmatpush.xpose.msk.msra.mxu2 %vm470_vm1, %v388_v17  ;;  %1903 = vmatpush.xpose.msk.msra.mxu3 %vm470_vm1, %v404_v18  ;;  %v436_v17 = vld [vmem:[%s2086_s19 + $0x6f0] sm:$0xff] }
 0x11d   : > { %1799 = vmatmul.msk.f32.vlgmr.msrb.gmra.mxu0 %vm470_vm1, %v2350_v11  ;;  %1816 = vmatmul.msk.f32.vlgmr.msrb.gmra.mxu1 %vm470_vm1, %v2350_v11  ;;  %v452_v18 = vld [vmem:[%s2086_s19 + $0x770] sm:$0xff] }
 0x11e   : > { %1833 = vmatmul.msk.f32.vlgmr.msrb.gmra.mxu2 %vm470_vm1, %v2350_v11  ;;  %1850 = vmatmul.msk.f32.vlgmr.msrb.gmra.mxu3 %vm470_vm1, %v2350_v11 }
 0x11f   : > { %1853 = vmatpush.xpose.msk.msra.mxu0 %vm470_vm1, %v355_v19  ;;  %1870 = vmatpush.xpose.msk.msra.mxu1 %vm470_vm1, %v371_v20  ;;  %v468_v19 = vld [vmem:[%s2086_s19 + $0x7f0] sm:$0xff]  ;;  %v419_v20 = vld [vmem:[%s2086_s19 + $0x668] sm:$0xff] }
 0x120   : > { %1887 = vmatpush.xpose.msk.msra.mxu2 %vm470_vm1, %v387_v21  ;;  %1904 = vmatpush.xpose.msk.msra.mxu3 %vm470_vm1, %v403_v22  ;;  %v435_v21 = vld [vmem:[%s2086_s19 + $0x6e8] sm:$0xff] }
 0x121   : > { %v451_v22 = vld [vmem:[%s2086_s19 + $0x768] sm:$0xff] }
 0x123   : > { %1854 = vmatpush.xpose.msk.msra.mxu0 %vm470_vm1, %v354_v23  ;;  %1871 = vmatpush.xpose.msk.msra.mxu1 %vm470_vm1, %v370_v24  ;;  %v467_v23 = vld [vmem:[%s2086_s19 + $0x7e8] sm:$0xff]  ;;  %v418_v24 = vld [vmem:[%s2086_s19 + $0x660] sm:$0xff] }
 0x124   : > { %1888 = vmatpush.xpose.msk.msra.mxu2 %vm470_vm1, %v386_v25  ;;  %1905 = vmatpush.xpose.msk.msra.mxu3 %vm470_vm1, %v402_v26  ;;  %v434_v25 = vld [vmem:[%s2086_s19 + $0x6e0] sm:$0xff] }
 0x125   : > { %v450_v26 = vld [vmem:[%s2086_s19 + $0x760] sm:$0xff] }
 0x127   : > { %1855 = vmatpush.xpose.msk.msra.mxu0 %vm470_vm1, %v353_v27  ;;  %1872 = vmatpush.xpose.msk.msra.mxu1 %vm470_vm1, %v369_v28  ;;  %v466_v27 = vld [vmem:[%s2086_s19 + $0x7e0] sm:$0xff]  ;;  %v417_v28 = vld [vmem:[%s2086_s19 + $0x658] sm:$0xff] }
 0x128   : > { %1889 = vmatpush.xpose.msk.msra.mxu2 %vm470_vm1, %v385_v29  ;;  %1906 = vmatpush.xpose.msk.msra.mxu3 %vm470_vm1, %v401_v30  ;;  %v433_v29 = vld [vmem:[%s2086_s19 + $0x6d8] sm:$0xff] }
 0x129   : > { %v449_v30 = vld [vmem:[%s2086_s19 + $0x758] sm:$0xff] }
 0x12b   : > { %1856 = vmatpush.xpose.msk.msra.mxu0 %vm470_vm1, %v352_v31  ;;  %1873 = vmatpush.xpose.msk.msra.mxu1 %vm470_vm1, %v368_v32  ;;  %v465_v31 = vld [vmem:[%s2086_s19 + $0x7d8] sm:$0xff]  ;;  %v416_v32 = vld [vmem:[%s2086_s19 + $0x650] sm:$0xff] }
 0x12c   : > { %1890 = vmatpush.xpose.msk.msra.mxu2 %vm470_vm1, %v384_v33  ;;  %1907 = vmatpush.xpose.msk.msra.mxu3 %vm470_vm1, %v400_v34  ;;  %v432_v33 = vld [vmem:[%s2086_s19 + $0x6d0] sm:$0xff] }
 0x12d   : > { %v448_v34 = vld [vmem:[%s2086_s19 + $0x750] sm:$0xff] }
 0x12f   : > { %1857 = vmatpush.xpose.msk.msra.mxu0 %vm470_vm1, %v351_v35  ;;  %1874 = vmatpush.xpose.msk.msra.mxu1 %vm470_vm1, %v367_v36  ;;  %v464_v35 = vld [vmem:[%s2086_s19 + $0x7d0] sm:$0xff]  ;;  %v415_v36 = vld [vmem:[%s2086_s19 + $0x648] sm:$0xff] }
 0x130   : > { %1891 = vmatpush.xpose.msk.msra.mxu2 %vm470_vm1, %v383_v38  ;;  %1908 = vmatpush.xpose.msk.msra.mxu3 %vm470_vm1, %v399_v39  ;;  %v431_v38 = vld [vmem:[%s2086_s19 + $0x6c8] sm:$0xff] }
 0x131   : > { %v447_v39 = vld [vmem:[%s2086_s19 + $0x748] sm:$0xff] }
 0x133   : > { %1858 = vmatpush.xpose.msk.msra.mxu0 %vm470_vm1, %v350_v40  ;;  %1875 = vmatpush.xpose.msk.msra.mxu1 %vm470_vm1, %v366_v41  ;;  %v463_v40 = vld [vmem:[%s2086_s19 + $0x7c8] sm:$0xff]  ;;  %v414_v41 = vld [vmem:[%s2086_s19 + $0x640] sm:$0xff] }
 0x134   : > { %1892 = vmatpush.xpose.msk.msra.mxu2 %vm470_vm1, %v382_v42  ;;  %1909 = vmatpush.xpose.msk.msra.mxu3 %vm470_vm1, %v398_v43  ;;  %v430_v42 = vld [vmem:[%s2086_s19 + $0x6c0] sm:$0xff] }
 0x135   : > { %v446_v43 = vld [vmem:[%s2086_s19 + $0x740] sm:$0xff] }
 0x137   : > { %1859 = vmatpush.xpose.msk.msra.mxu0 %vm470_vm1, %v349_v44  ;;  %1876 = vmatpush.xpose.msk.msra.mxu1 %vm470_vm1, %v365_v45  ;;  %v462_v44 = vld [vmem:[%s2086_s19 + $0x7c0] sm:$0xff]  ;;  %v413_v45 = vld [vmem:[%s2086_s19 + $0x638] sm:$0xff] }
 0x138   : > { %1893 = vmatpush.xpose.msk.msra.mxu2 %vm470_vm1, %v381_v46  ;;  %1910 = vmatpush.xpose.msk.msra.mxu3 %vm470_vm1, %v397_v47  ;;  %v429_v46 = vld [vmem:[%s2086_s19 + $0x6b8] sm:$0xff] }
 0x139   : > { %v445_v47 = vld [vmem:[%s2086_s19 + $0x738] sm:$0xff] }
 0x13b   : > { %1860 = vmatpush.xpose.msk.msra.mxu0 %vm470_vm1, %v348_v48  ;;  %1877 = vmatpush.xpose.msk.msra.mxu1 %vm470_vm1, %v364_v49  ;;  %v461_v48 = vld [vmem:[%s2086_s19 + $0x7b8] sm:$0xff]  ;;  %v412_v49 = vld [vmem:[%s2086_s19 + $0x630] sm:$0xff] }
 0x13c   : > { %1894 = vmatpush.xpose.msk.msra.mxu2 %vm470_vm1, %v380_v50  ;;  %1911 = vmatpush.xpose.msk.msra.mxu3 %vm470_vm1, %v396_v51  ;;  %v428_v50 = vld [vmem:[%s2086_s19 + $0x6b0] sm:$0xff] }
 0x13d   : > { %v444_v51 = vld [vmem:[%s2086_s19 + $0x730] sm:$0xff] }
 0x13f   : > { %1861 = vmatpush.xpose.msk.msra.mxu0 %vm470_vm1, %v347_v52  ;;  %1878 = vmatpush.xpose.msk.msra.mxu1 %vm470_vm1, %v363_v53  ;;  %v460_v52 = vld [vmem:[%s2086_s19 + $0x7b0] sm:$0xff]  ;;  %v411_v53 = vld [vmem:[%s2086_s19 + $0x628] sm:$0xff] }
 0x140   : > { %1895 = vmatpush.xpose.msk.msra.mxu2 %vm470_vm1, %v379_v54  ;;  %1912 = vmatpush.xpose.msk.msra.mxu3 %vm470_vm1, %v395_v55  ;;  %v427_v54 = vld [vmem:[%s2086_s19 + $0x6a8] sm:$0xff] }
 0x141   : > { %v443_v55 = vld [vmem:[%s2086_s19 + $0x728] sm:$0xff] }
 0x143   : > { %1862 = vmatpush.xpose.msk.msra.mxu0 %vm470_vm1, %v346_v56  ;;  %1879 = vmatpush.xpose.msk.msra.mxu1 %vm470_vm1, %v362_v57  ;;  %v459_v56 = vld [vmem:[%s2086_s19 + $0x7a8] sm:$0xff]  ;;  %v410_v57 = vld [vmem:[%s2086_s19 + $0x620] sm:$0xff] }
 0x144   : > { %1896 = vmatpush.xpose.msk.msra.mxu2 %vm470_vm1, %v378_v58  ;;  %1913 = vmatpush.xpose.msk.msra.mxu3 %vm470_vm1, %v394_v59  ;;  %v426_v58 = vld [vmem:[%s2086_s19 + $0x6a0] sm:$0xff] }
 0x145   : > { %v442_v59 = vld [vmem:[%s2086_s19 + $0x720] sm:$0xff] }
 0x147   : > { %1863 = vmatpush.xpose.msk.msra.mxu0 %vm470_vm1, %v345_v60  ;;  %1880 = vmatpush.xpose.msk.msra.mxu1 %vm470_vm1, %v361_v61  ;;  %v458_v60 = vld [vmem:[%s2086_s19 + $0x7a0] sm:$0xff]  ;;  %v409_v61 = vld [vmem:[%s2086_s19 + $0x618] sm:$0xff] }
 0x148   : > { %1897 = vmatpush.xpose.msk.msra.mxu2 %vm470_vm1, %v377_v62  ;;  %1914 = vmatpush.xpose.msk.msra.mxu3 %vm470_vm1, %v393_v63  ;;  %v425_v62 = vld [vmem:[%s2086_s19 + $0x698] sm:$0xff] }
 0x149   : > { %v441_v63 = vld [vmem:[%s2086_s19 + $0x718] sm:$0xff] }
 0x14b   : > { %1864 = vmatpush.xpose.msk.msra.mxu0 %vm470_vm1, %v344_v0  ;;  %1881 = vmatpush.xpose.msk.msra.mxu1 %vm470_vm1, %v360_v1  ;;  %v457_v0 = vld [vmem:[%s2086_s19 + $0x798] sm:$0xff]  ;;  %v408_v1 = vld [vmem:[%s2086_s19 + $0x610] sm:$0xff] }
 0x14c   : > { %1898 = vmatpush.xpose.msk.msra.mxu2 %vm470_vm1, %v376_v2  ;;  %1915 = vmatpush.xpose.msk.msra.mxu3 %vm470_vm1, %v392_v3  ;;  %v424_v2 = vld [vmem:[%s2086_s19 + $0x690] sm:$0xff] }
 0x14d   : > { %v440_v3 = vld [vmem:[%s2086_s19 + $0x710] sm:$0xff] }
 0x14f   : > { %1865 = vmatpush.xpose.msk.msra.mxu0 %vm470_vm1, %v343_v4  ;;  %1882 = vmatpush.xpose.msk.msra.mxu1 %vm470_vm1, %v359_v5  ;;  %v456_v4 = vld [vmem:[%s2086_s19 + $0x790] sm:$0xff]  ;;  %v407_v5 = vld [vmem:[%s2086_s19 + $0x608] sm:$0xff] }
 0x150   : > { %1899 = vmatpush.xpose.msk.msra.mxu2 %vm470_vm1, %v375_v6  ;;  %1916 = vmatpush.xpose.msk.msra.mxu3 %vm470_vm1, %v391_v7  ;;  %v423_v6 = vld [vmem:[%s2086_s19 + $0x688] sm:$0xff] }
 0x151   : > { %v439_v7 = vld [vmem:[%s2086_s19 + $0x708] sm:$0xff] }
 0x153   : > { %1866 = vmatpush.xpose.msk.msra.mxu0 %vm470_vm1, %v342_v8  ;;  %1883 = vmatpush.xpose.msk.msra.mxu1 %vm470_vm1, %v358_v9  ;;  %v455_v8 = vld [vmem:[%s2086_s19 + $0x788] sm:$0xff]  ;;  %v406_v9 = vld [vmem:[%s2086_s19 + $0x600] sm:$0xff] }
 0x154   : > { %1900 = vmatpush.xpose.msk.msra.mxu2 %vm470_vm1, %v374_v10  ;;  %1917 = vmatpush.xpose.msk.msra.mxu3 %vm470_vm1, %v390_v12  ;;  %v422_v10 = vld [vmem:[%s2086_s19 + $0x680] sm:$0xff] }
 0x155   : > { %v438_v12 = vld [vmem:[%s2086_s19 + $0x700] sm:$0xff] }
 0x156   : > { %1867 = vmatmul.msk.f32.vlgmr.msra.gmra.mxu0 %vm470_vm1, %v2350_v11  ;;  %1884 = vmatmul.msk.f32.vlgmr.msra.gmra.mxu1 %vm470_vm1, %v2350_v11 }
 0x157   : > { %1919 = vmatpush.xpose.msk.msrb.mxu0 %vm470_vm1, %v421_v13  ;;  %1936 = vmatpush.xpose.msk.msrb.mxu1 %vm470_vm1, %v437_v14  ;;  %v454_v13 = vld [vmem:[%s2086_s19 + $0x780] sm:$0xff] }
 0x158   : > { %1953 = vmatpush.xpose.msk.msrb.mxu2 %vm470_vm1, %v453_v15  ;;  %1970 = vmatpush.xpose.msk.msrb.mxu3 %vm470_vm1, %v469_v37 }
 0x159   : > { %1901 = vmatmul.msk.f32.vlgmr.msra.gmra.mxu2 %vm470_vm1, %v2350_v11  ;;  %1918 = vmatmul.msk.f32.vlgmr.msra.gmra.mxu3 %vm470_vm1, %v2350_v11 }
 0x15b   : > { %1920 = vmatpush.xpose.msk.msrb.mxu0 %vm470_vm1, %v420_v16  ;;  %1937 = vmatpush.xpose.msk.msrb.mxu1 %vm470_vm1, %v436_v17 }
 0x15c   : > { %1954 = vmatpush.xpose.msk.msrb.mxu2 %vm470_vm1, %v452_v18  ;;  %1971 = vmatpush.xpose.msk.msrb.mxu3 %vm470_vm1, %v468_v19 }
 0x15f   : > { %1921 = vmatpush.xpose.msk.msrb.mxu0 %vm470_vm1, %v419_v20  ;;  %1938 = vmatpush.xpose.msk.msrb.mxu1 %vm470_vm1, %v435_v21 }
 0x160   : > { %1955 = vmatpush.xpose.msk.msrb.mxu2 %vm470_vm1, %v451_v22  ;;  %1972 = vmatpush.xpose.msk.msrb.mxu3 %vm470_vm1, %v467_v23 }
 0x163   : > { %1922 = vmatpush.xpose.msk.msrb.mxu0 %vm470_vm1, %v418_v24  ;;  %1939 = vmatpush.xpose.msk.msrb.mxu1 %vm470_vm1, %v434_v25 }
 0x164   : > { %1956 = vmatpush.xpose.msk.msrb.mxu2 %vm470_vm1, %v450_v26  ;;  %1973 = vmatpush.xpose.msk.msrb.mxu3 %vm470_vm1, %v466_v27 }
 0x167   : > { %1923 = vmatpush.xpose.msk.msrb.mxu0 %vm470_vm1, %v417_v28  ;;  %1940 = vmatpush.xpose.msk.msrb.mxu1 %vm470_vm1, %v433_v29 }
 0x168   : > { %1957 = vmatpush.xpose.msk.msrb.mxu2 %vm470_vm1, %v449_v30  ;;  %1974 = vmatpush.xpose.msk.msrb.mxu3 %vm470_vm1, %v465_v31 }
 0x16b   : > { %1924 = vmatpush.xpose.msk.msrb.mxu0 %vm470_vm1, %v416_v32  ;;  %1941 = vmatpush.xpose.msk.msrb.mxu1 %vm470_vm1, %v432_v33 }
 0x16c   : > { %1958 = vmatpush.xpose.msk.msrb.mxu2 %vm470_vm1, %v448_v34  ;;  %1975 = vmatpush.xpose.msk.msrb.mxu3 %vm470_vm1, %v464_v35 }
 0x16f   : > { %1925 = vmatpush.xpose.msk.msrb.mxu0 %vm470_vm1, %v415_v36  ;;  %1942 = vmatpush.xpose.msk.msrb.mxu1 %vm470_vm1, %v431_v38 }
 0x170   : > { %1959 = vmatpush.xpose.msk.msrb.mxu2 %vm470_vm1, %v447_v39  ;;  %1976 = vmatpush.xpose.msk.msrb.mxu3 %vm470_vm1, %v463_v40 }
 0x173   : > { %1926 = vmatpush.xpose.msk.msrb.mxu0 %vm470_vm1, %v414_v41  ;;  %1943 = vmatpush.xpose.msk.msrb.mxu1 %vm470_vm1, %v430_v42 }
 0x174   : > { %1960 = vmatpush.xpose.msk.msrb.mxu2 %vm470_vm1, %v446_v43  ;;  %1977 = vmatpush.xpose.msk.msrb.mxu3 %vm470_vm1, %v462_v44 }
 0x177   : > { %1927 = vmatpush.xpose.msk.msrb.mxu0 %vm470_vm1, %v413_v45  ;;  %1944 = vmatpush.xpose.msk.msrb.mxu1 %vm470_vm1, %v429_v46 }
 0x178   : > { %1961 = vmatpush.xpose.msk.msrb.mxu2 %vm470_vm1, %v445_v47  ;;  %1978 = vmatpush.xpose.msk.msrb.mxu3 %vm470_vm1, %v461_v48 }
 0x17b   : > { %1928 = vmatpush.xpose.msk.msrb.mxu0 %vm470_vm1, %v412_v49  ;;  %1945 = vmatpush.xpose.msk.msrb.mxu1 %vm470_vm1, %v428_v50 }
 0x17c   : > { %1962 = vmatpush.xpose.msk.msrb.mxu2 %vm470_vm1, %v444_v51  ;;  %1979 = vmatpush.xpose.msk.msrb.mxu3 %vm470_vm1, %v460_v52 }
 0x17f   : > { %1929 = vmatpush.xpose.msk.msrb.mxu0 %vm470_vm1, %v411_v53  ;;  %1946 = vmatpush.xpose.msk.msrb.mxu1 %vm470_vm1, %v427_v54 }
 0x180   : > { %1963 = vmatpush.xpose.msk.msrb.mxu2 %vm470_vm1, %v443_v55  ;;  %1980 = vmatpush.xpose.msk.msrb.mxu3 %vm470_vm1, %v459_v56 }
 0x183   : > { %1930 = vmatpush.xpose.msk.msrb.mxu0 %vm470_vm1, %v410_v57  ;;  %1947 = vmatpush.xpose.msk.msrb.mxu1 %vm470_vm1, %v426_v58 }
 0x184   : > { %1964 = vmatpush.xpose.msk.msrb.mxu2 %vm470_vm1, %v442_v59  ;;  %1981 = vmatpush.xpose.msk.msrb.mxu3 %vm470_vm1, %v458_v60 }
 0x187   : > { %1931 = vmatpush.xpose.msk.msrb.mxu0 %vm470_vm1, %v409_v61  ;;  %1948 = vmatpush.xpose.msk.msrb.mxu1 %vm470_vm1, %v425_v62 }
 0x188   : > { %1965 = vmatpush.xpose.msk.msrb.mxu2 %vm470_vm1, %v441_v63  ;;  %1982 = vmatpush.xpose.msk.msrb.mxu3 %vm470_vm1, %v457_v0 }
 0x18b   : > { %1932 = vmatpush.xpose.msk.msrb.mxu0 %vm470_vm1, %v408_v1  ;;  %1949 = vmatpush.xpose.msk.msrb.mxu1 %vm470_vm1, %v424_v2 }
 0x18c   : > { %1966 = vmatpush.xpose.msk.msrb.mxu2 %vm470_vm1, %v440_v3  ;;  %1983 = vmatpush.xpose.msk.msrb.mxu3 %vm470_vm1, %v456_v4 }
 0x18f   : > { %1933 = vmatpush.xpose.msk.msrb.mxu0 %vm470_vm1, %v407_v5  ;;  %1950 = vmatpush.xpose.msk.msrb.mxu1 %vm470_vm1, %v423_v6 }
 0x190   : > { %1967 = vmatpush.xpose.msk.msrb.mxu2 %vm470_vm1, %v439_v7  ;;  %1984 = vmatpush.xpose.msk.msrb.mxu3 %vm470_vm1, %v455_v8 }
 0x192   : > { %v1259_v14 = vpop.f32.mrf.mxu0  ;;  %v1279_v15 = vpop.f32.mrf.mxu1 }
 0x193   : > { %1934 = vmatpush.xpose.msk.msrb.mxu0 %vm470_vm1, %v406_v9  ;;  %1951 = vmatpush.xpose.msk.msrb.mxu1 %vm470_vm1, %v422_v10  ;;  %v1578_v21 = vrot.slane %v1279_v15, 7 }
 0x194   : > { %1968 = vmatpush.xpose.msk.msrb.mxu2 %vm470_vm1, %v438_v12  ;;  %1985 = vmatpush.xpose.msk.msrb.mxu3 %vm470_vm1, %v454_v13 }
 0x195   : > { %v1593_v28 = vsel %vm1592_vm3, %v1259_v14, %v1578_v21 }
 0x196   : > { %1935 = vmatmul.msk.f32.vlgmr.msrb.gmra.mxu0 %vm470_vm1, %v2350_v11  ;;  %1952 = vmatmul.msk.f32.vlgmr.msrb.gmra.mxu1 %vm470_vm1, %v2350_v11 }
 0x197   : > { %1969 = vmatmul.msk.f32.vlgmr.msrb.gmra.mxu2 %vm470_vm1, %v2350_v11  ;;  %1986 = vmatmul.msk.f32.vlgmr.msrb.gmra.mxu3 %vm470_vm1, %v2350_v11 }
 0x199   : > { %v1299_v37 = vpop.f32.mrf.mxu2  ;;  %v1319_v16 = vpop.f32.mrf.mxu3 }
 0x19a   : > { %v1339_v17 = vpop.f32.mrf.mxu0  ;;  %v1359_v18 = vpop.f32.mrf.mxu1  ;;  %v1579_v19 = vrot.slane %v1299_v37, 6  ;;  %v1580_v20 = vrot.slane %v1319_v16, 5 }
 0x19b   : > { %v1581_v22 = vrot.slane %v1339_v17, 4  ;;  %v1582_v23 = vrot.slane %v1359_v18, 3 }
 0x19c   : > { %v1595_v26 = vsel %vm1594_vm2, %v1579_v19, %v1580_v20 }
 0x19d   : > { %v1599_v29 = vsel %vm1598_vm5, %v1581_v22, %v1582_v23  ;;  %v1597_v31 = vsel %vm1596_vm4, %v1593_v28, %v1595_v26 }
 0x1a1   : > { %v1379_v24 = vpop.f32.mrf.mxu2  ;;  %v1399_v25 = vpop.f32.mrf.mxu3 }
 0x1a2   : > { %v1583_v11 = vrot.slane %v1379_v24, 2  ;;  %v1584_v27 = vrot.slane %v1399_v25, 1 }
 0x1a4   : > { %v1601_v30 = vsel %vm1600_vm6, %v1583_v11, %v1584_v27 }
 0x1a5   : > { %v1603_v32 = vsel %vm1602_vm7, %v1599_v29, %v1601_v30 }
 0x1a6   : > { %v1605_v33 = vsel %vm1604_vm8, %v1597_v31, %v1603_v32 }
 0x1a7   : > { %1615 = vst [vmem:[%s193_s23] sm:$0xff] %v1605_v33 }
 0x1d3   : > { %v1419_v34 = vpop.f32.mrf.mxu0  ;;  %v1439_v35 = vpop.f32.mrf.mxu1 }
 0x1d4   : > { %v1585_v43 = vrot.slane %v1439_v35, 7 }
 0x1d6   : > { %v1606_v51 = vsel %vm1592_vm3, %v1419_v34, %v1585_v43 }
 0x1dc   : > { %v1459_v36 = vpop.f32.mrf.mxu2  ;;  %v1479_v38 = vpop.f32.mrf.mxu3 }
 0x1dd   : > { %v1586_v41 = vrot.slane %v1459_v36, 6  ;;  %v1587_v42 = vrot.slane %v1479_v38, 5 }
 0x1df   : > { %v1607_v48 = vsel %vm1594_vm2, %v1586_v41, %v1587_v42 }
 0x1e0   : > { %v1608_v54 = vsel %vm1596_vm4, %v1606_v51, %v1607_v48 }
 0x213   : > { %v1499_v39 = vpop.f32.mrf.mxu0  ;;  %v1519_v40 = vpop.f32.mrf.mxu1 }
 0x214   : > { %v1588_v44 = vrot.slane %v1499_v39, 4  ;;  %v1589_v45 = vrot.slane %v1519_v40, 3 }
 0x216   : > { %v1609_v52 = vsel %vm1598_vm5, %v1588_v44, %v1589_v45 }
 0x21a   : > { %v1539_v46 = vpop.f32.mrf.mxu2  ;;  %v1559_v47 = vpop.f32.mrf.mxu3 }
 0x21b   : > { %v1590_v49 = vrot.slane %v1539_v46, 2  ;;  %v1591_v50 = vrot.slane %v1559_v47, 1 }
 0x21d   : > { %v1610_v53 = vsel %vm1600_vm6, %v1590_v49, %v1591_v50 }
 0x21e   : > { %v1611_v55 = vsel %vm1602_vm7, %v1609_v52, %v1610_v53 }
 0x21f   : > { %v1612_v56 = vsel %vm1604_vm8, %v1608_v54, %v1611_v55 }
 0x220   : > { %1616 = vst [vmem:[%s193_s23 + $0x8] sm:$0xff] %v1612_v56 }
 0x221 PF: > { %s12_s11 = sadd.s32 1, %s2040_s11   ;;  %s2670_s9 = smov %s2036_s10 }
 0x222   : > { %p9_p5 = scmp.ge.s32.totalorder %s12_s11, 4   ;;  %s2671_s10 = smov %s2673_s12 }
 0x224   :  { %11 = sbr.rel (!%p9_p5) target bundleno = 2 (0x2), region = 65 }

// kernel: read_unit_forward.3
= control target key start
LH: loop header
LB: loop body
LE: loop exit
PB: predicated region body
PF: predicated region fallthrough
CT: control target
= control target key end

     0   :  { %8 = vsyncpa [#allocation3], 0  ;;  %s15969_s0 = inlined_call_operand.vmem [shape: bf16[2,2048], index: 0, kind: input, shape index: {}]   ;;  %s15970_s1 = inlined_call_operand.hbm [shape: bf16[2048,2048], index: 1, kind: input, shape index: {}]   ;;  %s15971_s2 = inlined_call_operand.hbm [shape: f32[1,2048], index: 2, kind: input, shape index: {}]   ;;  %s15972_s3 = inlined_call_operand.vmem [shape: f32[2,2048], index: 3, kind: output, shape index: {}]  }
   0x1   :  { %10 = vsyncpa [#allocation3 + $0x1], 0 }
   0x2   :  { %11 = vsyncpa [#allocation5], 0 }
   0x3   :  { %13 = vsyncpa [#allocation5 + $0x1], 0  ;;  %s13585_s12 = smov 0   ;;  %s13587_s13 = smov 0  }
   0x4   :  { %s13589_s14 = smov 0   ;;  %s13591_s15 = smov 0  }
   0x5 LB: > { %s8216_s16 = sadd.s32 4294967295, %s13560_s15   ;;  %s13605_s17 = sadd.s32 1, %s13560_s15   ;;  %s13560_s15 = sphi %s13591_s15, %s15980_s15   ;;  %s13556_s14 = sphi %s13589_s14, %s15979_s14   ;;  %s13552_s13 = sphi %s13587_s13, %s15978_s13   ;;  %s13548_s12 = sphi %s13585_s12, %s15977_s12  }
   0x6   : > { %s44_s18 = ssub.s32 %s13560_s15, %s13605_s17  ;;  %s47_s19 = sadd.s32 1, %s13556_s14 }
   0x7   : > { %p45_p0 = scmp.eq.s32.totalorder %s44_s18, 0  ;;  %p54_p1 = scmp.ne.s32.totalorder %s13556_s14, %s13552_s13 }
   0x8   : > { %p55_p2 = scmp.eq.s32.totalorder %s13560_s15, 0  ;;  %p60_p3 = scmp.ne.s32.totalorder %s13552_s13, %s13548_s12 }
   0x9   : > { %s13615_s20 = scalar_select %p45_p0, %s13556_s14, %s47_s19  }
   0xa   : > { %p13617_p4 = por %p55_p2, %p54_p1  ;;  %p61_p5 = scmp.eq.s32.totalorder %s8216_s16, 0 }
   0xb   : > { %p13364_p6 = scmp.lt.s32.totalorder %s13560_s15, 2  ;;  %s13629_s23 = sand.u32 1, %s13556_s14  }
   0xc   : > { %p13624_p7 = por %p61_p5, %p60_p3  ;;  %s8220_s24 = sshll.u32 %s13629_s23, 13 }
   0xd   : > { %s12328_s25 = sshll.u32 %s13560_s15, 5  ;;  %s143_s29 = scalar_lea.vmem [#allocation2], %s8220_s24 }
   0xe   : > { %s148_s28 = scalar_lea.hbm %s15970_s1, %s12328_s25  ;;  %s151_s30 = sshll.u32 %s143_s29, 4  ;;  %s152_s30 = int_to_ptr.vmem [resolvable:$true] %s151_s30 }
   0xf   : > { %s149_s4 = sshll.u32 %s148_s28, 4  ;;  %p13638_p8 = pnand %p13364_p6, %p13617_p4  ;;  %s150_s4 = int_to_ptr.hbm [resolvable:$true] %s149_s4 }
  0x10   : > { %s140_s6 = scalar_lea.sflag [#allocation3], %s13629_s23  ;;  %s13462_s7 = sshra.s32 %s150_s4, 4  ;;  %s13463_s7 = int_to_ptr.hbm [resolvable:$true] %s13462_s7 }
  0x11   : > { %s13464_s8 = scalar_lea.hbm %s13463_s7, 8192  ;;  %p13466_p10 = pneg %p13638_p8 }
  0x12   : > { %p13465_p9 = scmp.ne.s32.totalorder %s13463_s7, %s13464_s8  ;;  %s13469_s11 = scalar_lea.hbm %s15970_s1, 16384 }
  0x13   : > { %p13470_p13 = scmp.lt.s32.totalorder %s13463_s7, %s15970_s1  ;;  %p13471_p0 = scmp.lt.s32.totalorder %s13469_s11, %s13464_s8 }
  0x14   : > { %p13467_p11 = pnand %p13466_p10, %p13465_p9 }
  0x15   : > { %p13472_p1 = por %p13471_p0, %p13470_p13 }
  0x16   : > { %p13468_p12 = pneg %p13467_p11 }
  0x18   : > { %p13473_p2 = pnand %p13472_p1, %p13468_p12 }
  0x1a   : > { %13476 = shalt.err (!%p13473_p2)
}
  0x1b   : > { %s13562_s19 = smov 1024   ;;  %s13563_s21 = smov 512  }
  0x1c   : > { %s13564_s24 = smov 32   ;;  %p8225_p3 = scmp.ge.s32.totalorder %s13560_s15, 1 }
  0x1d   : > { %13360 = dma.hbm_to_vmem [thread:$0]  (!%p13638_p8), %s150_s4, 131072, %s152_s30, %s140_s6, %s13562_s19, %s13563_s21, %s13564_s24  }
  0x1e   : > { %p178_p4 = scmp.lt.s32.totalorder %s13560_s15, 3  ;;  %s8223_s25 = sshll.u32 %s13629_s23, 3 }
  0x1f   : > { %s8224_s27 = sshll.u32 %s13560_s15, 3  ;;  %s165_s28 = scalar_lea.vmem [#allocation4], %s8223_s25 }
  0x20   : > { %p13659_p5 = pnand %p8225_p3, %p178_p4  ;;  %s173_s29 = sshll.u32 %s165_s28, 4  ;;  %s174_s29 = int_to_ptr.vmem [resolvable:$true] %s173_s29 }
  0x21   : > { %s169_s9 = scalar_lea.hbm %s15971_s2, %s8224_s27  ;;  %s162_s11 = scalar_lea.sflag [#allocation5], %s13629_s23 }
  0x22   : > { %s171_s10 = sshll.u32 %s169_s9, 4  ;;  %s13499_s18 = scalar_lea.hbm %s15971_s2, 16  ;;  %s172_s10 = int_to_ptr.hbm [resolvable:$true] %s171_s10 }
  0x23   : > { %s13492_s30 = sshra.s32 %s172_s10, 4  ;;  %s13493_s30 = int_to_ptr.hbm [resolvable:$true] %s13492_s30 }
  0x24   : > { %s13494_s4 = scalar_lea.hbm %s13493_s30, 8  ;;  %p13500_p12 = scmp.lt.s32.totalorder %s13493_s30, %s15971_s2 }
  0x25   : > { %p13495_p6 = scmp.ne.s32.totalorder %s13493_s30, %s13494_s4  ;;  %p13501_p13 = scmp.lt.s32.totalorder %s13499_s18, %s13494_s4 }
  0x27   : > { %p13497_p9 = pnand %p13495_p6, %p13466_p10  ;;  %p13502_p0 = por %p13501_p13, %p13500_p12 }
  0x29   : > { %p13498_p11 = pneg %p13497_p9 }
  0x2b   : > { %p13503_p1 = pnand %p13502_p0, %p13498_p11 }
  0x2d   : > { %13506 = shalt.err (!%p13503_p1)
}
  0x2e   : > { %13363 = dma.hbm_to_vmem [thread:$0]  (!%p13638_p8), %s172_s10, 128, %s174_s29, %s162_s11  }
  0x2f   : > { %182 = sbr.rel (%p13659_p5) target bundleno = 2031 (0x7ef), region = 32  ;;  %s184_s23 = sand.u32 (!%p13659_p5), 1, %s13552_s13  }
  0x30   : > { %s8226_s24 = sshll.u32 (!%p13659_p5), %s184_s23, 13  ;;  %s185_s25 = scalar_lea.sflag (!%p13659_p5), [#allocation3], %s184_s23 }
  0x31   : > { %s13682_s27 = scalar_lea.vmem (!%p13659_p5), [#allocation2], %s8226_s24 }
  0x34   : > { %13539 = dma.done.wait (%p13624_p7), %s185_s25, 131072  }
  0x35   : > { %13541 = vsyncadd (%p13624_p7), %s185_s25, 4294836224  ;;  %s8227_s28 = sshll.u32 %s184_s23, 3  ;;  %s195_s7 = scalar_lea.sflag [#allocation5], %s184_s23 }
  0x36   : > { %s13688_s5 = scalar_lea.vmem [#allocation4], %s8227_s28 }
  0x37   : > { %13543 = dma.done.wait (%p13624_p7), %s195_s7, 128  }
  0x38   : > { %13545 = vsyncadd (%p13624_p7), %s195_s7, 4294967168  ;;  %v8456_v0 = vld [vmem:[%s13682_s27 + $0x1c0] sm:$0xf]  ;;  %vm8113_vm0 = vcmask 1041408   ;;  %s15127_s9 = sshll.u32 %s8216_s16, 3  ;;  %vm8115_vm1 = vcmask 1045508  }
  0x39   : > { %v12389_v1 = vld [vmem:[%s13682_s27 + $0x1dc] sm:$0xf0]  ;;  %p230_p7 = scmp.lt.s32.totalorder %s15127_s9, 15  ;;  %vm8117_vm2 = vcmask 1043456  }
  0x3a   : > { %v8712_v2 = vld [vmem:[%s13682_s27 + $0x3c0] sm:$0xf]  ;;  %v8457_v3 = vor.u32 %v12389_v1, %v8456_v0 }
  0x3b   : > { %v12453_v4 = vld [vmem:[%s13682_s27 + $0x3dc] sm:$0xf0]  ;;  %s15982_s9 = smov (!%p230_p7, %s15127_s9), 15 }
  0x3c   : > { %v8968_v5 = vld [vmem:[%s13682_s27 + $0x5c0] sm:$0xf]  ;;  %v8713_v7 = vor.u32 %v12453_v4, %v8712_v2  ;;  %6435 = vmatpush.bf16.msra.mxu0 %v8457_v3  ;;  %s8229_s15 = sshll.u32 %s15982_s9, 1 }
  0x3d   : > { %v12517_v6 = vld [vmem:[%s13682_s27 + $0x5dc] sm:$0xf0]  ;;  %s15173_s11 = scalar_lea.vmem %s15972_s3, %s8229_s15 }
  0x3e   : > { %v8969_v8 = vor.u32 %v12517_v6, %v8968_v5  ;;  %v9224_v9 = vld [vmem:[%s13682_s27 + $0x7c0] sm:$0xf]  ;;  %6448 = vmatpush.bf16.msra.mxu1 %v8713_v7 }
  0x3f   : > { %v12581_v10 = vld [vmem:[%s13682_s27 + $0x7dc] sm:$0xf0] }
  0x40   : > { %v8424_v11 = vld [vmem:[%s13682_s27 + $0x180] sm:$0xf]  ;;  %v9225_v12 = vor.u32 %v12581_v10, %v9224_v9  ;;  %6461 = vmatpush.bf16.msra.mxu2 %v8969_v8 }
  0x41   : > { %v12381_v13 = vld [vmem:[%s13682_s27 + $0x19c] sm:$0xf0] }
  0x42   : > { %v8680_v14 = vld [vmem:[%s13682_s27 + $0x380] sm:$0xf]  ;;  %v8425_v16 = vor.u32 %v12381_v13, %v8424_v11  ;;  %6474 = vmatpush.bf16.msra.mxu3 %v9225_v12 }
  0x43   : > { %v12445_v15 = vld [vmem:[%s13682_s27 + $0x39c] sm:$0xf0] }
  0x44   : > { %v8681_v17 = vor.u32 %v12445_v15, %v8680_v14  ;;  %v8936_v18 = vld [vmem:[%s13682_s27 + $0x580] sm:$0xf]  ;;  %6436 = vmatpush.bf16.msra.mxu0 %v8425_v16 }
  0x45   : > { %v12509_v19 = vld [vmem:[%s13682_s27 + $0x59c] sm:$0xf0] }
  0x46   : > { %v9192_v20 = vld [vmem:[%s13682_s27 + $0x780] sm:$0xf]  ;;  %v8937_v21 = vor.u32 %v12509_v19, %v8936_v18  ;;  %6449 = vmatpush.bf16.msra.mxu1 %v8681_v17 }
  0x47   : > { %v12573_v22 = vld [vmem:[%s13682_s27 + $0x79c] sm:$0xf0] }
  0x48   : > { %v8392_v23 = vld [vmem:[%s13682_s27 + $0x140] sm:$0xf]  ;;  %v9193_v25 = vor.u32 %v12573_v22, %v9192_v20  ;;  %6462 = vmatpush.bf16.msra.mxu2 %v8937_v21 }
  0x49   : > { %v12373_v24 = vld [vmem:[%s13682_s27 + $0x15c] sm:$0xf0] }
  0x4a   : > { %v8648_v26 = vld [vmem:[%s13682_s27 + $0x340] sm:$0xf]  ;;  %v8393_v29 = vor.u32 %v12373_v24, %v8392_v23  ;;  %6475 = vmatpush.bf16.msra.mxu3 %v9193_v25 }
  0x4b   : > { %v12437_v27 = vld [vmem:[%s13682_s27 + $0x35c] sm:$0xf0] }
  0x4c   : > { %v8904_v28 = vld [vmem:[%s13682_s27 + $0x540] sm:$0xf]  ;;  %v8649_v33 = vor.u32 %v12437_v27, %v8648_v26  ;;  %6437 = vmatpush.bf16.msra.mxu0 %v8393_v29 }
  0x4d   : > { %v12501_v30 = vld [vmem:[%s13682_s27 + $0x55c] sm:$0xf0] }
  0x4e   : > { %v9160_v31 = vld [vmem:[%s13682_s27 + $0x740] sm:$0xf]  ;;  %v8905_v34 = vor.u32 %v12501_v30, %v8904_v28  ;;  %6450 = vmatpush.bf16.msra.mxu1 %v8649_v33 }
  0x4f   : > { %v12565_v32 = vld [vmem:[%s13682_s27 + $0x75c] sm:$0xf0] }
  0x50   : > { %v8360_v35 = vld [vmem:[%s13682_s27 + $0x100] sm:$0xf]  ;;  %v9161_v38 = vor.u32 %v12565_v32, %v9160_v31  ;;  %6463 = vmatpush.bf16.msra.mxu2 %v8905_v34 }
  0x51   : > { %v12365_v36 = vld [vmem:[%s13682_s27 + $0x11c] sm:$0xf0] }
  0x52   : > { %v8616_v37 = vld [vmem:[%s13682_s27 + $0x300] sm:$0xf]  ;;  %v8361_v44 = vor.u32 %v12365_v36, %v8360_v35  ;;  %6476 = vmatpush.bf16.msra.mxu3 %v9161_v38 }
  0x53   : > { %v12429_v39 = vld [vmem:[%s13682_s27 + $0x31c] sm:$0xf0] }
  0x54   : > { %v8872_v40 = vld [vmem:[%s13682_s27 + $0x500] sm:$0xf]  ;;  %v8617_v45 = vor.u32 %v12429_v39, %v8616_v37  ;;  %6438 = vmatpush.bf16.msra.mxu0 %v8361_v44 }
  0x55   : > { %v12493_v41 = vld [vmem:[%s13682_s27 + $0x51c] sm:$0xf0] }
  0x56   : > { %v9128_v42 = vld [vmem:[%s13682_s27 + $0x700] sm:$0xf]  ;;  %v8873_v46 = vor.u32 %v12493_v41, %v8872_v40  ;;  %6451 = vmatpush.bf16.msra.mxu1 %v8617_v45 }
  0x57   : > { %v12557_v43 = vld [vmem:[%s13682_s27 + $0x71c] sm:$0xf0] }
  0x58   : > { %v8328_v47 = vld [vmem:[%s13682_s27 + $0xc0] sm:$0xf]  ;;  %v9129_v50 = vor.u32 %v12557_v43, %v9128_v42  ;;  %6464 = vmatpush.bf16.msra.mxu2 %v8873_v46 }
  0x59   : > { %v12357_v48 = vld [vmem:[%s13682_s27 + $0xdc] sm:$0xf0] }
  0x5a   : > { %v8584_v49 = vld [vmem:[%s13682_s27 + $0x2c0] sm:$0xf]  ;;  %v8329_v56 = vor.u32 %v12357_v48, %v8328_v47  ;;  %6477 = vmatpush.bf16.msra.mxu3 %v9129_v50 }
  0x5b   : > { %v12421_v51 = vld [vmem:[%s13682_s27 + $0x2dc] sm:$0xf0] }
  0x5c   : > { %v8840_v52 = vld [vmem:[%s13682_s27 + $0x4c0] sm:$0xf]  ;;  %v8585_v57 = vor.u32 %v12421_v51, %v8584_v49  ;;  %6439 = vmatpush.bf16.msra.mxu0 %v8329_v56 }
  0x5d   : > { %v12485_v53 = vld [vmem:[%s13682_s27 + $0x4dc] sm:$0xf0] }
  0x5e   : > { %v9096_v54 = vld [vmem:[%s13682_s27 + $0x6c0] sm:$0xf]  ;;  %v8841_v58 = vor.u32 %v12485_v53, %v8840_v52  ;;  %6452 = vmatpush.bf16.msra.mxu1 %v8585_v57 }
  0x5f   : > { %v12549_v55 = vld [vmem:[%s13682_s27 + $0x6dc] sm:$0xf0] }
  0x60   : > { %v8296_v59 = vld [vmem:[%s13682_s27 + $0x80] sm:$0xf]  ;;  %v9097_v62 = vor.u32 %v12549_v55, %v9096_v54  ;;  %6465 = vmatpush.bf16.msra.mxu2 %v8841_v58 }
  0x61   : > { %v12349_v60 = vld [vmem:[%s13682_s27 + $0x9c] sm:$0xf0] }
  0x62   : > { %v8552_v61 = vld [vmem:[%s13682_s27 + $0x280] sm:$0xf]  ;;  %v8297_v4 = vor.u32 %v12349_v60, %v8296_v59  ;;  %6478 = vmatpush.bf16.msra.mxu3 %v9097_v62  ;;  %v235_v59 = vld [vmem:[%s15969_s0] sm:$0xff] }
  0x63   : > { %v12413_v63 = vld [vmem:[%s13682_s27 + $0x29c] sm:$0xf0]  ;;  %1280 = vst [vmem:[#allocation1] ss:$9 sm:$0xff] %v235_v59 }
  0x64   : > { %v8808_v0 = vld [vmem:[%s13682_s27 + $0x480] sm:$0xf]  ;;  %v8553_v5 = vor.u32 %v12413_v63, %v8552_v61  ;;  %6440 = vmatpush.bf16.msra.mxu0 %v8297_v4 }
  0x65   : > { %v12477_v1 = vld [vmem:[%s13682_s27 + $0x49c] sm:$0xf0] }
  0x66   : > { %v9064_v2 = vld [vmem:[%s13682_s27 + $0x680] sm:$0xf]  ;;  %v8809_v6 = vor.u32 %v12477_v1, %v8808_v0  ;;  %6453 = vmatpush.bf16.msra.mxu1 %v8553_v5 }
  0x67   : > { %v12541_v3 = vld [vmem:[%s13682_s27 + $0x69c] sm:$0xf0] }
  0x68   : > { %v8264_v7 = vld [vmem:[%s13682_s27 + $0x40] sm:$0xf]  ;;  %v9065_v10 = vor.u32 %v12541_v3, %v9064_v2  ;;  %6466 = vmatpush.bf16.msra.mxu2 %v8809_v6 }
  0x69   : > { %v12341_v8 = vld [vmem:[%s13682_s27 + $0x5c] sm:$0xf0] }
  0x6a   : > { %v8520_v9 = vld [vmem:[%s13682_s27 + $0x240] sm:$0xf]  ;;  %v8265_v16 = vor.u32 %v12341_v8, %v8264_v7  ;;  %6479 = vmatpush.bf16.msra.mxu3 %v9065_v10 }
  0x6b   : > { %v12405_v11 = vld [vmem:[%s13682_s27 + $0x25c] sm:$0xf0] }
  0x6c   : > { %v8776_v12 = vld [vmem:[%s13682_s27 + $0x440] sm:$0xf]  ;;  %v8521_v19 = vor.u32 %v12405_v11, %v8520_v9  ;;  %6441 = vmatpush.bf16.msra.mxu0 %v8265_v16 }
  0x6d   : > { %v12469_v13 = vld [vmem:[%s13682_s27 + $0x45c] sm:$0xf0] }
  0x6e   : > { %v9032_v14 = vld [vmem:[%s13682_s27 + $0x640] sm:$0xf]  ;;  %v8777_v20 = vor.u32 %v12469_v13, %v8776_v12  ;;  %6454 = vmatpush.bf16.msra.mxu1 %v8521_v19 }
  0x6f   : > { %v12533_v15 = vld [vmem:[%s13682_s27 + $0x65c] sm:$0xf0] }
  0x70   : > { %v8232_v17 = vld [vmem:[%s13682_s27] sm:$0xf]  ;;  %v9033_v24 = vor.u32 %v12533_v15, %v9032_v14  ;;  %6467 = vmatpush.bf16.msra.mxu2 %v8777_v20  ;;  %v13797_v20 = vld [vmem:[#allocation1 + $0x12] sm:$0xff] }
  0x71   : > { %v12333_v18 = vld [vmem:[%s13682_s27 + $0x1c] sm:$0xf0] }
  0x72   : > { %v8488_v21 = vld [vmem:[%s13682_s27 + $0x200] sm:$0xf]  ;;  %v8233_v31 = vor.u32 %v12333_v18, %v8232_v17  ;;  %6480 = vmatpush.bf16.msra.mxu3 %v9033_v24 }
  0x73   : > { %v12397_v22 = vld [vmem:[%s13682_s27 + $0x21c] sm:$0xf0] }
  0x74   : > { %v8744_v23 = vld [vmem:[%s13682_s27 + $0x400] sm:$0xf]  ;;  %v8489_v35 = vor.u32 %v12397_v22, %v8488_v21  ;;  %6442 = vmatpush.bf16.msra.mxu0 %v8233_v31  ;;  %v13799_v21 = vld [vmem:[#allocation1] sm:$0xff] }
  0x75   : > { %v12461_v25 = vld [vmem:[%s13682_s27 + $0x41c] sm:$0xf0]  ;;  %v13801_v22 = vld [vmem:[#allocation1 + $0x1b] sm:$0xff] }
  0x76   : > { %v9000_v26 = vld [vmem:[%s13682_s27 + $0x600] sm:$0xf]  ;;  %v8745_v36 = vor.u32 %v12461_v25, %v8744_v23  ;;  %6455 = vmatpush.bf16.msra.mxu1 %v8489_v35 }
  0x77   : > { %v12525_v27 = vld [vmem:[%s13682_s27 + $0x61c] sm:$0xf0]  ;;  %6443 = vmatmul.bf16.vlgmr.msra.gmra.mxu0 %v13799_v21 }
  0x78   : > { %v9480_v28 = vld [vmem:[%s13682_s27 + $0x9c0] sm:$0xf]  ;;  %v9001_v39 = vor.u32 %v12525_v27, %v9000_v26  ;;  %6468 = vmatpush.bf16.msra.mxu2 %v8745_v36 }
  0x79   : > { %v12645_v29 = vld [vmem:[%s13682_s27 + $0x9dc] sm:$0xf0] }
  0x7a   : > { %v9736_v30 = vld [vmem:[%s13682_s27 + $0xbc0] sm:$0xf]  ;;  %v9481_v40 = vor.u32 %v12645_v29, %v9480_v28  ;;  %6481 = vmatpush.bf16.msra.mxu3 %v9001_v39 }
  0x7b   : > { %v12709_v32 = vld [vmem:[%s13682_s27 + $0xbdc] sm:$0xf0]  ;;  %6469 = vmatmul.bf16.vlgmr.msra.gmra.mxu2 %v13797_v20 }
  0x7c   : > { %v9992_v33 = vld [vmem:[%s13682_s27 + $0xdc0] sm:$0xf]  ;;  %v9737_v41 = vor.u32 %v12709_v32, %v9736_v30  ;;  %6487 = vmatpush.bf16.msrb.mxu0 %v9481_v40 }
  0x7d   : > { %v12773_v34 = vld [vmem:[%s13682_s27 + $0xddc] sm:$0xf0]  ;;  %6482 = vmatmul.bf16.vlgmr.msra.gmra.mxu3 %v13801_v22 }
  0x7e   : > { %v10248_v37 = vld [vmem:[%s13682_s27 + $0xfc0] sm:$0xf]  ;;  %v9993_v42 = vor.u32 %v12773_v34, %v9992_v33  ;;  %6500 = vmatpush.bf16.msrb.mxu1 %v9737_v41 }
  0x7f   : > { %v12837_v38 = vld [vmem:[%s13682_s27 + $0xfdc] sm:$0xf0] }
  0x80   : > { %v9448_v43 = vld [vmem:[%s13682_s27 + $0x980] sm:$0xf]  ;;  %v10249_v46 = vor.u32 %v12837_v38, %v10248_v37  ;;  %6513 = vmatpush.bf16.msrb.mxu2 %v9993_v42 }
  0x81   : > { %v12637_v44 = vld [vmem:[%s13682_s27 + $0x99c] sm:$0xf0] }
  0x82   : > { %v9704_v45 = vld [vmem:[%s13682_s27 + $0xb80] sm:$0xf]  ;;  %v9449_v52 = vor.u32 %v12637_v44, %v9448_v43  ;;  %6526 = vmatpush.bf16.msrb.mxu3 %v10249_v46 }
  0x83   : > { %v12701_v47 = vld [vmem:[%s13682_s27 + $0xb9c] sm:$0xf0] }
  0x84   : > { %v9960_v48 = vld [vmem:[%s13682_s27 + $0xd80] sm:$0xf]  ;;  %v9705_v55 = vor.u32 %v12701_v47, %v9704_v45  ;;  %6488 = vmatpush.bf16.msrb.mxu0 %v9449_v52 }
  0x85   : > { %v12765_v49 = vld [vmem:[%s13682_s27 + $0xd9c] sm:$0xf0] }
  0x86   : > { %v10216_v50 = vld [vmem:[%s13682_s27 + $0xf80] sm:$0xf]  ;;  %v9961_v56 = vor.u32 %v12765_v49, %v9960_v48  ;;  %6501 = vmatpush.bf16.msrb.mxu1 %v9705_v55 }
  0x87   : > { %v12829_v51 = vld [vmem:[%s13682_s27 + $0xf9c] sm:$0xf0] }
  0x88   : > { %v9416_v53 = vld [vmem:[%s13682_s27 + $0x940] sm:$0xf]  ;;  %v10217_v60 = vor.u32 %v12829_v51, %v10216_v50  ;;  %6514 = vmatpush.bf16.msrb.mxu2 %v9961_v56 }
  0x89   : > { %v12629_v54 = vld [vmem:[%s13682_s27 + $0x95c] sm:$0xf0] }
  0x8a   : > { %v9672_v57 = vld [vmem:[%s13682_s27 + $0xb40] sm:$0xf]  ;;  %v9417_v1 = vor.u32 %v12629_v54, %v9416_v53  ;;  %6527 = vmatpush.bf16.msrb.mxu3 %v10217_v60 }
  0x8b   : > { %v12693_v58 = vld [vmem:[%s13682_s27 + $0xb5c] sm:$0xf0] }
  0x8c   : > { %v9928_v61 = vld [vmem:[%s13682_s27 + $0xd40] sm:$0xf]  ;;  %v9673_v2 = vor.u32 %v12693_v58, %v9672_v57  ;;  %6489 = vmatpush.bf16.msrb.mxu0 %v9417_v1 }
  0x8d   : > { %v12757_v62 = vld [vmem:[%s13682_s27 + $0xd5c] sm:$0xf0] }
  0x8e   : > { %v10184_v63 = vld [vmem:[%s13682_s27 + $0xf40] sm:$0xf]  ;;  %v9929_v3 = vor.u32 %v12757_v62, %v9928_v61  ;;  %6502 = vmatpush.bf16.msrb.mxu1 %v9673_v2 }
  0x8f   : > { %v12821_v0 = vld [vmem:[%s13682_s27 + $0xf5c] sm:$0xf0] }
  0x90   : > { %v9384_v4 = vld [vmem:[%s13682_s27 + $0x900] sm:$0xf]  ;;  %v10185_v7 = vor.u32 %v12821_v0, %v10184_v63  ;;  %6515 = vmatpush.bf16.msrb.mxu2 %v9929_v3 }
  0x91   : > { %v12621_v5 = vld [vmem:[%s13682_s27 + $0x91c] sm:$0xf0] }
  0x92   : > { %v9640_v6 = vld [vmem:[%s13682_s27 + $0xb00] sm:$0xf]  ;;  %v9385_v14 = vor.u32 %v12621_v5, %v9384_v4  ;;  %6528 = vmatpush.bf16.msrb.mxu3 %v10185_v7 }
  0x93   : > { %v12685_v8 = vld [vmem:[%s13682_s27 + $0xb1c] sm:$0xf0] }
  0x94   : > { %v9896_v9 = vld [vmem:[%s13682_s27 + $0xd00] sm:$0xf]  ;;  %v9641_v18 = vor.u32 %v12685_v8, %v9640_v6  ;;  %6490 = vmatpush.bf16.msrb.mxu0 %v9385_v14 }
  0x95   : > { %v12749_v10 = vld [vmem:[%s13682_s27 + $0xd1c] sm:$0xf0] }
  0x96   : > { %v10152_v11 = vld [vmem:[%s13682_s27 + $0xf00] sm:$0xf]  ;;  %v9897_v19 = vor.u32 %v12749_v10, %v9896_v9  ;;  %6503 = vmatpush.bf16.msrb.mxu1 %v9641_v18 }
  0x97   : > { %v12813_v12 = vld [vmem:[%s13682_s27 + $0xf1c] sm:$0xf0] }
  0x98   : > { %v9352_v13 = vld [vmem:[%s13682_s27 + $0x8c0] sm:$0xf]  ;;  %v10153_v23 = vor.u32 %v12813_v12, %v10152_v11  ;;  %6516 = vmatpush.bf16.msrb.mxu2 %v9897_v19 }
  0x99   : > { %v12613_v15 = vld [vmem:[%s13682_s27 + $0x8dc] sm:$0xf0] }
  0x9a   : > { %v9608_v16 = vld [vmem:[%s13682_s27 + $0xac0] sm:$0xf]  ;;  %v9353_v29 = vor.u32 %v12613_v15, %v9352_v13  ;;  %6529 = vmatpush.bf16.msrb.mxu3 %v10153_v23 }
  0x9b   : > { %v12677_v17 = vld [vmem:[%s13682_s27 + $0xadc] sm:$0xf0] }
  0x9c   : > { %v9864_v24 = vld [vmem:[%s13682_s27 + $0xcc0] sm:$0xf]  ;;  %v9609_v30 = vor.u32 %v12677_v17, %v9608_v16  ;;  %6491 = vmatpush.bf16.msrb.mxu0 %v9353_v29  ;;  %v13853_v29 = vld [vmem:[#allocation1 + $0x36] sm:$0xff] }
  0x9d   : > { %v12741_v25 = vld [vmem:[%s13682_s27 + $0xcdc] sm:$0xf0] }
  0x9e   : > { %v13806_v26 = vld [vmem:[#allocation1 + $0x9] sm:$0xff]  ;;  %v9865_v31 = vor.u32 %v12741_v25, %v9864_v24  ;;  %6504 = vmatpush.bf16.msrb.mxu1 %v9609_v30 }
  0x9f   : > { %v10120_v27 = vld [vmem:[%s13682_s27 + $0xec0] sm:$0xf]  ;;  %6456 = vmatmul.bf16.vlgmr.msra.gmra.mxu1 %v13806_v26 }
  0xa0   : > { %v12805_v28 = vld [vmem:[%s13682_s27 + $0xedc] sm:$0xf0]  ;;  %6517 = vmatpush.bf16.msrb.mxu2 %v9865_v31 }
  0xa1   : > { %v9320_v32 = vld [vmem:[%s13682_s27 + $0x880] sm:$0xf]  ;;  %v10121_v35 = vor.u32 %v12805_v28, %v10120_v27 }
  0xa2   : > { %v12605_v33 = vld [vmem:[%s13682_s27 + $0x89c] sm:$0xf0] }
  0xa3   : > { %v9576_v34 = vld [vmem:[%s13682_s27 + $0xa80] sm:$0xf]  ;;  %v9321_v41 = vor.u32 %v12605_v33, %v9320_v32  ;;  %6530 = vmatpush.bf16.msrb.mxu3 %v10121_v35  ;;  %v13858_v33 = vld [vmem:[#allocation1 + $0x3f] sm:$0xff] }
  0xa4   : > { %v12669_v36 = vld [vmem:[%s13682_s27 + $0xa9c] sm:$0xf0] }
  0xa5   : > { %v9832_v37 = vld [vmem:[%s13682_s27 + $0xc80] sm:$0xf]  ;;  %v9577_v42 = vor.u32 %v12669_v36, %v9576_v34  ;;  %6492 = vmatpush.bf16.msrb.mxu0 %v9321_v41 }
  0xa6   : > { %v12733_v38 = vld [vmem:[%s13682_s27 + $0xc9c] sm:$0xf0] }
  0xa7   : > { %v10088_v39 = vld [vmem:[%s13682_s27 + $0xe80] sm:$0xf]  ;;  %v9833_v43 = vor.u32 %v12733_v38, %v9832_v37  ;;  %6505 = vmatpush.bf16.msrb.mxu1 %v9577_v42  ;;  %v13862_v38 = vld [vmem:[#allocation1 + $0x2d] sm:$0xff] }
  0xa8   : > { %v12797_v40 = vld [vmem:[%s13682_s27 + $0xe9c] sm:$0xf0] }
  0xa9   : > { %v9288_v44 = vld [vmem:[%s13682_s27 + $0x840] sm:$0xf]  ;;  %v10089_v47 = vor.u32 %v12797_v40, %v10088_v39  ;;  %6518 = vmatpush.bf16.msrb.mxu2 %v9833_v43 }
  0xaa   : > { %v12597_v45 = vld [vmem:[%s13682_s27 + $0x85c] sm:$0xf0] }
  0xab   : > { %v9544_v46 = vld [vmem:[%s13682_s27 + $0xa40] sm:$0xf]  ;;  %v9289_v53 = vor.u32 %v12597_v45, %v9288_v44  ;;  %6531 = vmatpush.bf16.msrb.mxu3 %v10089_v47 }
  0xac   : > { %v12661_v48 = vld [vmem:[%s13682_s27 + $0xa5c] sm:$0xf0] }
  0xad   : > { %v9800_v49 = vld [vmem:[%s13682_s27 + $0xc40] sm:$0xf]  ;;  %v9545_v56 = vor.u32 %v12661_v48, %v9544_v46  ;;  %6493 = vmatpush.bf16.msrb.mxu0 %v9289_v53 }
  0xae   : > { %v12725_v50 = vld [vmem:[%s13682_s27 + $0xc5c] sm:$0xf0] }
  0xaf   : > { %v10056_v51 = vld [vmem:[%s13682_s27 + $0xe40] sm:$0xf]  ;;  %v9801_v57 = vor.u32 %v12725_v50, %v9800_v49  ;;  %6506 = vmatpush.bf16.msrb.mxu1 %v9545_v56 }
  0xb0   : > { %v12789_v52 = vld [vmem:[%s13682_s27 + $0xe5c] sm:$0xf0] }
  0xb1   : > { %v9256_v54 = vld [vmem:[%s13682_s27 + $0x800] sm:$0xf]  ;;  %v10057_v61 = vor.u32 %v12789_v52, %v10056_v51  ;;  %6519 = vmatpush.bf16.msrb.mxu2 %v9801_v57 }
  0xb2   : > { %v12589_v55 = vld [vmem:[%s13682_s27 + $0x81c] sm:$0xf0] }
  0xb3   : > { %v9512_v58 = vld [vmem:[%s13682_s27 + $0xa00] sm:$0xf]  ;;  %v9257_v4 = vor.u32 %v12589_v55, %v9256_v54  ;;  %6532 = vmatpush.bf16.msrb.mxu3 %v10057_v61 }
  0xb4   : > { %v12653_v59 = vld [vmem:[%s13682_s27 + $0xa1c] sm:$0xf0] }
  0xb5   : > { %v9768_v60 = vld [vmem:[%s13682_s27 + $0xc00] sm:$0xf]  ;;  %v9513_v8 = vor.u32 %v12653_v59, %v9512_v58  ;;  %6494 = vmatpush.bf16.msrb.mxu0 %v9257_v4 }
  0xb6   : > { %v12717_v62 = vld [vmem:[%s13682_s27 + $0xc1c] sm:$0xf0] }
  0xb7   : > { %v10024_v63 = vld [vmem:[%s13682_s27 + $0xe00] sm:$0xf]  ;;  %v9769_v9 = vor.u32 %v12717_v62, %v9768_v60  ;;  %6507 = vmatpush.bf16.msrb.mxu1 %v9513_v8 }
  0xb8   : > { %v12781_v0 = vld [vmem:[%s13682_s27 + $0xe1c] sm:$0xf0] }
  0xb9   : > { %v10504_v1 = vld [vmem:[%s13682_s27 + $0x11c0] sm:$0xf]  ;;  %v10025_v12 = vor.u32 %v12781_v0, %v10024_v63  ;;  %6520 = vmatpush.bf16.msrb.mxu2 %v9769_v9 }
  0xba   : > { %v12901_v2 = vld [vmem:[%s13682_s27 + $0x11dc] sm:$0xf0]  ;;  %6508 = vmatmul.bf16.vlgmr.msrb.gmra.mxu1 %v13862_v38 }
  0xbb   : > { %v10760_v3 = vld [vmem:[%s13682_s27 + $0x13c0] sm:$0xf]  ;;  %v10505_v13 = vor.u32 %v12901_v2, %v10504_v1  ;;  %6533 = vmatpush.bf16.msrb.mxu3 %v10025_v12 }
  0xbc   : > { %v12965_v5 = vld [vmem:[%s13682_s27 + $0x13dc] sm:$0xf0]  ;;  %6521 = vmatmul.bf16.vlgmr.msrb.gmra.mxu2 %v13853_v29 }
  0xbd   : > { %v11016_v6 = vld [vmem:[%s13682_s27 + $0x15c0] sm:$0xf]  ;;  %v10761_v14 = vor.u32 %v12965_v5, %v10760_v3  ;;  %6539 = vmatpush.bf16.msra.mxu0 %v10505_v13 }
  0xbe   : > { %v13029_v7 = vld [vmem:[%s13682_s27 + $0x15dc] sm:$0xf0]  ;;  %6534 = vmatmul.bf16.vlgmr.msrb.gmra.mxu3 %v13858_v33 }
  0xbf   : > { %v11272_v10 = vld [vmem:[%s13682_s27 + $0x17c0] sm:$0xf]  ;;  %v11017_v15 = vor.u32 %v13029_v7, %v11016_v6  ;;  %6552 = vmatpush.bf16.msra.mxu1 %v10761_v14 }
  0xc0   : > { %v13093_v11 = vld [vmem:[%s13682_s27 + $0x17dc] sm:$0xf0] }
  0xc1   : > { %v10472_v16 = vld [vmem:[%s13682_s27 + $0x1180] sm:$0xf]  ;;  %v11273_v19 = vor.u32 %v13093_v11, %v11272_v10  ;;  %6565 = vmatpush.bf16.msra.mxu2 %v11017_v15 }
  0xc2   : > { %v12893_v17 = vld [vmem:[%s13682_s27 + $0x119c] sm:$0xf0] }
  0xc3   : > { %v10728_v18 = vld [vmem:[%s13682_s27 + $0x1380] sm:$0xf]  ;;  %v10473_v30 = vor.u32 %v12893_v17, %v10472_v16  ;;  %6578 = vmatpush.bf16.msra.mxu3 %v11273_v19 }
  0xc4   : > { %v12957_v23 = vld [vmem:[%s13682_s27 + $0x139c] sm:$0xf0] }
  0xc5   : > { %v10984_v24 = vld [vmem:[%s13682_s27 + $0x1580] sm:$0xf]  ;;  %v10729_v34 = vor.u32 %v12957_v23, %v10728_v18  ;;  %6540 = vmatpush.bf16.msra.mxu0 %v10473_v30 }
  0xc6   : > { %v13021_v25 = vld [vmem:[%s13682_s27 + $0x159c] sm:$0xf0] }
  0xc7   : > { %v11240_v27 = vld [vmem:[%s13682_s27 + $0x1780] sm:$0xf]  ;;  %v10985_v35 = vor.u32 %v13021_v25, %v10984_v24  ;;  %6553 = vmatpush.bf16.msra.mxu1 %v10729_v34 }
  0xc8   : > { %v13085_v28 = vld [vmem:[%s13682_s27 + $0x179c] sm:$0xf0] }
  0xc9   : > { %v10440_v31 = vld [vmem:[%s13682_s27 + $0x1140] sm:$0xf]  ;;  %v11241_v39 = vor.u32 %v13085_v28, %v11240_v27  ;;  %6566 = vmatpush.bf16.msra.mxu2 %v10985_v35 }
  0xca   : > { %v13856_v32 = vld [vmem:[#allocation1 + $0x24] sm:$0xff] }
  0xcb   : > { %v12885_v36 = vld [vmem:[%s13682_s27 + $0x115c] sm:$0xf0]  ;;  %6495 = vmatmul.bf16.vlgmr.msrb.gmra.mxu0 %v13856_v32  ;;  %6579 = vmatpush.bf16.msra.mxu3 %v11241_v39 }
  0xcc   : > { %v10696_v37 = vld [vmem:[%s13682_s27 + $0x1340] sm:$0xf]  ;;  %v10441_v45 = vor.u32 %v12885_v36, %v10440_v31 }
  0xcd   : > { %v12949_v40 = vld [vmem:[%s13682_s27 + $0x135c] sm:$0xf0] }
  0xce   : > { %v10952_v41 = vld [vmem:[%s13682_s27 + $0x1540] sm:$0xf]  ;;  %v10697_v46 = vor.u32 %v12949_v40, %v10696_v37  ;;  %6541 = vmatpush.bf16.msra.mxu0 %v10441_v45 }
  0xcf   : > { %v13013_v42 = vld [vmem:[%s13682_s27 + $0x155c] sm:$0xf0] }
  0xd0   : > { %v11208_v43 = vld [vmem:[%s13682_s27 + $0x1740] sm:$0xf]  ;;  %v10953_v47 = vor.u32 %v13013_v42, %v10952_v41  ;;  %6554 = vmatpush.bf16.msra.mxu1 %v10697_v46 }
  0xd1   : > { %v13077_v44 = vld [vmem:[%s13682_s27 + $0x175c] sm:$0xf0] }
  0xd2   : > { %v10408_v48 = vld [vmem:[%s13682_s27 + $0x1100] sm:$0xf]  ;;  %v11209_v51 = vor.u32 %v13077_v44, %v11208_v43  ;;  %6567 = vmatpush.bf16.msra.mxu2 %v10953_v47 }
  0xd3   : > { %v12877_v49 = vld [vmem:[%s13682_s27 + $0x111c] sm:$0xf0] }
  0xd4   : > { %v10664_v50 = vld [vmem:[%s13682_s27 + $0x1300] sm:$0xf]  ;;  %v10409_v58 = vor.u32 %v12877_v49, %v10408_v48  ;;  %6580 = vmatpush.bf16.msra.mxu3 %v11209_v51 }
  0xd5   : > { %v12941_v52 = vld [vmem:[%s13682_s27 + $0x131c] sm:$0xf0] }
  0xd6   : > { %v10920_v53 = vld [vmem:[%s13682_s27 + $0x1500] sm:$0xf]  ;;  %v10665_v59 = vor.u32 %v12941_v52, %v10664_v50  ;;  %6542 = vmatpush.bf16.msra.mxu0 %v10409_v58 }
  0xd7   : > { %v13005_v54 = vld [vmem:[%s13682_s27 + $0x151c] sm:$0xf0] }
  0xd8   : > { %v11176_v55 = vld [vmem:[%s13682_s27 + $0x1700] sm:$0xf]  ;;  %v10921_v60 = vor.u32 %v13005_v54, %v10920_v53  ;;  %6555 = vmatpush.bf16.msra.mxu1 %v10665_v59 }
  0xd9   : > { %v13069_v56 = vld [vmem:[%s13682_s27 + $0x171c] sm:$0xf0] }
  0xda   : > { %v236_v57 = vld [vmem:[%s15969_s0 + $0x8] sm:$0xff]  ;;  %v11177_v0 = vor.u32 %v13069_v56, %v11176_v55  ;;  %6568 = vmatpush.bf16.msra.mxu2 %v10921_v60 }
  0xdb   : > { %1290 = vst [vmem:[#allocation1] ss:$9 sm:$0xff] %v236_v57  ;;  %v10376_v61 = vld [vmem:[%s13682_s27 + $0x10c0] sm:$0xf] }
  0xdc   : > { %v12869_v62 = vld [vmem:[%s13682_s27 + $0x10dc] sm:$0xf0]  ;;  %6581 = vmatpush.bf16.msra.mxu3 %v11177_v0 }
  0xdd   : > { %v10632_v63 = vld [vmem:[%s13682_s27 + $0x12c0] sm:$0xf]  ;;  %v10377_v6 = vor.u32 %v12869_v62, %v10376_v61 }
  0xde   : > { %v12933_v1 = vld [vmem:[%s13682_s27 + $0x12dc] sm:$0xf0] }
  0xdf   : > { %v10888_v2 = vld [vmem:[%s13682_s27 + $0x14c0] sm:$0xf]  ;;  %v10633_v7 = vor.u32 %v12933_v1, %v10632_v63  ;;  %6543 = vmatpush.bf16.msra.mxu0 %v10377_v6 }
  0xe0   : > { %v12997_v3 = vld [vmem:[%s13682_s27 + $0x14dc] sm:$0xf0] }
  0xe1   : > { %v11144_v4 = vld [vmem:[%s13682_s27 + $0x16c0] sm:$0xf]  ;;  %v10889_v8 = vor.u32 %v12997_v3, %v10888_v2  ;;  %6556 = vmatpush.bf16.msra.mxu1 %v10633_v7 }
  0xe2   : > { %v13061_v5 = vld [vmem:[%s13682_s27 + $0x16dc] sm:$0xf0] }
  0xe3   : > { %v10344_v9 = vld [vmem:[%s13682_s27 + $0x1080] sm:$0xf]  ;;  %v11145_v12 = vor.u32 %v13061_v5, %v11144_v4  ;;  %6569 = vmatpush.bf16.msra.mxu2 %v10889_v8  ;;  %v1291_v8 = vld [vmem:[#allocation1] sm:$0xff] }
  0xe4   : > { %v12861_v10 = vld [vmem:[%s13682_s27 + $0x109c] sm:$0xf0] }
  0xe5   : > { %v10600_v11 = vld [vmem:[%s13682_s27 + $0x1280] sm:$0xf]  ;;  %v10345_v18 = vor.u32 %v12861_v10, %v10344_v9  ;;  %6582 = vmatpush.bf16.msra.mxu3 %v11145_v12 }
  0xe6   : > { %v12925_v13 = vld [vmem:[%s13682_s27 + $0x129c] sm:$0xf0] }
  0xe7   : > { %v10856_v14 = vld [vmem:[%s13682_s27 + $0x1480] sm:$0xf]  ;;  %v10601_v19 = vor.u32 %v12925_v13, %v10600_v11  ;;  %6544 = vmatpush.bf16.msra.mxu0 %v10345_v18  ;;  %v1293_v11 = vld [vmem:[#allocation1 + $0x12] sm:$0xff] }
  0xe8   : > { %v12989_v15 = vld [vmem:[%s13682_s27 + $0x149c] sm:$0xf0] }
  0xe9   : > { %v11112_v16 = vld [vmem:[%s13682_s27 + $0x1680] sm:$0xf]  ;;  %v10857_v23 = vor.u32 %v12989_v15, %v10856_v14  ;;  %6557 = vmatpush.bf16.msra.mxu1 %v10601_v19  ;;  %v1294_v15 = vld [vmem:[#allocation1 + $0x1b] sm:$0xff] }
  0xea   : > { %v13053_v17 = vld [vmem:[%s13682_s27 + $0x169c] sm:$0xf0] }
  0xeb   : > { %v10312_v24 = vld [vmem:[%s13682_s27 + $0x1040] sm:$0xf]  ;;  %v11113_v28 = vor.u32 %v13053_v17, %v11112_v16  ;;  %6570 = vmatpush.bf16.msra.mxu2 %v10857_v23 }
  0xec   : > { %v12853_v25 = vld [vmem:[%s13682_s27 + $0x105c] sm:$0xf0] }
  0xed   : > { %v10568_v27 = vld [vmem:[%s13682_s27 + $0x1240] sm:$0xf]  ;;  %v10313_v37 = vor.u32 %v12853_v25, %v10312_v24  ;;  %6583 = vmatpush.bf16.msra.mxu3 %v11113_v28 }
  0xee   : > { %v12917_v30 = vld [vmem:[%s13682_s27 + $0x125c] sm:$0xf0] }
  0xef   : > { %v10824_v31 = vld [vmem:[%s13682_s27 + $0x1440] sm:$0xf]  ;;  %v10569_v41 = vor.u32 %v12917_v30, %v10568_v27  ;;  %6545 = vmatpush.bf16.msra.mxu0 %v10313_v37 }
  0xf0   : > { %v12981_v34 = vld [vmem:[%s13682_s27 + $0x145c] sm:$0xf0] }
  0xf1   : > { %v11080_v35 = vld [vmem:[%s13682_s27 + $0x1640] sm:$0xf]  ;;  %v10825_v42 = vor.u32 %v12981_v34, %v10824_v31  ;;  %6558 = vmatpush.bf16.msra.mxu1 %v10569_v41 }
  0xf2   : > { %v13045_v36 = vld [vmem:[%s13682_s27 + $0x165c] sm:$0xf0] }
  0xf3   : > { %v10280_v39 = vld [vmem:[%s13682_s27 + $0x1000] sm:$0xf]  ;;  %v11081_v46 = vor.u32 %v13045_v36, %v11080_v35  ;;  %6571 = vmatpush.bf16.msra.mxu2 %v10825_v42 }
  0xf4   : > { %v12845_v40 = vld [vmem:[%s13682_s27 + $0x101c] sm:$0xf0] }
  0xf5   : > { %v10536_v43 = vld [vmem:[%s13682_s27 + $0x1200] sm:$0xf]  ;;  %v10281_v53 = vor.u32 %v12845_v40, %v10280_v39  ;;  %6584 = vmatpush.bf16.msra.mxu3 %v11081_v46 }
  0xf6   : > { %v12909_v44 = vld [vmem:[%s13682_s27 + $0x121c] sm:$0xf0] }
  0xf7   : > { %v10792_v45 = vld [vmem:[%s13682_s27 + $0x1400] sm:$0xf]  ;;  %v10537_v57 = vor.u32 %v12909_v44, %v10536_v43  ;;  %6546 = vmatpush.bf16.msra.mxu0 %v10281_v53 }
  0xf8   : > { %v12973_v47 = vld [vmem:[%s13682_s27 + $0x141c] sm:$0xf0] }
  0xf9   : > { %v11048_v48 = vld [vmem:[%s13682_s27 + $0x1600] sm:$0xf]  ;;  %v10793_v58 = vor.u32 %v12973_v47, %v10792_v45  ;;  %6559 = vmatpush.bf16.msra.mxu1 %v10537_v57 }
  0xfa   : > { %v13037_v49 = vld [vmem:[%s13682_s27 + $0x161c] sm:$0xf0]  ;;  %6547 = vmatmul.bf16.vlgmr.msra.gmra.mxu0 %v1291_v8 }
  0xfb   : > { %v11528_v50 = vld [vmem:[%s13682_s27 + $0x19c0] sm:$0xf]  ;;  %v11049_v61 = vor.u32 %v13037_v49, %v11048_v48  ;;  %6572 = vmatpush.bf16.msra.mxu2 %v10793_v58 }
  0xfc   : > { %v13157_v51 = vld [vmem:[%s13682_s27 + $0x19dc] sm:$0xf0] }
  0xfd   : > { %v11784_v52 = vld [vmem:[%s13682_s27 + $0x1bc0] sm:$0xf]  ;;  %v11529_v62 = vor.u32 %v13157_v51, %v11528_v50  ;;  %6585 = vmatpush.bf16.msra.mxu3 %v11049_v61 }
  0xfe   : > { %v13221_v54 = vld [vmem:[%s13682_s27 + $0x1bdc] sm:$0xf0]  ;;  %6573 = vmatmul.bf16.vlgmr.msra.gmra.mxu2 %v1293_v11 }
  0xff   : > { %v12040_v55 = vld [vmem:[%s13682_s27 + $0x1dc0] sm:$0xf]  ;;  %v11785_v63 = vor.u32 %v13221_v54, %v11784_v52  ;;  %6591 = vmatpush.bf16.msrb.mxu0 %v11529_v62 }
 0x100   : > { %v13285_v56 = vld [vmem:[%s13682_s27 + $0x1ddc] sm:$0xf0]  ;;  %6586 = vmatmul.bf16.vlgmr.msra.gmra.mxu3 %v1294_v15 }
 0x101   : > { %v12296_v59 = vld [vmem:[%s13682_s27 + $0x1fc0] sm:$0xf]  ;;  %v12041_v0 = vor.u32 %v13285_v56, %v12040_v55  ;;  %6604 = vmatpush.bf16.msrb.mxu1 %v11785_v63 }
 0x102   : > { %v13349_v60 = vld [vmem:[%s13682_s27 + $0x1fdc] sm:$0xf0] }
 0x103   : > { %v11496_v1 = vld [vmem:[%s13682_s27 + $0x1980] sm:$0xf]  ;;  %v12297_v4 = vor.u32 %v13349_v60, %v12296_v59  ;;  %6617 = vmatpush.bf16.msrb.mxu2 %v12041_v0 }
 0x104   : > { %v13149_v2 = vld [vmem:[%s13682_s27 + $0x199c] sm:$0xf0] }
 0x105   : > { %v11752_v3 = vld [vmem:[%s13682_s27 + $0x1b80] sm:$0xf]  ;;  %v11497_v13 = vor.u32 %v13149_v2, %v11496_v1  ;;  %6630 = vmatpush.bf16.msrb.mxu3 %v12297_v4 }
 0x106   : > { %v13213_v5 = vld [vmem:[%s13682_s27 + $0x1b9c] sm:$0xf0] }
 0x107   : > { %v12008_v6 = vld [vmem:[%s13682_s27 + $0x1d80] sm:$0xf]  ;;  %v11753_v16 = vor.u32 %v13213_v5, %v11752_v3  ;;  %6592 = vmatpush.bf16.msrb.mxu0 %v11497_v13 }
 0x108   : > { %v13277_v7 = vld [vmem:[%s13682_s27 + $0x1d9c] sm:$0xf0] }
 0x109   : > { %v12264_v9 = vld [vmem:[%s13682_s27 + $0x1f80] sm:$0xf]  ;;  %v12009_v17 = vor.u32 %v13277_v7, %v12008_v6  ;;  %6605 = vmatpush.bf16.msrb.mxu1 %v11753_v16 }
 0x10a   : > { %v13341_v10 = vld [vmem:[%s13682_s27 + $0x1f9c] sm:$0xf0] }
 0x10b   : > { %v1292_v12 = vld [vmem:[#allocation1 + $0x9] sm:$0xff]  ;;  %v12265_v23 = vor.u32 %v13341_v10, %v12264_v9  ;;  %6618 = vmatpush.bf16.msrb.mxu2 %v12009_v17 }
 0x10c   : > { %v11464_v14 = vld [vmem:[%s13682_s27 + $0x1940] sm:$0xf]  ;;  %6560 = vmatmul.bf16.vlgmr.msra.gmra.mxu1 %v1292_v12 }
 0x10d   : > { %v13141_v18 = vld [vmem:[%s13682_s27 + $0x195c] sm:$0xf0]  ;;  %6631 = vmatpush.bf16.msrb.mxu3 %v12265_v23 }
 0x10e   : > { %v11720_v19 = vld [vmem:[%s13682_s27 + $0x1b40] sm:$0xf]  ;;  %v11465_v31 = vor.u32 %v13141_v18, %v11464_v14 }
 0x10f   : > { %v13205_v24 = vld [vmem:[%s13682_s27 + $0x1b5c] sm:$0xf0] }
 0x110   : > { %v11976_v25 = vld [vmem:[%s13682_s27 + $0x1d40] sm:$0xf]  ;;  %v11721_v34 = vor.u32 %v13205_v24, %v11720_v19  ;;  %6593 = vmatpush.bf16.msrb.mxu0 %v11465_v31 }
 0x111   : > { %v13269_v27 = vld [vmem:[%s13682_s27 + $0x1d5c] sm:$0xf0] }
 0x112   : > { %v12232_v28 = vld [vmem:[%s13682_s27 + $0x1f40] sm:$0xf]  ;;  %v11977_v35 = vor.u32 %v13269_v27, %v11976_v25  ;;  %6606 = vmatpush.bf16.msrb.mxu1 %v11721_v34 }
 0x113   : > { %v13333_v30 = vld [vmem:[%s13682_s27 + $0x1f5c] sm:$0xf0] }
 0x114   : > { %v11432_v36 = vld [vmem:[%s13682_s27 + $0x1900] sm:$0xf]  ;;  %v12233_v40 = vor.u32 %v13333_v30, %v12232_v28  ;;  %6619 = vmatpush.bf16.msrb.mxu2 %v11977_v35 }
 0x115   : > { %v13133_v37 = vld [vmem:[%s13682_s27 + $0x191c] sm:$0xf0] }
 0x116   : > { %v11688_v39 = vld [vmem:[%s13682_s27 + $0x1b00] sm:$0xf]  ;;  %v11433_v46 = vor.u32 %v13133_v37, %v11432_v36  ;;  %6632 = vmatpush.bf16.msrb.mxu3 %v12233_v40  ;;  %v12385_v37 = vld [vmem:[%s13682_s27 + $0x1c4] sm:$0xf] }
 0x117   : > { %v13197_v41 = vld [vmem:[%s13682_s27 + $0x1b1c] sm:$0xf0]  ;;  %v12449_v40 = vld [vmem:[%s13682_s27 + $0x3c4] sm:$0xf] }
 0x118   : > { %v11944_v42 = vld [vmem:[%s13682_s27 + $0x1d00] sm:$0xf]  ;;  %v11689_v47 = vor.u32 %v13197_v41, %v11688_v39  ;;  %6594 = vmatpush.bf16.msrb.mxu0 %v11433_v46  ;;  %v8458_v39 = vld [vmem:[%s13682_s27 + $0x1e0] sm:$0xf0] }
 0x119   : > { %v13261_v43 = vld [vmem:[%s13682_s27 + $0x1d1c] sm:$0xf0] }
 0x11a   : > { %v12200_v44 = vld [vmem:[%s13682_s27 + $0x1f00] sm:$0xf]  ;;  %v11945_v48 = vor.u32 %v13261_v43, %v11944_v42  ;;  %6607 = vmatpush.bf16.msrb.mxu1 %v11689_v47  ;;  %v8714_v42 = vld [vmem:[%s13682_s27 + $0x3e0] sm:$0xf0] }
 0x11b   : > { %v13325_v45 = vld [vmem:[%s13682_s27 + $0x1f1c] sm:$0xf0]  ;;  %v12513_v43 = vld [vmem:[%s13682_s27 + $0x5c4] sm:$0xf] }
 0x11c   : > { %v11400_v49 = vld [vmem:[%s13682_s27 + $0x18c0] sm:$0xf]  ;;  %v12201_v52 = vor.u32 %v13325_v45, %v12200_v44  ;;  %6620 = vmatpush.bf16.msrb.mxu2 %v11945_v48  ;;  %v8970_v44 = vld [vmem:[%s13682_s27 + $0x5e0] sm:$0xf0] }
 0x11d   : > { %v13125_v50 = vld [vmem:[%s13682_s27 + $0x18dc] sm:$0xf0]  ;;  %v12577_v47 = vld [vmem:[%s13682_s27 + $0x7c4] sm:$0xf] }
 0x11e   : > { %v11656_v51 = vld [vmem:[%s13682_s27 + $0x1ac0] sm:$0xf]  ;;  %v11401_v58 = vor.u32 %v13125_v50, %v11400_v49  ;;  %6633 = vmatpush.bf16.msrb.mxu3 %v12201_v52  ;;  %v9226_v48 = vld [vmem:[%s13682_s27 + $0x7e0] sm:$0xf0]  ;;  %v8461_v50 = vor.u32 %v12385_v37, %v8458_v39  ;;  %v8973_v52 = vor.u32 %v12513_v43, %v8970_v44 }
 0x11f   : > { %v13189_v53 = vld [vmem:[%s13682_s27 + $0x1adc] sm:$0xf0]  ;;  %v8330_v37 = vld [vmem:[%s13682_s27 + $0xe0] sm:$0xf0] }
 0x120   : > { %v11912_v54 = vld [vmem:[%s13682_s27 + $0x1cc0] sm:$0xf]  ;;  %v11657_v59 = vor.u32 %v13189_v53, %v11656_v51  ;;  %6595 = vmatpush.bf16.msrb.mxu0 %v11401_v58  ;;  %v8717_v51 = vor.u32 %v12449_v40, %v8714_v42  ;;  %v12377_v53 = vld [vmem:[%s13682_s27 + $0x184] sm:$0xf] }
 0x121   : > { %v13253_v55 = vld [vmem:[%s13682_s27 + $0x1cdc] sm:$0xf0]  ;;  %v12505_v58 = vld [vmem:[%s13682_s27 + $0x584] sm:$0xf] }
 0x122   : > { %v12168_v56 = vld [vmem:[%s13682_s27 + $0x1ec0] sm:$0xf]  ;;  %v11913_v60 = vor.u32 %v13253_v55, %v11912_v54  ;;  %6608 = vmatpush.bf16.msrb.mxu1 %v11657_v59  ;;  %v8426_v54 = vld [vmem:[%s13682_s27 + $0x1a0] sm:$0xf0] }
 0x123   : > { %v13317_v57 = vld [vmem:[%s13682_s27 + $0x1edc] sm:$0xf0]  ;;  %v12441_v55 = vld [vmem:[%s13682_s27 + $0x384] sm:$0xf] }
 0x124   : > { %v11368_v61 = vld [vmem:[%s13682_s27 + $0x1880] sm:$0xf]  ;;  %v12169_v0 = vor.u32 %v13317_v57, %v12168_v56  ;;  %6621 = vmatpush.bf16.msrb.mxu2 %v11913_v60  ;;  %v9229_v56 = vor.u32 %v12577_v47, %v9226_v48  ;;  %v8682_v57 = vld [vmem:[%s13682_s27 + $0x3a0] sm:$0xf0] }
 0x125   : > { %v13117_v62 = vld [vmem:[%s13682_s27 + $0x189c] sm:$0xf0]  ;;  %v8938_v59 = vld [vmem:[%s13682_s27 + $0x5a0] sm:$0xf0] }
 0x126   : > { %v11624_v63 = vld [vmem:[%s13682_s27 + $0x1a80] sm:$0xf]  ;;  %v11369_v6 = vor.u32 %v13117_v62, %v11368_v61  ;;  %6634 = vmatpush.bf16.msrb.mxu3 %v12169_v0  ;;  %v12569_v61 = vld [vmem:[%s13682_s27 + $0x784] sm:$0xf] }
 0x127   : > { %v13181_v1 = vld [vmem:[%s13682_s27 + $0x1a9c] sm:$0xf0]  ;;  %v9194_v62 = vld [vmem:[%s13682_s27 + $0x7a0] sm:$0xf0] }
 0x128   : > { %v11880_v2 = vld [vmem:[%s13682_s27 + $0x1c80] sm:$0xf]  ;;  %v11625_v7 = vor.u32 %v13181_v1, %v11624_v63  ;;  %6596 = vmatpush.bf16.msrb.mxu0 %v11369_v6  ;;  %v1297_v63 = vld [vmem:[#allocation1 + $0x36] sm:$0xff]  ;;  %v1296_v0 = vld [vmem:[#allocation1 + $0x2d] sm:$0xff] }
 0x129   : > { %v13245_v3 = vld [vmem:[%s13682_s27 + $0x1c9c] sm:$0xf0]  ;;  %v1298_v1 = vld [vmem:[#allocation1 + $0x3f] sm:$0xff]  ;;  %v8394_v6 = vld [vmem:[%s13682_s27 + $0x160] sm:$0xf0] }
 0x12a   : > { %v12136_v4 = vld [vmem:[%s13682_s27 + $0x1e80] sm:$0xf]  ;;  %v11881_v8 = vor.u32 %v13245_v3, %v11880_v2  ;;  %6609 = vmatpush.bf16.msrb.mxu1 %v11625_v7  ;;  %v8429_v2 = vor.u32 %v12377_v53, %v8426_v54  ;;  %v8685_v3 = vor.u32 %v12441_v55, %v8682_v57  ;;  %v12433_v7 = vld [vmem:[%s13682_s27 + $0x344] sm:$0xf] }
 0x12b   : > { %v13309_v5 = vld [vmem:[%s13682_s27 + $0x1e9c] sm:$0xf0]  ;;  %v12417_v39 = vld [vmem:[%s13682_s27 + $0x2c4] sm:$0xf] }
 0x12c   : > { %v11336_v9 = vld [vmem:[%s13682_s27 + $0x1840] sm:$0xf]  ;;  %v12137_v12 = vor.u32 %v13309_v5, %v12136_v4  ;;  %6622 = vmatpush.bf16.msrb.mxu2 %v11881_v8  ;;  %v8941_v4 = vor.u32 %v12505_v58, %v8938_v59  ;;  %v12369_v5 = vld [vmem:[%s13682_s27 + $0x144] sm:$0xf]  ;;  %v9197_v8 = vor.u32 %v12569_v61, %v9194_v62 }
 0x12d   : > { %v13109_v10 = vld [vmem:[%s13682_s27 + $0x185c] sm:$0xf0]  ;;  %v12481_v42 = vld [vmem:[%s13682_s27 + $0x4c4] sm:$0xf] }
 0x12e   : > { %v11592_v11 = vld [vmem:[%s13682_s27 + $0x1a40] sm:$0xf]  ;;  %v11337_v18 = vor.u32 %v13109_v10, %v11336_v9  ;;  %6635 = vmatpush.bf16.msrb.mxu3 %v12137_v12  ;;  %v8650_v9 = vld [vmem:[%s13682_s27 + $0x360] sm:$0xf0] }
 0x12f   : > { %v13173_v13 = vld [vmem:[%s13682_s27 + $0x1a5c] sm:$0xf0]  ;;  %v12497_v10 = vld [vmem:[%s13682_s27 + $0x544] sm:$0xf] }
 0x130   : > { %v11848_v14 = vld [vmem:[%s13682_s27 + $0x1c40] sm:$0xf]  ;;  %v11593_v24 = vor.u32 %v13173_v13, %v11592_v11  ;;  %6597 = vmatpush.bf16.msrb.mxu0 %v11337_v18  ;;  %v8906_v11 = vld [vmem:[%s13682_s27 + $0x560] sm:$0xf0] }
 0x131   : > { %v13237_v15 = vld [vmem:[%s13682_s27 + $0x1c5c] sm:$0xf0]  ;;  %v12561_v12 = vld [vmem:[%s13682_s27 + $0x744] sm:$0xf] }
 0x132   : > { %v12104_v16 = vld [vmem:[%s13682_s27 + $0x1e40] sm:$0xf]  ;;  %v11849_v25 = vor.u32 %v13237_v15, %v11848_v14  ;;  %6610 = vmatpush.bf16.msrb.mxu1 %v11593_v24  ;;  %v9162_v13 = vld [vmem:[%s13682_s27 + $0x760] sm:$0xf0]  ;;  %v8397_v14 = vor.u32 %v12369_v5, %v8394_v6  ;;  %v8653_v15 = vor.u32 %v12433_v7, %v8650_v9 }
 0x133   : > { %v13301_v17 = vld [vmem:[%s13682_s27 + $0x1e5c] sm:$0xf0]  ;;  %v8362_v18 = vld [vmem:[%s13682_s27 + $0x120] sm:$0xf0] }
 0x134   : > { %v11304_v19 = vld [vmem:[%s13682_s27 + $0x1800] sm:$0xf]  ;;  %v12105_v31 = vor.u32 %v13301_v17, %v12104_v16  ;;  %6623 = vmatpush.bf16.msrb.mxu2 %v11849_v25  ;;  %v8909_v16 = vor.u32 %v12497_v10, %v8906_v11  ;;  %v12361_v17 = vld [vmem:[%s13682_s27 + $0x104] sm:$0xf] }
 0x135   : > { %v13101_v23 = vld [vmem:[%s13682_s27 + $0x181c] sm:$0xf0]  ;;  %v8618_v24 = vld [vmem:[%s13682_s27 + $0x320] sm:$0xf0] }
 0x136   : > { %v11560_v27 = vld [vmem:[%s13682_s27 + $0x1a00] sm:$0xf]  ;;  %v11305_v41 = vor.u32 %v13101_v23, %v11304_v19  ;;  %6636 = vmatpush.bf16.msrb.mxu3 %v12105_v31  ;;  %v12425_v19 = vld [vmem:[%s13682_s27 + $0x304] sm:$0xf]  ;;  %v9165_v23 = vor.u32 %v12561_v12, %v9162_v13  ;;  %v8365_v31 = vor.u32 %v12361_v17, %v8362_v18 }
 0x137   : > { %v13165_v28 = vld [vmem:[%s13682_s27 + $0x1a1c] sm:$0xf0]  ;;  %v12489_v25 = vld [vmem:[%s13682_s27 + $0x504] sm:$0xf] }
 0x138   : > { %v11816_v30 = vld [vmem:[%s13682_s27 + $0x1c00] sm:$0xf]  ;;  %v11561_v45 = vor.u32 %v13165_v28, %v11560_v27  ;;  %6598 = vmatpush.bf16.msrb.mxu0 %v11305_v41  ;;  %v8874_v27 = vld [vmem:[%s13682_s27 + $0x520] sm:$0xf0] }
 0x139   : > { %v13229_v34 = vld [vmem:[%s13682_s27 + $0x1c1c] sm:$0xf0]  ;;  %v12553_v28 = vld [vmem:[%s13682_s27 + $0x704] sm:$0xf] }
 0x13a   : > { %v12072_v35 = vld [vmem:[%s13682_s27 + $0x1e00] sm:$0xf]  ;;  %v11817_v46 = vor.u32 %v13229_v34, %v11816_v30  ;;  %6611 = vmatpush.bf16.msrb.mxu1 %v11561_v45  ;;  %v9130_v30 = vld [vmem:[%s13682_s27 + $0x720] sm:$0xf0]  ;;  %v8621_v34 = vor.u32 %v12425_v19, %v8618_v24 }
 0x13b   : > { %v13293_v36 = vld [vmem:[%s13682_s27 + $0x1e1c] sm:$0xf0]  ;;  %v9133_v40 = vor.u32 %v12553_v28, %v9130_v30  ;;  %v8586_v41 = vld [vmem:[%s13682_s27 + $0x2e0] sm:$0xf0] }
 0x13c   : > { %v12073_v49 = vor.u32 %v13293_v36, %v12072_v35  ;;  %6624 = vmatpush.bf16.msrb.mxu2 %v11817_v46  ;;  %v1295_v60 = vld [vmem:[#allocation1 + $0x24] sm:$0xff]  ;;  %6643 = vmatpush.bf16.msra.mxu0 %v8461_v50  ;;  %v8877_v35 = vor.u32 %v12489_v25, %v8874_v27  ;;  %v12353_v36 = vld [vmem:[%s13682_s27 + $0xc4] sm:$0xf]  ;;  %v8589_v47 = vor.u32 %v12417_v39, %v8586_v41 }
 0x13d   : > { %6599 = vmatmul.bf16.vlgmr.msrb.gmra.mxu0 %v1295_v60  ;;  %6612 = vmatmul.bf16.vlgmr.msrb.gmra.mxu1 %v1296_v0  ;;  %v8842_v43 = vld [vmem:[%s13682_s27 + $0x4e0] sm:$0xf0]  ;;  %v8333_v46 = vor.u32 %v12353_v36, %v8330_v37 }
 0x13e   : > { %6637 = vmatpush.bf16.msrb.mxu3 %v12073_v49  ;;  %6656 = vmatpush.bf16.msra.mxu1 %v8717_v51  ;;  %v12545_v44 = vld [vmem:[%s13682_s27 + $0x6c4] sm:$0xf]  ;;  %v8845_v48 = vor.u32 %v12481_v42, %v8842_v43 }
 0x13f   : > { %6625 = vmatmul.bf16.vlgmr.msrb.gmra.mxu2 %v1297_v63  ;;  %v9098_v45 = vld [vmem:[%s13682_s27 + $0x6e0] sm:$0xf0] }
 0x140   : > { %6669 = vmatpush.bf16.msra.mxu2 %v8973_v52  ;;  %6644 = vmatpush.bf16.msra.mxu0 %v8429_v2  ;;  %v12345_v49 = vld [vmem:[%s13682_s27 + $0x84] sm:$0xf]  ;;  %v9101_v52 = vor.u32 %v12545_v44, %v9098_v45 }
 0x141   : > { %6638 = vmatmul.bf16.vlgmr.msrb.gmra.mxu3 %v1298_v1  ;;  %v8298_v50 = vld [vmem:[%s13682_s27 + $0xa0] sm:$0xf0] }
 0x142   : > { %6682 = vmatpush.bf16.msra.mxu3 %v9229_v56  ;;  %6657 = vmatpush.bf16.msra.mxu1 %v8685_v3  ;;  %v12409_v51 = vld [vmem:[%s13682_s27 + $0x284] sm:$0xf]  ;;  %v8301_v58 = vor.u32 %v12345_v49, %v8298_v50 }
 0x143   : > { %v8554_v53 = vld [vmem:[%s13682_s27 + $0x2a0] sm:$0xf0] }
 0x144   : > { %6670 = vmatpush.bf16.msra.mxu2 %v8941_v4  ;;  %6645 = vmatpush.bf16.msra.mxu0 %v8397_v14  ;;  %v12473_v54 = vld [vmem:[%s13682_s27 + $0x484] sm:$0xf]  ;;  %v8557_v59 = vor.u32 %v12409_v51, %v8554_v53 }
 0x145   : > { %v8810_v55 = vld [vmem:[%s13682_s27 + $0x4a0] sm:$0xf0] }
 0x146   : > { %6683 = vmatpush.bf16.msra.mxu3 %v9197_v8  ;;  %6658 = vmatpush.bf16.msra.mxu1 %v8653_v15  ;;  %v12537_v56 = vld [vmem:[%s13682_s27 + $0x684] sm:$0xf]  ;;  %v8813_v60 = vor.u32 %v12473_v54, %v8810_v55 }
 0x147   : > { %v9066_v57 = vld [vmem:[%s13682_s27 + $0x6a0] sm:$0xf0] }
 0x148   : > { %6671 = vmatpush.bf16.msra.mxu2 %v8909_v16  ;;  %6646 = vmatpush.bf16.msra.mxu0 %v8365_v31  ;;  %v12337_v61 = vld [vmem:[%s13682_s27 + $0x44] sm:$0xf]  ;;  %v9069_v0 = vor.u32 %v12537_v56, %v9066_v57 }
 0x149   : > { %v8266_v62 = vld [vmem:[%s13682_s27 + $0x60] sm:$0xf0] }
 0x14a   : > { %6684 = vmatpush.bf16.msra.mxu3 %v9165_v23  ;;  %6659 = vmatpush.bf16.msra.mxu1 %v8621_v34  ;;  %v12401_v63 = vld [vmem:[%s13682_s27 + $0x244] sm:$0xf]  ;;  %v8269_v6 = vor.u32 %v12337_v61, %v8266_v62 }
 0x14b   : > { %v8522_v1 = vld [vmem:[%s13682_s27 + $0x260] sm:$0xf0] }
 0x14c   : > { %6672 = vmatpush.bf16.msra.mxu2 %v8877_v35  ;;  %6647 = vmatpush.bf16.msra.mxu0 %v8333_v46  ;;  %v12465_v2 = vld [vmem:[%s13682_s27 + $0x444] sm:$0xf]  ;;  %v8525_v9 = vor.u32 %v12401_v63, %v8522_v1 }
 0x14d   : > { %v8778_v3 = vld [vmem:[%s13682_s27 + $0x460] sm:$0xf0] }
 0x14e   : > { %6685 = vmatpush.bf16.msra.mxu3 %v9133_v40  ;;  %6660 = vmatpush.bf16.msra.mxu1 %v8589_v47  ;;  %v12529_v4 = vld [vmem:[%s13682_s27 + $0x644] sm:$0xf]  ;;  %v8781_v10 = vor.u32 %v12465_v2, %v8778_v3 }
 0x14f   : > { %v9034_v5 = vld [vmem:[%s13682_s27 + $0x660] sm:$0xf0] }
 0x150   : > { %6673 = vmatpush.bf16.msra.mxu2 %v8845_v48  ;;  %6648 = vmatpush.bf16.msra.mxu0 %v8301_v58  ;;  %v12329_v7 = vld [vmem:[%s13682_s27 + $0x4] sm:$0xf]  ;;  %v9037_v14 = vor.u32 %v12529_v4, %v9034_v5 }
 0x151   : > { %v8234_v8 = vld [vmem:[%s13682_s27 + $0x20] sm:$0xf0] }
 0x152   : > { %6686 = vmatpush.bf16.msra.mxu3 %v9101_v52  ;;  %6661 = vmatpush.bf16.msra.mxu1 %v8557_v59  ;;  %v12393_v11 = vld [vmem:[%s13682_s27 + $0x204] sm:$0xf]  ;;  %v8237_v24 = vor.u32 %v12329_v7, %v8234_v8 }
 0x153   : > { %v8490_v12 = vld [vmem:[%s13682_s27 + $0x220] sm:$0xf0] }
 0x154   : > { %6674 = vmatpush.bf16.msra.mxu2 %v8813_v60  ;;  %v12457_v13 = vld [vmem:[%s13682_s27 + $0x404] sm:$0xf]  ;;  %6649 = vmatpush.bf16.msra.mxu0 %v8269_v6  ;;  %v8493_v30 = vor.u32 %v12393_v11, %v8490_v12 }
 0x155   : > { %v8746_v15 = vld [vmem:[%s13682_s27 + $0x420] sm:$0xf0] }
 0x156   : > { %6687 = vmatpush.bf16.msra.mxu3 %v9069_v0  ;;  %v12521_v16 = vld [vmem:[%s13682_s27 + $0x604] sm:$0xf]  ;;  %6662 = vmatpush.bf16.msra.mxu1 %v8525_v9  ;;  %v8749_v31 = vor.u32 %v12457_v13, %v8746_v15 }
 0x157   : > { %v9002_v17 = vld [vmem:[%s13682_s27 + $0x620] sm:$0xf0] }
 0x158   : > { %v12641_v18 = vld [vmem:[%s13682_s27 + $0x9c4] sm:$0xf]  ;;  %6675 = vmatpush.bf16.msra.mxu2 %v8781_v10  ;;  %v9005_v36 = vor.u32 %v12521_v16, %v9002_v17  ;;  %6650 = vmatpush.bf16.msra.mxu0 %v8237_v24 }
 0x159   : > { %v9482_v19 = vld [vmem:[%s13682_s27 + $0x9e0] sm:$0xf0] }
 0x15a   : > { %v12705_v23 = vld [vmem:[%s13682_s27 + $0xbc4] sm:$0xf]  ;;  %6688 = vmatpush.bf16.msra.mxu3 %v9037_v14  ;;  %v9485_v37 = vor.u32 %v12641_v18, %v9482_v19  ;;  %6663 = vmatpush.bf16.msra.mxu1 %v8493_v30 }
 0x15b   : > { %v9738_v25 = vld [vmem:[%s13682_s27 + $0xbe0] sm:$0xf0]  ;;  %6651 = vmatmul.bf16.vlgmr.msra.gmra.mxu0 %v13799_v21 }
 0x15c   : > { %v12769_v27 = vld [vmem:[%s13682_s27 + $0xdc4] sm:$0xf]  ;;  %v9741_v39 = vor.u32 %v12705_v23, %v9738_v25  ;;  %6676 = vmatpush.bf16.msra.mxu2 %v8749_v31  ;;  %6695 = vmatpush.bf16.msrb.mxu0 %v9485_v37 }
 0x15d   : > { %v9994_v28 = vld [vmem:[%s13682_s27 + $0xde0] sm:$0xf0]  ;;  %6664 = vmatmul.bf16.vlgmr.msra.gmra.mxu1 %v13806_v26 }
 0x15e   : > { %v12833_v34 = vld [vmem:[%s13682_s27 + $0xfc4] sm:$0xf]  ;;  %v9997_v40 = vor.u32 %v12769_v27, %v9994_v28  ;;  %6689 = vmatpush.bf16.msra.mxu3 %v9005_v36  ;;  %6708 = vmatpush.bf16.msrb.mxu1 %v9741_v39 }
 0x15f   : > { %v10250_v35 = vld [vmem:[%s13682_s27 + $0xfe0] sm:$0xf0]  ;;  %6677 = vmatmul.bf16.vlgmr.msra.gmra.mxu2 %v13797_v20 }
 0x160   : > { %v12633_v41 = vld [vmem:[%s13682_s27 + $0x984] sm:$0xf]  ;;  %v10253_v44 = vor.u32 %v12833_v34, %v10250_v35  ;;  %6721 = vmatpush.bf16.msrb.mxu2 %v9997_v40 }
 0x161   : > { %v9450_v42 = vld [vmem:[%s13682_s27 + $0x9a0] sm:$0xf0]  ;;  %6690 = vmatmul.bf16.vlgmr.msra.gmra.mxu3 %v13801_v22 }
 0x162   : > { %v12697_v43 = vld [vmem:[%s13682_s27 + $0xb84] sm:$0xf]  ;;  %v9453_v50 = vor.u32 %v12633_v41, %v9450_v42  ;;  %6734 = vmatpush.bf16.msrb.mxu3 %v10253_v44 }
 0x163   : > { %v9706_v45 = vld [vmem:[%s13682_s27 + $0xba0] sm:$0xf0] }
 0x164   : > { %v12761_v46 = vld [vmem:[%s13682_s27 + $0xd84] sm:$0xf]  ;;  %v9709_v51 = vor.u32 %v12697_v43, %v9706_v45  ;;  %6696 = vmatpush.bf16.msrb.mxu0 %v9453_v50  ;;  %v6444_v45 = vpop.f32.mrf.mxu0 }
 0x165   : > { %v9962_v47 = vld [vmem:[%s13682_s27 + $0xda0] sm:$0xf0] }
 0x166   : > { %v12825_v48 = vld [vmem:[%s13682_s27 + $0xf84] sm:$0xf]  ;;  %v9965_v52 = vor.u32 %v12761_v46, %v9962_v47  ;;  %6709 = vmatpush.bf16.msrb.mxu1 %v9709_v51 }
 0x167   : > { %v10218_v49 = vld [vmem:[%s13682_s27 + $0xfa0] sm:$0xf0] }
 0x168   : > { %v12625_v53 = vld [vmem:[%s13682_s27 + $0x944] sm:$0xf]  ;;  %v10221_v56 = vor.u32 %v12825_v48, %v10218_v49  ;;  %6722 = vmatpush.bf16.msrb.mxu2 %v9965_v52  ;;  %v6457_v52 = vpop.f32.mrf.mxu1 }
 0x169   : > { %v9418_v54 = vld [vmem:[%s13682_s27 + $0x960] sm:$0xf0] }
 0x16a   : > { %v12689_v55 = vld [vmem:[%s13682_s27 + $0xb44] sm:$0xf]  ;;  %v9421_v62 = vor.u32 %v12625_v53, %v9418_v54  ;;  %6735 = vmatpush.bf16.msrb.mxu3 %v10221_v56 }
 0x16b   : > { %v9674_v57 = vld [vmem:[%s13682_s27 + $0xb60] sm:$0xf0] }
 0x16c   : > { %v12753_v58 = vld [vmem:[%s13682_s27 + $0xd44] sm:$0xf]  ;;  %v9677_v63 = vor.u32 %v12689_v55, %v9674_v57  ;;  %6697 = vmatpush.bf16.msrb.mxu0 %v9421_v62 }
 0x16d   : > { %v9930_v59 = vld [vmem:[%s13682_s27 + $0xd60] sm:$0xf0] }
 0x16e   : > { %v12817_v60 = vld [vmem:[%s13682_s27 + $0xf44] sm:$0xf]  ;;  %v9933_v0 = vor.u32 %v12753_v58, %v9930_v59  ;;  %6710 = vmatpush.bf16.msrb.mxu1 %v9677_v63 }
 0x16f   : > { %v10186_v61 = vld [vmem:[%s13682_s27 + $0xf60] sm:$0xf0] }
 0x170   : > { %v12617_v1 = vld [vmem:[%s13682_s27 + $0x904] sm:$0xf]  ;;  %v10189_v4 = vor.u32 %v12817_v60, %v10186_v61  ;;  %6723 = vmatpush.bf16.msrb.mxu2 %v9933_v0 }
 0x171   : > { %v9386_v2 = vld [vmem:[%s13682_s27 + $0x920] sm:$0xf0] }
 0x172   : > { %v12681_v3 = vld [vmem:[%s13682_s27 + $0xb04] sm:$0xf]  ;;  %v9389_v10 = vor.u32 %v12617_v1, %v9386_v2  ;;  %6736 = vmatpush.bf16.msrb.mxu3 %v10189_v4  ;;  %v6470_v4 = vpop.f32.mrf.mxu2 }
 0x173   : > { %v9642_v5 = vld [vmem:[%s13682_s27 + $0xb20] sm:$0xf0] }
 0x174   : > { %v12745_v6 = vld [vmem:[%s13682_s27 + $0xd04] sm:$0xf]  ;;  %v9645_v12 = vor.u32 %v12681_v3, %v9642_v5  ;;  %6698 = vmatpush.bf16.msrb.mxu0 %v9389_v10  ;;  %v6483_v10 = vpop.f32.mrf.mxu3 }
 0x175   : > { %v9898_v7 = vld [vmem:[%s13682_s27 + $0xd20] sm:$0xf0] }
 0x176   : > { %v12809_v8 = vld [vmem:[%s13682_s27 + $0xf04] sm:$0xf]  ;;  %v9901_v13 = vor.u32 %v12745_v6, %v9898_v7  ;;  %6711 = vmatpush.bf16.msrb.mxu1 %v9645_v12 }
 0x177   : > { %v10154_v9 = vld [vmem:[%s13682_s27 + $0xf20] sm:$0xf0] }
 0x178   : > { %v12609_v11 = vld [vmem:[%s13682_s27 + $0x8c4] sm:$0xf]  ;;  %v10157_v17 = vor.u32 %v12809_v8, %v10154_v9  ;;  %6724 = vmatpush.bf16.msrb.mxu2 %v9901_v13 }
 0x179   : > { %v9354_v14 = vld [vmem:[%s13682_s27 + $0x8e0] sm:$0xf0] }
 0x17a   : > { %v12673_v15 = vld [vmem:[%s13682_s27 + $0xac4] sm:$0xf]  ;;  %v9357_v27 = vor.u32 %v12609_v11, %v9354_v14  ;;  %6737 = vmatpush.bf16.msrb.mxu3 %v10157_v17 }
 0x17b   : > { %v9610_v16 = vld [vmem:[%s13682_s27 + $0xae0] sm:$0xf0] }
 0x17c   : > { %v12737_v18 = vld [vmem:[%s13682_s27 + $0xcc4] sm:$0xf]  ;;  %v9613_v30 = vor.u32 %v12673_v15, %v9610_v16  ;;  %6699 = vmatpush.bf16.msrb.mxu0 %v9357_v27 }
 0x17d   : > { %v9866_v19 = vld [vmem:[%s13682_s27 + $0xce0] sm:$0xf0] }
 0x17e   : > { %v1261_v23 = vld [vmem:[%s13688_s5] sm:$0xff]  ;;  %v9869_v31 = vor.u32 %v12737_v18, %v9866_v19  ;;  %6712 = vmatpush.bf16.msrb.mxu1 %v9613_v30  ;;  %v6446_v19 = vpop.f32.mrf.mxu0 }
 0x17f   : > { %v12801_v24 = vld [vmem:[%s13682_s27 + $0xec4] sm:$0xf]  ;;  %v1263_v36 = vperm.slane %v1261_v23, 0 }
 0x180   : > { %v10122_v25 = vld [vmem:[%s13682_s27 + $0xee0] sm:$0xf0]  ;;  %6725 = vmatpush.bf16.msrb.mxu2 %v9869_v31 }
 0x181   : > { %v12601_v28 = vld [vmem:[%s13682_s27 + $0x884] sm:$0xf]  ;;  %v10125_v37 = vor.u32 %v12801_v24, %v10122_v25  ;;  %v6445_v51 = vadd.f32 %v6444_v45, %v1263_v36 }
 0x182   : > { %v9322_v34 = vld [vmem:[%s13682_s27 + $0x8a0] sm:$0xf0] }
 0x183   : > { %v12665_v35 = vld [vmem:[%s13682_s27 + $0xa84] sm:$0xf]  ;;  %v9325_v44 = vor.u32 %v12601_v28, %v9322_v34  ;;  %6738 = vmatpush.bf16.msrb.mxu3 %v10125_v37  ;;  %v6458_v59 = vadd.f32 %v6457_v52, %v6445_v51  ;;  %v6459_v28 = vpop.f32.mrf.mxu1 }
 0x184   : > { %v9578_v39 = vld [vmem:[%s13682_s27 + $0xaa0] sm:$0xf0] }
 0x185   : > { %v12729_v40 = vld [vmem:[%s13682_s27 + $0xc84] sm:$0xf]  ;;  %v9581_v46 = vor.u32 %v12665_v35, %v9578_v39  ;;  %6700 = vmatpush.bf16.msrb.mxu0 %v9325_v44  ;;  %v6471_v9 = vadd.f32 %v6470_v4, %v6458_v59 }
 0x186   : > { %v9834_v41 = vld [vmem:[%s13682_s27 + $0xca0] sm:$0xf0] }
 0x187   : > { %v12793_v42 = vld [vmem:[%s13682_s27 + $0xe84] sm:$0xf]  ;;  %v9837_v47 = vor.u32 %v12729_v40, %v9834_v41  ;;  %6713 = vmatpush.bf16.msrb.mxu1 %v9581_v46  ;;  %v14119_v18 = vadd.f32 %v6483_v10, %v6471_v9  ;;  %v6472_v46 = vpop.f32.mrf.mxu2  ;;  %v6496_v9 = vpop.f32.mrf.mxu0 }
 0x188   : > { %v10090_v43 = vld [vmem:[%s13682_s27 + $0xea0] sm:$0xf0] }
 0x189   : > { %v12593_v48 = vld [vmem:[%s13682_s27 + $0x844] sm:$0xf]  ;;  %v10093_v53 = vor.u32 %v12793_v42, %v10090_v43  ;;  %6726 = vmatpush.bf16.msrb.mxu2 %v9837_v47 }
 0x18a   : > { %v9290_v49 = vld [vmem:[%s13682_s27 + $0x860] sm:$0xf0] }
 0x18b   : > { %v12657_v50 = vld [vmem:[%s13682_s27 + $0xa44] sm:$0xf]  ;;  %v9293_v60 = vor.u32 %v12593_v48, %v9290_v49  ;;  %6739 = vmatpush.bf16.msrb.mxu3 %v10093_v53  ;;  %v6485_v48 = vpop.f32.mrf.mxu3 }
 0x18c   : > { %v9546_v54 = vld [vmem:[%s13682_s27 + $0xa60] sm:$0xf0] }
 0x18d   : > { %v12721_v55 = vld [vmem:[%s13682_s27 + $0xc44] sm:$0xf]  ;;  %v9549_v63 = vor.u32 %v12657_v50, %v9546_v54  ;;  %6701 = vmatpush.bf16.msrb.mxu0 %v9293_v60 }
 0x18e   : > { %v9802_v56 = vld [vmem:[%s13682_s27 + $0xc60] sm:$0xf0] }
 0x18f   : > { %v12785_v57 = vld [vmem:[%s13682_s27 + $0xe44] sm:$0xf]  ;;  %v9805_v0 = vor.u32 %v12721_v55, %v9802_v56  ;;  %6714 = vmatpush.bf16.msrb.mxu1 %v9549_v63 }
 0x190   : > { %v10058_v58 = vld [vmem:[%s13682_s27 + $0xe60] sm:$0xf0] }
 0x191   : > { %v12585_v61 = vld [vmem:[%s13682_s27 + $0x804] sm:$0xf]  ;;  %v10061_v5 = vor.u32 %v12785_v57, %v10058_v58  ;;  %6727 = vmatpush.bf16.msrb.mxu2 %v9805_v0 }
 0x192   : > { %v9258_v62 = vld [vmem:[%s13682_s27 + $0x820] sm:$0xf0] }
 0x193   : > { %v12649_v1 = vld [vmem:[%s13682_s27 + $0xa04] sm:$0xf]  ;;  %v9261_v14 = vor.u32 %v12585_v61, %v9258_v62  ;;  %6740 = vmatpush.bf16.msrb.mxu3 %v10061_v5 }
 0x194   : > { %v9514_v2 = vld [vmem:[%s13682_s27 + $0xa20] sm:$0xf0] }
 0x195   : > { %v12713_v3 = vld [vmem:[%s13682_s27 + $0xc04] sm:$0xf]  ;;  %v9517_v23 = vor.u32 %v12649_v1, %v9514_v2  ;;  %6702 = vmatpush.bf16.msrb.mxu0 %v9261_v14 }
 0x196   : > { %v9770_v6 = vld [vmem:[%s13682_s27 + $0xc20] sm:$0xf0] }
 0x197   : > { %v12777_v7 = vld [vmem:[%s13682_s27 + $0xe04] sm:$0xf]  ;;  %v9773_v24 = vor.u32 %v12713_v3, %v9770_v6  ;;  %6715 = vmatpush.bf16.msrb.mxu1 %v9517_v23 }
 0x198   : > { %v10026_v8 = vld [vmem:[%s13682_s27 + $0xe20] sm:$0xf0]  ;;  %6703 = vmatmul.bf16.vlgmr.msrb.gmra.mxu0 %v13856_v32 }
 0x199   : > { %v12897_v11 = vld [vmem:[%s13682_s27 + $0x11c4] sm:$0xf]  ;;  %v10029_v30 = vor.u32 %v12777_v7, %v10026_v8  ;;  %6728 = vmatpush.bf16.msrb.mxu2 %v9773_v24 }
 0x19a   : > { %v10506_v12 = vld [vmem:[%s13682_s27 + $0x11e0] sm:$0xf0]  ;;  %6716 = vmatmul.bf16.vlgmr.msrb.gmra.mxu1 %v13862_v38 }
 0x19b   : > { %v12961_v13 = vld [vmem:[%s13682_s27 + $0x13c4] sm:$0xf]  ;;  %v10509_v31 = vor.u32 %v12897_v11, %v10506_v12  ;;  %6741 = vmatpush.bf16.msrb.mxu3 %v10029_v30 }
 0x19c   : > { %v10762_v15 = vld [vmem:[%s13682_s27 + $0x13e0] sm:$0xf0]  ;;  %6729 = vmatmul.bf16.vlgmr.msrb.gmra.mxu2 %v13853_v29 }
 0x19d   : > { %v13025_v16 = vld [vmem:[%s13682_s27 + $0x15c4] sm:$0xf]  ;;  %v10765_v34 = vor.u32 %v12961_v13, %v10762_v15  ;;  %6747 = vmatpush.bf16.msra.mxu0 %v10509_v31  ;;  %v6497_v15 = vadd.f32 %v6496_v9, %v14119_v18 }
 0x19e   : > { %v11018_v17 = vld [vmem:[%s13682_s27 + $0x15e0] sm:$0xf0]  ;;  %6742 = vmatmul.bf16.vlgmr.msrb.gmra.mxu3 %v13858_v33 }
 0x19f   : > { %v13089_v25 = vld [vmem:[%s13682_s27 + $0x17c4] sm:$0xf]  ;;  %v11021_v35 = vor.u32 %v13025_v16, %v11018_v17  ;;  %6760 = vmatpush.bf16.msra.mxu1 %v10765_v34  ;;  %v6509_v16 = vpop.f32.mrf.mxu1 }
 0x1a0   : > { %v11274_v27 = vld [vmem:[%s13682_s27 + $0x17e0] sm:$0xf0]  ;;  %v6510_v28 = vadd.f32 %v6509_v16, %v6497_v15 }
 0x1a1   : > { %v12889_v36 = vld [vmem:[%s13682_s27 + $0x1184] sm:$0xf]  ;;  %v11277_v40 = vor.u32 %v13089_v25, %v11274_v27  ;;  %6773 = vmatpush.bf16.msra.mxu2 %v11021_v35 }
 0x1a2   : > { %v10474_v37 = vld [vmem:[%s13682_s27 + $0x11a0] sm:$0xf0] }
 0x1a3   : > { %v12953_v39 = vld [vmem:[%s13682_s27 + $0x1384] sm:$0xf]  ;;  %v10477_v47 = vor.u32 %v12889_v36, %v10474_v37  ;;  %6786 = vmatpush.bf16.msra.mxu3 %v11277_v40  ;;  %v6522_v37 = vpop.f32.mrf.mxu2 }
 0x1a4   : > { %v10730_v41 = vld [vmem:[%s13682_s27 + $0x13a0] sm:$0xf0] }
 0x1a5   : > { %v13017_v42 = vld [vmem:[%s13682_s27 + $0x1584] sm:$0xf]  ;;  %v10733_v49 = vor.u32 %v12953_v39, %v10730_v41  ;;  %6748 = vmatpush.bf16.msra.mxu0 %v10477_v47 }
 0x1a6   : > { %v10986_v43 = vld [vmem:[%s13682_s27 + $0x15a0] sm:$0xf0] }
 0x1a7   : > { %v13081_v44 = vld [vmem:[%s13682_s27 + $0x1784] sm:$0xf]  ;;  %v10989_v50 = vor.u32 %v13017_v42, %v10986_v43  ;;  %6761 = vmatpush.bf16.msra.mxu1 %v10733_v49  ;;  %v6523_v43 = vadd.f32 %v6522_v37, %v6510_v28  ;;  %v6498_v49 = vpop.f32.mrf.mxu0 }
 0x1a8   : > { %v11242_v45 = vld [vmem:[%s13682_s27 + $0x17a0] sm:$0xf0] }
 0x1a9   : > { %v12881_v51 = vld [vmem:[%s13682_s27 + $0x1144] sm:$0xf]  ;;  %v11245_v54 = vor.u32 %v13081_v44, %v11242_v45  ;;  %6774 = vmatpush.bf16.msra.mxu2 %v10989_v50  ;;  %v6535_v44 = vpop.f32.mrf.mxu3 }
 0x1aa   : > { %v10442_v52 = vld [vmem:[%s13682_s27 + $0x1160] sm:$0xf0]  ;;  %v14168_v48 = vadd.f32 %v6535_v44, %v6523_v43 }
 0x1ab   : > { %v12945_v53 = vld [vmem:[%s13682_s27 + $0x1344] sm:$0xf]  ;;  %v10445_v60 = vor.u32 %v12881_v51, %v10442_v52  ;;  %6787 = vmatpush.bf16.msra.mxu3 %v11245_v54 }
 0x1ac   : > { %v10698_v55 = vld [vmem:[%s13682_s27 + $0x1360] sm:$0xf0] }
 0x1ad   : > { %v13009_v56 = vld [vmem:[%s13682_s27 + $0x1544] sm:$0xf]  ;;  %v10701_v61 = vor.u32 %v12945_v53, %v10698_v55  ;;  %6749 = vmatpush.bf16.msra.mxu0 %v10445_v60  ;;  %v6511_v55 = vpop.f32.mrf.mxu1 }
 0x1ae   : > { %v10954_v57 = vld [vmem:[%s13682_s27 + $0x1560] sm:$0xf0] }
 0x1af   : > { %v13073_v58 = vld [vmem:[%s13682_s27 + $0x1744] sm:$0xf]  ;;  %v10957_v62 = vor.u32 %v13009_v56, %v10954_v57  ;;  %6762 = vmatpush.bf16.msra.mxu1 %v10701_v61 }
 0x1b0   : > { %v11210_v59 = vld [vmem:[%s13682_s27 + $0x1760] sm:$0xf0] }
 0x1b1   : > { %v12873_v63 = vld [vmem:[%s13682_s27 + $0x1104] sm:$0xf]  ;;  %v11213_v2 = vor.u32 %v13073_v58, %v11210_v59  ;;  %6775 = vmatpush.bf16.msra.mxu2 %v10957_v62 }
 0x1b2   : > { %v10410_v0 = vld [vmem:[%s13682_s27 + $0x1120] sm:$0xf0] }
 0x1b3   : > { %v12937_v1 = vld [vmem:[%s13682_s27 + $0x1304] sm:$0xf]  ;;  %v10413_v8 = vor.u32 %v12873_v63, %v10410_v0  ;;  %6788 = vmatpush.bf16.msra.mxu3 %v11213_v2 }
 0x1b4   : > { %v10666_v3 = vld [vmem:[%s13682_s27 + $0x1320] sm:$0xf0] }
 0x1b5   : > { %v13001_v4 = vld [vmem:[%s13682_s27 + $0x1504] sm:$0xf]  ;;  %v10669_v10 = vor.u32 %v12937_v1, %v10666_v3  ;;  %6750 = vmatpush.bf16.msra.mxu0 %v10413_v8 }
 0x1b6   : > { %v10922_v5 = vld [vmem:[%s13682_s27 + $0x1520] sm:$0xf0] }
 0x1b7   : > { %v13065_v6 = vld [vmem:[%s13682_s27 + $0x1704] sm:$0xf]  ;;  %v10925_v11 = vor.u32 %v13001_v4, %v10922_v5  ;;  %6763 = vmatpush.bf16.msra.mxu1 %v10669_v10 }
 0x1b8   : > { %v11178_v7 = vld [vmem:[%s13682_s27 + $0x1720] sm:$0xf0] }
 0x1b9   : > { %v12865_v12 = vld [vmem:[%s13682_s27 + $0x10c4] sm:$0xf]  ;;  %v11181_v17 = vor.u32 %v13065_v6, %v11178_v7  ;;  %6776 = vmatpush.bf16.msra.mxu2 %v10925_v11  ;;  %v6524_v6 = vpop.f32.mrf.mxu2  ;;  %v6537_v11 = vpop.f32.mrf.mxu3 }
 0x1ba   : > { %v10378_v13 = vld [vmem:[%s13682_s27 + $0x10e0] sm:$0xf0] }
 0x1bb   : > { %v12929_v14 = vld [vmem:[%s13682_s27 + $0x12c4] sm:$0xf]  ;;  %v10381_v30 = vor.u32 %v12865_v12, %v10378_v13  ;;  %6789 = vmatpush.bf16.msra.mxu3 %v11181_v17 }
 0x1bc   : > { %v10634_v19 = vld [vmem:[%s13682_s27 + $0x12e0] sm:$0xf0] }
 0x1bd   : > { %v12993_v23 = vld [vmem:[%s13682_s27 + $0x14c4] sm:$0xf]  ;;  %v10637_v18 = vor.u32 %v12929_v14, %v10634_v19  ;;  %6751 = vmatpush.bf16.msra.mxu0 %v10381_v30 }
 0x1be   : > { %v10890_v24 = vld [vmem:[%s13682_s27 + $0x14e0] sm:$0xf0] }
 0x1bf   : > { %v13057_v25 = vld [vmem:[%s13682_s27 + $0x16c4] sm:$0xf]  ;;  %v10893_v31 = vor.u32 %v12993_v23, %v10890_v24  ;;  %6764 = vmatpush.bf16.msra.mxu1 %v10637_v18 }
 0x1c0   : > { %v11146_v27 = vld [vmem:[%s13682_s27 + $0x16e0] sm:$0xf0] }
 0x1c1   : > { %v12857_v34 = vld [vmem:[%s13682_s27 + $0x1084] sm:$0xf]  ;;  %v11149_v39 = vor.u32 %v13057_v25, %v11146_v27  ;;  %6777 = vmatpush.bf16.msra.mxu2 %v10893_v31 }
 0x1c2   : > { %v10346_v35 = vld [vmem:[%s13682_s27 + $0x10a0] sm:$0xf0] }
 0x1c3   : > { %v12921_v36 = vld [vmem:[%s13682_s27 + $0x1284] sm:$0xf]  ;;  %v10349_v47 = vor.u32 %v12857_v34, %v10346_v35  ;;  %6790 = vmatpush.bf16.msra.mxu3 %v11149_v39 }
 0x1c4   : > { %v10602_v40 = vld [vmem:[%s13682_s27 + $0x12a0] sm:$0xf0] }
 0x1c5   : > { %v12985_v41 = vld [vmem:[%s13682_s27 + $0x1484] sm:$0xf]  ;;  %v10605_v50 = vor.u32 %v12921_v36, %v10602_v40  ;;  %6752 = vmatpush.bf16.msra.mxu0 %v10349_v47 }
 0x1c6   : > { %v10858_v42 = vld [vmem:[%s13682_s27 + $0x14a0] sm:$0xf0] }
 0x1c7   : > { %v13049_v45 = vld [vmem:[%s13682_s27 + $0x1684] sm:$0xf]  ;;  %v10861_v51 = vor.u32 %v12985_v41, %v10858_v42  ;;  %6765 = vmatpush.bf16.msra.mxu1 %v10605_v50 }
 0x1c8   : > { %v11114_v46 = vld [vmem:[%s13682_s27 + $0x16a0] sm:$0xf0] }
 0x1c9   : > { %v12849_v52 = vld [vmem:[%s13682_s27 + $0x1044] sm:$0xf]  ;;  %v11117_v56 = vor.u32 %v13049_v45, %v11114_v46  ;;  %6778 = vmatpush.bf16.msra.mxu2 %v10861_v51  ;;  %v13400_v51 = vld [vmem:[#allocation1] sm:$0xff] }
 0x1ca   : > { %v10314_v53 = vld [vmem:[%s13682_s27 + $0x1060] sm:$0xf0] }
 0x1cb   : > { %v12913_v54 = vld [vmem:[%s13682_s27 + $0x1244] sm:$0xf]  ;;  %v10317_v62 = vor.u32 %v12849_v52, %v10314_v53  ;;  %6791 = vmatpush.bf16.msra.mxu3 %v11117_v56  ;;  %v13401_v56 = vld [vmem:[#allocation1 + $0x12] sm:$0xff] }
 0x1cc   : > { %v10570_v57 = vld [vmem:[%s13682_s27 + $0x1260] sm:$0xf0] }
 0x1cd   : > { %v12977_v58 = vld [vmem:[%s13682_s27 + $0x1444] sm:$0xf]  ;;  %v10573_v1 = vor.u32 %v12913_v54, %v10570_v57  ;;  %6753 = vmatpush.bf16.msra.mxu0 %v10317_v62 }
 0x1ce   : > { %v10826_v59 = vld [vmem:[%s13682_s27 + $0x1460] sm:$0xf0] }
 0x1cf   : > { %v13041_v60 = vld [vmem:[%s13682_s27 + $0x1644] sm:$0xf]  ;;  %v10829_v2 = vor.u32 %v12977_v58, %v10826_v59  ;;  %6766 = vmatpush.bf16.msra.mxu1 %v10573_v1 }
 0x1d0   : > { %v11082_v61 = vld [vmem:[%s13682_s27 + $0x1660] sm:$0xf0] }
 0x1d1   : > { %v12841_v63 = vld [vmem:[%s13682_s27 + $0x1004] sm:$0xf]  ;;  %v11085_v7 = vor.u32 %v13041_v60, %v11082_v61  ;;  %6779 = vmatpush.bf16.msra.mxu2 %v10829_v2  ;;  %v13403_v60 = vld [vmem:[#allocation1 + $0x1b] sm:$0xff] }
 0x1d2   : > { %v10282_v0 = vld [vmem:[%s13682_s27 + $0x1020] sm:$0xf0] }
 0x1d3   : > { %v12905_v3 = vld [vmem:[%s13682_s27 + $0x1204] sm:$0xf]  ;;  %v10285_v15 = vor.u32 %v12841_v63, %v10282_v0  ;;  %6792 = vmatpush.bf16.msra.mxu3 %v11085_v7  ;;  %v6548_v7 = vpop.f32.mrf.mxu0 }
 0x1d4   : > { %v10538_v4 = vld [vmem:[%s13682_s27 + $0x1220] sm:$0xf0] }
 0x1d5   : > { %v12969_v5 = vld [vmem:[%s13682_s27 + $0x1404] sm:$0xf]  ;;  %v10541_v23 = vor.u32 %v12905_v3, %v10538_v4  ;;  %6754 = vmatpush.bf16.msra.mxu0 %v10285_v15 }
 0x1d6   : > { %v10794_v8 = vld [vmem:[%s13682_s27 + $0x1420] sm:$0xf0] }
 0x1d7   : > { %v13033_v9 = vld [vmem:[%s13682_s27 + $0x1604] sm:$0xf]  ;;  %v10797_v24 = vor.u32 %v12969_v5, %v10794_v8  ;;  %6767 = vmatpush.bf16.msra.mxu1 %v10541_v23 }
 0x1d8   : > { %v11050_v10 = vld [vmem:[%s13682_s27 + $0x1620] sm:$0xf0]  ;;  %6755 = vmatmul.bf16.vlgmr.msra.gmra.mxu0 %v13400_v51 }
 0x1d9   : > { %v13153_v12 = vld [vmem:[%s13682_s27 + $0x19c4] sm:$0xf]  ;;  %v11053_v28 = vor.u32 %v13033_v9, %v11050_v10  ;;  %6780 = vmatpush.bf16.msra.mxu2 %v10797_v24  ;;  %v6549_v10 = vadd.f32 %v6548_v7, %v14168_v48 }
 0x1da   : > { %v11530_v13 = vld [vmem:[%s13682_s27 + $0x19e0] sm:$0xf0] }
 0x1db   : > { %v13217_v14 = vld [vmem:[%s13682_s27 + $0x1bc4] sm:$0xf]  ;;  %v11533_v30 = vor.u32 %v13153_v12, %v11530_v13  ;;  %6793 = vmatpush.bf16.msra.mxu3 %v11053_v28  ;;  %v6561_v12 = vpop.f32.mrf.mxu1 }
 0x1dc   : > { %v11786_v16 = vld [vmem:[%s13682_s27 + $0x1be0] sm:$0xf0]  ;;  %6781 = vmatmul.bf16.vlgmr.msra.gmra.mxu2 %v13401_v56  ;;  %v6562_v23 = vadd.f32 %v6561_v12, %v6549_v10  ;;  %v8464_v12 = vld [vmem:[%s13682_s27 + $0x1c8] sm:$0xf] }
 0x1dd   : > { %v13281_v17 = vld [vmem:[%s13682_s27 + $0x1dc4] sm:$0xf]  ;;  %v11789_v18 = vor.u32 %v13217_v14, %v11786_v16  ;;  %6799 = vmatpush.bf16.msrb.mxu0 %v11533_v30 }
 0x1de   : > { %v12042_v19 = vld [vmem:[%s13682_s27 + $0x1de0] sm:$0xf0]  ;;  %6794 = vmatmul.bf16.vlgmr.msra.gmra.mxu3 %v13403_v60 }
 0x1df   : > { %v13345_v25 = vld [vmem:[%s13682_s27 + $0x1fc4] sm:$0xf]  ;;  %v12045_v31 = vor.u32 %v13281_v17, %v12042_v19  ;;  %6812 = vmatpush.bf16.msrb.mxu1 %v11789_v18 }
 0x1e0   : > { %v12298_v27 = vld [vmem:[%s13682_s27 + $0x1fe0] sm:$0xf0] }
 0x1e1   : > { %v13145_v34 = vld [vmem:[%s13682_s27 + $0x1984] sm:$0xf]  ;;  %v12301_v37 = vor.u32 %v13345_v25, %v12298_v27  ;;  %6825 = vmatpush.bf16.msrb.mxu2 %v12045_v31 }
 0x1e2   : > { %v11498_v35 = vld [vmem:[%s13682_s27 + $0x19a0] sm:$0xf0] }
 0x1e3   : > { %v13209_v36 = vld [vmem:[%s13682_s27 + $0x1b84] sm:$0xf]  ;;  %v11501_v44 = vor.u32 %v13145_v34, %v11498_v35  ;;  %6838 = vmatpush.bf16.msrb.mxu3 %v12301_v37 }
 0x1e4   : > { %v11754_v39 = vld [vmem:[%s13682_s27 + $0x1ba0] sm:$0xf0] }
 0x1e5   : > { %v13273_v40 = vld [vmem:[%s13682_s27 + $0x1d84] sm:$0xf]  ;;  %v11757_v45 = vor.u32 %v13209_v36, %v11754_v39  ;;  %6800 = vmatpush.bf16.msrb.mxu0 %v11501_v44  ;;  %v6574_v39 = vpop.f32.mrf.mxu2  ;;  %v6587_v44 = vpop.f32.mrf.mxu3 }
 0x1e6   : > { %v12010_v41 = vld [vmem:[%s13682_s27 + $0x1da0] sm:$0xf0] }
 0x1e7   : > { %v13337_v42 = vld [vmem:[%s13682_s27 + $0x1f84] sm:$0xf]  ;;  %v12013_v46 = vor.u32 %v13273_v40, %v12010_v41  ;;  %6813 = vmatpush.bf16.msrb.mxu1 %v11757_v45 }
 0x1e8   : > { %v12266_v43 = vld [vmem:[%s13682_s27 + $0x1fa0] sm:$0xf0] }
 0x1e9   : > { %v13137_v47 = vld [vmem:[%s13682_s27 + $0x1944] sm:$0xf]  ;;  %v12269_v52 = vor.u32 %v13337_v42, %v12266_v43  ;;  %6826 = vmatpush.bf16.msrb.mxu2 %v12013_v46  ;;  %v6575_v43 = vadd.f32 %v6574_v39, %v6562_v23  ;;  %v12518_v23 = vld [vmem:[%s13682_s27 + $0x5e4] sm:$0xf0] }
 0x1ea   : > { %v11466_v49 = vld [vmem:[%s13682_s27 + $0x1960] sm:$0xf0]  ;;  %v12446_v39 = vld [vmem:[%s13682_s27 + $0x3a4] sm:$0xf0] }
 0x1eb   : > { %v13201_v50 = vld [vmem:[%s13682_s27 + $0x1b44] sm:$0xf]  ;;  %v11469_v61 = vor.u32 %v13137_v47, %v11466_v49  ;;  %6839 = vmatpush.bf16.msrb.mxu3 %v12269_v52  ;;  %v6550_v47 = vpop.f32.mrf.mxu0  ;;  %v14235_v51 = vadd.f32 %v6587_v44, %v6575_v43  ;;  %v12574_v43 = vld [vmem:[%s13682_s27 + $0x7a4] sm:$0xf0] }
 0x1ec   : > { %v11722_v53 = vld [vmem:[%s13682_s27 + $0x1b60] sm:$0xf0]  ;;  %v8400_v47 = vld [vmem:[%s13682_s27 + $0x148] sm:$0xf] }
 0x1ed   : > { %v13265_v54 = vld [vmem:[%s13682_s27 + $0x1d44] sm:$0xf]  ;;  %v11725_v62 = vor.u32 %v13201_v50, %v11722_v53  ;;  %6801 = vmatpush.bf16.msrb.mxu0 %v11469_v61  ;;  %v6563_v50 = vpop.f32.mrf.mxu1 }
 0x1ee   : > { %v11978_v55 = vld [vmem:[%s13682_s27 + $0x1d60] sm:$0xf0]  ;;  %v8656_v50 = vld [vmem:[%s13682_s27 + $0x348] sm:$0xf] }
 0x1ef   : > { %v13402_v57 = vld [vmem:[#allocation1 + $0x9] sm:$0xff]  ;;  %v11981_v63 = vor.u32 %v13265_v54, %v11978_v55  ;;  %6814 = vmatpush.bf16.msrb.mxu1 %v11725_v62 }
 0x1f0   : > { %6768 = vmatmul.bf16.vlgmr.msra.gmra.mxu1 %v13402_v57  ;;  %v13329_v58 = vld [vmem:[%s13682_s27 + $0x1f44] sm:$0xf] }
 0x1f1   : > { %v12234_v59 = vld [vmem:[%s13682_s27 + $0x1f60] sm:$0xf0]  ;;  %6827 = vmatpush.bf16.msrb.mxu2 %v11981_v63 }
 0x1f2   : > { %v13129_v0 = vld [vmem:[%s13682_s27 + $0x1904] sm:$0xf]  ;;  %v12237_v3 = vor.u32 %v13329_v58, %v12234_v59 }
 0x1f3   : > { %v11434_v1 = vld [vmem:[%s13682_s27 + $0x1920] sm:$0xf0] }
 0x1f4   : > { %v13193_v2 = vld [vmem:[%s13682_s27 + $0x1b04] sm:$0xf]  ;;  %v11437_v11 = vor.u32 %v13129_v0, %v11434_v1  ;;  %6840 = vmatpush.bf16.msrb.mxu3 %v12237_v3 }
 0x1f5   : > { %v11690_v4 = vld [vmem:[%s13682_s27 + $0x1b20] sm:$0xf0] }
 0x1f6   : > { %v13257_v5 = vld [vmem:[%s13682_s27 + $0x1d04] sm:$0xf]  ;;  %v11693_v13 = vor.u32 %v13193_v2, %v11690_v4  ;;  %6802 = vmatpush.bf16.msrb.mxu0 %v11437_v11  ;;  %v6576_v11 = vpop.f32.mrf.mxu2 }
 0x1f7   : > { %v11946_v6 = vld [vmem:[%s13682_s27 + $0x1d20] sm:$0xf0] }
 0x1f8   : > { %v13321_v8 = vld [vmem:[%s13682_s27 + $0x1f04] sm:$0xf]  ;;  %v11949_v14 = vor.u32 %v13257_v5, %v11946_v6  ;;  %6815 = vmatpush.bf16.msrb.mxu1 %v11693_v13  ;;  %v12390_v13 = vld [vmem:[%s13682_s27 + $0x1e4] sm:$0xf0] }
 0x1f9   : > { %v12202_v9 = vld [vmem:[%s13682_s27 + $0x1f20] sm:$0xf0] }
 0x1fa   : > { %v13121_v15 = vld [vmem:[%s13682_s27 + $0x18c4] sm:$0xf]  ;;  %v12205_v19 = vor.u32 %v13321_v8, %v12202_v9  ;;  %6828 = vmatpush.bf16.msrb.mxu2 %v11949_v14  ;;  %v8720_v14 = vld [vmem:[%s13682_s27 + $0x3c8] sm:$0xf] }
 0x1fb   : > { %v11402_v16 = vld [vmem:[%s13682_s27 + $0x18e0] sm:$0xf0] }
 0x1fc   : > { %v13185_v17 = vld [vmem:[%s13682_s27 + $0x1ac4] sm:$0xf]  ;;  %v11405_v30 = vor.u32 %v13121_v15, %v11402_v16  ;;  %6841 = vmatpush.bf16.msrb.mxu3 %v12205_v19  ;;  %v6589_v15 = vpop.f32.mrf.mxu3  ;;  %v8976_v19 = vld [vmem:[%s13682_s27 + $0x5c8] sm:$0xf] }
 0x1fd   : > { %v11658_v24 = vld [vmem:[%s13682_s27 + $0x1ae0] sm:$0xf0] }
 0x1fe   : > { %v13249_v25 = vld [vmem:[%s13682_s27 + $0x1cc4] sm:$0xf]  ;;  %v11661_v18 = vor.u32 %v13185_v17, %v11658_v24  ;;  %6803 = vmatpush.bf16.msrb.mxu0 %v11405_v30  ;;  %v12454_v17 = vld [vmem:[%s13682_s27 + $0x3e4] sm:$0xf0]  ;;  %v8465_v30 = vor.u32 %v12390_v13, %v8464_v12  ;;  %v6613_v13 = vpop.f32.mrf.mxu1 }
 0x1ff   : > { %v11914_v48 = vld [vmem:[%s13682_s27 + $0x1ce0] sm:$0xf0] }
 0x200   : > { %v13313_v27 = vld [vmem:[%s13682_s27 + $0x1ec4] sm:$0xf]  ;;  %v11917_v31 = vor.u32 %v13249_v25, %v11914_v48  ;;  %6816 = vmatpush.bf16.msrb.mxu1 %v11661_v18  ;;  %v9232_v48 = vld [vmem:[%s13682_s27 + $0x7c8] sm:$0xf]  ;;  %v8721_v18 = vor.u32 %v12454_v17, %v8720_v14 }
 0x201   : > { %v12170_v28 = vld [vmem:[%s13682_s27 + $0x1ee0] sm:$0xf0]  ;;  %v12358_v17 = vld [vmem:[%s13682_s27 + $0xe4] sm:$0xf0] }
 0x202   : > { %v13113_v34 = vld [vmem:[%s13682_s27 + $0x1884] sm:$0xf]  ;;  %v12173_v37 = vor.u32 %v13313_v27, %v12170_v28  ;;  %6829 = vmatpush.bf16.msrb.mxu2 %v11917_v31  ;;  %v12582_v27 = vld [vmem:[%s13682_s27 + $0x7e4] sm:$0xf0]  ;;  %v8977_v31 = vor.u32 %v12518_v23, %v8976_v19 }
 0x203   : > { %v11370_v35 = vld [vmem:[%s13682_s27 + $0x18a0] sm:$0xf0]  ;;  %v8592_v19 = vld [vmem:[%s13682_s27 + $0x2c8] sm:$0xf] }
 0x204   : > { %v13177_v36 = vld [vmem:[%s13682_s27 + $0x1a84] sm:$0xf]  ;;  %v11373_v49 = vor.u32 %v13113_v34, %v11370_v35  ;;  %6842 = vmatpush.bf16.msrb.mxu3 %v12173_v37  ;;  %v8432_v34 = vld [vmem:[%s13682_s27 + $0x188] sm:$0xf]  ;;  %v9233_v37 = vor.u32 %v12582_v27, %v9232_v48 }
 0x205   : > { %v11626_v40 = vld [vmem:[%s13682_s27 + $0x1aa0] sm:$0xf0]  ;;  %v12382_v35 = vld [vmem:[%s13682_s27 + $0x1a4] sm:$0xf0] }
 0x206   : > { %v13241_v41 = vld [vmem:[%s13682_s27 + $0x1c84] sm:$0xf]  ;;  %v11629_v52 = vor.u32 %v13177_v36, %v11626_v40  ;;  %6804 = vmatpush.bf16.msrb.mxu0 %v11373_v49  ;;  %v8688_v36 = vld [vmem:[%s13682_s27 + $0x388] sm:$0xf]  ;;  %v8433_v44 = vor.u32 %v12382_v35, %v8432_v34 }
 0x207   : > { %v11882_v42 = vld [vmem:[%s13682_s27 + $0x1ca0] sm:$0xf0]  ;;  %v8944_v40 = vld [vmem:[%s13682_s27 + $0x588] sm:$0xf] }
 0x208   : > { %v13305_v45 = vld [vmem:[%s13682_s27 + $0x1e84] sm:$0xf]  ;;  %v11885_v53 = vor.u32 %v13241_v41, %v11882_v42  ;;  %6817 = vmatpush.bf16.msrb.mxu1 %v11629_v52  ;;  %v12510_v41 = vld [vmem:[%s13682_s27 + $0x5a4] sm:$0xf0]  ;;  %v13404_v52 = vld [vmem:[#allocation1 + $0x24] sm:$0xff] }
 0x209   : > { %v12138_v46 = vld [vmem:[%s13682_s27 + $0x1ea0] sm:$0xf0]  ;;  %v9200_v42 = vld [vmem:[%s13682_s27 + $0x788] sm:$0xf] }
 0x20a   : > { %v13105_v54 = vld [vmem:[%s13682_s27 + $0x1844] sm:$0xf]  ;;  %v12141_v57 = vor.u32 %v13305_v45, %v12138_v46  ;;  %6830 = vmatpush.bf16.msrb.mxu2 %v11885_v53  ;;  %v8689_v45 = vor.u32 %v12446_v39, %v8688_v36  ;;  %v8945_v46 = vor.u32 %v12510_v41, %v8944_v40  ;;  %v12374_v49 = vld [vmem:[%s13682_s27 + $0x164] sm:$0xf0]  ;;  %v9201_v53 = vor.u32 %v12574_v43, %v9200_v42  ;;  %v6626_v39 = vpop.f32.mrf.mxu2 }
 0x20b   : > { %v11338_v55 = vld [vmem:[%s13682_s27 + $0x1860] sm:$0xf0]  ;;  %v8848_v48 = vld [vmem:[%s13682_s27 + $0x4c8] sm:$0xf] }
 0x20c   : > { %v13169_v56 = vld [vmem:[%s13682_s27 + $0x1a44] sm:$0xf]  ;;  %v11341_v63 = vor.u32 %v13105_v54, %v11338_v55  ;;  %6843 = vmatpush.bf16.msrb.mxu3 %v12141_v57  ;;  %v12438_v54 = vld [vmem:[%s13682_s27 + $0x364] sm:$0xf0]  ;;  %v13405_v57 = vld [vmem:[#allocation1 + $0x36] sm:$0xff] }
 0x20d   : > { %v11594_v58 = vld [vmem:[%s13682_s27 + $0x1a60] sm:$0xf0]  ;;  %v8912_v55 = vld [vmem:[%s13682_s27 + $0x548] sm:$0xf] }
 0x20e   : > { %v13233_v59 = vld [vmem:[%s13682_s27 + $0x1c44] sm:$0xf]  ;;  %v11597_v2 = vor.u32 %v13169_v56, %v11594_v58  ;;  %6805 = vmatpush.bf16.msrb.mxu0 %v11341_v63  ;;  %v12502_v56 = vld [vmem:[%s13682_s27 + $0x564] sm:$0xf0]  ;;  %v8657_v63 = vor.u32 %v12438_v54, %v8656_v50  ;;  %v6615_v50 = vpop.f32.mrf.mxu1 }
 0x20f   : > { %v11850_v60 = vld [vmem:[%s13682_s27 + $0x1c60] sm:$0xf0]  ;;  %v9104_v27 = vld [vmem:[%s13682_s27 + $0x6c8] sm:$0xf] }
 0x210   : > { %v13297_v61 = vld [vmem:[%s13682_s27 + $0x1e44] sm:$0xf]  ;;  %v11853_v3 = vor.u32 %v13233_v59, %v11850_v60  ;;  %6818 = vmatpush.bf16.msrb.mxu1 %v11597_v2  ;;  %v9168_v59 = vld [vmem:[%s13682_s27 + $0x748] sm:$0xf] }
 0x211   : > { %v12106_v62 = vld [vmem:[%s13682_s27 + $0x1e60] sm:$0xf0]  ;;  %v12566_v60 = vld [vmem:[%s13682_s27 + $0x764] sm:$0xf0] }
 0x212   : > { %v13097_v0 = vld [vmem:[%s13682_s27 + $0x1804] sm:$0xf]  ;;  %v12109_v7 = vor.u32 %v13297_v61, %v12106_v62  ;;  %6831 = vmatpush.bf16.msrb.mxu2 %v11853_v3  ;;  %v13407_v61 = vld [vmem:[#allocation1 + $0x3f] sm:$0xff]  ;;  %v8401_v62 = vor.u32 %v12374_v49, %v8400_v47  ;;  %v12366_v2 = vld [vmem:[%s13682_s27 + $0x124] sm:$0xf0] }
 0x213   : > { %v11306_v1 = vld [vmem:[%s13682_s27 + $0x1820] sm:$0xf0]  ;;  %v8624_v3 = vld [vmem:[%s13682_s27 + $0x308] sm:$0xf] }
 0x214   : > { %v13161_v4 = vld [vmem:[%s13682_s27 + $0x1a04] sm:$0xf]  ;;  %v11309_v16 = vor.u32 %v13097_v0, %v11306_v1  ;;  %6844 = vmatpush.bf16.msrb.mxu3 %v12109_v7  ;;  %v8913_v0 = vor.u32 %v12502_v56, %v8912_v55  ;;  %v8368_v1 = vld [vmem:[%s13682_s27 + $0x108] sm:$0xf] }
 0x215   : > { %v11562_v5 = vld [vmem:[%s13682_s27 + $0x1a20] sm:$0xf0]  ;;  %v12494_v7 = vld [vmem:[%s13682_s27 + $0x524] sm:$0xf0]  ;;  %v8369_v12 = vor.u32 %v12366_v2, %v8368_v1 }
 0x216   : > { %v13225_v6 = vld [vmem:[%s13682_s27 + $0x1c04] sm:$0xf]  ;;  %v11565_v24 = vor.u32 %v13161_v4, %v11562_v5  ;;  %6806 = vmatpush.bf16.msrb.mxu0 %v11309_v16  ;;  %v9169_v4 = vor.u32 %v12566_v60, %v9168_v59  ;;  %v12430_v5 = vld [vmem:[%s13682_s27 + $0x324] sm:$0xf0] }
 0x217   : > { %v11818_v8 = vld [vmem:[%s13682_s27 + $0x1c20] sm:$0xf0]  ;;  %v8625_v14 = vor.u32 %v12430_v5, %v8624_v3  ;;  %v8336_v16 = vld [vmem:[%s13682_s27 + $0xc8] sm:$0xf] }
 0x218   : > { %v13289_v9 = vld [vmem:[%s13682_s27 + $0x1e04] sm:$0xf]  ;;  %v11821_v25 = vor.u32 %v13225_v6, %v11818_v8  ;;  %6819 = vmatpush.bf16.msrb.mxu1 %v11565_v24  ;;  %v8880_v6 = vld [vmem:[%s13682_s27 + $0x508] sm:$0xf]  ;;  %v6600_v8 = vpop.f32.mrf.mxu0 }
 0x219   : > { %v12074_v10 = vld [vmem:[%s13682_s27 + $0x1e20] sm:$0xf0]  ;;  %6807 = vmatmul.bf16.vlgmr.msrb.gmra.mxu0 %v13404_v52  ;;  %v6601_v11 = vadd.f32 %v6600_v8, %v14235_v51  ;;  %v8881_v15 = vor.u32 %v12494_v7, %v8880_v6  ;;  %v12486_v51 = vld [vmem:[%s13682_s27 + $0x4e4] sm:$0xf0] }
 0x21a   : > { %v12077_v28 = vor.u32 %v13289_v9, %v12074_v10  ;;  %6832 = vmatpush.bf16.msrb.mxu2 %v11821_v25  ;;  %6851 = vmatpush.bf16.msra.mxu0 %v8465_v30  ;;  %v13406_v58 = vld [vmem:[#allocation1 + $0x2d] sm:$0xff]  ;;  %v8337_v30 = vor.u32 %v12358_v17, %v8336_v16 }
 0x21b   : > { %6820 = vmatmul.bf16.vlgmr.msrb.gmra.mxu1 %v13406_v58  ;;  %v9136_v9 = vld [vmem:[%s13682_s27 + $0x708] sm:$0xf]  ;;  %v6614_v24 = vadd.f32 %v6613_v13, %v6601_v11 }
 0x21c   : > { %6845 = vmatpush.bf16.msrb.mxu3 %v12077_v28  ;;  %6864 = vmatpush.bf16.msra.mxu1 %v8721_v18  ;;  %v12558_v10 = vld [vmem:[%s13682_s27 + $0x724] sm:$0xf0] }
 0x21d   : > { %6833 = vmatmul.bf16.vlgmr.msrb.gmra.mxu2 %v13405_v57  ;;  %v9137_v23 = vor.u32 %v12558_v10, %v9136_v9  ;;  %v12422_v25 = vld [vmem:[%s13682_s27 + $0x2e4] sm:$0xf0]  ;;  %v6627_v43 = vadd.f32 %v6626_v39, %v6614_v24 }
 0x21e   : > { %6877 = vmatpush.bf16.msra.mxu2 %v8977_v31  ;;  %6852 = vmatpush.bf16.msra.mxu0 %v8433_v44  ;;  %v12550_v28 = vld [vmem:[%s13682_s27 + $0x6e4] sm:$0xf0]  ;;  %v8593_v18 = vor.u32 %v12422_v25, %v8592_v19  ;;  %v8849_v31 = vor.u32 %v12486_v51, %v8848_v48  ;;  %v6639_v44 = vpop.f32.mrf.mxu3 }
 0x21f   : > { %6846 = vmatmul.bf16.vlgmr.msrb.gmra.mxu3 %v13407_v61  ;;  %v8304_v34 = vld [vmem:[%s13682_s27 + $0x88] sm:$0xf]  ;;  %v14302_v52 = vadd.f32 %v6639_v44, %v6627_v43 }
 0x220   : > { %6890 = vmatpush.bf16.msra.mxu3 %v9233_v37  ;;  %6865 = vmatpush.bf16.msra.mxu1 %v8689_v45  ;;  %v12350_v35 = vld [vmem:[%s13682_s27 + $0xa4] sm:$0xf0]  ;;  %v9105_v37 = vor.u32 %v12550_v28, %v9104_v27  ;;  %v6602_v47 = vpop.f32.mrf.mxu0 }
 0x221   : > { %v8560_v36 = vld [vmem:[%s13682_s27 + $0x288] sm:$0xf]  ;;  %v8305_v49 = vor.u32 %v12350_v35, %v8304_v34 }
 0x222   : > { %6878 = vmatpush.bf16.msra.mxu2 %v8945_v46  ;;  %6853 = vmatpush.bf16.msra.mxu0 %v8401_v62  ;;  %v12414_v40 = vld [vmem:[%s13682_s27 + $0x2a4] sm:$0xf0] }
 0x223   : > { %v8816_v41 = vld [vmem:[%s13682_s27 + $0x488] sm:$0xf] }
 0x224   : > { %6891 = vmatpush.bf16.msra.mxu3 %v9201_v53  ;;  %6866 = vmatpush.bf16.msra.mxu1 %v8657_v63  ;;  %v12478_v42 = vld [vmem:[%s13682_s27 + $0x4a4] sm:$0xf0]  ;;  %v8561_v53 = vor.u32 %v12414_v40, %v8560_v36 }
 0x225   : > { %v9072_v45 = vld [vmem:[%s13682_s27 + $0x688] sm:$0xf]  ;;  %v8817_v54 = vor.u32 %v12478_v42, %v8816_v41 }
 0x226   : > { %6879 = vmatpush.bf16.msra.mxu2 %v8913_v0  ;;  %6854 = vmatpush.bf16.msra.mxu0 %v8369_v12  ;;  %v12542_v46 = vld [vmem:[%s13682_s27 + $0x6a4] sm:$0xf0]  ;;  %v6628_v12 = vpop.f32.mrf.mxu2  ;;  %v6641_v16 = vpop.f32.mrf.mxu3 }
 0x227   : > { %v8272_v55 = vld [vmem:[%s13682_s27 + $0x48] sm:$0xf]  ;;  %v9073_v58 = vor.u32 %v12542_v46, %v9072_v45 }
 0x228   : > { %6892 = vmatpush.bf16.msra.mxu3 %v9169_v4  ;;  %6867 = vmatpush.bf16.msra.mxu1 %v8625_v14  ;;  %v12342_v56 = vld [vmem:[%s13682_s27 + $0x64] sm:$0xf0] }
 0x229   : > { %v8528_v57 = vld [vmem:[%s13682_s27 + $0x248] sm:$0xf]  ;;  %v8273_v0 = vor.u32 %v12342_v56, %v8272_v55 }
 0x22a   : > { %6880 = vmatpush.bf16.msra.mxu2 %v8881_v15  ;;  %6855 = vmatpush.bf16.msra.mxu0 %v8337_v30  ;;  %v12406_v59 = vld [vmem:[%s13682_s27 + $0x264] sm:$0xf0] }
 0x22b   : > { %v8784_v60 = vld [vmem:[%s13682_s27 + $0x448] sm:$0xf]  ;;  %v8529_v3 = vor.u32 %v12406_v59, %v8528_v57 }
 0x22c   : > { %6893 = vmatpush.bf16.msra.mxu3 %v9137_v23  ;;  %6868 = vmatpush.bf16.msra.mxu1 %v8593_v18  ;;  %v12470_v61 = vld [vmem:[%s13682_s27 + $0x464] sm:$0xf0] }
 0x22d   : > { %v9040_v62 = vld [vmem:[%s13682_s27 + $0x648] sm:$0xf]  ;;  %v8785_v4 = vor.u32 %v12470_v61, %v8784_v60 }
 0x22e   : > { %6881 = vmatpush.bf16.msra.mxu2 %v8849_v31  ;;  %v12534_v63 = vld [vmem:[%s13682_s27 + $0x664] sm:$0xf0]  ;;  %6856 = vmatpush.bf16.msra.mxu0 %v8305_v49 }
 0x22f   : > { %v8240_v1 = vld [vmem:[%s13682_s27 + $0x8] sm:$0xf]  ;;  %v9041_v8 = vor.u32 %v12534_v63, %v9040_v62 }
 0x230   : > { %6894 = vmatpush.bf16.msra.mxu3 %v9105_v37  ;;  %v12334_v2 = vld [vmem:[%s13682_s27 + $0x24] sm:$0xf0]  ;;  %6869 = vmatpush.bf16.msra.mxu1 %v8561_v53 }
 0x231   : > { %v8496_v5 = vld [vmem:[%s13682_s27 + $0x208] sm:$0xf]  ;;  %v8241_v17 = vor.u32 %v12334_v2, %v8240_v1 }
 0x232   : > { %6882 = vmatpush.bf16.msra.mxu2 %v8817_v54  ;;  %v12398_v6 = vld [vmem:[%s13682_s27 + $0x224] sm:$0xf0]  ;;  %6857 = vmatpush.bf16.msra.mxu0 %v8273_v0 }
 0x233   : > { %v8752_v7 = vld [vmem:[%s13682_s27 + $0x408] sm:$0xf]  ;;  %v8497_v25 = vor.u32 %v12398_v6, %v8496_v5 }
 0x234   : > { %6895 = vmatpush.bf16.msra.mxu3 %v9073_v58  ;;  %v12462_v9 = vld [vmem:[%s13682_s27 + $0x424] sm:$0xf0]  ;;  %6870 = vmatpush.bf16.msra.mxu1 %v8529_v3 }
 0x235   : > { %v9008_v10 = vld [vmem:[%s13682_s27 + $0x608] sm:$0xf]  ;;  %v8753_v48 = vor.u32 %v12462_v9, %v8752_v7 }
 0x236   : > { %v12526_v11 = vld [vmem:[%s13682_s27 + $0x624] sm:$0xf0]  ;;  %6883 = vmatpush.bf16.msra.mxu2 %v8785_v4  ;;  %6858 = vmatpush.bf16.msra.mxu0 %v8241_v17  ;;  %v6665_v17 = vpop.f32.mrf.mxu1 }
 0x237   : > { %v9488_v13 = vld [vmem:[%s13682_s27 + $0x9c8] sm:$0xf]  ;;  %v9009_v28 = vor.u32 %v12526_v11, %v9008_v10  ;;  %v6652_v10 = vpop.f32.mrf.mxu0 }
 0x238   : > { %v12646_v14 = vld [vmem:[%s13682_s27 + $0x9e4] sm:$0xf0]  ;;  %6896 = vmatpush.bf16.msra.mxu3 %v9041_v8  ;;  %6871 = vmatpush.bf16.msra.mxu1 %v8497_v25 }
 0x239   : > { %v9744_v15 = vld [vmem:[%s13682_s27 + $0xbc8] sm:$0xf]  ;;  %v9489_v30 = vor.u32 %v12646_v14, %v9488_v13  ;;  %6859 = vmatmul.bf16.vlgmr.msra.gmra.mxu0 %v13799_v21 }
 0x23a   : > { %v12710_v19 = vld [vmem:[%s13682_s27 + $0xbe4] sm:$0xf0]  ;;  %6884 = vmatpush.bf16.msra.mxu2 %v8753_v48 }
 0x23b   : > { %v10000_v23 = vld [vmem:[%s13682_s27 + $0xdc8] sm:$0xf]  ;;  %v9745_v18 = vor.u32 %v12710_v19, %v9744_v15  ;;  %6903 = vmatpush.bf16.msrb.mxu0 %v9489_v30  ;;  %6872 = vmatmul.bf16.vlgmr.msra.gmra.mxu1 %v13806_v26 }
 0x23c   : > { %v12774_v24 = vld [vmem:[%s13682_s27 + $0xde4] sm:$0xf0]  ;;  %6897 = vmatpush.bf16.msra.mxu3 %v9009_v28 }
 0x23d   : > { %v10256_v51 = vld [vmem:[%s13682_s27 + $0xfc8] sm:$0xf]  ;;  %v10001_v31 = vor.u32 %v12774_v24, %v10000_v23  ;;  %6916 = vmatpush.bf16.msrb.mxu1 %v9745_v18  ;;  %6885 = vmatmul.bf16.vlgmr.msra.gmra.mxu2 %v13797_v20 }
 0x23e   : > { %v12838_v27 = vld [vmem:[%s13682_s27 + $0xfe4] sm:$0xf0] }
 0x23f   : > { %v9456_v34 = vld [vmem:[%s13682_s27 + $0x988] sm:$0xf]  ;;  %v10257_v37 = vor.u32 %v12838_v27, %v10256_v51  ;;  %6929 = vmatpush.bf16.msrb.mxu2 %v10001_v31  ;;  %6898 = vmatmul.bf16.vlgmr.msra.gmra.mxu3 %v13801_v22 }
 0x240   : > { %v12638_v35 = vld [vmem:[%s13682_s27 + $0x9a4] sm:$0xf0] }
 0x241   : > { %v9712_v36 = vld [vmem:[%s13682_s27 + $0xb88] sm:$0xf]  ;;  %v9457_v44 = vor.u32 %v12638_v35, %v9456_v34  ;;  %6942 = vmatpush.bf16.msrb.mxu3 %v10257_v37 }
 0x242   : > { %v12702_v39 = vld [vmem:[%s13682_s27 + $0xba4] sm:$0xf0] }
 0x243   : > { %v9968_v40 = vld [vmem:[%s13682_s27 + $0xd88] sm:$0xf]  ;;  %v9713_v45 = vor.u32 %v12702_v39, %v9712_v36  ;;  %6904 = vmatpush.bf16.msrb.mxu0 %v9457_v44  ;;  %v6678_v36 = vpop.f32.mrf.mxu2 }
 0x244   : > { %v12766_v41 = vld [vmem:[%s13682_s27 + $0xda4] sm:$0xf0] }
 0x245   : > { %v10224_v42 = vld [vmem:[%s13682_s27 + $0xf88] sm:$0xf]  ;;  %v9969_v46 = vor.u32 %v12766_v41, %v9968_v40  ;;  %6917 = vmatpush.bf16.msrb.mxu1 %v9713_v45 }
 0x246   : > { %v12830_v43 = vld [vmem:[%s13682_s27 + $0xfa4] sm:$0xf0] }
 0x247   : > { %v9424_v47 = vld [vmem:[%s13682_s27 + $0x948] sm:$0xf]  ;;  %v10225_v53 = vor.u32 %v12830_v43, %v10224_v42  ;;  %6930 = vmatpush.bf16.msrb.mxu2 %v9969_v46  ;;  %v6691_v43 = vpop.f32.mrf.mxu3 }
 0x248   : > { %v12630_v49 = vld [vmem:[%s13682_s27 + $0x964] sm:$0xf0] }
 0x249   : > { %v9680_v50 = vld [vmem:[%s13682_s27 + $0xb48] sm:$0xf]  ;;  %v9425_v59 = vor.u32 %v12630_v49, %v9424_v47  ;;  %6943 = vmatpush.bf16.msrb.mxu3 %v10225_v53  ;;  %v6654_v49 = vpop.f32.mrf.mxu0 }
 0x24a   : > { %v12694_v54 = vld [vmem:[%s13682_s27 + $0xb64] sm:$0xf0] }
 0x24b   : > { %v9936_v55 = vld [vmem:[%s13682_s27 + $0xd48] sm:$0xf]  ;;  %v9681_v61 = vor.u32 %v12694_v54, %v9680_v50  ;;  %6905 = vmatpush.bf16.msrb.mxu0 %v9425_v59 }
 0x24c   : > { %v12758_v56 = vld [vmem:[%s13682_s27 + $0xd64] sm:$0xf0] }
 0x24d   : > { %v10192_v57 = vld [vmem:[%s13682_s27 + $0xf48] sm:$0xf]  ;;  %v9937_v62 = vor.u32 %v12758_v56, %v9936_v55  ;;  %6918 = vmatpush.bf16.msrb.mxu1 %v9681_v61 }
 0x24e   : > { %v12822_v58 = vld [vmem:[%s13682_s27 + $0xf64] sm:$0xf0] }
 0x24f   : > { %v9392_v60 = vld [vmem:[%s13682_s27 + $0x908] sm:$0xf]  ;;  %v10193_v3 = vor.u32 %v12822_v58, %v10192_v57  ;;  %6931 = vmatpush.bf16.msrb.mxu2 %v9937_v62  ;;  %v6667_v57 = vpop.f32.mrf.mxu1 }
 0x250   : > { %v12622_v63 = vld [vmem:[%s13682_s27 + $0x924] sm:$0xf0] }
 0x251   : > { %v9648_v0 = vld [vmem:[%s13682_s27 + $0xb08] sm:$0xf]  ;;  %v9393_v9 = vor.u32 %v12622_v63, %v9392_v60  ;;  %6944 = vmatpush.bf16.msrb.mxu3 %v10193_v3 }
 0x252   : > { %v13408_v1 = vld [vmem:[%s13688_s5] sm:$0xff] }
 0x253   : > { %v1264_v2 = vperm.slane %v13408_v1, 1  ;;  %v12686_v4 = vld [vmem:[%s13682_s27 + $0xb24] sm:$0xf0]  ;;  %6906 = vmatpush.bf16.msrb.mxu0 %v9393_v9 }
 0x254   : > { %v9904_v5 = vld [vmem:[%s13682_s27 + $0xd08] sm:$0xf]  ;;  %v9649_v11 = vor.u32 %v12686_v4, %v9648_v0 }
 0x255   : > { %v12750_v6 = vld [vmem:[%s13682_s27 + $0xd24] sm:$0xf0]  ;;  %v6653_v16 = vadd.f32 %v6652_v10, %v1264_v2 }
 0x256   : > { %v10160_v7 = vld [vmem:[%s13682_s27 + $0xf08] sm:$0xf]  ;;  %v9905_v12 = vor.u32 %v12750_v6, %v9904_v5  ;;  %6919 = vmatpush.bf16.msrb.mxu1 %v9649_v11 }
 0x257   : > { %v12814_v8 = vld [vmem:[%s13682_s27 + $0xf24] sm:$0xf0]  ;;  %v6666_v27 = vadd.f32 %v6665_v17, %v6653_v16 }
 0x258   : > { %v9360_v13 = vld [vmem:[%s13682_s27 + $0x8c8] sm:$0xf]  ;;  %v10161_v19 = vor.u32 %v12814_v8, %v10160_v7  ;;  %6932 = vmatpush.bf16.msrb.mxu2 %v9905_v12  ;;  %v6680_v8 = vpop.f32.mrf.mxu2 }
 0x259   : > { %v12614_v14 = vld [vmem:[%s13682_s27 + $0x8e4] sm:$0xf0]  ;;  %v6679_v42 = vadd.f32 %v6678_v36, %v6666_v27 }
 0x25a   : > { %v9616_v15 = vld [vmem:[%s13682_s27 + $0xac8] sm:$0xf]  ;;  %v9361_v28 = vor.u32 %v12614_v14, %v9360_v13  ;;  %6945 = vmatpush.bf16.msrb.mxu3 %v10161_v19  ;;  %v6693_v13 = vpop.f32.mrf.mxu3 }
 0x25b   : > { %v12678_v23 = vld [vmem:[%s13682_s27 + $0xae4] sm:$0xf0]  ;;  %v14373_v47 = vadd.f32 %v6691_v43, %v6679_v42 }
 0x25c   : > { %v9872_v24 = vld [vmem:[%s13682_s27 + $0xcc8] sm:$0xf]  ;;  %v9617_v30 = vor.u32 %v12678_v23, %v9616_v15  ;;  %6907 = vmatpush.bf16.msrb.mxu0 %v9361_v28 }
 0x25d   : > { %v12742_v25 = vld [vmem:[%s13682_s27 + $0xce4] sm:$0xf0] }
 0x25e   : > { %v10128_v48 = vld [vmem:[%s13682_s27 + $0xec8] sm:$0xf]  ;;  %v9873_v18 = vor.u32 %v12742_v25, %v9872_v24  ;;  %6920 = vmatpush.bf16.msrb.mxu1 %v9617_v30 }
 0x25f   : > { %v12806_v51 = vld [vmem:[%s13682_s27 + $0xee4] sm:$0xf0] }
 0x260   : > { %v9328_v31 = vld [vmem:[%s13682_s27 + $0x888] sm:$0xf]  ;;  %v10129_v37 = vor.u32 %v12806_v51, %v10128_v48  ;;  %6933 = vmatpush.bf16.msrb.mxu2 %v9873_v18 }
 0x261   : > { %v12606_v34 = vld [vmem:[%s13682_s27 + $0x8a4] sm:$0xf0] }
 0x262   : > { %v9584_v35 = vld [vmem:[%s13682_s27 + $0xa88] sm:$0xf]  ;;  %v9329_v46 = vor.u32 %v12606_v34, %v9328_v31  ;;  %6946 = vmatpush.bf16.msrb.mxu3 %v10129_v37 }
 0x263   : > { %v12670_v39 = vld [vmem:[%s13682_s27 + $0xaa4] sm:$0xf0] }
 0x264   : > { %v9840_v40 = vld [vmem:[%s13682_s27 + $0xc88] sm:$0xf]  ;;  %v9585_v50 = vor.u32 %v12670_v39, %v9584_v35  ;;  %6908 = vmatpush.bf16.msrb.mxu0 %v9329_v46 }
 0x265   : > { %v12734_v41 = vld [vmem:[%s13682_s27 + $0xca4] sm:$0xf0] }
 0x266   : > { %v10096_v44 = vld [vmem:[%s13682_s27 + $0xe88] sm:$0xf]  ;;  %v9841_v53 = vor.u32 %v12734_v41, %v9840_v40  ;;  %6921 = vmatpush.bf16.msrb.mxu1 %v9585_v50 }
 0x267   : > { %v12798_v45 = vld [vmem:[%s13682_s27 + $0xea4] sm:$0xf0] }
 0x268   : > { %v9296_v54 = vld [vmem:[%s13682_s27 + $0x848] sm:$0xf]  ;;  %v10097_v58 = vor.u32 %v12798_v45, %v10096_v44  ;;  %6934 = vmatpush.bf16.msrb.mxu2 %v9841_v53 }
 0x269   : > { %v12598_v55 = vld [vmem:[%s13682_s27 + $0x864] sm:$0xf0] }
 0x26a   : > { %v9552_v56 = vld [vmem:[%s13682_s27 + $0xa48] sm:$0xf]  ;;  %v9297_v0 = vor.u32 %v12598_v55, %v9296_v54  ;;  %6947 = vmatpush.bf16.msrb.mxu3 %v10097_v58 }
 0x26b   : > { %v12662_v59 = vld [vmem:[%s13682_s27 + $0xa64] sm:$0xf0] }
 0x26c   : > { %v9808_v60 = vld [vmem:[%s13682_s27 + $0xc48] sm:$0xf]  ;;  %v9553_v3 = vor.u32 %v12662_v59, %v9552_v56  ;;  %6909 = vmatpush.bf16.msrb.mxu0 %v9297_v0 }
 0x26d   : > { %v12726_v61 = vld [vmem:[%s13682_s27 + $0xc64] sm:$0xf0] }
 0x26e   : > { %v10064_v62 = vld [vmem:[%s13682_s27 + $0xe48] sm:$0xf]  ;;  %v9809_v4 = vor.u32 %v12726_v61, %v9808_v60  ;;  %6922 = vmatpush.bf16.msrb.mxu1 %v9553_v3 }
 0x26f   : > { %v12790_v63 = vld [vmem:[%s13682_s27 + $0xe64] sm:$0xf0] }
 0x270   : > { %v9264_v1 = vld [vmem:[%s13682_s27 + $0x808] sm:$0xf]  ;;  %v10065_v9 = vor.u32 %v12790_v63, %v10064_v62  ;;  %6935 = vmatpush.bf16.msrb.mxu2 %v9809_v4 }
 0x271   : > { %v12590_v2 = vld [vmem:[%s13682_s27 + $0x824] sm:$0xf0] }
 0x272   : > { %v9520_v5 = vld [vmem:[%s13682_s27 + $0xa08] sm:$0xf]  ;;  %v9265_v17 = vor.u32 %v12590_v2, %v9264_v1  ;;  %6948 = vmatpush.bf16.msrb.mxu3 %v10065_v9  ;;  %v6704_v9 = vpop.f32.mrf.mxu0 }
 0x273   : > { %v12654_v6 = vld [vmem:[%s13682_s27 + $0xa24] sm:$0xf0] }
 0x274   : > { %v9776_v7 = vld [vmem:[%s13682_s27 + $0xc08] sm:$0xf]  ;;  %v9521_v25 = vor.u32 %v12654_v6, %v9520_v5  ;;  %6910 = vmatpush.bf16.msrb.mxu0 %v9265_v17 }
 0x275   : > { %v12718_v10 = vld [vmem:[%s13682_s27 + $0xc24] sm:$0xf0] }
 0x276   : > { %v10032_v11 = vld [vmem:[%s13682_s27 + $0xe08] sm:$0xf]  ;;  %v9777_v48 = vor.u32 %v12718_v10, %v9776_v7  ;;  %6923 = vmatpush.bf16.msrb.mxu1 %v9521_v25 }
 0x277   : > { %v12782_v12 = vld [vmem:[%s13682_s27 + $0xe24] sm:$0xf0]  ;;  %6911 = vmatmul.bf16.vlgmr.msrb.gmra.mxu0 %v13856_v32 }
 0x278   : > { %v10512_v14 = vld [vmem:[%s13682_s27 + $0x11c8] sm:$0xf]  ;;  %v10033_v28 = vor.u32 %v12782_v12, %v10032_v11  ;;  %6936 = vmatpush.bf16.msrb.mxu2 %v9777_v48 }
 0x279   : > { %v12902_v15 = vld [vmem:[%s13682_s27 + $0x11e4] sm:$0xf0]  ;;  %6924 = vmatmul.bf16.vlgmr.msrb.gmra.mxu1 %v13862_v38 }
 0x27a   : > { %v10768_v16 = vld [vmem:[%s13682_s27 + $0x13c8] sm:$0xf]  ;;  %v10513_v30 = vor.u32 %v12902_v15, %v10512_v14  ;;  %6949 = vmatpush.bf16.msrb.mxu3 %v10033_v28  ;;  %v6705_v15 = vadd.f32 %v6704_v9, %v14373_v47 }
 0x27b   : > { %v12966_v19 = vld [vmem:[%s13682_s27 + $0x13e4] sm:$0xf0]  ;;  %6937 = vmatmul.bf16.vlgmr.msrb.gmra.mxu2 %v13853_v29 }
 0x27c   : > { %v11024_v23 = vld [vmem:[%s13682_s27 + $0x15c8] sm:$0xf]  ;;  %v10769_v18 = vor.u32 %v12966_v19, %v10768_v16  ;;  %6955 = vmatpush.bf16.msra.mxu0 %v10513_v30  ;;  %v6717_v16 = vpop.f32.mrf.mxu1 }
 0x27d   : > { %v13030_v24 = vld [vmem:[%s13682_s27 + $0x15e4] sm:$0xf0]  ;;  %6950 = vmatmul.bf16.vlgmr.msrb.gmra.mxu3 %v13858_v33 }
 0x27e   : > { %v11280_v51 = vld [vmem:[%s13682_s27 + $0x17c8] sm:$0xf]  ;;  %v11025_v31 = vor.u32 %v13030_v24, %v11024_v23  ;;  %6968 = vmatpush.bf16.msra.mxu1 %v10769_v18 }
 0x27f   : > { %v13094_v27 = vld [vmem:[%s13682_s27 + $0x17e4] sm:$0xf0] }
 0x280   : > { %v10480_v34 = vld [vmem:[%s13682_s27 + $0x1188] sm:$0xf]  ;;  %v11281_v37 = vor.u32 %v13094_v27, %v11280_v51  ;;  %6981 = vmatpush.bf16.msra.mxu2 %v11025_v31  ;;  %v6718_v51 = vadd.f32 %v6717_v16, %v6705_v15 }
 0x281   : > { %v12894_v35 = vld [vmem:[%s13682_s27 + $0x11a4] sm:$0xf0] }
 0x282   : > { %v10736_v36 = vld [vmem:[%s13682_s27 + $0x1388] sm:$0xf]  ;;  %v10481_v44 = vor.u32 %v12894_v35, %v10480_v34  ;;  %6994 = vmatpush.bf16.msra.mxu3 %v11281_v37  ;;  %v6730_v34 = vpop.f32.mrf.mxu2 }
 0x283   : > { %v12958_v39 = vld [vmem:[%s13682_s27 + $0x13a4] sm:$0xf0] }
 0x284   : > { %v10992_v40 = vld [vmem:[%s13682_s27 + $0x1588] sm:$0xf]  ;;  %v10737_v45 = vor.u32 %v12958_v39, %v10736_v36  ;;  %6956 = vmatpush.bf16.msra.mxu0 %v10481_v44 }
 0x285   : > { %v13022_v41 = vld [vmem:[%s13682_s27 + $0x15a4] sm:$0xf0] }
 0x286   : > { %v11248_v42 = vld [vmem:[%s13682_s27 + $0x1788] sm:$0xf]  ;;  %v10993_v46 = vor.u32 %v13022_v41, %v10992_v40  ;;  %6969 = vmatpush.bf16.msra.mxu1 %v10737_v45  ;;  %v6731_v40 = vadd.f32 %v6730_v34, %v6718_v51  ;;  %v6743_v41 = vpop.f32.mrf.mxu3 }
 0x287   : > { %v13086_v43 = vld [vmem:[%s13682_s27 + $0x17a4] sm:$0xf0] }
 0x288   : > { %v10448_v49 = vld [vmem:[%s13682_s27 + $0x1148] sm:$0xf]  ;;  %v11249_v54 = vor.u32 %v13086_v43, %v11248_v42  ;;  %6982 = vmatpush.bf16.msra.mxu2 %v10993_v46  ;;  %v14444_v45 = vadd.f32 %v6743_v41, %v6731_v40  ;;  %v6706_v46 = vpop.f32.mrf.mxu0 }
 0x289   : > { %v12886_v50 = vld [vmem:[%s13682_s27 + $0x1164] sm:$0xf0] }
 0x28a   : > { %v10704_v53 = vld [vmem:[%s13682_s27 + $0x1348] sm:$0xf]  ;;  %v10449_v60 = vor.u32 %v12886_v50, %v10448_v49  ;;  %6995 = vmatpush.bf16.msra.mxu3 %v11249_v54 }
 0x28b   : > { %v12950_v55 = vld [vmem:[%s13682_s27 + $0x1364] sm:$0xf0] }
 0x28c   : > { %v10960_v56 = vld [vmem:[%s13682_s27 + $0x1548] sm:$0xf]  ;;  %v10705_v61 = vor.u32 %v12950_v55, %v10704_v53  ;;  %6957 = vmatpush.bf16.msra.mxu0 %v10449_v60 }
 0x28d   : > { %v13014_v57 = vld [vmem:[%s13682_s27 + $0x1564] sm:$0xf0] }
 0x28e   : > { %v11216_v58 = vld [vmem:[%s13682_s27 + $0x1748] sm:$0xf]  ;;  %v10961_v62 = vor.u32 %v13014_v57, %v10960_v56  ;;  %6970 = vmatpush.bf16.msra.mxu1 %v10705_v61  ;;  %v6719_v56 = vpop.f32.mrf.mxu1 }
 0x28f   : > { %v13078_v59 = vld [vmem:[%s13682_s27 + $0x1764] sm:$0xf0] }
 0x290   : > { %v10416_v63 = vld [vmem:[%s13682_s27 + $0x1108] sm:$0xf]  ;;  %v11217_v2 = vor.u32 %v13078_v59, %v11216_v58  ;;  %6983 = vmatpush.bf16.msra.mxu2 %v10961_v62 }
 0x291   : > { %v12878_v0 = vld [vmem:[%s13682_s27 + $0x1124] sm:$0xf0] }
 0x292   : > { %v10672_v1 = vld [vmem:[%s13682_s27 + $0x1308] sm:$0xf]  ;;  %v10417_v8 = vor.u32 %v12878_v0, %v10416_v63  ;;  %6996 = vmatpush.bf16.msra.mxu3 %v11217_v2 }
 0x293   : > { %v12942_v3 = vld [vmem:[%s13682_s27 + $0x1324] sm:$0xf0] }
 0x294   : > { %v10928_v4 = vld [vmem:[%s13682_s27 + $0x1508] sm:$0xf]  ;;  %v10673_v10 = vor.u32 %v12942_v3, %v10672_v1  ;;  %6958 = vmatpush.bf16.msra.mxu0 %v10417_v8 }
 0x295   : > { %v13006_v5 = vld [vmem:[%s13682_s27 + $0x1524] sm:$0xf0] }
 0x296   : > { %v11184_v6 = vld [vmem:[%s13682_s27 + $0x1708] sm:$0xf]  ;;  %v10929_v11 = vor.u32 %v13006_v5, %v10928_v4  ;;  %6971 = vmatpush.bf16.msra.mxu1 %v10673_v10 }
 0x297   : > { %v13070_v7 = vld [vmem:[%s13682_s27 + $0x1724] sm:$0xf0] }
 0x298   : > { %v10384_v12 = vld [vmem:[%s13682_s27 + $0x10c8] sm:$0xf]  ;;  %v11185_v17 = vor.u32 %v13070_v7, %v11184_v6  ;;  %6984 = vmatpush.bf16.msra.mxu2 %v10929_v11  ;;  %v6732_v7 = vpop.f32.mrf.mxu2 }
 0x299   : > { %v12870_v13 = vld [vmem:[%s13682_s27 + $0x10e4] sm:$0xf0] }
 0x29a   : > { %v10640_v14 = vld [vmem:[%s13682_s27 + $0x12c8] sm:$0xf]  ;;  %v10385_v27 = vor.u32 %v12870_v13, %v10384_v12  ;;  %6997 = vmatpush.bf16.msra.mxu3 %v11185_v17  ;;  %v6745_v12 = vpop.f32.mrf.mxu3 }
 0x29b   : > { %v12934_v19 = vld [vmem:[%s13682_s27 + $0x12e4] sm:$0xf0] }
 0x29c   : > { %v10896_v23 = vld [vmem:[%s13682_s27 + $0x14c8] sm:$0xf]  ;;  %v10641_v47 = vor.u32 %v12934_v19, %v10640_v14  ;;  %6959 = vmatpush.bf16.msra.mxu0 %v10385_v27 }
 0x29d   : > { %v12998_v24 = vld [vmem:[%s13682_s27 + $0x14e4] sm:$0xf0] }
 0x29e   : > { %v11152_v25 = vld [vmem:[%s13682_s27 + $0x16c8] sm:$0xf]  ;;  %v10897_v28 = vor.u32 %v12998_v24, %v10896_v23  ;;  %6972 = vmatpush.bf16.msra.mxu1 %v10641_v47 }
 0x29f   : > { %v13062_v48 = vld [vmem:[%s13682_s27 + $0x16e4] sm:$0xf0] }
 0x2a0   : > { %v10352_v30 = vld [vmem:[%s13682_s27 + $0x1088] sm:$0xf]  ;;  %v11153_v35 = vor.u32 %v13062_v48, %v11152_v25  ;;  %6985 = vmatpush.bf16.msra.mxu2 %v10897_v28 }
 0x2a1   : > { %v12862_v18 = vld [vmem:[%s13682_s27 + $0x10a4] sm:$0xf0] }
 0x2a2   : > { %v10608_v31 = vld [vmem:[%s13682_s27 + $0x1288] sm:$0xf]  ;;  %v10353_v44 = vor.u32 %v12862_v18, %v10352_v30  ;;  %6998 = vmatpush.bf16.msra.mxu3 %v11153_v35 }
 0x2a3   : > { %v12926_v36 = vld [vmem:[%s13682_s27 + $0x12a4] sm:$0xf0] }
 0x2a4   : > { %v10864_v37 = vld [vmem:[%s13682_s27 + $0x1488] sm:$0xf]  ;;  %v10609_v49 = vor.u32 %v12926_v36, %v10608_v31  ;;  %6960 = vmatpush.bf16.msra.mxu0 %v10353_v44 }
 0x2a5   : > { %v12990_v39 = vld [vmem:[%s13682_s27 + $0x14a4] sm:$0xf0] }
 0x2a6   : > { %v11120_v42 = vld [vmem:[%s13682_s27 + $0x1688] sm:$0xf]  ;;  %v10865_v50 = vor.u32 %v12990_v39, %v10864_v37  ;;  %6973 = vmatpush.bf16.msra.mxu1 %v10609_v49 }
 0x2a7   : > { %v13054_v43 = vld [vmem:[%s13682_s27 + $0x16a4] sm:$0xf0] }
 0x2a8   : > { %v10320_v53 = vld [vmem:[%s13682_s27 + $0x1048] sm:$0xf]  ;;  %v11121_v57 = vor.u32 %v13054_v43, %v11120_v42  ;;  %6986 = vmatpush.bf16.msra.mxu2 %v10865_v50 }
 0x2a9   : > { %v12854_v54 = vld [vmem:[%s13682_s27 + $0x1064] sm:$0xf0] }
 0x2aa   : > { %v10576_v55 = vld [vmem:[%s13682_s27 + $0x1248] sm:$0xf]  ;;  %v10321_v63 = vor.u32 %v12854_v54, %v10320_v53  ;;  %6999 = vmatpush.bf16.msra.mxu3 %v11121_v57  ;;  %v13409_v53 = vld [vmem:[#allocation1] sm:$0xff] }
 0x2ab   : > { %v12918_v58 = vld [vmem:[%s13682_s27 + $0x1264] sm:$0xf0] }
 0x2ac   : > { %v10832_v59 = vld [vmem:[%s13682_s27 + $0x1448] sm:$0xf]  ;;  %v10577_v2 = vor.u32 %v12918_v58, %v10576_v55  ;;  %6961 = vmatpush.bf16.msra.mxu0 %v10321_v63 }
 0x2ad   : > { %v12982_v60 = vld [vmem:[%s13682_s27 + $0x1464] sm:$0xf0] }
 0x2ae   : > { %v11088_v61 = vld [vmem:[%s13682_s27 + $0x1648] sm:$0xf]  ;;  %v10833_v3 = vor.u32 %v12982_v60, %v10832_v59  ;;  %6974 = vmatpush.bf16.msra.mxu1 %v10577_v2 }
 0x2af   : > { %v13046_v62 = vld [vmem:[%s13682_s27 + $0x1664] sm:$0xf0] }
 0x2b0   : > { %v10288_v0 = vld [vmem:[%s13682_s27 + $0x1008] sm:$0xf]  ;;  %v11089_v8 = vor.u32 %v13046_v62, %v11088_v61  ;;  %6987 = vmatpush.bf16.msra.mxu2 %v10833_v3  ;;  %v13412_v62 = vld [vmem:[#allocation1 + $0x1b] sm:$0xff] }
 0x2b1   : > { %v12846_v1 = vld [vmem:[%s13682_s27 + $0x1024] sm:$0xf0] }
 0x2b2   : > { %v10544_v4 = vld [vmem:[%s13682_s27 + $0x1208] sm:$0xf]  ;;  %v10289_v16 = vor.u32 %v12846_v1, %v10288_v0  ;;  %7000 = vmatpush.bf16.msra.mxu3 %v11089_v8 }
 0x2b3   : > { %v12910_v5 = vld [vmem:[%s13682_s27 + $0x1224] sm:$0xf0] }
 0x2b4   : > { %v10800_v6 = vld [vmem:[%s13682_s27 + $0x1408] sm:$0xf]  ;;  %v10545_v24 = vor.u32 %v12910_v5, %v10544_v4  ;;  %6962 = vmatpush.bf16.msra.mxu0 %v10289_v16 }
 0x2b5   : > { %v12974_v9 = vld [vmem:[%s13682_s27 + $0x1424] sm:$0xf0] }
 0x2b6   : > { %v11056_v10 = vld [vmem:[%s13682_s27 + $0x1608] sm:$0xf]  ;;  %v10801_v25 = vor.u32 %v12974_v9, %v10800_v6  ;;  %6975 = vmatpush.bf16.msra.mxu1 %v10545_v24  ;;  %v6756_v9 = vpop.f32.mrf.mxu0 }
 0x2b7   : > { %v13038_v11 = vld [vmem:[%s13682_s27 + $0x1624] sm:$0xf0]  ;;  %6963 = vmatmul.bf16.vlgmr.msra.gmra.mxu0 %v13409_v53  ;;  %v6757_v12 = vadd.f32 %v6756_v9, %v14444_v45 }
 0x2b8   : > { %v11536_v13 = vld [vmem:[%s13682_s27 + $0x19c8] sm:$0xf]  ;;  %v11057_v27 = vor.u32 %v13038_v11, %v11056_v10  ;;  %6988 = vmatpush.bf16.msra.mxu2 %v10801_v25 }
 0x2b9   : > { %v13158_v14 = vld [vmem:[%s13682_s27 + $0x19e4] sm:$0xf0] }
 0x2ba   : > { %v11792_v15 = vld [vmem:[%s13682_s27 + $0x1bc8] sm:$0xf]  ;;  %v11537_v47 = vor.u32 %v13158_v14, %v11536_v13  ;;  %7001 = vmatpush.bf16.msra.mxu3 %v11057_v27  ;;  %v6769_v14 = vpop.f32.mrf.mxu1 }
 0x2bb   : > { %v13222_v17 = vld [vmem:[%s13682_s27 + $0x1be4] sm:$0xf0]  ;;  %v6770_v25 = vadd.f32 %v6769_v14, %v6757_v12 }
 0x2bc   : > { %v12048_v19 = vld [vmem:[%s13682_s27 + $0x1dc8] sm:$0xf]  ;;  %v11793_v28 = vor.u32 %v13222_v17, %v11792_v15  ;;  %7007 = vmatpush.bf16.msrb.mxu0 %v11537_v47 }
 0x2bd   : > { %v13286_v23 = vld [vmem:[%s13682_s27 + $0x1de4] sm:$0xf0]  ;;  %7002 = vmatmul.bf16.vlgmr.msra.gmra.mxu3 %v13412_v62 }
 0x2be   : > { %v12304_v48 = vld [vmem:[%s13682_s27 + $0x1fc8] sm:$0xf]  ;;  %v12049_v30 = vor.u32 %v13286_v23, %v12048_v19  ;;  %7020 = vmatpush.bf16.msrb.mxu1 %v11793_v28 }
 0x2bf   : > { %v13350_v51 = vld [vmem:[%s13682_s27 + $0x1fe4] sm:$0xf0] }
 0x2c0   : > { %v11504_v18 = vld [vmem:[%s13682_s27 + $0x1988] sm:$0xf]  ;;  %v12305_v35 = vor.u32 %v13350_v51, %v12304_v48  ;;  %7033 = vmatpush.bf16.msrb.mxu2 %v12049_v30 }
 0x2c1   : > { %v13150_v31 = vld [vmem:[%s13682_s27 + $0x19a4] sm:$0xf0] }
 0x2c2   : > { %v11760_v34 = vld [vmem:[%s13682_s27 + $0x1b88] sm:$0xf]  ;;  %v11505_v42 = vor.u32 %v13150_v31, %v11504_v18  ;;  %7046 = vmatpush.bf16.msrb.mxu3 %v12305_v35  ;;  %v6771_v53 = vpop.f32.mrf.mxu1 }
 0x2c3   : > { %v13214_v36 = vld [vmem:[%s13682_s27 + $0x1ba4] sm:$0xf0]  ;;  %v8402_v53 = vld [vmem:[%s13682_s27 + $0x168] sm:$0xf0] }
 0x2c4   : > { %v12016_v37 = vld [vmem:[%s13682_s27 + $0x1d88] sm:$0xf]  ;;  %v11761_v43 = vor.u32 %v13214_v36, %v11760_v34  ;;  %7008 = vmatpush.bf16.msrb.mxu0 %v11505_v42 }
 0x2c5   : > { %v13278_v39 = vld [vmem:[%s13682_s27 + $0x1da4] sm:$0xf0] }
 0x2c6   : > { %v12272_v40 = vld [vmem:[%s13682_s27 + $0x1f88] sm:$0xf]  ;;  %v12017_v44 = vor.u32 %v13278_v39, %v12016_v37  ;;  %7021 = vmatpush.bf16.msrb.mxu1 %v11761_v43  ;;  %v6782_v37 = vpop.f32.mrf.mxu2  ;;  %v6795_v43 = vpop.f32.mrf.mxu3 }
 0x2c7   : > { %v13342_v41 = vld [vmem:[%s13682_s27 + $0x1fa4] sm:$0xf0]  ;;  %v6783_v42 = vadd.f32 %v6782_v37, %v6770_v25  ;;  %v12514_v25 = vld [vmem:[%s13682_s27 + $0x5cc] sm:$0xf] }
 0x2c8   : > { %v11472_v46 = vld [vmem:[%s13682_s27 + $0x1948] sm:$0xf]  ;;  %v12273_v54 = vor.u32 %v13342_v41, %v12272_v40  ;;  %7034 = vmatpush.bf16.msrb.mxu2 %v12017_v44 }
 0x2c9   : > { %v13142_v49 = vld [vmem:[%s13682_s27 + $0x1964] sm:$0xf0] }
 0x2ca   : > { %v11728_v50 = vld [vmem:[%s13682_s27 + $0x1b48] sm:$0xf]  ;;  %v11473_v63 = vor.u32 %v13142_v49, %v11472_v46  ;;  %7047 = vmatpush.bf16.msrb.mxu3 %v12273_v54  ;;  %v6758_v49 = vpop.f32.mrf.mxu0  ;;  %v14511_v54 = vadd.f32 %v6795_v43, %v6783_v42  ;;  %v12570_v42 = vld [vmem:[%s13682_s27 + $0x78c] sm:$0xf] }
 0x2cb   : > { %v13206_v55 = vld [vmem:[%s13682_s27 + $0x1b64] sm:$0xf0]  ;;  %v9202_v43 = vld [vmem:[%s13682_s27 + $0x7a8] sm:$0xf0] }
 0x2cc   : > { %v11984_v56 = vld [vmem:[%s13682_s27 + $0x1d48] sm:$0xf]  ;;  %v11729_v0 = vor.u32 %v13206_v55, %v11728_v50  ;;  %7009 = vmatpush.bf16.msrb.mxu0 %v11473_v63 }
 0x2cd   : > { %v13270_v57 = vld [vmem:[%s13682_s27 + $0x1d64] sm:$0xf0] }
 0x2ce   : > { %v13410_v58 = vld [vmem:[#allocation1 + $0x12] sm:$0xff]  ;;  %v13411_v59 = vld [vmem:[#allocation1 + $0x9] sm:$0xff]  ;;  %v11985_v1 = vor.u32 %v13270_v57, %v11984_v56  ;;  %7022 = vmatpush.bf16.msrb.mxu1 %v11729_v0  ;;  %v6784_v14 = vpop.f32.mrf.mxu2 }
 0x2cf   : > { %6989 = vmatmul.bf16.vlgmr.msra.gmra.mxu2 %v13410_v58  ;;  %6976 = vmatmul.bf16.vlgmr.msra.gmra.mxu1 %v13411_v59  ;;  %v12240_v60 = vld [vmem:[%s13682_s27 + $0x1f48] sm:$0xf]  ;;  %v9138_v14 = vld [vmem:[%s13682_s27 + $0x728] sm:$0xf0] }
 0x2d0   : > { %v13334_v61 = vld [vmem:[%s13682_s27 + $0x1f64] sm:$0xf0]  ;;  %7035 = vmatpush.bf16.msrb.mxu2 %v11985_v1 }
 0x2d1   : > { %v11440_v2 = vld [vmem:[%s13682_s27 + $0x1908] sm:$0xf]  ;;  %v12241_v5 = vor.u32 %v13334_v61, %v12240_v60 }
 0x2d2   : > { %v13134_v3 = vld [vmem:[%s13682_s27 + $0x1924] sm:$0xf0] }
 0x2d3   : > { %v11696_v4 = vld [vmem:[%s13682_s27 + $0x1b08] sm:$0xf]  ;;  %v11441_v13 = vor.u32 %v13134_v3, %v11440_v2  ;;  %7048 = vmatpush.bf16.msrb.mxu3 %v12241_v5 }
 0x2d4   : > { %v13198_v6 = vld [vmem:[%s13682_s27 + $0x1b24] sm:$0xf0] }
 0x2d5   : > { %v11952_v7 = vld [vmem:[%s13682_s27 + $0x1d08] sm:$0xf]  ;;  %v11697_v15 = vor.u32 %v13198_v6, %v11696_v4  ;;  %7010 = vmatpush.bf16.msrb.mxu0 %v11441_v13 }
 0x2d6   : > { %v13262_v8 = vld [vmem:[%s13682_s27 + $0x1d24] sm:$0xf0] }
 0x2d7   : > { %v12208_v10 = vld [vmem:[%s13682_s27 + $0x1f08] sm:$0xf]  ;;  %v11953_v16 = vor.u32 %v13262_v8, %v11952_v7  ;;  %7023 = vmatpush.bf16.msrb.mxu1 %v11697_v15  ;;  %v12386_v15 = vld [vmem:[%s13682_s27 + $0x1cc] sm:$0xf] }
 0x2d8   : > { %v13326_v11 = vld [vmem:[%s13682_s27 + $0x1f24] sm:$0xf0] }
 0x2d9   : > { %v11408_v17 = vld [vmem:[%s13682_s27 + $0x18c8] sm:$0xf]  ;;  %v12209_v24 = vor.u32 %v13326_v11, %v12208_v10  ;;  %7036 = vmatpush.bf16.msrb.mxu2 %v11953_v16  ;;  %v8466_v16 = vld [vmem:[%s13682_s27 + $0x1e8] sm:$0xf0] }
 0x2da   : > { %v13126_v19 = vld [vmem:[%s13682_s27 + $0x18e4] sm:$0xf0] }
 0x2db   : > { %v11664_v23 = vld [vmem:[%s13682_s27 + $0x1ac8] sm:$0xf]  ;;  %v11409_v28 = vor.u32 %v13126_v19, %v11408_v17  ;;  %7049 = vmatpush.bf16.msrb.mxu3 %v12209_v24  ;;  %v12450_v17 = vld [vmem:[%s13682_s27 + $0x3cc] sm:$0xf]  ;;  %v6797_v19 = vpop.f32.mrf.mxu3 }
 0x2dc   : > { %v13190_v48 = vld [vmem:[%s13682_s27 + $0x1ae4] sm:$0xf0]  ;;  %v8722_v24 = vld [vmem:[%s13682_s27 + $0x3e8] sm:$0xf0] }
 0x2dd   : > { %v11920_v51 = vld [vmem:[%s13682_s27 + $0x1cc8] sm:$0xf]  ;;  %v11665_v30 = vor.u32 %v13190_v48, %v11664_v23  ;;  %7011 = vmatpush.bf16.msrb.mxu0 %v11409_v28  ;;  %v8978_v48 = vld [vmem:[%s13682_s27 + $0x5e8] sm:$0xf0] }
 0x2de   : > { %v13254_v45 = vld [vmem:[%s13682_s27 + $0x1ce4] sm:$0xf0] }
 0x2df   : > { %v12176_v27 = vld [vmem:[%s13682_s27 + $0x1ec8] sm:$0xf]  ;;  %v11921_v18 = vor.u32 %v13254_v45, %v11920_v51  ;;  %7024 = vmatpush.bf16.msrb.mxu1 %v11665_v30  ;;  %v8469_v30 = vor.u32 %v12386_v15, %v8466_v16 }
 0x2e0   : > { %v13318_v47 = vld [vmem:[%s13682_s27 + $0x1ee4] sm:$0xf0] }
 0x2e1   : > { %v11376_v31 = vld [vmem:[%s13682_s27 + $0x1888] sm:$0xf]  ;;  %v12177_v36 = vor.u32 %v13318_v47, %v12176_v27  ;;  %7037 = vmatpush.bf16.msrb.mxu2 %v11921_v18  ;;  %v12578_v27 = vld [vmem:[%s13682_s27 + $0x7cc] sm:$0xf]  ;;  %v8725_v18 = vor.u32 %v12450_v17, %v8722_v24  ;;  %v6821_v17 = vpop.f32.mrf.mxu1 }
 0x2e2   : > { %v13118_v34 = vld [vmem:[%s13682_s27 + $0x18a4] sm:$0xf0]  ;;  %v9234_v47 = vld [vmem:[%s13682_s27 + $0x7e8] sm:$0xf0] }
 0x2e3   : > { %v11632_v35 = vld [vmem:[%s13682_s27 + $0x1a88] sm:$0xf]  ;;  %v11377_v50 = vor.u32 %v13118_v34, %v11376_v31  ;;  %7050 = vmatpush.bf16.msrb.mxu3 %v12177_v36  ;;  %v8981_v31 = vor.u32 %v12514_v25, %v8978_v48  ;;  %v12378_v34 = vld [vmem:[%s13682_s27 + $0x18c] sm:$0xf]  ;;  %v9237_v37 = vor.u32 %v12578_v27, %v9234_v47 }
 0x2e4   : > { %v13182_v39 = vld [vmem:[%s13682_s27 + $0x1aa4] sm:$0xf0]  ;;  %v12442_v36 = vld [vmem:[%s13682_s27 + $0x38c] sm:$0xf] }
 0x2e5   : > { %v11888_v40 = vld [vmem:[%s13682_s27 + $0x1c88] sm:$0xf]  ;;  %v11633_v55 = vor.u32 %v13182_v39, %v11632_v35  ;;  %7012 = vmatpush.bf16.msrb.mxu0 %v11377_v50  ;;  %v8434_v35 = vld [vmem:[%s13682_s27 + $0x1a8] sm:$0xf0] }
 0x2e6   : > { %v13246_v41 = vld [vmem:[%s13682_s27 + $0x1ca4] sm:$0xf0]  ;;  %v8690_v39 = vld [vmem:[%s13682_s27 + $0x3a8] sm:$0xf0] }
 0x2e7   : > { %v12144_v44 = vld [vmem:[%s13682_s27 + $0x1e88] sm:$0xf]  ;;  %v11889_v56 = vor.u32 %v13246_v41, %v11888_v40  ;;  %7025 = vmatpush.bf16.msrb.mxu1 %v11633_v55  ;;  %v12506_v40 = vld [vmem:[%s13682_s27 + $0x58c] sm:$0xf] }
 0x2e8   : > { %v13310_v46 = vld [vmem:[%s13682_s27 + $0x1ea4] sm:$0xf0]  ;;  %v8946_v41 = vld [vmem:[%s13682_s27 + $0x5a8] sm:$0xf0] }
 0x2e9   : > { %v11344_v57 = vld [vmem:[%s13682_s27 + $0x1848] sm:$0xf]  ;;  %v12145_v60 = vor.u32 %v13310_v46, %v12144_v44  ;;  %7038 = vmatpush.bf16.msrb.mxu2 %v11889_v56  ;;  %v8437_v44 = vor.u32 %v12378_v34, %v8434_v35  ;;  %v8693_v46 = vor.u32 %v12442_v36, %v8690_v39  ;;  %v8949_v49 = vor.u32 %v12506_v40, %v8946_v41  ;;  %v12370_v50 = vld [vmem:[%s13682_s27 + $0x14c] sm:$0xf]  ;;  %v13413_v56 = vld [vmem:[#allocation1 + $0x24] sm:$0xff]  ;;  %v6834_v40 = vpop.f32.mrf.mxu2 }
 0x2ea   : > { %v13110_v58 = vld [vmem:[%s13682_s27 + $0x1864] sm:$0xf0]  ;;  %v12434_v55 = vld [vmem:[%s13682_s27 + $0x34c] sm:$0xf] }
 0x2eb   : > { %v11600_v59 = vld [vmem:[%s13682_s27 + $0x1a48] sm:$0xf]  ;;  %v11345_v2 = vor.u32 %v13110_v58, %v11344_v57  ;;  %7051 = vmatpush.bf16.msrb.mxu3 %v12145_v60  ;;  %v9205_v57 = vor.u32 %v12570_v42, %v9202_v43  ;;  %v8658_v58 = vld [vmem:[%s13682_s27 + $0x368] sm:$0xf0] }
 0x2ec   : > { %v13174_v61 = vld [vmem:[%s13682_s27 + $0x1a64] sm:$0xf0]  ;;  %v8914_v60 = vld [vmem:[%s13682_s27 + $0x568] sm:$0xf0] }
 0x2ed   : > { %v11856_v62 = vld [vmem:[%s13682_s27 + $0x1c48] sm:$0xf]  ;;  %v11601_v5 = vor.u32 %v13174_v61, %v11600_v59  ;;  %7013 = vmatpush.bf16.msrb.mxu0 %v11345_v2  ;;  %v12498_v59 = vld [vmem:[%s13682_s27 + $0x54c] sm:$0xf]  ;;  %v8405_v2 = vor.u32 %v12370_v50, %v8402_v53 }
 0x2ee   : > { %v13238_v63 = vld [vmem:[%s13682_s27 + $0x1c64] sm:$0xf0]  ;;  %v13414_v61 = vld [vmem:[#allocation1 + $0x36] sm:$0xff] }
 0x2ef   : > { %v12112_v0 = vld [vmem:[%s13682_s27 + $0x1e48] sm:$0xf]  ;;  %v11857_v6 = vor.u32 %v13238_v63, %v11856_v62  ;;  %7026 = vmatpush.bf16.msrb.mxu1 %v11601_v5  ;;  %v12562_v63 = vld [vmem:[%s13682_s27 + $0x74c] sm:$0xf] }
 0x2f0   : > { %v13302_v1 = vld [vmem:[%s13682_s27 + $0x1e64] sm:$0xf0]  ;;  %v12362_v5 = vld [vmem:[%s13682_s27 + $0x10c] sm:$0xf] }
 0x2f1   : > { %v11312_v3 = vld [vmem:[%s13682_s27 + $0x1808] sm:$0xf]  ;;  %v12113_v10 = vor.u32 %v13302_v1, %v12112_v0  ;;  %7039 = vmatpush.bf16.msrb.mxu2 %v11857_v6  ;;  %v9170_v0 = vld [vmem:[%s13682_s27 + $0x768] sm:$0xf0]  ;;  %v13416_v1 = vld [vmem:[#allocation1 + $0x3f] sm:$0xff] }
 0x2f2   : > { %v13102_v4 = vld [vmem:[%s13682_s27 + $0x1824] sm:$0xf0]  ;;  %v8370_v6 = vld [vmem:[%s13682_s27 + $0x128] sm:$0xf0] }
 0x2f3   : > { %v11568_v7 = vld [vmem:[%s13682_s27 + $0x1a08] sm:$0xf]  ;;  %v11313_v23 = vor.u32 %v13102_v4, %v11312_v3  ;;  %7052 = vmatpush.bf16.msrb.mxu3 %v12113_v10  ;;  %v8661_v3 = vor.u32 %v12434_v55, %v8658_v58  ;;  %v8917_v4 = vor.u32 %v12498_v59, %v8914_v60  ;;  %v12490_v10 = vld [vmem:[%s13682_s27 + $0x50c] sm:$0xf]  ;;  %v8373_v16 = vor.u32 %v12362_v5, %v8370_v6 }
 0x2f4   : > { %v13166_v8 = vld [vmem:[%s13682_s27 + $0x1a24] sm:$0xf0]  ;;  %v12354_v24 = vld [vmem:[%s13682_s27 + $0xcc] sm:$0xf] }
 0x2f5   : > { %v11824_v9 = vld [vmem:[%s13682_s27 + $0x1c08] sm:$0xf]  ;;  %v11569_v51 = vor.u32 %v13166_v8, %v11568_v7  ;;  %7014 = vmatpush.bf16.msrb.mxu0 %v11313_v23  ;;  %v12426_v7 = vld [vmem:[%s13682_s27 + $0x30c] sm:$0xf]  ;;  %v9173_v8 = vor.u32 %v12562_v63, %v9170_v0 }
 0x2f6   : > { %v13230_v11 = vld [vmem:[%s13682_s27 + $0x1c24] sm:$0xf0]  ;;  %v8338_v25 = vld [vmem:[%s13682_s27 + $0xe8] sm:$0xf0] }
 0x2f7   : > { %v12080_v12 = vld [vmem:[%s13682_s27 + $0x1e08] sm:$0xf]  ;;  %v11825_v45 = vor.u32 %v13230_v11, %v11824_v9  ;;  %7027 = vmatpush.bf16.msrb.mxu1 %v11569_v51  ;;  %v8626_v9 = vld [vmem:[%s13682_s27 + $0x328] sm:$0xf0] }
 0x2f8   : > { %v13294_v13 = vld [vmem:[%s13682_s27 + $0x1e24] sm:$0xf0]  ;;  %7015 = vmatmul.bf16.vlgmr.msrb.gmra.mxu0 %v13413_v56  ;;  %v8882_v11 = vld [vmem:[%s13682_s27 + $0x528] sm:$0xf0]  ;;  %v8629_v19 = vor.u32 %v12426_v7, %v8626_v9  ;;  %v6823_v56 = vpop.f32.mrf.mxu1 }
 0x2f9   : > { %v12081_v28 = vor.u32 %v13294_v13, %v12080_v12  ;;  %7040 = vmatpush.bf16.msrb.mxu2 %v11825_v45  ;;  %7059 = vmatpush.bf16.msra.mxu0 %v8469_v30  ;;  %v13415_v62 = vld [vmem:[#allocation1 + $0x2d] sm:$0xff]  ;;  %v6808_v12 = vpop.f32.mrf.mxu0  ;;  %v8885_v23 = vor.u32 %v12490_v10, %v8882_v11 }
 0x2fa   : > { %7028 = vmatmul.bf16.vlgmr.msrb.gmra.mxu1 %v13415_v62  ;;  %v12554_v13 = vld [vmem:[%s13682_s27 + $0x70c] sm:$0xf]  ;;  %v6809_v15 = vadd.f32 %v6808_v12, %v14511_v54 }
 0x2fb   : > { %7053 = vmatpush.bf16.msrb.mxu3 %v12081_v28  ;;  %7072 = vmatpush.bf16.msra.mxu1 %v8725_v18  ;;  %v12418_v48 = vld [vmem:[%s13682_s27 + $0x2cc] sm:$0xf]  ;;  %v9141_v51 = vor.u32 %v12554_v13, %v9138_v14  ;;  %v8341_v18 = vor.u32 %v12354_v24, %v8338_v25 }
 0x2fc   : > { %7041 = vmatmul.bf16.vlgmr.msrb.gmra.mxu2 %v13414_v61  ;;  %v6822_v45 = vadd.f32 %v6821_v17, %v6809_v15  ;;  %v8594_v27 = vld [vmem:[%s13682_s27 + $0x2e8] sm:$0xf0] }
 0x2fd   : > { %7085 = vmatpush.bf16.msra.mxu2 %v8981_v31  ;;  %7060 = vmatpush.bf16.msra.mxu0 %v8437_v44  ;;  %v12482_v47 = vld [vmem:[%s13682_s27 + $0x4cc] sm:$0xf]  ;;  %v8597_v31 = vor.u32 %v12418_v48, %v8594_v27 }
 0x2fe   : > { %7054 = vmatmul.bf16.vlgmr.msrb.gmra.mxu3 %v13416_v1  ;;  %v8850_v54 = vld [vmem:[%s13682_s27 + $0x4e8] sm:$0xf0]  ;;  %v6835_v44 = vadd.f32 %v6834_v40, %v6822_v45 }
 0x2ff   : > { %7098 = vmatpush.bf16.msra.mxu3 %v9237_v37  ;;  %7073 = vmatpush.bf16.msra.mxu1 %v8693_v46  ;;  %v12546_v28 = vld [vmem:[%s13682_s27 + $0x6cc] sm:$0xf]  ;;  %v8853_v34 = vor.u32 %v12482_v47, %v8850_v54  ;;  %v6847_v46 = vpop.f32.mrf.mxu3 }
 0x300   : > { %v9106_v30 = vld [vmem:[%s13682_s27 + $0x6e8] sm:$0xf0] }
 0x301   : > { %7086 = vmatpush.bf16.msra.mxu2 %v8949_v49  ;;  %7061 = vmatpush.bf16.msra.mxu0 %v8405_v2  ;;  %v12346_v35 = vld [vmem:[%s13682_s27 + $0x8c] sm:$0xf]  ;;  %v9109_v39 = vor.u32 %v12546_v28, %v9106_v30  ;;  %v6810_v53 = vpop.f32.mrf.mxu0 }
 0x302   : > { %v8306_v36 = vld [vmem:[%s13682_s27 + $0xa8] sm:$0xf0] }
 0x303   : > { %7099 = vmatpush.bf16.msra.mxu3 %v9205_v57  ;;  %7074 = vmatpush.bf16.msra.mxu1 %v8661_v3  ;;  %v12410_v37 = vld [vmem:[%s13682_s27 + $0x28c] sm:$0xf]  ;;  %v8309_v55 = vor.u32 %v12346_v35, %v8306_v36  ;;  %v6848_v57 = vadd.f32 %v6847_v46, %v6835_v44 }
 0x304   : > { %v8562_v41 = vld [vmem:[%s13682_s27 + $0x2a8] sm:$0xf0] }
 0x305   : > { %7087 = vmatpush.bf16.msra.mxu2 %v8917_v4  ;;  %7062 = vmatpush.bf16.msra.mxu0 %v8373_v16  ;;  %v12474_v42 = vld [vmem:[%s13682_s27 + $0x48c] sm:$0xf]  ;;  %v8565_v58 = vor.u32 %v12410_v37, %v8562_v41  ;;  %v8107_v3 = vrot.slane %v6848_v57, 6 }
 0x306   : > { %v8818_v43 = vld [vmem:[%s13682_s27 + $0x4a8] sm:$0xf0] }
 0x307   : > { %7100 = vmatpush.bf16.msra.mxu3 %v9173_v8  ;;  %7075 = vmatpush.bf16.msra.mxu1 %v8629_v19  ;;  %v12538_v49 = vld [vmem:[%s13682_s27 + $0x68c] sm:$0xf]  ;;  %v8821_v59 = vor.u32 %v12474_v42, %v8818_v43  ;;  %v14590_v9 = vsel %vm8113_vm0, %v14302_v52, %v8107_v3  ;;  %v6836_v52 = vpop.f32.mrf.mxu2  ;;  %v6849_v48 = vpop.f32.mrf.mxu3 }
 0x308   : > { %v9074_v50 = vld [vmem:[%s13682_s27 + $0x6a8] sm:$0xf0] }
 0x309   : > { %7088 = vmatpush.bf16.msra.mxu2 %v8885_v23  ;;  %7063 = vmatpush.bf16.msra.mxu0 %v8341_v18  ;;  %v12338_v60 = vld [vmem:[%s13682_s27 + $0x4c] sm:$0xf]  ;;  %v9077_v63 = vor.u32 %v12538_v49, %v9074_v50 }
 0x30a   : > { %v8274_v61 = vld [vmem:[%s13682_s27 + $0x68] sm:$0xf0] }
 0x30b   : > { %7101 = vmatpush.bf16.msra.mxu3 %v9141_v51  ;;  %7076 = vmatpush.bf16.msra.mxu1 %v8597_v31  ;;  %v12402_v62 = vld [vmem:[%s13682_s27 + $0x24c] sm:$0xf]  ;;  %v8277_v6 = vor.u32 %v12338_v60, %v8274_v61 }
 0x30c   : > { %v8530_v0 = vld [vmem:[%s13682_s27 + $0x268] sm:$0xf0] }
 0x30d   : > { %7089 = vmatpush.bf16.msra.mxu2 %v8853_v34  ;;  %v12466_v1 = vld [vmem:[%s13682_s27 + $0x44c] sm:$0xf]  ;;  %7064 = vmatpush.bf16.msra.mxu0 %v8309_v55  ;;  %v8533_v10 = vor.u32 %v12402_v62, %v8530_v0 }
 0x30e   : > { %v8786_v2 = vld [vmem:[%s13682_s27 + $0x468] sm:$0xf0] }
 0x30f   : > { %7102 = vmatpush.bf16.msra.mxu3 %v9109_v39  ;;  %v12530_v4 = vld [vmem:[%s13682_s27 + $0x64c] sm:$0xf]  ;;  %7077 = vmatpush.bf16.msra.mxu1 %v8565_v58  ;;  %v8789_v11 = vor.u32 %v12466_v1, %v8786_v2 }
 0x310   : > { %v9042_v5 = vld [vmem:[%s13682_s27 + $0x668] sm:$0xf0] }
 0x311   : > { %v12330_v7 = vld [vmem:[%s13682_s27 + $0xc] sm:$0xf]  ;;  %7090 = vmatpush.bf16.msra.mxu2 %v8821_v59  ;;  %v9045_v15 = vor.u32 %v12530_v4, %v9042_v5  ;;  %7065 = vmatpush.bf16.msra.mxu0 %v8277_v6 }
 0x312   : > { %v8242_v8 = vld [vmem:[%s13682_s27 + $0x28] sm:$0xf0] }
 0x313   : > { %v12394_v12 = vld [vmem:[%s13682_s27 + $0x20c] sm:$0xf]  ;;  %7103 = vmatpush.bf16.msra.mxu3 %v9077_v63  ;;  %v8245_v51 = vor.u32 %v12330_v7, %v8242_v8  ;;  %7078 = vmatpush.bf16.msra.mxu1 %v8533_v10 }
 0x314   : > { %v8498_v13 = vld [vmem:[%s13682_s27 + $0x228] sm:$0xf0] }
 0x315   : > { %v12458_v14 = vld [vmem:[%s13682_s27 + $0x40c] sm:$0xf]  ;;  %7091 = vmatpush.bf16.msra.mxu2 %v8789_v11  ;;  %v8501_v54 = vor.u32 %v12394_v12, %v8498_v13  ;;  %7066 = vmatpush.bf16.msra.mxu0 %v8245_v51  ;;  %v6873_v51 = vpop.f32.mrf.mxu1 }
 0x316   : > { %v8754_v16 = vld [vmem:[%s13682_s27 + $0x428] sm:$0xf0] }
 0x317   : > { %v12522_v17 = vld [vmem:[%s13682_s27 + $0x60c] sm:$0xf]  ;;  %v8757_v28 = vor.u32 %v12458_v14, %v8754_v16  ;;  %7104 = vmatpush.bf16.msra.mxu3 %v9045_v15  ;;  %7079 = vmatpush.bf16.msra.mxu1 %v8501_v54 }
 0x318   : > { %v9010_v19 = vld [vmem:[%s13682_s27 + $0x628] sm:$0xf0]  ;;  %7067 = vmatmul.bf16.vlgmr.msra.gmra.mxu0 %v13799_v21 }
 0x319   : > { %v12642_v23 = vld [vmem:[%s13682_s27 + $0x9cc] sm:$0xf]  ;;  %v9013_v31 = vor.u32 %v12522_v17, %v9010_v19  ;;  %7092 = vmatpush.bf16.msra.mxu2 %v8757_v28  ;;  %v6860_v17 = vpop.f32.mrf.mxu0 }
 0x31a   : > { %v9490_v24 = vld [vmem:[%s13682_s27 + $0x9e8] sm:$0xf0]  ;;  %7080 = vmatmul.bf16.vlgmr.msra.gmra.mxu1 %v13806_v26 }
 0x31b   : > { %v12706_v25 = vld [vmem:[%s13682_s27 + $0xbcc] sm:$0xf]  ;;  %v9493_v34 = vor.u32 %v12642_v23, %v9490_v24  ;;  %7105 = vmatpush.bf16.msra.mxu3 %v9013_v31 }
 0x31c   : > { %v9746_v45 = vld [vmem:[%s13682_s27 + $0xbe8] sm:$0xf0]  ;;  %7093 = vmatmul.bf16.vlgmr.msra.gmra.mxu2 %v13797_v20 }
 0x31d   : > { %v12770_v27 = vld [vmem:[%s13682_s27 + $0xdcc] sm:$0xf]  ;;  %v9749_v35 = vor.u32 %v12706_v25, %v9746_v45  ;;  %7111 = vmatpush.bf16.msrb.mxu0 %v9493_v34 }
 0x31e   : > { %v10002_v47 = vld [vmem:[%s13682_s27 + $0xde8] sm:$0xf0]  ;;  %7106 = vmatmul.bf16.vlgmr.msra.gmra.mxu3 %v13801_v22 }
 0x31f   : > { %v12834_v30 = vld [vmem:[%s13682_s27 + $0xfcc] sm:$0xf]  ;;  %v10005_v36 = vor.u32 %v12770_v27, %v10002_v47  ;;  %7124 = vmatpush.bf16.msrb.mxu1 %v9749_v35 }
 0x320   : > { %v10258_v18 = vld [vmem:[%s13682_s27 + $0xfe8] sm:$0xf0] }
 0x321   : > { %v12634_v37 = vld [vmem:[%s13682_s27 + $0x98c] sm:$0xf]  ;;  %v10261_v41 = vor.u32 %v12834_v30, %v10258_v18  ;;  %7137 = vmatpush.bf16.msrb.mxu2 %v10005_v36 }
 0x322   : > { %v9458_v39 = vld [vmem:[%s13682_s27 + $0x9a8] sm:$0xf0] }
 0x323   : > { %v12698_v40 = vld [vmem:[%s13682_s27 + $0xb8c] sm:$0xf]  ;;  %v9461_v50 = vor.u32 %v12634_v37, %v9458_v39  ;;  %7150 = vmatpush.bf16.msrb.mxu3 %v10261_v41 }
 0x324   : > { %v9714_v42 = vld [vmem:[%s13682_s27 + $0xba8] sm:$0xf0] }
 0x325   : > { %v12762_v43 = vld [vmem:[%s13682_s27 + $0xd8c] sm:$0xf]  ;;  %v9717_v53 = vor.u32 %v12698_v40, %v9714_v42  ;;  %7112 = vmatpush.bf16.msrb.mxu0 %v9461_v50  ;;  %v6886_v40 = vpop.f32.mrf.mxu2 }
 0x326   : > { %v9970_v44 = vld [vmem:[%s13682_s27 + $0xda8] sm:$0xf0] }
 0x327   : > { %v12826_v46 = vld [vmem:[%s13682_s27 + $0xf8c] sm:$0xf]  ;;  %v9973_v55 = vor.u32 %v12762_v43, %v9970_v44  ;;  %7125 = vmatpush.bf16.msrb.mxu1 %v9717_v53 }
 0x328   : > { %v10226_v49 = vld [vmem:[%s13682_s27 + $0xfa8] sm:$0xf0] }
 0x329   : > { %v12626_v56 = vld [vmem:[%s13682_s27 + $0x94c] sm:$0xf]  ;;  %v10229_v59 = vor.u32 %v12826_v46, %v10226_v49  ;;  %7138 = vmatpush.bf16.msrb.mxu2 %v9973_v55  ;;  %v6899_v49 = vpop.f32.mrf.mxu3 }
 0x32a   : > { %v9426_v57 = vld [vmem:[%s13682_s27 + $0x968] sm:$0xf0] }
 0x32b   : > { %v12690_v58 = vld [vmem:[%s13682_s27 + $0xb4c] sm:$0xf]  ;;  %v9429_v1 = vor.u32 %v12626_v56, %v9426_v57  ;;  %7151 = vmatpush.bf16.msrb.mxu3 %v10229_v59  ;;  %v6862_v57 = vpop.f32.mrf.mxu0 }
 0x32c   : > { %v9682_v60 = vld [vmem:[%s13682_s27 + $0xb68] sm:$0xf0] }
 0x32d   : > { %v12754_v61 = vld [vmem:[%s13682_s27 + $0xd4c] sm:$0xf]  ;;  %v9685_v3 = vor.u32 %v12690_v58, %v9682_v60  ;;  %7113 = vmatpush.bf16.msrb.mxu0 %v9429_v1 }
 0x32e   : > { %v9938_v62 = vld [vmem:[%s13682_s27 + $0xd68] sm:$0xf0] }
 0x32f   : > { %v12818_v63 = vld [vmem:[%s13682_s27 + $0xf4c] sm:$0xf]  ;;  %v9941_v4 = vor.u32 %v12754_v61, %v9938_v62  ;;  %7126 = vmatpush.bf16.msrb.mxu1 %v9685_v3 }
 0x330   : > { %v10194_v0 = vld [vmem:[%s13682_s27 + $0xf68] sm:$0xf0] }
 0x331   : > { %v12618_v2 = vld [vmem:[%s13682_s27 + $0x90c] sm:$0xf]  ;;  %v10197_v10 = vor.u32 %v12818_v63, %v10194_v0  ;;  %7139 = vmatpush.bf16.msrb.mxu2 %v9941_v4  ;;  %v6875_v63 = vpop.f32.mrf.mxu1 }
 0x332   : > { %v9394_v5 = vld [vmem:[%s13682_s27 + $0x928] sm:$0xf0] }
 0x333   : > { %v12682_v6 = vld [vmem:[%s13682_s27 + $0xb0c] sm:$0xf]  ;;  %v9397_v16 = vor.u32 %v12618_v2, %v9394_v5  ;;  %7152 = vmatpush.bf16.msrb.mxu3 %v10197_v10 }
 0x334   : > { %v13417_v7 = vld [vmem:[%s13688_s5] sm:$0xff] }
 0x335   : > { %v1265_v8 = vperm.slane %v13417_v7, 2  ;;  %v9650_v11 = vld [vmem:[%s13682_s27 + $0xb28] sm:$0xf0]  ;;  %7114 = vmatpush.bf16.msrb.mxu0 %v9397_v16 }
 0x336   : > { %v12746_v12 = vld [vmem:[%s13682_s27 + $0xd0c] sm:$0xf]  ;;  %v9653_v19 = vor.u32 %v12682_v6, %v9650_v11 }
 0x337   : > { %v9906_v13 = vld [vmem:[%s13682_s27 + $0xd28] sm:$0xf0]  ;;  %v6861_v48 = vadd.f32 %v6860_v17, %v1265_v8 }
 0x338   : > { %v12810_v14 = vld [vmem:[%s13682_s27 + $0xf0c] sm:$0xf]  ;;  %v9909_v52 = vor.u32 %v12746_v12, %v9906_v13  ;;  %7127 = vmatpush.bf16.msrb.mxu1 %v9653_v19 }
 0x339   : > { %v10162_v15 = vld [vmem:[%s13682_s27 + $0xf28] sm:$0xf0]  ;;  %v6874_v18 = vadd.f32 %v6873_v51, %v6861_v48 }
 0x33a   : > { %v12610_v23 = vld [vmem:[%s13682_s27 + $0x8cc] sm:$0xf]  ;;  %v10165_v45 = vor.u32 %v12810_v14, %v10162_v15  ;;  %7140 = vmatpush.bf16.msrb.mxu2 %v9909_v52  ;;  %v6888_v15 = vpop.f32.mrf.mxu2 }
 0x33b   : > { %v9362_v24 = vld [vmem:[%s13682_s27 + $0x8e8] sm:$0xf0]  ;;  %v6887_v46 = vadd.f32 %v6886_v40, %v6874_v18 }
 0x33c   : > { %v12674_v25 = vld [vmem:[%s13682_s27 + $0xacc] sm:$0xf]  ;;  %v9365_v31 = vor.u32 %v12610_v23, %v9362_v24  ;;  %7153 = vmatpush.bf16.msrb.mxu3 %v10165_v45  ;;  %v6901_v23 = vpop.f32.mrf.mxu3 }
 0x33d   : > { %v9618_v27 = vld [vmem:[%s13682_s27 + $0xae8] sm:$0xf0]  ;;  %v14651_v56 = vadd.f32 %v6899_v49, %v6887_v46 }
 0x33e   : > { %v12738_v47 = vld [vmem:[%s13682_s27 + $0xccc] sm:$0xf]  ;;  %v9621_v34 = vor.u32 %v12674_v25, %v9618_v27  ;;  %7115 = vmatpush.bf16.msrb.mxu0 %v9365_v31 }
 0x33f   : > { %v9874_v54 = vld [vmem:[%s13682_s27 + $0xce8] sm:$0xf0] }
 0x340   : > { %v12802_v28 = vld [vmem:[%s13682_s27 + $0xecc] sm:$0xf]  ;;  %v9877_v35 = vor.u32 %v12738_v47, %v9874_v54  ;;  %7128 = vmatpush.bf16.msrb.mxu1 %v9621_v34 }
 0x341   : > { %v10130_v30 = vld [vmem:[%s13682_s27 + $0xee8] sm:$0xf0] }
 0x342   : > { %v12602_v36 = vld [vmem:[%s13682_s27 + $0x88c] sm:$0xf]  ;;  %v10133_v41 = vor.u32 %v12802_v28, %v10130_v30  ;;  %7141 = vmatpush.bf16.msrb.mxu2 %v9877_v35 }
 0x343   : > { %v9330_v37 = vld [vmem:[%s13682_s27 + $0x8a8] sm:$0xf0] }
 0x344   : > { %v12666_v39 = vld [vmem:[%s13682_s27 + $0xa8c] sm:$0xf]  ;;  %v9333_v55 = vor.u32 %v12602_v36, %v9330_v37  ;;  %7154 = vmatpush.bf16.msrb.mxu3 %v10133_v41 }
 0x345   : > { %v9586_v42 = vld [vmem:[%s13682_s27 + $0xaa8] sm:$0xf0] }
 0x346   : > { %v12730_v43 = vld [vmem:[%s13682_s27 + $0xc8c] sm:$0xf]  ;;  %v9589_v58 = vor.u32 %v12666_v39, %v9586_v42  ;;  %7116 = vmatpush.bf16.msrb.mxu0 %v9333_v55 }
 0x347   : > { %v9842_v44 = vld [vmem:[%s13682_s27 + $0xca8] sm:$0xf0] }
 0x348   : > { %v12794_v50 = vld [vmem:[%s13682_s27 + $0xe8c] sm:$0xf]  ;;  %v9845_v59 = vor.u32 %v12730_v43, %v9842_v44  ;;  %7129 = vmatpush.bf16.msrb.mxu1 %v9589_v58 }
 0x349   : > { %v10098_v53 = vld [vmem:[%s13682_s27 + $0xea8] sm:$0xf0] }
 0x34a   : > { %v12594_v60 = vld [vmem:[%s13682_s27 + $0x84c] sm:$0xf]  ;;  %v10101_v0 = vor.u32 %v12794_v50, %v10098_v53  ;;  %7142 = vmatpush.bf16.msrb.mxu2 %v9845_v59 }
 0x34b   : > { %v9298_v61 = vld [vmem:[%s13682_s27 + $0x868] sm:$0xf0] }
 0x34c   : > { %v12658_v62 = vld [vmem:[%s13682_s27 + $0xa4c] sm:$0xf]  ;;  %v9301_v6 = vor.u32 %v12594_v60, %v9298_v61  ;;  %7155 = vmatpush.bf16.msrb.mxu3 %v10101_v0 }
 0x34d   : > { %v9554_v1 = vld [vmem:[%s13682_s27 + $0xa68] sm:$0xf0] }
 0x34e   : > { %v12722_v2 = vld [vmem:[%s13682_s27 + $0xc4c] sm:$0xf]  ;;  %v9557_v10 = vor.u32 %v12658_v62, %v9554_v1  ;;  %7117 = vmatpush.bf16.msrb.mxu0 %v9301_v6 }
 0x34f   : > { %v9810_v3 = vld [vmem:[%s13682_s27 + $0xc68] sm:$0xf0] }
 0x350   : > { %v12786_v4 = vld [vmem:[%s13682_s27 + $0xe4c] sm:$0xf]  ;;  %v9813_v11 = vor.u32 %v12722_v2, %v9810_v3  ;;  %7130 = vmatpush.bf16.msrb.mxu1 %v9557_v10 }
 0x351   : > { %v10066_v5 = vld [vmem:[%s13682_s27 + $0xe68] sm:$0xf0] }
 0x352   : > { %v12586_v7 = vld [vmem:[%s13682_s27 + $0x80c] sm:$0xf]  ;;  %v10069_v16 = vor.u32 %v12786_v4, %v10066_v5  ;;  %7143 = vmatpush.bf16.msrb.mxu2 %v9813_v11 }
 0x353   : > { %v9266_v8 = vld [vmem:[%s13682_s27 + $0x828] sm:$0xf0] }
 0x354   : > { %v12650_v12 = vld [vmem:[%s13682_s27 + $0xa0c] sm:$0xf]  ;;  %v9269_v51 = vor.u32 %v12586_v7, %v9266_v8  ;;  %7156 = vmatpush.bf16.msrb.mxu3 %v10069_v16  ;;  %v6912_v16 = vpop.f32.mrf.mxu0 }
 0x355   : > { %v9522_v13 = vld [vmem:[%s13682_s27 + $0xa28] sm:$0xf0] }
 0x356   : > { %v12714_v14 = vld [vmem:[%s13682_s27 + $0xc0c] sm:$0xf]  ;;  %v9525_v54 = vor.u32 %v12650_v12, %v9522_v13  ;;  %7118 = vmatpush.bf16.msrb.mxu0 %v9269_v51 }
 0x357   : > { %v9778_v17 = vld [vmem:[%s13682_s27 + $0xc28] sm:$0xf0] }
 0x358   : > { %v12778_v19 = vld [vmem:[%s13682_s27 + $0xe0c] sm:$0xf]  ;;  %v9781_v28 = vor.u32 %v12714_v14, %v9778_v17  ;;  %7131 = vmatpush.bf16.msrb.mxu1 %v9525_v54 }
 0x359   : > { %v10034_v52 = vld [vmem:[%s13682_s27 + $0xe28] sm:$0xf0]  ;;  %7119 = vmatmul.bf16.vlgmr.msrb.gmra.mxu0 %v13856_v32 }
 0x35a   : > { %v12898_v24 = vld [vmem:[%s13682_s27 + $0x11cc] sm:$0xf]  ;;  %v10037_v31 = vor.u32 %v12778_v19, %v10034_v52  ;;  %7144 = vmatpush.bf16.msrb.mxu2 %v9781_v28 }
 0x35b   : > { %v10514_v25 = vld [vmem:[%s13682_s27 + $0x11e8] sm:$0xf0]  ;;  %7132 = vmatmul.bf16.vlgmr.msrb.gmra.mxu1 %v13862_v38 }
 0x35c   : > { %v12962_v48 = vld [vmem:[%s13682_s27 + $0x13cc] sm:$0xf]  ;;  %v10517_v34 = vor.u32 %v12898_v24, %v10514_v25  ;;  %7157 = vmatpush.bf16.msrb.mxu3 %v10037_v31  ;;  %v6913_v25 = vadd.f32 %v6912_v16, %v14651_v56 }
 0x35d   : > { %v10770_v45 = vld [vmem:[%s13682_s27 + $0x13e8] sm:$0xf0]  ;;  %7145 = vmatmul.bf16.vlgmr.msrb.gmra.mxu2 %v13853_v29 }
 0x35e   : > { %v13026_v27 = vld [vmem:[%s13682_s27 + $0x15cc] sm:$0xf]  ;;  %v10773_v35 = vor.u32 %v12962_v48, %v10770_v45  ;;  %7163 = vmatpush.bf16.msra.mxu0 %v10517_v34  ;;  %v6925_v48 = vpop.f32.mrf.mxu1 }
 0x35f   : > { %v11026_v47 = vld [vmem:[%s13682_s27 + $0x15e8] sm:$0xf0]  ;;  %7158 = vmatmul.bf16.vlgmr.msrb.gmra.mxu3 %v13858_v33 }
 0x360   : > { %v13090_v30 = vld [vmem:[%s13682_s27 + $0x17cc] sm:$0xf]  ;;  %v11029_v36 = vor.u32 %v13026_v27, %v11026_v47  ;;  %7176 = vmatpush.bf16.msra.mxu1 %v10773_v35 }
 0x361   : > { %v11282_v18 = vld [vmem:[%s13682_s27 + $0x17e8] sm:$0xf0] }
 0x362   : > { %v12890_v37 = vld [vmem:[%s13682_s27 + $0x118c] sm:$0xf]  ;;  %v11285_v41 = vor.u32 %v13090_v30, %v11282_v18  ;;  %7189 = vmatpush.bf16.msra.mxu2 %v11029_v36  ;;  %v6926_v30 = vadd.f32 %v6925_v48, %v6913_v25 }
 0x363   : > { %v10482_v39 = vld [vmem:[%s13682_s27 + $0x11a8] sm:$0xf0] }
 0x364   : > { %v12954_v40 = vld [vmem:[%s13682_s27 + $0x138c] sm:$0xf]  ;;  %v10485_v50 = vor.u32 %v12890_v37, %v10482_v39  ;;  %7202 = vmatpush.bf16.msra.mxu3 %v11285_v41  ;;  %v6938_v37 = vpop.f32.mrf.mxu2 }
 0x365   : > { %v10738_v42 = vld [vmem:[%s13682_s27 + $0x13a8] sm:$0xf0] }
 0x366   : > { %v13018_v43 = vld [vmem:[%s13682_s27 + $0x158c] sm:$0xf]  ;;  %v10741_v53 = vor.u32 %v12954_v40, %v10738_v42  ;;  %7164 = vmatpush.bf16.msra.mxu0 %v10485_v50 }
 0x367   : > { %v10994_v44 = vld [vmem:[%s13682_s27 + $0x15a8] sm:$0xf0] }
 0x368   : > { %v13082_v46 = vld [vmem:[%s13682_s27 + $0x178c] sm:$0xf]  ;;  %v10997_v55 = vor.u32 %v13018_v43, %v10994_v44  ;;  %7177 = vmatpush.bf16.msra.mxu1 %v10741_v53  ;;  %v6939_v43 = vadd.f32 %v6938_v37, %v6926_v30  ;;  %v6951_v44 = vpop.f32.mrf.mxu3 }
 0x369   : > { %v11250_v49 = vld [vmem:[%s13682_s27 + $0x17a8] sm:$0xf0] }
 0x36a   : > { %v12882_v57 = vld [vmem:[%s13682_s27 + $0x114c] sm:$0xf]  ;;  %v11253_v60 = vor.u32 %v13082_v46, %v11250_v49  ;;  %7190 = vmatpush.bf16.msra.mxu2 %v10997_v55  ;;  %v14722_v53 = vadd.f32 %v6951_v44, %v6939_v43  ;;  %v6914_v55 = vpop.f32.mrf.mxu0 }
 0x36b   : > { %v10450_v58 = vld [vmem:[%s13682_s27 + $0x1168] sm:$0xf0] }
 0x36c   : > { %v12946_v59 = vld [vmem:[%s13682_s27 + $0x134c] sm:$0xf]  ;;  %v10453_v2 = vor.u32 %v12882_v57, %v10450_v58  ;;  %7203 = vmatpush.bf16.msra.mxu3 %v11253_v60 }
 0x36d   : > { %v10706_v61 = vld [vmem:[%s13682_s27 + $0x1368] sm:$0xf0] }
 0x36e   : > { %v13010_v62 = vld [vmem:[%s13682_s27 + $0x154c] sm:$0xf]  ;;  %v10709_v3 = vor.u32 %v12946_v59, %v10706_v61  ;;  %7165 = vmatpush.bf16.msra.mxu0 %v10453_v2 }
 0x36f   : > { %v10962_v63 = vld [vmem:[%s13682_s27 + $0x1568] sm:$0xf0] }
 0x370   : > { %v13074_v0 = vld [vmem:[%s13682_s27 + $0x174c] sm:$0xf]  ;;  %v10965_v4 = vor.u32 %v13010_v62, %v10962_v63  ;;  %7178 = vmatpush.bf16.msra.mxu1 %v10709_v3  ;;  %v6927_v62 = vpop.f32.mrf.mxu1 }
 0x371   : > { %v11218_v1 = vld [vmem:[%s13682_s27 + $0x1768] sm:$0xf0] }
 0x372   : > { %v12874_v5 = vld [vmem:[%s13682_s27 + $0x110c] sm:$0xf]  ;;  %v11221_v8 = vor.u32 %v13074_v0, %v11218_v1  ;;  %7191 = vmatpush.bf16.msra.mxu2 %v10965_v4 }
 0x373   : > { %v10418_v6 = vld [vmem:[%s13682_s27 + $0x1128] sm:$0xf0] }
 0x374   : > { %v12938_v7 = vld [vmem:[%s13682_s27 + $0x130c] sm:$0xf]  ;;  %v10421_v15 = vor.u32 %v12874_v5, %v10418_v6  ;;  %7204 = vmatpush.bf16.msra.mxu3 %v11221_v8 }
 0x375   : > { %v10674_v10 = vld [vmem:[%s13682_s27 + $0x1328] sm:$0xf0] }
 0x376   : > { %v13002_v11 = vld [vmem:[%s13682_s27 + $0x150c] sm:$0xf]  ;;  %v10677_v17 = vor.u32 %v12938_v7, %v10674_v10  ;;  %7166 = vmatpush.bf16.msra.mxu0 %v10421_v15 }
 0x377   : > { %v10930_v12 = vld [vmem:[%s13682_s27 + $0x1528] sm:$0xf0] }
 0x378   : > { %v13066_v13 = vld [vmem:[%s13682_s27 + $0x170c] sm:$0xf]  ;;  %v10933_v19 = vor.u32 %v13002_v11, %v10930_v12  ;;  %7179 = vmatpush.bf16.msra.mxu1 %v10677_v17 }
 0x379   : > { %v11186_v14 = vld [vmem:[%s13682_s27 + $0x1728] sm:$0xf0] }
 0x37a   : > { %v12866_v52 = vld [vmem:[%s13682_s27 + $0x10cc] sm:$0xf]  ;;  %v11189_v51 = vor.u32 %v13066_v13, %v11186_v14  ;;  %7192 = vmatpush.bf16.msra.mxu2 %v10933_v19  ;;  %v6940_v14 = vpop.f32.mrf.mxu2 }
 0x37b   : > { %v10386_v23 = vld [vmem:[%s13682_s27 + $0x10e8] sm:$0xf0] }
 0x37c   : > { %v12930_v24 = vld [vmem:[%s13682_s27 + $0x12cc] sm:$0xf]  ;;  %v10389_v18 = vor.u32 %v12866_v52, %v10386_v23  ;;  %7205 = vmatpush.bf16.msra.mxu3 %v11189_v51  ;;  %v6953_v52 = vpop.f32.mrf.mxu3 }
 0x37d   : > { %v10642_v45 = vld [vmem:[%s13682_s27 + $0x12e8] sm:$0xf0] }
 0x37e   : > { %v12994_v27 = vld [vmem:[%s13682_s27 + $0x14cc] sm:$0xf]  ;;  %v10645_v56 = vor.u32 %v12930_v24, %v10642_v45  ;;  %7167 = vmatpush.bf16.msra.mxu0 %v10389_v18 }
 0x37f   : > { %v10898_v47 = vld [vmem:[%s13682_s27 + $0x14e8] sm:$0xf0] }
 0x380   : > { %v13058_v54 = vld [vmem:[%s13682_s27 + $0x16cc] sm:$0xf]  ;;  %v10901_v31 = vor.u32 %v12994_v27, %v10898_v47  ;;  %7180 = vmatpush.bf16.msra.mxu1 %v10645_v56 }
 0x381   : > { %v11154_v28 = vld [vmem:[%s13682_s27 + $0x16e8] sm:$0xf0] }
 0x382   : > { %v12858_v34 = vld [vmem:[%s13682_s27 + $0x108c] sm:$0xf]  ;;  %v11157_v39 = vor.u32 %v13058_v54, %v11154_v28  ;;  %7193 = vmatpush.bf16.msra.mxu2 %v10901_v31 }
 0x383   : > { %v10354_v35 = vld [vmem:[%s13682_s27 + $0x10a8] sm:$0xf0] }
 0x384   : > { %v12922_v36 = vld [vmem:[%s13682_s27 + $0x128c] sm:$0xf]  ;;  %v10357_v50 = vor.u32 %v12858_v34, %v10354_v35  ;;  %7206 = vmatpush.bf16.msra.mxu3 %v11157_v39 }
 0x385   : > { %v10610_v40 = vld [vmem:[%s13682_s27 + $0x12a8] sm:$0xf0] }
 0x386   : > { %v12986_v41 = vld [vmem:[%s13682_s27 + $0x148c] sm:$0xf]  ;;  %v10613_v57 = vor.u32 %v12922_v36, %v10610_v40  ;;  %7168 = vmatpush.bf16.msra.mxu0 %v10357_v50 }
 0x387   : > { %v10866_v42 = vld [vmem:[%s13682_s27 + $0x14a8] sm:$0xf0] }
 0x388   : > { %v13050_v46 = vld [vmem:[%s13682_s27 + $0x168c] sm:$0xf]  ;;  %v10869_v58 = vor.u32 %v12986_v41, %v10866_v42  ;;  %7181 = vmatpush.bf16.msra.mxu1 %v10613_v57 }
 0x389   : > { %v11122_v49 = vld [vmem:[%s13682_s27 + $0x16a8] sm:$0xf0] }
 0x38a   : > { %v12850_v59 = vld [vmem:[%s13682_s27 + $0x104c] sm:$0xf]  ;;  %v11125_v63 = vor.u32 %v13050_v46, %v11122_v49  ;;  %7194 = vmatpush.bf16.msra.mxu2 %v10869_v58 }
 0x38b   : > { %v10322_v60 = vld [vmem:[%s13682_s27 + $0x1068] sm:$0xf0] }
 0x38c   : > { %v12914_v61 = vld [vmem:[%s13682_s27 + $0x124c] sm:$0xf]  ;;  %v10325_v5 = vor.u32 %v12850_v59, %v10322_v60  ;;  %7207 = vmatpush.bf16.msra.mxu3 %v11125_v63  ;;  %v13418_v59 = vld [vmem:[#allocation1] sm:$0xff] }
 0x38d   : > { %v10578_v0 = vld [vmem:[%s13682_s27 + $0x1268] sm:$0xf0] }
 0x38e   : > { %v12978_v1 = vld [vmem:[%s13682_s27 + $0x144c] sm:$0xf]  ;;  %v10581_v8 = vor.u32 %v12914_v61, %v10578_v0  ;;  %7169 = vmatpush.bf16.msra.mxu0 %v10325_v5 }
 0x38f   : > { %v10834_v2 = vld [vmem:[%s13682_s27 + $0x1468] sm:$0xf0] }
 0x390   : > { %v13042_v3 = vld [vmem:[%s13682_s27 + $0x164c] sm:$0xf]  ;;  %v10837_v10 = vor.u32 %v12978_v1, %v10834_v2  ;;  %7182 = vmatpush.bf16.msra.mxu1 %v10581_v8  ;;  %v13420_v1 = vld [vmem:[#allocation1 + $0x9] sm:$0xff] }
 0x391   : > { %v11090_v4 = vld [vmem:[%s13682_s27 + $0x1668] sm:$0xf0] }
 0x392   : > { %v12842_v6 = vld [vmem:[%s13682_s27 + $0x100c] sm:$0xf]  ;;  %v11093_v15 = vor.u32 %v13042_v3, %v11090_v4  ;;  %7195 = vmatpush.bf16.msra.mxu2 %v10837_v10  ;;  %v13421_v4 = vld [vmem:[#allocation1 + $0x1b] sm:$0xff] }
 0x393   : > { %v10290_v7 = vld [vmem:[%s13682_s27 + $0x1028] sm:$0xf0] }
 0x394   : > { %v12906_v11 = vld [vmem:[%s13682_s27 + $0x120c] sm:$0xf]  ;;  %v10293_v48 = vor.u32 %v12842_v6, %v10290_v7  ;;  %7208 = vmatpush.bf16.msra.mxu3 %v11093_v15 }
 0x395   : > { %v10546_v12 = vld [vmem:[%s13682_s27 + $0x1228] sm:$0xf0] }
 0x396   : > { %v12970_v13 = vld [vmem:[%s13682_s27 + $0x140c] sm:$0xf]  ;;  %v10549_v47 = vor.u32 %v12906_v11, %v10546_v12  ;;  %7170 = vmatpush.bf16.msra.mxu0 %v10293_v48 }
 0x397   : > { %v10802_v16 = vld [vmem:[%s13682_s27 + $0x1428] sm:$0xf0] }
 0x398   : > { %v13034_v17 = vld [vmem:[%s13682_s27 + $0x160c] sm:$0xf]  ;;  %v10805_v54 = vor.u32 %v12970_v13, %v10802_v16  ;;  %7183 = vmatpush.bf16.msra.mxu1 %v10549_v47  ;;  %v6964_v16 = vpop.f32.mrf.mxu0 }
 0x399   : > { %v11058_v19 = vld [vmem:[%s13682_s27 + $0x1628] sm:$0xf0]  ;;  %7171 = vmatmul.bf16.vlgmr.msra.gmra.mxu0 %v13418_v59  ;;  %v6965_v52 = vadd.f32 %v6964_v16, %v14722_v53 }
 0x39a   : > { %v13154_v23 = vld [vmem:[%s13682_s27 + $0x19cc] sm:$0xf]  ;;  %v11061_v18 = vor.u32 %v13034_v17, %v11058_v19  ;;  %7196 = vmatpush.bf16.msra.mxu2 %v10805_v54 }
 0x39b   : > { %v11538_v24 = vld [vmem:[%s13682_s27 + $0x19e8] sm:$0xf0]  ;;  %7184 = vmatmul.bf16.vlgmr.msra.gmra.mxu1 %v13420_v1 }
 0x39c   : > { %v13218_v25 = vld [vmem:[%s13682_s27 + $0x1bcc] sm:$0xf]  ;;  %v11541_v56 = vor.u32 %v13154_v23, %v11538_v24  ;;  %7209 = vmatpush.bf16.msra.mxu3 %v11061_v18  ;;  %v6977_v24 = vpop.f32.mrf.mxu1 }
 0x39d   : > { %v11794_v51 = vld [vmem:[%s13682_s27 + $0x1be8] sm:$0xf0]  ;;  %v6978_v54 = vadd.f32 %v6977_v24, %v6965_v52 }
 0x39e   : > { %v13282_v45 = vld [vmem:[%s13682_s27 + $0x1dcc] sm:$0xf]  ;;  %v11797_v31 = vor.u32 %v13218_v25, %v11794_v51  ;;  %7215 = vmatpush.bf16.msrb.mxu0 %v11541_v56 }
 0x39f   : > { %v12050_v27 = vld [vmem:[%s13682_s27 + $0x1de8] sm:$0xf0]  ;;  %7210 = vmatmul.bf16.vlgmr.msra.gmra.mxu3 %v13421_v4 }
 0x3a0   : > { %v13346_v28 = vld [vmem:[%s13682_s27 + $0x1fcc] sm:$0xf]  ;;  %v12053_v34 = vor.u32 %v13282_v45, %v12050_v27  ;;  %7228 = vmatpush.bf16.msrb.mxu1 %v11797_v31 }
 0x3a1   : > { %v12306_v30 = vld [vmem:[%s13682_s27 + $0x1fe8] sm:$0xf0] }
 0x3a2   : > { %v13146_v35 = vld [vmem:[%s13682_s27 + $0x198c] sm:$0xf]  ;;  %v12309_v39 = vor.u32 %v13346_v28, %v12306_v30  ;;  %7241 = vmatpush.bf16.msrb.mxu2 %v12053_v34 }
 0x3a3   : > { %v11506_v36 = vld [vmem:[%s13682_s27 + $0x19a8] sm:$0xf0] }
 0x3a4   : > { %v13210_v37 = vld [vmem:[%s13682_s27 + $0x1b8c] sm:$0xf]  ;;  %v11509_v46 = vor.u32 %v13146_v35, %v11506_v36  ;;  %7254 = vmatpush.bf16.msrb.mxu3 %v12309_v39  ;;  %v6979_v59 = vpop.f32.mrf.mxu1 }
 0x3a5   : > { %v11762_v40 = vld [vmem:[%s13682_s27 + $0x1ba8] sm:$0xf0]  ;;  %v12375_v59 = vld [vmem:[%s13682_s27 + $0x16c] sm:$0xf0] }
 0x3a6   : > { %v13274_v41 = vld [vmem:[%s13682_s27 + $0x1d8c] sm:$0xf]  ;;  %v11765_v49 = vor.u32 %v13210_v37, %v11762_v40  ;;  %7216 = vmatpush.bf16.msrb.mxu0 %v11509_v46 }
 0x3a7   : > { %v12018_v42 = vld [vmem:[%s13682_s27 + $0x1da8] sm:$0xf0] }
 0x3a8   : > { %v13338_v43 = vld [vmem:[%s13682_s27 + $0x1f8c] sm:$0xf]  ;;  %v12021_v50 = vor.u32 %v13274_v41, %v12018_v42  ;;  %7229 = vmatpush.bf16.msrb.mxu1 %v11765_v49  ;;  %v6990_v41 = vpop.f32.mrf.mxu2  ;;  %v7003_v49 = vpop.f32.mrf.mxu3 }
 0x3a9   : > { %v12274_v44 = vld [vmem:[%s13682_s27 + $0x1fa8] sm:$0xf0]  ;;  %v6991_v46 = vadd.f32 %v6990_v41, %v6978_v54  ;;  %v8984_v54 = vld [vmem:[%s13682_s27 + $0x5d0] sm:$0xf] }
 0x3aa   : > { %v13138_v55 = vld [vmem:[%s13682_s27 + $0x194c] sm:$0xf]  ;;  %v12277_v60 = vor.u32 %v13338_v43, %v12274_v44  ;;  %7242 = vmatpush.bf16.msrb.mxu2 %v12021_v50 }
 0x3ab   : > { %v11474_v57 = vld [vmem:[%s13682_s27 + $0x1968] sm:$0xf0] }
 0x3ac   : > { %v13202_v58 = vld [vmem:[%s13682_s27 + $0x1b4c] sm:$0xf]  ;;  %v11477_v5 = vor.u32 %v13138_v55, %v11474_v57  ;;  %7255 = vmatpush.bf16.msrb.mxu3 %v12277_v60  ;;  %v6966_v57 = vpop.f32.mrf.mxu0  ;;  %v14789_v60 = vadd.f32 %v7003_v49, %v6991_v46  ;;  %v9208_v46 = vld [vmem:[%s13682_s27 + $0x790] sm:$0xf] }
 0x3ad   : > { %v11730_v61 = vld [vmem:[%s13682_s27 + $0x1b68] sm:$0xf0]  ;;  %v12575_v49 = vld [vmem:[%s13682_s27 + $0x7ac] sm:$0xf0] }
 0x3ae   : > { %v13266_v62 = vld [vmem:[%s13682_s27 + $0x1d4c] sm:$0xf]  ;;  %v11733_v6 = vor.u32 %v13202_v58, %v11730_v61  ;;  %7217 = vmatpush.bf16.msrb.mxu0 %v11477_v5 }
 0x3af   : > { %v11986_v63 = vld [vmem:[%s13682_s27 + $0x1d68] sm:$0xf0] }
 0x3b0   : > { %v13419_v0 = vld [vmem:[#allocation1 + $0x12] sm:$0xff]  ;;  %v11989_v7 = vor.u32 %v13266_v62, %v11986_v63  ;;  %7230 = vmatpush.bf16.msrb.mxu1 %v11733_v6  ;;  %v6992_v24 = vpop.f32.mrf.mxu2 }
 0x3b1   : > { %7197 = vmatmul.bf16.vlgmr.msra.gmra.mxu2 %v13419_v0  ;;  %v13330_v2 = vld [vmem:[%s13682_s27 + $0x1f4c] sm:$0xf]  ;;  %v12559_v24 = vld [vmem:[%s13682_s27 + $0x72c] sm:$0xf0] }
 0x3b2   : > { %v12242_v3 = vld [vmem:[%s13682_s27 + $0x1f68] sm:$0xf0]  ;;  %7243 = vmatpush.bf16.msrb.mxu2 %v11989_v7 }
 0x3b3   : > { %v13130_v8 = vld [vmem:[%s13682_s27 + $0x190c] sm:$0xf]  ;;  %v12245_v12 = vor.u32 %v13330_v2, %v12242_v3 }
 0x3b4   : > { %v11442_v10 = vld [vmem:[%s13682_s27 + $0x1928] sm:$0xf0] }
 0x3b5   : > { %v13194_v11 = vld [vmem:[%s13682_s27 + $0x1b0c] sm:$0xf]  ;;  %v11445_v23 = vor.u32 %v13130_v8, %v11442_v10  ;;  %7256 = vmatpush.bf16.msrb.mxu3 %v12245_v12 }
 0x3b6   : > { %v11698_v13 = vld [vmem:[%s13682_s27 + $0x1b28] sm:$0xf0] }
 0x3b7   : > { %v13258_v14 = vld [vmem:[%s13682_s27 + $0x1d0c] sm:$0xf]  ;;  %v11701_v25 = vor.u32 %v13194_v11, %v11698_v13  ;;  %7218 = vmatpush.bf16.msrb.mxu0 %v11445_v23 }
 0x3b8   : > { %v11954_v15 = vld [vmem:[%s13682_s27 + $0x1d28] sm:$0xf0] }
 0x3b9   : > { %v13322_v17 = vld [vmem:[%s13682_s27 + $0x1f0c] sm:$0xf]  ;;  %v11957_v48 = vor.u32 %v13258_v14, %v11954_v15  ;;  %7231 = vmatpush.bf16.msrb.mxu1 %v11701_v25  ;;  %v8472_v25 = vld [vmem:[%s13682_s27 + $0x1d0] sm:$0xf] }
 0x3ba   : > { %v12210_v19 = vld [vmem:[%s13682_s27 + $0x1f28] sm:$0xf0] }
 0x3bb   : > { %v13122_v51 = vld [vmem:[%s13682_s27 + $0x18cc] sm:$0xf]  ;;  %v12213_v47 = vor.u32 %v13322_v17, %v12210_v19  ;;  %7244 = vmatpush.bf16.msrb.mxu2 %v11957_v48  ;;  %v12391_v48 = vld [vmem:[%s13682_s27 + $0x1ec] sm:$0xf0] }
 0x3bc   : > { %v11410_v45 = vld [vmem:[%s13682_s27 + $0x18e8] sm:$0xf0] }
 0x3bd   : > { %v13186_v27 = vld [vmem:[%s13682_s27 + $0x1acc] sm:$0xf]  ;;  %v11413_v31 = vor.u32 %v13122_v51, %v11410_v45  ;;  %7257 = vmatpush.bf16.msrb.mxu3 %v12213_v47  ;;  %v8728_v51 = vld [vmem:[%s13682_s27 + $0x3d0] sm:$0xf]  ;;  %v7005_v45 = vpop.f32.mrf.mxu3 }
 0x3be   : > { %v11666_v28 = vld [vmem:[%s13682_s27 + $0x1ae8] sm:$0xf0]  ;;  %v12455_v47 = vld [vmem:[%s13682_s27 + $0x3ec] sm:$0xf0] }
 0x3bf   : > { %v13250_v30 = vld [vmem:[%s13682_s27 + $0x1ccc] sm:$0xf]  ;;  %v11669_v34 = vor.u32 %v13186_v27, %v11666_v28  ;;  %7219 = vmatpush.bf16.msrb.mxu0 %v11413_v31  ;;  %v12519_v28 = vld [vmem:[%s13682_s27 + $0x5ec] sm:$0xf0] }
 0x3c0   : > { %v11922_v53 = vld [vmem:[%s13682_s27 + $0x1ce8] sm:$0xf0] }
 0x3c1   : > { %v13314_v18 = vld [vmem:[%s13682_s27 + $0x1ecc] sm:$0xf]  ;;  %v11925_v35 = vor.u32 %v13250_v30, %v11922_v53  ;;  %7232 = vmatpush.bf16.msrb.mxu1 %v11669_v34  ;;  %v8473_v34 = vor.u32 %v12391_v48, %v8472_v25 }
 0x3c2   : > { %v12178_v56 = vld [vmem:[%s13682_s27 + $0x1ee8] sm:$0xf0] }
 0x3c3   : > { %v13114_v36 = vld [vmem:[%s13682_s27 + $0x188c] sm:$0xf]  ;;  %v12181_v40 = vor.u32 %v13314_v18, %v12178_v56  ;;  %7245 = vmatpush.bf16.msrb.mxu2 %v11925_v35  ;;  %v9240_v18 = vld [vmem:[%s13682_s27 + $0x7d0] sm:$0xf]  ;;  %v8729_v35 = vor.u32 %v12455_v47, %v8728_v51  ;;  %v7029_v51 = vpop.f32.mrf.mxu1 }
 0x3c4   : > { %v11378_v37 = vld [vmem:[%s13682_s27 + $0x18a8] sm:$0xf0]  ;;  %v12583_v56 = vld [vmem:[%s13682_s27 + $0x7ec] sm:$0xf0] }
 0x3c5   : > { %v13178_v39 = vld [vmem:[%s13682_s27 + $0x1a8c] sm:$0xf]  ;;  %v11381_v58 = vor.u32 %v13114_v36, %v11378_v37  ;;  %7258 = vmatpush.bf16.msrb.mxu3 %v12181_v40  ;;  %v8985_v36 = vor.u32 %v12519_v28, %v8984_v54  ;;  %v8440_v37 = vld [vmem:[%s13682_s27 + $0x190] sm:$0xf]  ;;  %v9241_v41 = vor.u32 %v12583_v56, %v9240_v18 }
 0x3c6   : > { %v11634_v42 = vld [vmem:[%s13682_s27 + $0x1aa8] sm:$0xf0]  ;;  %v8696_v40 = vld [vmem:[%s13682_s27 + $0x390] sm:$0xf] }
 0x3c7   : > { %v13242_v43 = vld [vmem:[%s13682_s27 + $0x1c8c] sm:$0xf]  ;;  %v11637_v61 = vor.u32 %v13178_v39, %v11634_v42  ;;  %7220 = vmatpush.bf16.msrb.mxu0 %v11381_v58  ;;  %v12383_v39 = vld [vmem:[%s13682_s27 + $0x1ac] sm:$0xf0] }
 0x3c8   : > { %v11890_v44 = vld [vmem:[%s13682_s27 + $0x1ca8] sm:$0xf0]  ;;  %v12447_v42 = vld [vmem:[%s13682_s27 + $0x3ac] sm:$0xf0] }
 0x3c9   : > { %v13306_v50 = vld [vmem:[%s13682_s27 + $0x1e8c] sm:$0xf]  ;;  %v11893_v62 = vor.u32 %v13242_v43, %v11890_v44  ;;  %7233 = vmatpush.bf16.msrb.mxu1 %v11637_v61  ;;  %v8952_v43 = vld [vmem:[%s13682_s27 + $0x590] sm:$0xf] }
 0x3ca   : > { %v12146_v55 = vld [vmem:[%s13682_s27 + $0x1ea8] sm:$0xf0]  ;;  %v12511_v44 = vld [vmem:[%s13682_s27 + $0x5ac] sm:$0xf0] }
 0x3cb   : > { %v13106_v63 = vld [vmem:[%s13682_s27 + $0x184c] sm:$0xf]  ;;  %v12149_v2 = vor.u32 %v13306_v50, %v12146_v55  ;;  %7246 = vmatpush.bf16.msrb.mxu2 %v11893_v62  ;;  %v8441_v50 = vor.u32 %v12383_v39, %v8440_v37  ;;  %v8697_v55 = vor.u32 %v12447_v42, %v8696_v40  ;;  %v8953_v57 = vor.u32 %v12511_v44, %v8952_v43  ;;  %v8408_v58 = vld [vmem:[%s13682_s27 + $0x150] sm:$0xf]  ;;  %v13422_v62 = vld [vmem:[#allocation1 + $0x24] sm:$0xff]  ;;  %v7042_v43 = vpop.f32.mrf.mxu2 }
 0x3cc   : > { %v11346_v0 = vld [vmem:[%s13682_s27 + $0x1868] sm:$0xf0]  ;;  %v8664_v61 = vld [vmem:[%s13682_s27 + $0x350] sm:$0xf] }
 0x3cd   : > { %v13170_v1 = vld [vmem:[%s13682_s27 + $0x1a4c] sm:$0xf]  ;;  %v11349_v8 = vor.u32 %v13106_v63, %v11346_v0  ;;  %7259 = vmatpush.bf16.msrb.mxu3 %v12149_v2  ;;  %v9209_v63 = vor.u32 %v12575_v49, %v9208_v46  ;;  %v12439_v0 = vld [vmem:[%s13682_s27 + $0x36c] sm:$0xf0] }
 0x3ce   : > { %v11602_v3 = vld [vmem:[%s13682_s27 + $0x1a68] sm:$0xf0]  ;;  %v12503_v2 = vld [vmem:[%s13682_s27 + $0x56c] sm:$0xf0] }
 0x3cf   : > { %v13234_v4 = vld [vmem:[%s13682_s27 + $0x1c4c] sm:$0xf]  ;;  %v11605_v12 = vor.u32 %v13170_v1, %v11602_v3  ;;  %7221 = vmatpush.bf16.msrb.mxu0 %v11349_v8  ;;  %v8920_v1 = vld [vmem:[%s13682_s27 + $0x550] sm:$0xf]  ;;  %v8409_v8 = vor.u32 %v12375_v59, %v8408_v58 }
 0x3d0   : > { %v11858_v5 = vld [vmem:[%s13682_s27 + $0x1c68] sm:$0xf0]  ;;  %v8344_v47 = vld [vmem:[%s13682_s27 + $0xd0] sm:$0xf] }
 0x3d1   : > { %v13298_v6 = vld [vmem:[%s13682_s27 + $0x1e4c] sm:$0xf]  ;;  %v11861_v13 = vor.u32 %v13234_v4, %v11858_v5  ;;  %7234 = vmatpush.bf16.msrb.mxu1 %v11605_v12  ;;  %v9176_v5 = vld [vmem:[%s13682_s27 + $0x750] sm:$0xf] }
 0x3d2   : > { %v12114_v7 = vld [vmem:[%s13682_s27 + $0x1e68] sm:$0xf0]  ;;  %v8376_v12 = vld [vmem:[%s13682_s27 + $0x110] sm:$0xf] }
 0x3d3   : > { %v13098_v10 = vld [vmem:[%s13682_s27 + $0x180c] sm:$0xf]  ;;  %v12117_v17 = vor.u32 %v13298_v6, %v12114_v7  ;;  %7247 = vmatpush.bf16.msrb.mxu2 %v11861_v13  ;;  %v12567_v6 = vld [vmem:[%s13682_s27 + $0x76c] sm:$0xf0]  ;;  %v13425_v7 = vld [vmem:[#allocation1 + $0x3f] sm:$0xff] }
 0x3d4   : > { %v11314_v11 = vld [vmem:[%s13682_s27 + $0x1828] sm:$0xf0]  ;;  %v12367_v13 = vld [vmem:[%s13682_s27 + $0x12c] sm:$0xf0] }
 0x3d5   : > { %v13162_v14 = vld [vmem:[%s13682_s27 + $0x1a0c] sm:$0xf]  ;;  %v11317_v27 = vor.u32 %v13098_v10, %v11314_v11  ;;  %7260 = vmatpush.bf16.msrb.mxu3 %v12117_v17  ;;  %v8665_v10 = vor.u32 %v12439_v0, %v8664_v61  ;;  %v8921_v11 = vor.u32 %v12503_v2, %v8920_v1  ;;  %v8888_v17 = vld [vmem:[%s13682_s27 + $0x510] sm:$0xf]  ;;  %v8377_v48 = vor.u32 %v12367_v13, %v8376_v12 }
 0x3d6   : > { %v11570_v15 = vld [vmem:[%s13682_s27 + $0x1a28] sm:$0xf0]  ;;  %v12359_v54 = vld [vmem:[%s13682_s27 + $0xec] sm:$0xf0] }
 0x3d7   : > { %v13226_v16 = vld [vmem:[%s13682_s27 + $0x1c0c] sm:$0xf]  ;;  %v11573_v30 = vor.u32 %v13162_v14, %v11570_v15  ;;  %7222 = vmatpush.bf16.msrb.mxu0 %v11317_v27  ;;  %v8632_v14 = vld [vmem:[%s13682_s27 + $0x310] sm:$0xf]  ;;  %v9177_v15 = vor.u32 %v12567_v6, %v9176_v5 }
 0x3d8   : > { %v11826_v19 = vld [vmem:[%s13682_s27 + $0x1c28] sm:$0xf0]  ;;  %v8600_v28 = vld [vmem:[%s13682_s27 + $0x2d0] sm:$0xf] }
 0x3d9   : > { %v13290_v52 = vld [vmem:[%s13682_s27 + $0x1e0c] sm:$0xf]  ;;  %v11829_v53 = vor.u32 %v13226_v16, %v11826_v19  ;;  %7235 = vmatpush.bf16.msrb.mxu1 %v11573_v30  ;;  %v12431_v16 = vld [vmem:[%s13682_s27 + $0x32c] sm:$0xf0] }
 0x3da   : > { %v12082_v23 = vld [vmem:[%s13682_s27 + $0x1e28] sm:$0xf0]  ;;  %7223 = vmatmul.bf16.vlgmr.msrb.gmra.mxu0 %v13422_v62  ;;  %v12495_v19 = vld [vmem:[%s13682_s27 + $0x52c] sm:$0xf0]  ;;  %v8633_v45 = vor.u32 %v12431_v16, %v8632_v14  ;;  %v7031_v62 = vpop.f32.mrf.mxu1 }
 0x3db   : > { %v12085_v31 = vor.u32 %v13290_v52, %v12082_v23  ;;  %7248 = vmatpush.bf16.msrb.mxu2 %v11829_v53  ;;  %7267 = vmatpush.bf16.msra.mxu0 %v8473_v34  ;;  %v13423_v3 = vld [vmem:[#allocation1 + $0x36] sm:$0xff]  ;;  %v13424_v4 = vld [vmem:[#allocation1 + $0x2d] sm:$0xff]  ;;  %v7016_v52 = vpop.f32.mrf.mxu0  ;;  %v8889_v27 = vor.u32 %v12495_v19, %v8888_v17 }
 0x3dc   : > { %7236 = vmatmul.bf16.vlgmr.msrb.gmra.mxu1 %v13424_v4  ;;  %v9144_v23 = vld [vmem:[%s13682_s27 + $0x710] sm:$0xf]  ;;  %v7017_v25 = vadd.f32 %v7016_v52, %v14789_v60 }
 0x3dd   : > { %7261 = vmatpush.bf16.msrb.mxu3 %v12085_v31  ;;  %7280 = vmatpush.bf16.msra.mxu1 %v8729_v35  ;;  %v9145_v30 = vor.u32 %v12559_v24, %v9144_v23  ;;  %v12423_v18 = vld [vmem:[%s13682_s27 + $0x2ec] sm:$0xf0]  ;;  %v8345_v35 = vor.u32 %v12359_v54, %v8344_v47 }
 0x3de   : > { %7249 = vmatmul.bf16.vlgmr.msrb.gmra.mxu2 %v13423_v3  ;;  %v7030_v53 = vadd.f32 %v7029_v51, %v7017_v25  ;;  %v8856_v56 = vld [vmem:[%s13682_s27 + $0x4d0] sm:$0xf]  ;;  %v7044_v51 = vpop.f32.mrf.mxu2 }
 0x3df   : > { %7293 = vmatpush.bf16.msra.mxu2 %v8985_v36  ;;  %7268 = vmatpush.bf16.msra.mxu0 %v8441_v50  ;;  %v12487_v60 = vld [vmem:[%s13682_s27 + $0x4ec] sm:$0xf0]  ;;  %v8601_v36 = vor.u32 %v12423_v18, %v8600_v28 }
 0x3e0   : > { %7262 = vmatmul.bf16.vlgmr.msrb.gmra.mxu3 %v13425_v7  ;;  %v9112_v31 = vld [vmem:[%s13682_s27 + $0x6d0] sm:$0xf]  ;;  %v8857_v37 = vor.u32 %v12487_v60, %v8856_v56  ;;  %v7043_v50 = vadd.f32 %v7042_v43, %v7030_v53 }
 0x3e1   : > { %7306 = vmatpush.bf16.msra.mxu3 %v9241_v41  ;;  %7281 = vmatpush.bf16.msra.mxu1 %v8697_v55  ;;  %v12551_v34 = vld [vmem:[%s13682_s27 + $0x6ec] sm:$0xf0]  ;;  %v7055_v55 = vpop.f32.mrf.mxu3 }
 0x3e2   : > { %v8312_v39 = vld [vmem:[%s13682_s27 + $0x90] sm:$0xf]  ;;  %v9113_v42 = vor.u32 %v12551_v34, %v9112_v31 }
 0x3e3   : > { %7294 = vmatpush.bf16.msra.mxu2 %v8953_v57  ;;  %7269 = vmatpush.bf16.msra.mxu0 %v8409_v8  ;;  %v12351_v40 = vld [vmem:[%s13682_s27 + $0xac] sm:$0xf0]  ;;  %v7018_v59 = vpop.f32.mrf.mxu0 }
 0x3e4   : > { %v8568_v41 = vld [vmem:[%s13682_s27 + $0x290] sm:$0xf]  ;;  %v8313_v61 = vor.u32 %v12351_v40, %v8312_v39 }
 0x3e5   : > { %7307 = vmatpush.bf16.msra.mxu3 %v9209_v63  ;;  %7282 = vmatpush.bf16.msra.mxu1 %v8665_v10  ;;  %v12415_v44 = vld [vmem:[%s13682_s27 + $0x2ac] sm:$0xf0]  ;;  %v14856_v63 = vadd.f32 %v7055_v55, %v7043_v50 }
 0x3e6   : > { %v8824_v46 = vld [vmem:[%s13682_s27 + $0x490] sm:$0xf]  ;;  %v8569_v0 = vor.u32 %v12415_v44, %v8568_v41 }
 0x3e7   : > { %7295 = vmatpush.bf16.msra.mxu2 %v8921_v11  ;;  %7270 = vmatpush.bf16.msra.mxu0 %v8377_v48  ;;  %v12479_v49 = vld [vmem:[%s13682_s27 + $0x4ac] sm:$0xf0] }
 0x3e8   : > { %v9080_v57 = vld [vmem:[%s13682_s27 + $0x690] sm:$0xf]  ;;  %v8825_v1 = vor.u32 %v12479_v49, %v8824_v46 }
 0x3e9   : > { %7308 = vmatpush.bf16.msra.mxu3 %v9177_v15  ;;  %7283 = vmatpush.bf16.msra.mxu1 %v8633_v45  ;;  %v12543_v58 = vld [vmem:[%s13682_s27 + $0x6ac] sm:$0xf0]  ;;  %v7057_v54 = vpop.f32.mrf.mxu3 }
 0x3ea   : > { %v8280_v2 = vld [vmem:[%s13682_s27 + $0x50] sm:$0xf]  ;;  %v9081_v5 = vor.u32 %v12543_v58, %v9080_v57 }
 0x3eb   : > { %7296 = vmatpush.bf16.msra.mxu2 %v8889_v27  ;;  %7271 = vmatpush.bf16.msra.mxu0 %v8345_v35  ;;  %v12343_v3 = vld [vmem:[%s13682_s27 + $0x6c] sm:$0xf0] }
 0x3ec   : > { %v8536_v4 = vld [vmem:[%s13682_s27 + $0x250] sm:$0xf]  ;;  %v8281_v12 = vor.u32 %v12343_v3, %v8280_v2 }
 0x3ed   : > { %7309 = vmatpush.bf16.msra.mxu3 %v9145_v30  ;;  %7284 = vmatpush.bf16.msra.mxu1 %v8601_v36  ;;  %v12407_v6 = vld [vmem:[%s13682_s27 + $0x26c] sm:$0xf0] }
 0x3ee   : > { %v8792_v7 = vld [vmem:[%s13682_s27 + $0x450] sm:$0xf]  ;;  %v8537_v15 = vor.u32 %v12407_v6, %v8536_v4 }
 0x3ef   : > { %7297 = vmatpush.bf16.msra.mxu2 %v8857_v37  ;;  %v12471_v8 = vld [vmem:[%s13682_s27 + $0x46c] sm:$0xf0]  ;;  %7272 = vmatpush.bf16.msra.mxu0 %v8313_v61 }
 0x3f0   : > { %v9048_v10 = vld [vmem:[%s13682_s27 + $0x650] sm:$0xf]  ;;  %v8793_v16 = vor.u32 %v12471_v8, %v8792_v7 }
 0x3f1   : > { %7310 = vmatpush.bf16.msra.mxu3 %v9113_v42  ;;  %v12535_v11 = vld [vmem:[%s13682_s27 + $0x66c] sm:$0xf0]  ;;  %7285 = vmatpush.bf16.msra.mxu1 %v8569_v0 }
 0x3f2   : > { %v8248_v13 = vld [vmem:[%s13682_s27 + $0x10] sm:$0xf]  ;;  %v9049_v23 = vor.u32 %v12535_v11, %v9048_v10 }
 0x3f3   : > { %v12335_v14 = vld [vmem:[%s13682_s27 + $0x2c] sm:$0xf0]  ;;  %7298 = vmatpush.bf16.msra.mxu2 %v8825_v1  ;;  %7273 = vmatpush.bf16.msra.mxu0 %v8281_v12 }
 0x3f4   : > { %v8504_v17 = vld [vmem:[%s13682_s27 + $0x210] sm:$0xf]  ;;  %v8249_v28 = vor.u32 %v12335_v14, %v8248_v13  ;;  %v13426_v14 = vld [vmem:[%s13688_s5] sm:$0xff] }
 0x3f5   : > { %v12399_v19 = vld [vmem:[%s13682_s27 + $0x22c] sm:$0xf0]  ;;  %7311 = vmatpush.bf16.msra.mxu3 %v9081_v5  ;;  %7286 = vmatpush.bf16.msra.mxu1 %v8537_v15  ;;  %v1266_v15 = vperm.slane %v13426_v14, 3 }
 0x3f6   : > { %v8760_v52 = vld [vmem:[%s13682_s27 + $0x410] sm:$0xf]  ;;  %v8505_v56 = vor.u32 %v12399_v19, %v8504_v17 }
 0x3f7   : > { %v12463_v24 = vld [vmem:[%s13682_s27 + $0x42c] sm:$0xf0]  ;;  %7299 = vmatpush.bf16.msra.mxu2 %v8793_v16  ;;  %7274 = vmatpush.bf16.msra.mxu0 %v8249_v28 }
 0x3f8   : > { %v9016_v25 = vld [vmem:[%s13682_s27 + $0x610] sm:$0xf]  ;;  %v8761_v60 = vor.u32 %v12463_v24, %v8760_v52 }
 0x3f9   : > { %v12527_v48 = vld [vmem:[%s13682_s27 + $0x62c] sm:$0xf0]  ;;  %7312 = vmatpush.bf16.msra.mxu3 %v9049_v23  ;;  %7287 = vmatpush.bf16.msra.mxu1 %v8505_v56 }
 0x3fa   : > { %v9496_v45 = vld [vmem:[%s13682_s27 + $0x9d0] sm:$0xf]  ;;  %v9017_v35 = vor.u32 %v12527_v48, %v9016_v25  ;;  %7275 = vmatmul.bf16.vlgmr.msra.gmra.mxu0 %v13799_v21  ;;  %v7068_v48 = vpop.f32.mrf.mxu0 }
 0x3fb   : > { %v12647_v27 = vld [vmem:[%s13682_s27 + $0x9ec] sm:$0xf0]  ;;  %7300 = vmatpush.bf16.msra.mxu2 %v8761_v60  ;;  %v7069_v28 = vadd.f32 %v7068_v48, %v1266_v15 }
 0x3fc   : > { %v9752_v47 = vld [vmem:[%s13682_s27 + $0xbd0] sm:$0xf]  ;;  %v9497_v36 = vor.u32 %v12647_v27, %v9496_v45  ;;  %7288 = vmatmul.bf16.vlgmr.msra.gmra.mxu1 %v13806_v26 }
 0x3fd   : > { %v12711_v30 = vld [vmem:[%s13682_s27 + $0xbec] sm:$0xf0]  ;;  %7313 = vmatpush.bf16.msra.mxu3 %v9017_v35 }
 0x3fe   : > { %v10008_v53 = vld [vmem:[%s13682_s27 + $0xdd0] sm:$0xf]  ;;  %v9753_v37 = vor.u32 %v12711_v30, %v9752_v47  ;;  %7319 = vmatpush.bf16.msrb.mxu0 %v9497_v36  ;;  %7301 = vmatmul.bf16.vlgmr.msra.gmra.mxu2 %v13797_v20  ;;  %v7081_v30 = vpop.f32.mrf.mxu1 }
 0x3ff   : > { %v12775_v18 = vld [vmem:[%s13682_s27 + $0xdec] sm:$0xf0]  ;;  %v7082_v35 = vadd.f32 %v7081_v30, %v7069_v28 }
 0x400   : > { %v10264_v31 = vld [vmem:[%s13682_s27 + $0xfd0] sm:$0xf]  ;;  %v10009_v39 = vor.u32 %v12775_v18, %v10008_v53  ;;  %7332 = vmatpush.bf16.msrb.mxu1 %v9753_v37  ;;  %7314 = vmatmul.bf16.vlgmr.msra.gmra.mxu3 %v13801_v22 }
 0x401   : > { %v12839_v34 = vld [vmem:[%s13682_s27 + $0xfec] sm:$0xf0] }
 0x402   : > { %v9464_v40 = vld [vmem:[%s13682_s27 + $0x990] sm:$0xf]  ;;  %v10265_v43 = vor.u32 %v12839_v34, %v10264_v31  ;;  %7345 = vmatpush.bf16.msrb.mxu2 %v10009_v39 }
 0x403   : > { %v12639_v41 = vld [vmem:[%s13682_s27 + $0x9ac] sm:$0xf0] }
 0x404   : > { %v9720_v42 = vld [vmem:[%s13682_s27 + $0xb90] sm:$0xf]  ;;  %v9465_v57 = vor.u32 %v12639_v41, %v9464_v40  ;;  %7358 = vmatpush.bf16.msrb.mxu3 %v10265_v43  ;;  %v7094_v43 = vpop.f32.mrf.mxu2 }
 0x405   : > { %v12703_v44 = vld [vmem:[%s13682_s27 + $0xbac] sm:$0xf0] }
 0x406   : > { %v9976_v46 = vld [vmem:[%s13682_s27 + $0xd90] sm:$0xf]  ;;  %v9721_v58 = vor.u32 %v12703_v44, %v9720_v42  ;;  %7320 = vmatpush.bf16.msrb.mxu0 %v9465_v57  ;;  %v7107_v57 = vpop.f32.mrf.mxu3 }
 0x407   : > { %v12767_v49 = vld [vmem:[%s13682_s27 + $0xdac] sm:$0xf0] }
 0x408   : > { %v10232_v50 = vld [vmem:[%s13682_s27 + $0xf90] sm:$0xf]  ;;  %v9977_v59 = vor.u32 %v12767_v49, %v9976_v46  ;;  %7333 = vmatpush.bf16.msrb.mxu1 %v9721_v58 }
 0x409   : > { %v12831_v55 = vld [vmem:[%s13682_s27 + $0xfac] sm:$0xf0] }
 0x40a   : > { %v9432_v61 = vld [vmem:[%s13682_s27 + $0x950] sm:$0xf]  ;;  %v10233_v1 = vor.u32 %v12831_v55, %v10232_v50  ;;  %7346 = vmatpush.bf16.msrb.mxu2 %v9977_v59  ;;  %v7095_v55 = vadd.f32 %v7094_v43, %v7082_v35 }
 0x40b   : > { %v12631_v62 = vld [vmem:[%s13682_s27 + $0x96c] sm:$0xf0] }
 0x40c   : > { %v9688_v0 = vld [vmem:[%s13682_s27 + $0xb50] sm:$0xf]  ;;  %v9433_v7 = vor.u32 %v12631_v62, %v9432_v61  ;;  %7359 = vmatpush.bf16.msrb.mxu3 %v10233_v1  ;;  %v14927_v62 = vadd.f32 %v7107_v57, %v7095_v55 }
 0x40d   : > { %v12695_v2 = vld [vmem:[%s13682_s27 + $0xb6c] sm:$0xf0] }
 0x40e   : > { %v9944_v3 = vld [vmem:[%s13682_s27 + $0xd50] sm:$0xf]  ;;  %v9689_v10 = vor.u32 %v12695_v2, %v9688_v0  ;;  %7321 = vmatpush.bf16.msrb.mxu0 %v9433_v7  ;;  %v7070_v0 = vpop.f32.mrf.mxu0 }
 0x40f   : > { %v12759_v4 = vld [vmem:[%s13682_s27 + $0xd6c] sm:$0xf0] }
 0x410   : > { %v10200_v5 = vld [vmem:[%s13682_s27 + $0xf50] sm:$0xf]  ;;  %v9945_v11 = vor.u32 %v12759_v4, %v9944_v3  ;;  %7334 = vmatpush.bf16.msrb.mxu1 %v9689_v10 }
 0x411   : > { %v12823_v6 = vld [vmem:[%s13682_s27 + $0xf6c] sm:$0xf0] }
 0x412   : > { %v9400_v8 = vld [vmem:[%s13682_s27 + $0x910] sm:$0xf]  ;;  %v10201_v16 = vor.u32 %v12823_v6, %v10200_v5  ;;  %7347 = vmatpush.bf16.msrb.mxu2 %v9945_v11  ;;  %v7083_v6 = vpop.f32.mrf.mxu1 }
 0x413   : > { %v12623_v12 = vld [vmem:[%s13682_s27 + $0x92c] sm:$0xf0] }
 0x414   : > { %v9656_v13 = vld [vmem:[%s13682_s27 + $0xb10] sm:$0xf]  ;;  %v9401_v25 = vor.u32 %v12623_v12, %v9400_v8  ;;  %7360 = vmatpush.bf16.msrb.mxu3 %v10201_v16 }
 0x415   : > { %v12687_v17 = vld [vmem:[%s13682_s27 + $0xb2c] sm:$0xf0] }
 0x416   : > { %v9912_v19 = vld [vmem:[%s13682_s27 + $0xd10] sm:$0xf]  ;;  %v9657_v51 = vor.u32 %v12687_v17, %v9656_v13  ;;  %7322 = vmatpush.bf16.msrb.mxu0 %v9401_v25  ;;  %v7096_v25 = vpop.f32.mrf.mxu2 }
 0x417   : > { %v12751_v52 = vld [vmem:[%s13682_s27 + $0xd2c] sm:$0xf0] }
 0x418   : > { %v10168_v23 = vld [vmem:[%s13682_s27 + $0xf10] sm:$0xf]  ;;  %v9913_v45 = vor.u32 %v12751_v52, %v9912_v19  ;;  %7335 = vmatpush.bf16.msrb.mxu1 %v9657_v51 }
 0x419   : > { %v12815_v24 = vld [vmem:[%s13682_s27 + $0xf2c] sm:$0xf0] }
 0x41a   : > { %v9368_v27 = vld [vmem:[%s13682_s27 + $0x8d0] sm:$0xf]  ;;  %v10169_v53 = vor.u32 %v12815_v24, %v10168_v23  ;;  %7348 = vmatpush.bf16.msrb.mxu2 %v9913_v45 }
 0x41b   : > { %v12615_v47 = vld [vmem:[%s13682_s27 + $0x8ec] sm:$0xf0] }
 0x41c   : > { %v9624_v54 = vld [vmem:[%s13682_s27 + $0xad0] sm:$0xf]  ;;  %v9369_v36 = vor.u32 %v12615_v47, %v9368_v27  ;;  %7361 = vmatpush.bf16.msrb.mxu3 %v10169_v53  ;;  %v7109_v47 = vpop.f32.mrf.mxu3 }
 0x41d   : > { %v12679_v18 = vld [vmem:[%s13682_s27 + $0xaec] sm:$0xf0] }
 0x41e   : > { %v9880_v56 = vld [vmem:[%s13682_s27 + $0xcd0] sm:$0xf]  ;;  %v9625_v37 = vor.u32 %v12679_v18, %v9624_v54  ;;  %7323 = vmatpush.bf16.msrb.mxu0 %v9369_v36 }
 0x41f   : > { %v12743_v60 = vld [vmem:[%s13682_s27 + $0xcec] sm:$0xf0] }
 0x420   : > { %v10136_v31 = vld [vmem:[%s13682_s27 + $0xed0] sm:$0xf]  ;;  %v9881_v39 = vor.u32 %v12743_v60, %v9880_v56  ;;  %7336 = vmatpush.bf16.msrb.mxu1 %v9625_v37 }
 0x421   : > { %v12807_v34 = vld [vmem:[%s13682_s27 + $0xeec] sm:$0xf0] }
 0x422   : > { %v9336_v40 = vld [vmem:[%s13682_s27 + $0x890] sm:$0xf]  ;;  %v10137_v44 = vor.u32 %v12807_v34, %v10136_v31  ;;  %7349 = vmatpush.bf16.msrb.mxu2 %v9881_v39 }
 0x423   : > { %v12607_v41 = vld [vmem:[%s13682_s27 + $0x8ac] sm:$0xf0] }
 0x424   : > { %v9592_v42 = vld [vmem:[%s13682_s27 + $0xa90] sm:$0xf]  ;;  %v9337_v61 = vor.u32 %v12607_v41, %v9336_v40  ;;  %7362 = vmatpush.bf16.msrb.mxu3 %v10137_v44 }
 0x425   : > { %v12671_v46 = vld [vmem:[%s13682_s27 + $0xaac] sm:$0xf0] }
 0x426   : > { %v9848_v49 = vld [vmem:[%s13682_s27 + $0xc90] sm:$0xf]  ;;  %v9593_v1 = vor.u32 %v12671_v46, %v9592_v42  ;;  %7324 = vmatpush.bf16.msrb.mxu0 %v9337_v61 }
 0x427   : > { %v12735_v50 = vld [vmem:[%s13682_s27 + $0xcac] sm:$0xf0] }
 0x428   : > { %v10104_v58 = vld [vmem:[%s13682_s27 + $0xe90] sm:$0xf]  ;;  %v9849_v2 = vor.u32 %v12735_v50, %v9848_v49  ;;  %7337 = vmatpush.bf16.msrb.mxu1 %v9593_v1 }
 0x429   : > { %v12799_v59 = vld [vmem:[%s13682_s27 + $0xeac] sm:$0xf0] }
 0x42a   : > { %v9304_v3 = vld [vmem:[%s13682_s27 + $0x850] sm:$0xf]  ;;  %v10105_v7 = vor.u32 %v12799_v59, %v10104_v58  ;;  %7350 = vmatpush.bf16.msrb.mxu2 %v9849_v2 }
 0x42b   : > { %v12599_v4 = vld [vmem:[%s13682_s27 + $0x86c] sm:$0xf0] }
 0x42c   : > { %v9560_v5 = vld [vmem:[%s13682_s27 + $0xa50] sm:$0xf]  ;;  %v9305_v14 = vor.u32 %v12599_v4, %v9304_v3  ;;  %7363 = vmatpush.bf16.msrb.mxu3 %v10105_v7 }
 0x42d   : > { %v12663_v8 = vld [vmem:[%s13682_s27 + $0xa6c] sm:$0xf0] }
 0x42e   : > { %v9816_v10 = vld [vmem:[%s13682_s27 + $0xc50] sm:$0xf]  ;;  %v9561_v17 = vor.u32 %v12663_v8, %v9560_v5  ;;  %7325 = vmatpush.bf16.msrb.mxu0 %v9305_v14 }
 0x42f   : > { %v12727_v11 = vld [vmem:[%s13682_s27 + $0xc6c] sm:$0xf0] }
 0x430   : > { %v10072_v12 = vld [vmem:[%s13682_s27 + $0xe50] sm:$0xf]  ;;  %v9817_v19 = vor.u32 %v12727_v11, %v9816_v10  ;;  %7338 = vmatpush.bf16.msrb.mxu1 %v9561_v17 }
 0x431   : > { %v12791_v13 = vld [vmem:[%s13682_s27 + $0xe6c] sm:$0xf0] }
 0x432   : > { %v9272_v15 = vld [vmem:[%s13682_s27 + $0x810] sm:$0xf]  ;;  %v10073_v48 = vor.u32 %v12791_v13, %v10072_v12  ;;  %7351 = vmatpush.bf16.msrb.mxu2 %v9817_v19 }
 0x433   : > { %v12591_v16 = vld [vmem:[%s13682_s27 + $0x82c] sm:$0xf0] }
 0x434   : > { %v9528_v52 = vld [vmem:[%s13682_s27 + $0xa10] sm:$0xf]  ;;  %v9273_v53 = vor.u32 %v12591_v16, %v9272_v15  ;;  %7364 = vmatpush.bf16.msrb.mxu3 %v10073_v48 }
 0x435   : > { %v12655_v23 = vld [vmem:[%s13682_s27 + $0xa2c] sm:$0xf0] }
 0x436   : > { %v9784_v24 = vld [vmem:[%s13682_s27 + $0xc10] sm:$0xf]  ;;  %v9529_v31 = vor.u32 %v12655_v23, %v9528_v52  ;;  %7326 = vmatpush.bf16.msrb.mxu0 %v9273_v53 }
 0x437   : > { %v12719_v51 = vld [vmem:[%s13682_s27 + $0xc2c] sm:$0xf0] }
 0x438   : > { %v10040_v45 = vld [vmem:[%s13682_s27 + $0xe10] sm:$0xf]  ;;  %v9785_v34 = vor.u32 %v12719_v51, %v9784_v24  ;;  %7339 = vmatpush.bf16.msrb.mxu1 %v9529_v31  ;;  %v14981_v51 = vpop.f32.mrf.mxu0 }
 0x439   : > { %v12783_v27 = vld [vmem:[%s13682_s27 + $0xe2c] sm:$0xf0]  ;;  %7327 = vmatmul.bf16.vlgmr.msrb.gmra.mxu0 %v13856_v32 }
 0x43a   : > { %v10520_v54 = vld [vmem:[%s13682_s27 + $0x11d0] sm:$0xf]  ;;  %v10041_v37 = vor.u32 %v12783_v27, %v10040_v45  ;;  %7352 = vmatpush.bf16.msrb.mxu2 %v9785_v34 }
 0x43b   : > { %v12903_v28 = vld [vmem:[%s13682_s27 + $0x11ec] sm:$0xf0]  ;;  %7340 = vmatmul.bf16.vlgmr.msrb.gmra.mxu1 %v13862_v38 }
 0x43c   : > { %v10776_v30 = vld [vmem:[%s13682_s27 + $0x13d0] sm:$0xf]  ;;  %v10521_v39 = vor.u32 %v12903_v28, %v10520_v54  ;;  %7365 = vmatpush.bf16.msrb.mxu3 %v10041_v37 }
 0x43d   : > { %v12967_v18 = vld [vmem:[%s13682_s27 + $0x13ec] sm:$0xf0]  ;;  %7353 = vmatmul.bf16.vlgmr.msrb.gmra.mxu2 %v13853_v29 }
 0x43e   : > { %v11032_v56 = vld [vmem:[%s13682_s27 + $0x15d0] sm:$0xf]  ;;  %v10777_v40 = vor.u32 %v12967_v18, %v10776_v30  ;;  %7371 = vmatpush.bf16.msra.mxu0 %v10521_v39  ;;  %v14986_v30 = vpop.f32.mrf.mxu1 }
 0x43f   : > { %v13031_v60 = vld [vmem:[%s13682_s27 + $0x15ec] sm:$0xf0]  ;;  %7366 = vmatmul.bf16.vlgmr.msrb.gmra.mxu3 %v13858_v33 }
 0x440   : > { %v11288_v35 = vld [vmem:[%s13682_s27 + $0x17d0] sm:$0xf]  ;;  %v11033_v41 = vor.u32 %v13031_v60, %v11032_v56  ;;  %7384 = vmatpush.bf16.msra.mxu1 %v10777_v40 }
 0x441   : > { %v13095_v36 = vld [vmem:[%s13682_s27 + $0x17ec] sm:$0xf0] }
 0x442   : > { %v10488_v42 = vld [vmem:[%s13682_s27 + $0x1190] sm:$0xf]  ;;  %v11289_v46 = vor.u32 %v13095_v36, %v11288_v35  ;;  %7397 = vmatpush.bf16.msra.mxu2 %v11033_v41 }
 0x443   : > { %v12895_v43 = vld [vmem:[%s13682_s27 + $0x11ac] sm:$0xf0] }
 0x444   : > { %v10744_v44 = vld [vmem:[%s13682_s27 + $0x1390] sm:$0xf]  ;;  %v10489_v59 = vor.u32 %v12895_v43, %v10488_v42  ;;  %7410 = vmatpush.bf16.msra.mxu3 %v11289_v46  ;;  %v14996_v42 = vpop.f32.mrf.mxu2 }
 0x445   : > { %v12959_v49 = vld [vmem:[%s13682_s27 + $0x13ac] sm:$0xf0] }
 0x446   : > { %v11000_v50 = vld [vmem:[%s13682_s27 + $0x1590] sm:$0xf]  ;;  %v10745_v61 = vor.u32 %v12959_v49, %v10744_v44  ;;  %7372 = vmatpush.bf16.msra.mxu0 %v10489_v59  ;;  %v7122_v59 = vpop.f32.mrf.mxu0 }
 0x447   : > { %v13023_v55 = vld [vmem:[%s13682_s27 + $0x15ac] sm:$0xf0] }
 0x448   : > { %v11256_v57 = vld [vmem:[%s13682_s27 + $0x1790] sm:$0xf]  ;;  %v11001_v0 = vor.u32 %v13023_v55, %v11000_v50  ;;  %7385 = vmatpush.bf16.msra.mxu1 %v10745_v61  ;;  %v15001_v50 = vpop.f32.mrf.mxu3 }
 0x449   : > { %v13087_v58 = vld [vmem:[%s13682_s27 + $0x17ac] sm:$0xf0] }
 0x44a   : > { %v10456_v1 = vld [vmem:[%s13682_s27 + $0x1150] sm:$0xf]  ;;  %v11257_v4 = vor.u32 %v13087_v58, %v11256_v57  ;;  %7398 = vmatpush.bf16.msra.mxu2 %v11001_v0 }
 0x44b   : > { %v12887_v2 = vld [vmem:[%s13682_s27 + $0x116c] sm:$0xf0] }
 0x44c   : > { %v10712_v3 = vld [vmem:[%s13682_s27 + $0x1350] sm:$0xf]  ;;  %v10457_v11 = vor.u32 %v12887_v2, %v10456_v1  ;;  %7411 = vmatpush.bf16.msra.mxu3 %v11257_v4  ;;  %v7135_v4 = vpop.f32.mrf.mxu1 }
 0x44d   : > { %v12951_v5 = vld [vmem:[%s13682_s27 + $0x136c] sm:$0xf0] }
 0x44e   : > { %v10968_v6 = vld [vmem:[%s13682_s27 + $0x1550] sm:$0xf]  ;;  %v10713_v12 = vor.u32 %v12951_v5, %v10712_v3  ;;  %7373 = vmatpush.bf16.msra.mxu0 %v10457_v11 }
 0x44f   : > { %v13015_v7 = vld [vmem:[%s13682_s27 + $0x156c] sm:$0xf0] }
 0x450   : > { %v11224_v8 = vld [vmem:[%s13682_s27 + $0x1750] sm:$0xf]  ;;  %v10969_v13 = vor.u32 %v13015_v7, %v10968_v6  ;;  %7386 = vmatpush.bf16.msra.mxu1 %v10713_v12 }
 0x451   : > { %v13079_v10 = vld [vmem:[%s13682_s27 + $0x176c] sm:$0xf0] }
 0x452   : > { %v10424_v14 = vld [vmem:[%s13682_s27 + $0x1110] sm:$0xf]  ;;  %v11225_v17 = vor.u32 %v13079_v10, %v11224_v8  ;;  %7399 = vmatpush.bf16.msra.mxu2 %v10969_v13 }
 0x453   : > { %v12879_v15 = vld [vmem:[%s13682_s27 + $0x112c] sm:$0xf0] }
 0x454   : > { %v10680_v16 = vld [vmem:[%s13682_s27 + $0x1310] sm:$0xf]  ;;  %v10425_v48 = vor.u32 %v12879_v15, %v10424_v14  ;;  %7412 = vmatpush.bf16.msra.mxu3 %v11225_v17 }
 0x455   : > { %v12943_v19 = vld [vmem:[%s13682_s27 + $0x132c] sm:$0xf0] }
 0x456   : > { %v10936_v52 = vld [vmem:[%s13682_s27 + $0x1510] sm:$0xf]  ;;  %v10681_v45 = vor.u32 %v12943_v19, %v10680_v16  ;;  %7374 = vmatpush.bf16.msra.mxu0 %v10425_v48 }
 0x457   : > { %v13007_v23 = vld [vmem:[%s13682_s27 + $0x152c] sm:$0xf0] }
 0x458   : > { %v11192_v24 = vld [vmem:[%s13682_s27 + $0x1710] sm:$0xf]  ;;  %v10937_v27 = vor.u32 %v13007_v23, %v10936_v52  ;;  %7387 = vmatpush.bf16.msra.mxu1 %v10681_v45  ;;  %v7148_v23 = vpop.f32.mrf.mxu2 }
 0x459   : > { %v13071_v25 = vld [vmem:[%s13682_s27 + $0x172c] sm:$0xf0] }
 0x45a   : > { %v10392_v47 = vld [vmem:[%s13682_s27 + $0x10d0] sm:$0xf]  ;;  %v11193_v53 = vor.u32 %v13071_v25, %v11192_v24  ;;  %7400 = vmatpush.bf16.msra.mxu2 %v10937_v27  ;;  %v7161_v27 = vpop.f32.mrf.mxu3 }
 0x45b   : > { %v12871_v54 = vld [vmem:[%s13682_s27 + $0x10ec] sm:$0xf0] }
 0x45c   : > { %v10648_v28 = vld [vmem:[%s13682_s27 + $0x12d0] sm:$0xf]  ;;  %v10393_v35 = vor.u32 %v12871_v54, %v10392_v47  ;;  %7413 = vmatpush.bf16.msra.mxu3 %v11193_v53 }
 0x45d   : > { %v12935_v18 = vld [vmem:[%s13682_s27 + $0x12ec] sm:$0xf0] }
 0x45e   : > { %v10904_v56 = vld [vmem:[%s13682_s27 + $0x14d0] sm:$0xf]  ;;  %v10649_v36 = vor.u32 %v12935_v18, %v10648_v28  ;;  %7375 = vmatpush.bf16.msra.mxu0 %v10393_v35 }
 0x45f   : > { %v12999_v60 = vld [vmem:[%s13682_s27 + $0x14ec] sm:$0xf0] }
 0x460   : > { %v11160_v31 = vld [vmem:[%s13682_s27 + $0x16d0] sm:$0xf]  ;;  %v10905_v37 = vor.u32 %v12999_v60, %v10904_v56  ;;  %7388 = vmatpush.bf16.msra.mxu1 %v10649_v36 }
 0x461   : > { %v13063_v34 = vld [vmem:[%s13682_s27 + $0x16ec] sm:$0xf0] }
 0x462   : > { %v10360_v39 = vld [vmem:[%s13682_s27 + $0x1090] sm:$0xf]  ;;  %v11161_v43 = vor.u32 %v13063_v34, %v11160_v31  ;;  %7401 = vmatpush.bf16.msra.mxu2 %v10905_v37 }
 0x463   : > { %v12863_v40 = vld [vmem:[%s13682_s27 + $0x10ac] sm:$0xf0] }
 0x464   : > { %v10616_v41 = vld [vmem:[%s13682_s27 + $0x1290] sm:$0xf]  ;;  %v10361_v58 = vor.u32 %v12863_v40, %v10360_v39  ;;  %7414 = vmatpush.bf16.msra.mxu3 %v11161_v43 }
 0x465   : > { %v12927_v44 = vld [vmem:[%s13682_s27 + $0x12ac] sm:$0xf0] }
 0x466   : > { %v10872_v46 = vld [vmem:[%s13682_s27 + $0x1490] sm:$0xf]  ;;  %v10617_v61 = vor.u32 %v12927_v44, %v10616_v41  ;;  %7376 = vmatpush.bf16.msra.mxu0 %v10361_v58 }
 0x467   : > { %v12991_v49 = vld [vmem:[%s13682_s27 + $0x14ac] sm:$0xf0] }
 0x468   : > { %v11128_v55 = vld [vmem:[%s13682_s27 + $0x1690] sm:$0xf]  ;;  %v10873_v0 = vor.u32 %v12991_v49, %v10872_v46  ;;  %7389 = vmatpush.bf16.msra.mxu1 %v10617_v61 }
 0x469   : > { %v13055_v57 = vld [vmem:[%s13682_s27 + $0x16ac] sm:$0xf0] }
 0x46a   : > { %v10328_v1 = vld [vmem:[%s13682_s27 + $0x1050] sm:$0xf]  ;;  %v11129_v5 = vor.u32 %v13055_v57, %v11128_v55  ;;  %7402 = vmatpush.bf16.msra.mxu2 %v10873_v0 }
 0x46b   : > { %v12855_v2 = vld [vmem:[%s13682_s27 + $0x106c] sm:$0xf0] }
 0x46c   : > { %v10584_v3 = vld [vmem:[%s13682_s27 + $0x1250] sm:$0xf]  ;;  %v10329_v12 = vor.u32 %v12855_v2, %v10328_v1  ;;  %7415 = vmatpush.bf16.msra.mxu3 %v11129_v5 }
 0x46d   : > { %v12919_v6 = vld [vmem:[%s13682_s27 + $0x126c] sm:$0xf0] }
 0x46e   : > { %v10840_v7 = vld [vmem:[%s13682_s27 + $0x1450] sm:$0xf]  ;;  %v10585_v15 = vor.u32 %v12919_v6, %v10584_v3  ;;  %7377 = vmatpush.bf16.msra.mxu0 %v10329_v12  ;;  %v13427_v6 = vld [vmem:[#allocation1] sm:$0xff] }
 0x46f   : > { %v12983_v8 = vld [vmem:[%s13682_s27 + $0x146c] sm:$0xf0] }
 0x470   : > { %v11096_v10 = vld [vmem:[%s13682_s27 + $0x1650] sm:$0xf]  ;;  %v10841_v16 = vor.u32 %v12983_v8, %v10840_v7  ;;  %7390 = vmatpush.bf16.msra.mxu1 %v10585_v15 }
 0x471   : > { %v13047_v11 = vld [vmem:[%s13682_s27 + $0x166c] sm:$0xf0] }
 0x472   : > { %v10296_v13 = vld [vmem:[%s13682_s27 + $0x1010] sm:$0xf]  ;;  %v11097_v24 = vor.u32 %v13047_v11, %v11096_v10  ;;  %7403 = vmatpush.bf16.msra.mxu2 %v10841_v16 }
 0x473   : > { %v12847_v14 = vld [vmem:[%s13682_s27 + $0x102c] sm:$0xf0] }
 0x474   : > { %v10552_v17 = vld [vmem:[%s13682_s27 + $0x1210] sm:$0xf]  ;;  %v10297_v53 = vor.u32 %v12847_v14, %v10296_v13  ;;  %7416 = vmatpush.bf16.msra.mxu3 %v11097_v24  ;;  %v13429_v13 = vld [vmem:[#allocation1 + $0x9] sm:$0xff] }
 0x475   : > { %v12911_v19 = vld [vmem:[%s13682_s27 + $0x122c] sm:$0xf0] }
 0x476   : > { %v10808_v52 = vld [vmem:[%s13682_s27 + $0x1410] sm:$0xf]  ;;  %v10553_v31 = vor.u32 %v12911_v19, %v10552_v17  ;;  %7378 = vmatpush.bf16.msra.mxu0 %v10297_v53 }
 0x477   : > { %v12975_v25 = vld [vmem:[%s13682_s27 + $0x142c] sm:$0xf0] }
 0x478   : > { %v11064_v48 = vld [vmem:[%s13682_s27 + $0x1610] sm:$0xf]  ;;  %v10809_v34 = vor.u32 %v12975_v25, %v10808_v52  ;;  %7391 = vmatpush.bf16.msra.mxu1 %v10553_v31 }
 0x479   : > { %v13039_v45 = vld [vmem:[%s13682_s27 + $0x162c] sm:$0xf0]  ;;  %7379 = vmatmul.bf16.vlgmr.msra.gmra.mxu0 %v13427_v6 }
 0x47a   : > { %v11544_v47 = vld [vmem:[%s13682_s27 + $0x19d0] sm:$0xf]  ;;  %v11065_v37 = vor.u32 %v13039_v45, %v11064_v48  ;;  %7404 = vmatpush.bf16.msra.mxu2 %v10809_v34 }
 0x47b   : > { %v13159_v54 = vld [vmem:[%s13682_s27 + $0x19ec] sm:$0xf0]  ;;  %7392 = vmatmul.bf16.vlgmr.msra.gmra.mxu1 %v13429_v13 }
 0x47c   : > { %v11800_v28 = vld [vmem:[%s13682_s27 + $0x1bd0] sm:$0xf]  ;;  %v11545_v39 = vor.u32 %v13159_v54, %v11544_v47  ;;  %7417 = vmatpush.bf16.msra.mxu3 %v11065_v37  ;;  %v15051_v54 = vpop.f32.mrf.mxu0 }
 0x47d   : > { %v13223_v18 = vld [vmem:[%s13682_s27 + $0x1bec] sm:$0xf0] }
 0x47e   : > { %v12056_v56 = vld [vmem:[%s13682_s27 + $0x1dd0] sm:$0xf]  ;;  %v11801_v40 = vor.u32 %v13223_v18, %v11800_v28  ;;  %7423 = vmatpush.bf16.msrb.mxu0 %v11545_v39 }
 0x47f   : > { %v13287_v60 = vld [vmem:[%s13682_s27 + $0x1dec] sm:$0xf0] }
 0x480   : > { %v12312_v35 = vld [vmem:[%s13682_s27 + $0x1fd0] sm:$0xf]  ;;  %v12057_v41 = vor.u32 %v13287_v60, %v12056_v56  ;;  %7436 = vmatpush.bf16.msrb.mxu1 %v11801_v40  ;;  %v15055_v56 = vpop.f32.mrf.mxu1 }
 0x481   : > { %v13351_v36 = vld [vmem:[%s13682_s27 + $0x1fec] sm:$0xf0] }
 0x482   : > { %v11512_v43 = vld [vmem:[%s13682_s27 + $0x1990] sm:$0xf]  ;;  %v12313_v49 = vor.u32 %v13351_v36, %v12312_v35  ;;  %7449 = vmatpush.bf16.msrb.mxu2 %v12057_v41 }
 0x483   : > { %v13151_v44 = vld [vmem:[%s13682_s27 + $0x19ac] sm:$0xf0] }
 0x484   : > { %v11768_v46 = vld [vmem:[%s13682_s27 + $0x1b90] sm:$0xf]  ;;  %v11513_v0 = vor.u32 %v13151_v44, %v11512_v43  ;;  %7462 = vmatpush.bf16.msrb.mxu3 %v12313_v49  ;;  %v7121_v49 = vadd.f32 %v14981_v51, %v14927_v62  ;;  %v7174_v6 = vpop.f32.mrf.mxu0 }
 0x485   : > { %v13215_v55 = vld [vmem:[%s13682_s27 + $0x1bac] sm:$0xf0] }
 0x486   : > { %v12024_v57 = vld [vmem:[%s13682_s27 + $0x1d90] sm:$0xf]  ;;  %v11769_v1 = vor.u32 %v13215_v55, %v11768_v46  ;;  %7424 = vmatpush.bf16.msrb.mxu0 %v11513_v0 }
 0x487   : > { %v13279_v58 = vld [vmem:[%s13682_s27 + $0x1dac] sm:$0xf0] }
 0x488   : > { %v12280_v59 = vld [vmem:[%s13682_s27 + $0x1f90] sm:$0xf]  ;;  %v12025_v2 = vor.u32 %v13279_v58, %v12024_v57  ;;  %7437 = vmatpush.bf16.msrb.mxu1 %v11769_v1  ;;  %v15070_v1 = vpop.f32.mrf.mxu2 }
 0x489   : > { %v13343_v61 = vld [vmem:[%s13682_s27 + $0x1fac] sm:$0xf0] }
 0x48a   : > { %v11480_v3 = vld [vmem:[%s13682_s27 + $0x1950] sm:$0xf]  ;;  %v12281_v7 = vor.u32 %v13343_v61, %v12280_v59  ;;  %7450 = vmatpush.bf16.msrb.mxu2 %v12025_v2 }
 0x48b   : > { %v13143_v4 = vld [vmem:[%s13682_s27 + $0x196c] sm:$0xf0] }
 0x48c   : > { %v11736_v5 = vld [vmem:[%s13682_s27 + $0x1b50] sm:$0xf]  ;;  %v11481_v17 = vor.u32 %v13143_v4, %v11480_v3  ;;  %7463 = vmatpush.bf16.msrb.mxu3 %v12281_v7 }
 0x48d   : > { %v13207_v8 = vld [vmem:[%s13682_s27 + $0x1b6c] sm:$0xf0] }
 0x48e   : > { %v11992_v10 = vld [vmem:[%s13682_s27 + $0x1d50] sm:$0xf]  ;;  %v11737_v19 = vor.u32 %v13207_v8, %v11736_v5  ;;  %7425 = vmatpush.bf16.msrb.mxu0 %v11481_v17  ;;  %v15075_v5 = vpop.f32.mrf.mxu3  ;;  %v7187_v8 = vpop.f32.mrf.mxu1 }
 0x48f   : > { %v13271_v11 = vld [vmem:[%s13682_s27 + $0x1d6c] sm:$0xf0]  ;;  %v12507_v8 = vld [vmem:[%s13682_s27 + $0x594] sm:$0xf] }
 0x490   : > { %v13428_v12 = vld [vmem:[#allocation1 + $0x12] sm:$0xff]  ;;  %v13430_v16 = vld [vmem:[#allocation1 + $0x1b] sm:$0xff]  ;;  %v11993_v52 = vor.u32 %v13271_v11, %v11992_v10  ;;  %7438 = vmatpush.bf16.msrb.mxu1 %v11737_v19  ;;  %v7134_v10 = vadd.f32 %v14986_v30, %v7121_v49 }
 0x491   : > { %7405 = vmatmul.bf16.vlgmr.msra.gmra.mxu2 %v13428_v12  ;;  %v12248_v14 = vld [vmem:[%s13682_s27 + $0x1f50] sm:$0xf]  ;;  %7418 = vmatmul.bf16.vlgmr.msra.gmra.mxu3 %v13430_v16 }
 0x492   : > { %v13335_v15 = vld [vmem:[%s13682_s27 + $0x1f6c] sm:$0xf0]  ;;  %7451 = vmatpush.bf16.msrb.mxu2 %v11993_v52 }
 0x493   : > { %v11448_v23 = vld [vmem:[%s13682_s27 + $0x1910] sm:$0xf]  ;;  %v12249_v48 = vor.u32 %v13335_v15, %v12248_v14 }
 0x494   : > { %v13135_v24 = vld [vmem:[%s13682_s27 + $0x192c] sm:$0xf0] }
 0x495   : > { %v11704_v25 = vld [vmem:[%s13682_s27 + $0x1b10] sm:$0xf]  ;;  %v11449_v18 = vor.u32 %v13135_v24, %v11448_v23  ;;  %7464 = vmatpush.bf16.msrb.mxu3 %v12249_v48 }
 0x496   : > { %v13199_v45 = vld [vmem:[%s13682_s27 + $0x1b2c] sm:$0xf0] }
 0x497   : > { %v11960_v27 = vld [vmem:[%s13682_s27 + $0x1d10] sm:$0xf]  ;;  %v11705_v60 = vor.u32 %v13199_v45, %v11704_v25  ;;  %7426 = vmatpush.bf16.msrb.mxu0 %v11449_v18  ;;  %v7147_v45 = vadd.f32 %v14996_v42, %v7134_v10  ;;  %v12387_v42 = vld [vmem:[%s13682_s27 + $0x1d4] sm:$0xf] }
 0x498   : > { %v13263_v47 = vld [vmem:[%s13682_s27 + $0x1d2c] sm:$0xf0]  ;;  %v8954_v10 = vld [vmem:[%s13682_s27 + $0x5b0] sm:$0xf0] }
 0x499   : > { %v12216_v28 = vld [vmem:[%s13682_s27 + $0x1f10] sm:$0xf]  ;;  %v11961_v31 = vor.u32 %v13263_v47, %v11960_v27  ;;  %7439 = vmatpush.bf16.msrb.mxu1 %v11705_v60  ;;  %v7160_v49 = vadd.f32 %v15001_v50, %v7147_v45  ;;  %v8442_v50 = vld [vmem:[%s13682_s27 + $0x1b0] sm:$0xf0]  ;;  %v13433_v45 = vld [vmem:[#allocation1 + $0x2d] sm:$0xff] }
 0x49a   : > { %v13327_v53 = vld [vmem:[%s13682_s27 + $0x1f2c] sm:$0xf0] }
 0x49b   : > { %v11416_v34 = vld [vmem:[%s13682_s27 + $0x18d0] sm:$0xf]  ;;  %v12217_v37 = vor.u32 %v13327_v53, %v12216_v28  ;;  %7452 = vmatpush.bf16.msrb.mxu2 %v11961_v31 }
 0x49c   : > { %v13127_v35 = vld [vmem:[%s13682_s27 + $0x18ec] sm:$0xf0] }
 0x49d   : > { %v11672_v36 = vld [vmem:[%s13682_s27 + $0x1ad0] sm:$0xf]  ;;  %v11417_v46 = vor.u32 %v13127_v35, %v11416_v34  ;;  %7465 = vmatpush.bf16.msrb.mxu3 %v12217_v37  ;;  %v8474_v37 = vld [vmem:[%s13682_s27 + $0x1f0] sm:$0xf0] }
 0x49e   : > { %v13191_v39 = vld [vmem:[%s13682_s27 + $0x1aec] sm:$0xf0] }
 0x49f   : > { %v11928_v40 = vld [vmem:[%s13682_s27 + $0x1cd0] sm:$0xf]  ;;  %v11673_v55 = vor.u32 %v13191_v39, %v11672_v36  ;;  %7427 = vmatpush.bf16.msrb.mxu0 %v11417_v46  ;;  %v7200_v36 = vpop.f32.mrf.mxu2  ;;  %v12451_v39 = vld [vmem:[%s13682_s27 + $0x3d4] sm:$0xf] }
 0x4a0   : > { %v13255_v41 = vld [vmem:[%s13682_s27 + $0x1cec] sm:$0xf0]  ;;  %v8986_v46 = vld [vmem:[%s13682_s27 + $0x5f0] sm:$0xf0] }
 0x4a1   : > { %v12184_v43 = vld [vmem:[%s13682_s27 + $0x1ed0] sm:$0xf]  ;;  %v11929_v57 = vor.u32 %v13255_v41, %v11928_v40  ;;  %7440 = vmatpush.bf16.msrb.mxu1 %v11673_v55  ;;  %v7213_v40 = vpop.f32.mrf.mxu3  ;;  %v8634_v36 = vld [vmem:[%s13682_s27 + $0x330] sm:$0xf0] }
 0x4a2   : > { %v13319_v44 = vld [vmem:[%s13682_s27 + $0x1eec] sm:$0xf0]  ;;  %v7224_v40 = vpop.f32.mrf.mxu0 }
 0x4a3   : > { %v11384_v58 = vld [vmem:[%s13682_s27 + $0x1890] sm:$0xf]  ;;  %v12185_v0 = vor.u32 %v13319_v44, %v12184_v43  ;;  %7453 = vmatpush.bf16.msrb.mxu2 %v11929_v57  ;;  %v8730_v43 = vld [vmem:[%s13682_s27 + $0x3f0] sm:$0xf0] }
 0x4a4   : > { %v13119_v59 = vld [vmem:[%s13682_s27 + $0x18ac] sm:$0xf0]  ;;  %v12515_v44 = vld [vmem:[%s13682_s27 + $0x5d4] sm:$0xf] }
 0x4a5   : > { %v11640_v61 = vld [vmem:[%s13682_s27 + $0x1a90] sm:$0xf]  ;;  %v11385_v7 = vor.u32 %v13119_v59, %v11384_v58  ;;  %7466 = vmatpush.bf16.msrb.mxu3 %v12185_v0  ;;  %v12579_v58 = vld [vmem:[%s13682_s27 + $0x7d4] sm:$0xf]  ;;  %v8477_v0 = vor.u32 %v12387_v42, %v8474_v37 }
 0x4a6   : > { %v13183_v2 = vld [vmem:[%s13682_s27 + $0x1aac] sm:$0xf0]  ;;  %v9242_v59 = vld [vmem:[%s13682_s27 + $0x7f0] sm:$0xf0] }
 0x4a7   : > { %v11896_v3 = vld [vmem:[%s13682_s27 + $0x1c90] sm:$0xf]  ;;  %v11641_v11 = vor.u32 %v13183_v2, %v11640_v61  ;;  %7428 = vmatpush.bf16.msrb.mxu0 %v11385_v7  ;;  %v7173_v2 = vadd.f32 %v15051_v54, %v7160_v49  ;;  %v9245_v6 = vor.u32 %v12579_v58, %v9242_v59  ;;  %v8698_v7 = vld [vmem:[%s13682_s27 + $0x3b0] sm:$0xf0] }
 0x4a8   : > { %v13247_v4 = vld [vmem:[%s13682_s27 + $0x1cac] sm:$0xf0]  ;;  %v12491_v42 = vld [vmem:[%s13682_s27 + $0x514] sm:$0xf] }
 0x4a9   : > { %v12152_v62 = vld [vmem:[%s13682_s27 + $0x1e90] sm:$0xf]  ;;  %v11897_v12 = vor.u32 %v13247_v4, %v11896_v3  ;;  %7441 = vmatpush.bf16.msrb.mxu1 %v11641_v11  ;;  %v8733_v3 = vor.u32 %v12451_v39, %v8730_v43  ;;  %v8989_v4 = vor.u32 %v12515_v44, %v8986_v46  ;;  %v12571_v11 = vld [vmem:[%s13682_s27 + $0x794] sm:$0xf]  ;;  %v7237_v46 = vpop.f32.mrf.mxu1 }
 0x4aa   : > { %v13311_v51 = vld [vmem:[%s13682_s27 + $0x1eac] sm:$0xf0]  ;;  %v8890_v37 = vld [vmem:[%s13682_s27 + $0x530] sm:$0xf0] }
 0x4ab   : > { %v11352_v13 = vld [vmem:[%s13682_s27 + $0x1850] sm:$0xf]  ;;  %v12153_v16 = vor.u32 %v13311_v51, %v12152_v62  ;;  %7454 = vmatpush.bf16.msrb.mxu2 %v11897_v12  ;;  %v12379_v62 = vld [vmem:[%s13682_s27 + $0x194] sm:$0xf] }
 0x4ac   : > { %v13111_v14 = vld [vmem:[%s13682_s27 + $0x186c] sm:$0xf0]  ;;  %v12443_v51 = vld [vmem:[%s13682_s27 + $0x394] sm:$0xf]  ;;  %v8445_v54 = vor.u32 %v12379_v62, %v8442_v50 }
 0x4ad   : > { %v11608_v15 = vld [vmem:[%s13682_s27 + $0x1a50] sm:$0xf]  ;;  %v11353_v24 = vor.u32 %v13111_v14, %v11352_v13  ;;  %7467 = vmatpush.bf16.msrb.mxu3 %v12153_v16  ;;  %v9210_v12 = vld [vmem:[%s13682_s27 + $0x7b0] sm:$0xf0]  ;;  %v7186_v13 = vadd.f32 %v15055_v56, %v7173_v2  ;;  %v8701_v14 = vor.u32 %v12443_v51, %v8698_v7 }
 0x4ae   : > { %v13175_v17 = vld [vmem:[%s13682_s27 + $0x1a6c] sm:$0xf0]  ;;  %v12371_v16 = vld [vmem:[%s13682_s27 + $0x154] sm:$0xf] }
 0x4af   : > { %v11864_v19 = vld [vmem:[%s13682_s27 + $0x1c50] sm:$0xf]  ;;  %v11609_v27 = vor.u32 %v13175_v17, %v11608_v15  ;;  %7429 = vmatpush.bf16.msrb.mxu0 %v11353_v24  ;;  %v8957_v15 = vor.u32 %v12507_v8, %v8954_v10  ;;  %v8410_v17 = vld [vmem:[%s13682_s27 + $0x170] sm:$0xf0] }
 0x4b0   : > { %v13239_v52 = vld [vmem:[%s13682_s27 + $0x1c6c] sm:$0xf0]  ;;  %v12499_v24 = vld [vmem:[%s13682_s27 + $0x554] sm:$0xf] }
 0x4b1   : > { %v12120_v23 = vld [vmem:[%s13682_s27 + $0x1e50] sm:$0xf]  ;;  %v11865_v47 = vor.u32 %v13239_v52, %v11864_v19  ;;  %7442 = vmatpush.bf16.msrb.mxu1 %v11609_v27  ;;  %v12435_v19 = vld [vmem:[%s13682_s27 + $0x354] sm:$0xf]  ;;  %v13431_v52 = vld [vmem:[#allocation1 + $0x24] sm:$0xff] }
 0x4b2   : > { %v13303_v30 = vld [vmem:[%s13682_s27 + $0x1e6c] sm:$0xf0]  ;;  %v12563_v27 = vld [vmem:[%s13682_s27 + $0x754] sm:$0xf] }
 0x4b3   : > { %v11320_v25 = vld [vmem:[%s13682_s27 + $0x1810] sm:$0xf]  ;;  %v12121_v60 = vor.u32 %v13303_v30, %v12120_v23  ;;  %7455 = vmatpush.bf16.msrb.mxu2 %v11865_v47  ;;  %v9213_v23 = vor.u32 %v12571_v11, %v9210_v12  ;;  %v8666_v30 = vld [vmem:[%s13682_s27 + $0x370] sm:$0xf0] }
 0x4b4   : > { %v13103_v48 = vld [vmem:[%s13682_s27 + $0x182c] sm:$0xf0]  ;;  %v9178_v47 = vld [vmem:[%s13682_s27 + $0x770] sm:$0xf0] }
 0x4b5   : > { %v11576_v28 = vld [vmem:[%s13682_s27 + $0x1a10] sm:$0xf]  ;;  %v11321_v41 = vor.u32 %v13103_v48, %v11320_v25  ;;  %7468 = vmatpush.bf16.msrb.mxu3 %v12121_v60  ;;  %v8922_v25 = vld [vmem:[%s13682_s27 + $0x570] sm:$0xf0]  ;;  %v7199_v48 = vadd.f32 %v15070_v1, %v7186_v13  ;;  %v8669_v1 = vor.u32 %v12435_v19, %v8666_v30  ;;  %v8108_v30 = vrot.slane %v14856_v63, 4 }
 0x4b6   : > { %v13167_v53 = vld [vmem:[%s13682_s27 + $0x1a2c] sm:$0xf0]  ;;  %v12363_v60 = vld [vmem:[%s13682_s27 + $0x114] sm:$0xf] }
 0x4b7   : > { %v11832_v18 = vld [vmem:[%s13682_s27 + $0x1c10] sm:$0xf]  ;;  %v11577_v55 = vor.u32 %v13167_v53, %v11576_v28  ;;  %7430 = vmatpush.bf16.msrb.mxu0 %v11321_v41  ;;  %v13434_v28 = vld [vmem:[#allocation1 + $0x3f] sm:$0xff]  ;;  %v8413_v53 = vor.u32 %v12371_v16, %v8410_v17  ;;  %v7212_v39 = vadd.f32 %v15075_v5, %v7199_v48  ;;  %v7263_v17 = vpop.f32.mrf.mxu3 }
 0x4b8   : > { %v13231_v31 = vld [vmem:[%s13682_s27 + $0x1c2c] sm:$0xf0]  ;;  %v12555_v41 = vld [vmem:[%s13682_s27 + $0x714] sm:$0xf] }
 0x4b9   : > { %v12088_v34 = vld [vmem:[%s13682_s27 + $0x1e10] sm:$0xf]  ;;  %v11833_v57 = vor.u32 %v13231_v31, %v11832_v18  ;;  %7443 = vmatpush.bf16.msrb.mxu1 %v11577_v55  ;;  %v8925_v18 = vor.u32 %v12499_v24, %v8922_v25  ;;  %v8378_v31 = vld [vmem:[%s13682_s27 + $0x130] sm:$0xf0]  ;;  %v7225_v49 = vadd.f32 %v7224_v40, %v7212_v39  ;;  %v7239_v25 = vpop.f32.mrf.mxu1 }
 0x4ba   : > { %v13295_v35 = vld [vmem:[%s13682_s27 + $0x1e2c] sm:$0xf0]  ;;  %7431 = vmatmul.bf16.vlgmr.msrb.gmra.mxu0 %v13431_v52  ;;  %v9146_v43 = vld [vmem:[%s13682_s27 + $0x730] sm:$0xf0]  ;;  %v8381_v44 = vor.u32 %v12363_v60, %v8378_v31 }
 0x4bb   : > { %v12089_v61 = vor.u32 %v13295_v35, %v12088_v34  ;;  %7456 = vmatpush.bf16.msrb.mxu2 %v11833_v57  ;;  %7475 = vmatpush.bf16.msra.mxu0 %v8477_v0  ;;  %v13432_v56 = vld [vmem:[#allocation1 + $0x36] sm:$0xff]  ;;  %v9181_v35 = vor.u32 %v12563_v27, %v9178_v47  ;;  %v8893_v57 = vor.u32 %v12491_v42, %v8890_v37 }
 0x4bc   : > { %7444 = vmatmul.bf16.vlgmr.msrb.gmra.mxu1 %v13433_v45  ;;  %v12427_v34 = vld [vmem:[%s13682_s27 + $0x314] sm:$0xf]  ;;  %v7238_v51 = vadd.f32 %v7237_v46, %v7225_v49 }
 0x4bd   : > { %7469 = vmatpush.bf16.msrb.mxu3 %v12089_v61  ;;  %7488 = vmatpush.bf16.msra.mxu1 %v8733_v3  ;;  %v8637_v55 = vor.u32 %v12427_v34, %v8634_v36  ;;  %v12355_v5 = vld [vmem:[%s13682_s27 + $0xd4] sm:$0xf]  ;;  %v9149_v61 = vor.u32 %v12555_v41, %v9146_v43 }
 0x4be   : > { %7457 = vmatmul.bf16.vlgmr.msrb.gmra.mxu2 %v13432_v56  ;;  %v8346_v58 = vld [vmem:[%s13682_s27 + $0xf0] sm:$0xf0] }
 0x4bf   : > { %7501 = vmatpush.bf16.msra.mxu2 %v8989_v4  ;;  %7476 = vmatpush.bf16.msra.mxu0 %v8445_v54  ;;  %v12419_v59 = vld [vmem:[%s13682_s27 + $0x2d4] sm:$0xf]  ;;  %v8349_v50 = vor.u32 %v12355_v5, %v8346_v58  ;;  %v7250_v54 = vpop.f32.mrf.mxu2 }
 0x4c0   : > { %7470 = vmatmul.bf16.vlgmr.msrb.gmra.mxu3 %v13434_v28  ;;  %v8602_v0 = vld [vmem:[%s13682_s27 + $0x2f0] sm:$0xf0]  ;;  %v7251_v16 = vadd.f32 %v7250_v54, %v7238_v51 }
 0x4c1   : > { %7514 = vmatpush.bf16.msra.mxu3 %v9245_v6  ;;  %7489 = vmatpush.bf16.msra.mxu1 %v8701_v14  ;;  %v12483_v2 = vld [vmem:[%s13682_s27 + $0x4d4] sm:$0xf]  ;;  %v8605_v6 = vor.u32 %v12419_v59, %v8602_v0 }
 0x4c2   : > { %v8858_v3 = vld [vmem:[%s13682_s27 + $0x4f0] sm:$0xf0]  ;;  %v7264_v48 = vadd.f32 %v7263_v17, %v7251_v16 }
 0x4c3   : > { %7502 = vmatpush.bf16.msra.mxu2 %v8957_v15  ;;  %7477 = vmatpush.bf16.msra.mxu0 %v8413_v53  ;;  %v12547_v4 = vld [vmem:[%s13682_s27 + $0x6d4] sm:$0xf]  ;;  %v8861_v7 = vor.u32 %v12483_v2, %v8858_v3  ;;  %v7265_v2 = vpop.f32.mrf.mxu3 }
 0x4c4   : > { %v9114_v62 = vld [vmem:[%s13682_s27 + $0x6f0] sm:$0xf0]  ;;  %v8109_v60 = vrot.slane %v7264_v48, 2  ;;  %v7289_v2 = vpop.f32.mrf.mxu1 }
 0x4c5   : > { %7515 = vmatpush.bf16.msra.mxu3 %v9213_v23  ;;  %7490 = vmatpush.bf16.msra.mxu1 %v8669_v1  ;;  %v12347_v8 = vld [vmem:[%s13682_s27 + $0x94] sm:$0xf]  ;;  %v9117_v12 = vor.u32 %v12547_v4, %v9114_v62  ;;  %v7226_v23 = vpop.f32.mrf.mxu0 }
 0x4c6   : > { %v8314_v10 = vld [vmem:[%s13682_s27 + $0xb0] sm:$0xf0]  ;;  %v8116_v37 = vsel %vm8115_vm1, %v8108_v30, %v8109_v60 }
 0x4c7   : > { %7503 = vmatpush.bf16.msra.mxu2 %v8925_v18  ;;  %7478 = vmatpush.bf16.msra.mxu0 %v8381_v44  ;;  %v12411_v11 = vld [vmem:[%s13682_s27 + $0x294] sm:$0xf]  ;;  %v8317_v24 = vor.u32 %v12347_v8, %v8314_v10  ;;  %v8118_v46 = vsel %vm8117_vm2, %v14590_v9, %v8116_v37  ;;  %v7252_v58 = vpop.f32.mrf.mxu2 }
 0x4c8   : > { %v8570_v13 = vld [vmem:[%s13682_s27 + $0x2b0] sm:$0xf0]  ;;  %8124 = vst [vmem:[%s15173_s11] sm:$0xff] %v8118_v46 }
 0x4c9   : > { %7516 = vmatpush.bf16.msra.mxu3 %v9181_v35  ;;  %7491 = vmatpush.bf16.msra.mxu1 %v8637_v55  ;;  %v12475_v14 = vld [vmem:[%s13682_s27 + $0x494] sm:$0xf]  ;;  %v8573_v56 = vor.u32 %v12411_v11, %v8570_v13 }
 0x4ca   : > { %v8826_v15 = vld [vmem:[%s13682_s27 + $0x4b0] sm:$0xf0] }
 0x4cb   : > { %7504 = vmatpush.bf16.msra.mxu2 %v8893_v57  ;;  %v12539_v19 = vld [vmem:[%s13682_s27 + $0x694] sm:$0xf]  ;;  %7479 = vmatpush.bf16.msra.mxu0 %v8349_v50  ;;  %v8829_v45 = vor.u32 %v12475_v14, %v8826_v15 }
 0x4cc   : > { %v9082_v52 = vld [vmem:[%s13682_s27 + $0x6b0] sm:$0xf0] }
 0x4cd   : > { %7517 = vmatpush.bf16.msra.mxu3 %v9149_v61  ;;  %7492 = vmatpush.bf16.msra.mxu1 %v8605_v6  ;;  %v12339_v27 = vld [vmem:[%s13682_s27 + $0x54] sm:$0xf]  ;;  %v9085_v28 = vor.u32 %v12539_v19, %v9082_v52 }
 0x4ce   : > { %v8282_v47 = vld [vmem:[%s13682_s27 + $0x70] sm:$0xf0] }
 0x4cf   : > { %7505 = vmatpush.bf16.msra.mxu2 %v8861_v7  ;;  %v12403_v63 = vld [vmem:[%s13682_s27 + $0x254] sm:$0xf]  ;;  %7480 = vmatpush.bf16.msra.mxu0 %v8317_v24  ;;  %v8285_v35 = vor.u32 %v12339_v27, %v8282_v47 }
 0x4d0   : > { %v8538_v53 = vld [vmem:[%s13682_s27 + $0x270] sm:$0xf0] }
 0x4d1   : > { %7518 = vmatpush.bf16.msra.mxu3 %v9117_v12  ;;  %v12467_v1 = vld [vmem:[%s13682_s27 + $0x454] sm:$0xf]  ;;  %7493 = vmatpush.bf16.msra.mxu1 %v8573_v56  ;;  %v8541_v39 = vor.u32 %v12403_v63, %v8538_v53 }
 0x4d2   : > { %v8794_v18 = vld [vmem:[%s13682_s27 + $0x470] sm:$0xf0] }
 0x4d3   : > { %v12531_v31 = vld [vmem:[%s13682_s27 + $0x654] sm:$0xf]  ;;  %7506 = vmatpush.bf16.msra.mxu2 %v8829_v45  ;;  %v8797_v40 = vor.u32 %v12467_v1, %v8794_v18  ;;  %7481 = vmatpush.bf16.msra.mxu0 %v8285_v35 }
 0x4d4   : > { %v9050_v34 = vld [vmem:[%s13682_s27 + $0x670] sm:$0xf0] }
 0x4d5   : > { %v12331_v36 = vld [vmem:[%s13682_s27 + $0x14] sm:$0xf]  ;;  %7519 = vmatpush.bf16.msra.mxu3 %v9085_v28  ;;  %v9053_v49 = vor.u32 %v12531_v31, %v9050_v34  ;;  %7494 = vmatpush.bf16.msra.mxu1 %v8541_v39 }
 0x4d6   : > { %v8250_v42 = vld [vmem:[%s13682_s27 + $0x30] sm:$0xf0] }
 0x4d7   : > { %v12395_v41 = vld [vmem:[%s13682_s27 + $0x214] sm:$0xf]  ;;  %v8253_v3 = vor.u32 %v12331_v36, %v8250_v42  ;;  %7507 = vmatpush.bf16.msra.mxu2 %v8797_v40  ;;  %v13435_v42 = vld [vmem:[%s13688_s5] sm:$0xff] }
 0x4d8   : > { %v8506_v43 = vld [vmem:[%s13682_s27 + $0x230] sm:$0xf0]  ;;  %v1267_v37 = vperm.slane %v13435_v42, 4 }
 0x4d9   : > { %v12459_v44 = vld [vmem:[%s13682_s27 + $0x414] sm:$0xf]  ;;  %v8509_v50 = vor.u32 %v12395_v41, %v8506_v43  ;;  %7520 = vmatpush.bf16.msra.mxu3 %v9053_v49  ;;  %7482 = vmatpush.bf16.msra.mxu0 %v8253_v3 }
 0x4da   : > { %v8762_v55 = vld [vmem:[%s13682_s27 + $0x430] sm:$0xf0] }
 0x4db   : > { %v12523_v57 = vld [vmem:[%s13682_s27 + $0x614] sm:$0xf]  ;;  %v8765_v51 = vor.u32 %v12459_v44, %v8762_v55  ;;  %7495 = vmatpush.bf16.msra.mxu1 %v8509_v50  ;;  %v7276_v55 = vpop.f32.mrf.mxu0 }
 0x4dc   : > { %v9018_v5 = vld [vmem:[%s13682_s27 + $0x630] sm:$0xf0]  ;;  %7483 = vmatmul.bf16.vlgmr.msra.gmra.mxu0 %v13799_v21 }
 0x4dd   : > { %v12643_v59 = vld [vmem:[%s13682_s27 + $0x9d4] sm:$0xf]  ;;  %v9021_v8 = vor.u32 %v12523_v57, %v9018_v5  ;;  %7508 = vmatpush.bf16.msra.mxu2 %v8765_v51 }
 0x4de   : > { %v9498_v61 = vld [vmem:[%s13682_s27 + $0x9f0] sm:$0xf0]  ;;  %7496 = vmatmul.bf16.vlgmr.msra.gmra.mxu1 %v13806_v26 }
 0x4df   : > { %v12707_v0 = vld [vmem:[%s13682_s27 + $0xbd4] sm:$0xf]  ;;  %v9501_v10 = vor.u32 %v12643_v59, %v9498_v61  ;;  %7521 = vmatpush.bf16.msra.mxu3 %v9021_v8 }
 0x4e0   : > { %v9754_v4 = vld [vmem:[%s13682_s27 + $0xbf0] sm:$0xf0]  ;;  %7509 = vmatmul.bf16.vlgmr.msra.gmra.mxu2 %v13797_v20 }
 0x4e1   : > { %v12771_v9 = vld [vmem:[%s13682_s27 + $0xdd4] sm:$0xf]  ;;  %v9757_v11 = vor.u32 %v12707_v0, %v9754_v4  ;;  %7527 = vmatpush.bf16.msrb.mxu0 %v9501_v10  ;;  %v7277_v0 = vadd.f32 %v7276_v55, %v1267_v37 }
 0x4e2   : > { %v10010_v62 = vld [vmem:[%s13682_s27 + $0xdf0] sm:$0xf0]  ;;  %7522 = vmatmul.bf16.vlgmr.msra.gmra.mxu3 %v13801_v22 }
 0x4e3   : > { %v12835_v6 = vld [vmem:[%s13682_s27 + $0xfd4] sm:$0xf]  ;;  %v10013_v12 = vor.u32 %v12771_v9, %v10010_v62  ;;  %7540 = vmatpush.bf16.msrb.mxu1 %v9757_v11 }
 0x4e4   : > { %v10266_v7 = vld [vmem:[%s13682_s27 + $0xff0] sm:$0xf0] }
 0x4e5   : > { %v12635_v54 = vld [vmem:[%s13682_s27 + $0x994] sm:$0xf]  ;;  %v10269_v15 = vor.u32 %v12835_v6, %v10266_v7  ;;  %7553 = vmatpush.bf16.msrb.mxu2 %v10013_v12  ;;  %v7290_v6 = vadd.f32 %v7289_v2, %v7277_v0 }
 0x4e6   : > { %v9466_v13 = vld [vmem:[%s13682_s27 + $0x9b0] sm:$0xf0] }
 0x4e7   : > { %v12699_v14 = vld [vmem:[%s13682_s27 + $0xb94] sm:$0xf]  ;;  %v9469_v30 = vor.u32 %v12635_v54, %v9466_v13  ;;  %7566 = vmatpush.bf16.msrb.mxu3 %v10269_v15  ;;  %v7302_v13 = vpop.f32.mrf.mxu2 }
 0x4e8   : > { %v9722_v16 = vld [vmem:[%s13682_s27 + $0xbb0] sm:$0xf0] }
 0x4e9   : > { %v12763_v17 = vld [vmem:[%s13682_s27 + $0xd94] sm:$0xf]  ;;  %v9725_v24 = vor.u32 %v12699_v14, %v9722_v16  ;;  %7528 = vmatpush.bf16.msrb.mxu0 %v9469_v30 }
 0x4ea   : > { %v9978_v19 = vld [vmem:[%s13682_s27 + $0xdb0] sm:$0xf0] }
 0x4eb   : > { %v12827_v52 = vld [vmem:[%s13682_s27 + $0xf94] sm:$0xf]  ;;  %v9981_v25 = vor.u32 %v12763_v17, %v9978_v19  ;;  %7541 = vmatpush.bf16.msrb.mxu1 %v9725_v24  ;;  %v7303_v19 = vadd.f32 %v7302_v13, %v7290_v6 }
 0x4ec   : > { %v10234_v23 = vld [vmem:[%s13682_s27 + $0xfb0] sm:$0xf0] }
 0x4ed   : > { %v12627_v48 = vld [vmem:[%s13682_s27 + $0x954] sm:$0xf]  ;;  %v10237_v27 = vor.u32 %v12827_v52, %v10234_v23  ;;  %7554 = vmatpush.bf16.msrb.mxu2 %v9981_v25  ;;  %v7315_v52 = vpop.f32.mrf.mxu3 }
 0x4ee   : > { %v9434_v56 = vld [vmem:[%s13682_s27 + $0x970] sm:$0xf0]  ;;  %v15240_v25 = vadd.f32 %v7315_v52, %v7303_v19 }
 0x4ef   : > { %v12691_v45 = vld [vmem:[%s13682_s27 + $0xb54] sm:$0xf]  ;;  %v9437_v18 = vor.u32 %v12627_v48, %v9434_v56  ;;  %7567 = vmatpush.bf16.msrb.mxu3 %v10237_v27  ;;  %v7278_v48 = vpop.f32.mrf.mxu0 }
 0x4f0   : > { %v9690_v47 = vld [vmem:[%s13682_s27 + $0xb70] sm:$0xf0] }
 0x4f1   : > { %v12755_v63 = vld [vmem:[%s13682_s27 + $0xd54] sm:$0xf]  ;;  %v9693_v31 = vor.u32 %v12691_v45, %v9690_v47  ;;  %7529 = vmatpush.bf16.msrb.mxu0 %v9437_v18 }
 0x4f2   : > { %v9946_v28 = vld [vmem:[%s13682_s27 + $0xd70] sm:$0xf0] }
 0x4f3   : > { %v12819_v53 = vld [vmem:[%s13682_s27 + $0xf54] sm:$0xf]  ;;  %v9949_v34 = vor.u32 %v12755_v63, %v9946_v28  ;;  %7542 = vmatpush.bf16.msrb.mxu1 %v9693_v31  ;;  %v7291_v28 = vpop.f32.mrf.mxu1 }
 0x4f4   : > { %v10202_v1 = vld [vmem:[%s13682_s27 + $0xf70] sm:$0xf0] }
 0x4f5   : > { %v12619_v60 = vld [vmem:[%s13682_s27 + $0x914] sm:$0xf]  ;;  %v10205_v39 = vor.u32 %v12819_v53, %v10202_v1  ;;  %7555 = vmatpush.bf16.msrb.mxu2 %v9949_v34 }
 0x4f6   : > { %v9402_v35 = vld [vmem:[%s13682_s27 + $0x930] sm:$0xf0] }
 0x4f7   : > { %v12683_v36 = vld [vmem:[%s13682_s27 + $0xb14] sm:$0xf]  ;;  %v9405_v49 = vor.u32 %v12619_v60, %v9402_v35  ;;  %7568 = vmatpush.bf16.msrb.mxu3 %v10205_v39 }
 0x4f8   : > { %v9658_v40 = vld [vmem:[%s13682_s27 + $0xb30] sm:$0xf0] }
 0x4f9   : > { %v12747_v41 = vld [vmem:[%s13682_s27 + $0xd14] sm:$0xf]  ;;  %v9661_v57 = vor.u32 %v12683_v36, %v9658_v40  ;;  %7530 = vmatpush.bf16.msrb.mxu0 %v9405_v49 }
 0x4fa   : > { %v9914_v43 = vld [vmem:[%s13682_s27 + $0xd30] sm:$0xf0] }
 0x4fb   : > { %v12811_v44 = vld [vmem:[%s13682_s27 + $0xf14] sm:$0xf]  ;;  %v9917_v5 = vor.u32 %v12747_v41, %v9914_v43  ;;  %7543 = vmatpush.bf16.msrb.mxu1 %v9661_v57 }
 0x4fc   : > { %v10170_v46 = vld [vmem:[%s13682_s27 + $0xf30] sm:$0xf0] }
 0x4fd   : > { %v12611_v58 = vld [vmem:[%s13682_s27 + $0x8d4] sm:$0xf]  ;;  %v10173_v3 = vor.u32 %v12811_v44, %v10170_v46  ;;  %7556 = vmatpush.bf16.msrb.mxu2 %v9917_v5  ;;  %v7304_v44 = vpop.f32.mrf.mxu2  ;;  %v7317_v5 = vpop.f32.mrf.mxu3 }
 0x4fe   : > { %v9370_v59 = vld [vmem:[%s13682_s27 + $0x8f0] sm:$0xf0]  ;;  %v7328_v44 = vpop.f32.mrf.mxu0 }
 0x4ff   : > { %v12675_v61 = vld [vmem:[%s13682_s27 + $0xad4] sm:$0xf]  ;;  %v9373_v7 = vor.u32 %v12611_v58, %v9370_v59  ;;  %7569 = vmatpush.bf16.msrb.mxu3 %v10173_v3 }
 0x500   : > { %v9626_v4 = vld [vmem:[%s13682_s27 + $0xaf0] sm:$0xf0] }
 0x501   : > { %v12739_v9 = vld [vmem:[%s13682_s27 + $0xcd4] sm:$0xf]  ;;  %v9629_v8 = vor.u32 %v12675_v61, %v9626_v4  ;;  %7531 = vmatpush.bf16.msrb.mxu0 %v9373_v7 }
 0x502   : > { %v9882_v62 = vld [vmem:[%s13682_s27 + $0xcf0] sm:$0xf0] }
 0x503   : > { %v12803_v50 = vld [vmem:[%s13682_s27 + $0xed4] sm:$0xf]  ;;  %v9885_v10 = vor.u32 %v12739_v9, %v9882_v62  ;;  %7544 = vmatpush.bf16.msrb.mxu1 %v9629_v8 }
 0x504   : > { %v10138_v51 = vld [vmem:[%s13682_s27 + $0xef0] sm:$0xf0] }
 0x505   : > { %v12603_v11 = vld [vmem:[%s13682_s27 + $0x894] sm:$0xf]  ;;  %v10141_v14 = vor.u32 %v12803_v50, %v10138_v51  ;;  %7557 = vmatpush.bf16.msrb.mxu2 %v9885_v10 }
 0x506   : > { %v9338_v12 = vld [vmem:[%s13682_s27 + $0x8b0] sm:$0xf0] }
 0x507   : > { %v12667_v54 = vld [vmem:[%s13682_s27 + $0xa94] sm:$0xf]  ;;  %v9341_v24 = vor.u32 %v12603_v11, %v9338_v12  ;;  %7570 = vmatpush.bf16.msrb.mxu3 %v10141_v14 }
 0x508   : > { %v9594_v15 = vld [vmem:[%s13682_s27 + $0xab0] sm:$0xf0] }
 0x509   : > { %v12731_v16 = vld [vmem:[%s13682_s27 + $0xc94] sm:$0xf]  ;;  %v9597_v56 = vor.u32 %v12667_v54, %v9594_v15  ;;  %7532 = vmatpush.bf16.msrb.mxu0 %v9341_v24 }
 0x50a   : > { %v9850_v17 = vld [vmem:[%s13682_s27 + $0xcb0] sm:$0xf0] }
 0x50b   : > { %v12795_v23 = vld [vmem:[%s13682_s27 + $0xe94] sm:$0xf]  ;;  %v9853_v45 = vor.u32 %v12731_v16, %v9850_v17  ;;  %7545 = vmatpush.bf16.msrb.mxu1 %v9597_v56 }
 0x50c   : > { %v10106_v30 = vld [vmem:[%s13682_s27 + $0xeb0] sm:$0xf0] }
 0x50d   : > { %v12595_v27 = vld [vmem:[%s13682_s27 + $0x854] sm:$0xf]  ;;  %v10109_v53 = vor.u32 %v12795_v23, %v10106_v30  ;;  %7558 = vmatpush.bf16.msrb.mxu2 %v9853_v45 }
 0x50e   : > { %v9306_v47 = vld [vmem:[%s13682_s27 + $0x870] sm:$0xf0] }
 0x50f   : > { %v12659_v63 = vld [vmem:[%s13682_s27 + $0xa54] sm:$0xf]  ;;  %v9309_v35 = vor.u32 %v12595_v27, %v9306_v47  ;;  %7571 = vmatpush.bf16.msrb.mxu3 %v10109_v53 }
 0x510   : > { %v9562_v1 = vld [vmem:[%s13682_s27 + $0xa70] sm:$0xf0] }
 0x511   : > { %v12723_v18 = vld [vmem:[%s13682_s27 + $0xc54] sm:$0xf]  ;;  %v9565_v37 = vor.u32 %v12659_v63, %v9562_v1  ;;  %7533 = vmatpush.bf16.msrb.mxu0 %v9309_v35 }
 0x512   : > { %v9818_v60 = vld [vmem:[%s13682_s27 + $0xc70] sm:$0xf0] }
 0x513   : > { %v12787_v31 = vld [vmem:[%s13682_s27 + $0xe54] sm:$0xf]  ;;  %v9821_v39 = vor.u32 %v12723_v18, %v9818_v60  ;;  %7546 = vmatpush.bf16.msrb.mxu1 %v9565_v37 }
 0x514   : > { %v10074_v34 = vld [vmem:[%s13682_s27 + $0xe70] sm:$0xf0] }
 0x515   : > { %v12587_v36 = vld [vmem:[%s13682_s27 + $0x814] sm:$0xf]  ;;  %v10077_v46 = vor.u32 %v12787_v31, %v10074_v34  ;;  %7559 = vmatpush.bf16.msrb.mxu2 %v9821_v39 }
 0x516   : > { %v9274_v42 = vld [vmem:[%s13682_s27 + $0x830] sm:$0xf0] }
 0x517   : > { %v12651_v40 = vld [vmem:[%s13682_s27 + $0xa14] sm:$0xf]  ;;  %v9277_v0 = vor.u32 %v12587_v36, %v9274_v42  ;;  %7572 = vmatpush.bf16.msrb.mxu3 %v10077_v46 }
 0x518   : > { %v9530_v41 = vld [vmem:[%s13682_s27 + $0xa30] sm:$0xf0] }
 0x519   : > { %v12715_v43 = vld [vmem:[%s13682_s27 + $0xc14] sm:$0xf]  ;;  %v9533_v9 = vor.u32 %v12651_v40, %v9530_v41  ;;  %7534 = vmatpush.bf16.msrb.mxu0 %v9277_v0 }
 0x51a   : > { %v9786_v49 = vld [vmem:[%s13682_s27 + $0xc30] sm:$0xf0] }
 0x51b   : > { %v12779_v55 = vld [vmem:[%s13682_s27 + $0xe14] sm:$0xf]  ;;  %v9789_v62 = vor.u32 %v12715_v43, %v9786_v49  ;;  %7547 = vmatpush.bf16.msrb.mxu1 %v9533_v9 }
 0x51c   : > { %v10042_v57 = vld [vmem:[%s13682_s27 + $0xe30] sm:$0xf0]  ;;  %7535 = vmatmul.bf16.vlgmr.msrb.gmra.mxu0 %v13856_v32 }
 0x51d   : > { %v12899_v58 = vld [vmem:[%s13682_s27 + $0x11d4] sm:$0xf]  ;;  %v10045_v6 = vor.u32 %v12779_v55, %v10042_v57  ;;  %7560 = vmatpush.bf16.msrb.mxu2 %v9789_v62 }
 0x51e   : > { %v10522_v59 = vld [vmem:[%s13682_s27 + $0x11f0] sm:$0xf0]  ;;  %7548 = vmatmul.bf16.vlgmr.msrb.gmra.mxu1 %v13862_v38 }
 0x51f   : > { %v12963_v61 = vld [vmem:[%s13682_s27 + $0x13d4] sm:$0xf]  ;;  %v10525_v7 = vor.u32 %v12899_v58, %v10522_v59  ;;  %7573 = vmatpush.bf16.msrb.mxu3 %v10045_v6  ;;  %v7329_v58 = vadd.f32 %v7328_v44, %v15240_v25  ;;  %v7341_v59 = vpop.f32.mrf.mxu1 }
 0x520   : > { %v10778_v2 = vld [vmem:[%s13682_s27 + $0x13f0] sm:$0xf0]  ;;  %7561 = vmatmul.bf16.vlgmr.msrb.gmra.mxu2 %v13853_v29 }
 0x521   : > { %v13027_v3 = vld [vmem:[%s13682_s27 + $0x15d4] sm:$0xf]  ;;  %v10781_v8 = vor.u32 %v12963_v61, %v10778_v2  ;;  %7579 = vmatpush.bf16.msra.mxu0 %v10525_v7  ;;  %v7342_v62 = vadd.f32 %v7341_v59, %v7329_v58 }
 0x522   : > { %v11034_v4 = vld [vmem:[%s13682_s27 + $0x15f0] sm:$0xf0]  ;;  %7574 = vmatmul.bf16.vlgmr.msrb.gmra.mxu3 %v13858_v33 }
 0x523   : > { %v13091_v50 = vld [vmem:[%s13682_s27 + $0x17d4] sm:$0xf]  ;;  %v11037_v10 = vor.u32 %v13027_v3, %v11034_v4  ;;  %7592 = vmatpush.bf16.msra.mxu1 %v10781_v8 }
 0x524   : > { %v11290_v51 = vld [vmem:[%s13682_s27 + $0x17f0] sm:$0xf0] }
 0x525   : > { %v12891_v11 = vld [vmem:[%s13682_s27 + $0x1194] sm:$0xf]  ;;  %v11293_v13 = vor.u32 %v13091_v50, %v11290_v51  ;;  %7605 = vmatpush.bf16.msra.mxu2 %v11037_v10  ;;  %v7354_v10 = vpop.f32.mrf.mxu2 }
 0x526   : > { %v10490_v12 = vld [vmem:[%s13682_s27 + $0x11b0] sm:$0xf0] }
 0x527   : > { %v12955_v54 = vld [vmem:[%s13682_s27 + $0x1394] sm:$0xf]  ;;  %v10493_v52 = vor.u32 %v12891_v11, %v10490_v12  ;;  %7618 = vmatpush.bf16.msra.mxu3 %v11293_v13 }
 0x528   : > { %v10746_v14 = vld [vmem:[%s13682_s27 + $0x13b0] sm:$0xf0] }
 0x529   : > { %v13019_v15 = vld [vmem:[%s13682_s27 + $0x1594] sm:$0xf]  ;;  %v10749_v23 = vor.u32 %v12955_v54, %v10746_v14  ;;  %7580 = vmatpush.bf16.msra.mxu0 %v10493_v52  ;;  %v7355_v14 = vadd.f32 %v7354_v10, %v7342_v62 }
 0x52a   : > { %v11002_v16 = vld [vmem:[%s13682_s27 + $0x15b0] sm:$0xf0] }
 0x52b   : > { %v13083_v17 = vld [vmem:[%s13682_s27 + $0x1794] sm:$0xf]  ;;  %v11005_v30 = vor.u32 %v13019_v15, %v11002_v16  ;;  %7593 = vmatpush.bf16.msra.mxu1 %v10749_v23  ;;  %v7367_v15 = vpop.f32.mrf.mxu3  ;;  %v7330_v23 = vpop.f32.mrf.mxu0 }
 0x52c   : > { %v11258_v19 = vld [vmem:[%s13682_s27 + $0x17b0] sm:$0xf0]  ;;  %v15311_v52 = vadd.f32 %v7367_v15, %v7355_v14 }
 0x52d   : > { %v12883_v24 = vld [vmem:[%s13682_s27 + $0x1154] sm:$0xf]  ;;  %v11261_v45 = vor.u32 %v13083_v17, %v11258_v19  ;;  %7606 = vmatpush.bf16.msra.mxu2 %v11005_v30 }
 0x52e   : > { %v10458_v48 = vld [vmem:[%s13682_s27 + $0x1170] sm:$0xf0] }
 0x52f   : > { %v12947_v56 = vld [vmem:[%s13682_s27 + $0x1354] sm:$0xf]  ;;  %v10461_v1 = vor.u32 %v12883_v24, %v10458_v48  ;;  %7619 = vmatpush.bf16.msra.mxu3 %v11261_v45 }
 0x530   : > { %v10714_v27 = vld [vmem:[%s13682_s27 + $0x1370] sm:$0xf0] }
 0x531   : > { %v13011_v47 = vld [vmem:[%s13682_s27 + $0x1554] sm:$0xf]  ;;  %v10717_v18 = vor.u32 %v12947_v56, %v10714_v27  ;;  %7581 = vmatpush.bf16.msra.mxu0 %v10461_v1  ;;  %v7343_v27 = vpop.f32.mrf.mxu1 }
 0x532   : > { %v10970_v63 = vld [vmem:[%s13682_s27 + $0x1570] sm:$0xf0] }
 0x533   : > { %v13075_v28 = vld [vmem:[%s13682_s27 + $0x1754] sm:$0xf]  ;;  %v10973_v60 = vor.u32 %v13011_v47, %v10970_v63  ;;  %7594 = vmatpush.bf16.msra.mxu1 %v10717_v18 }
 0x534   : > { %v11226_v53 = vld [vmem:[%s13682_s27 + $0x1770] sm:$0xf0] }
 0x535   : > { %v12875_v31 = vld [vmem:[%s13682_s27 + $0x1114] sm:$0xf]  ;;  %v11229_v36 = vor.u32 %v13075_v28, %v11226_v53  ;;  %7607 = vmatpush.bf16.msra.mxu2 %v10973_v60 }
 0x536   : > { %v10426_v34 = vld [vmem:[%s13682_s27 + $0x1130] sm:$0xf0] }
 0x537   : > { %v12939_v35 = vld [vmem:[%s13682_s27 + $0x1314] sm:$0xf]  ;;  %v10429_v43 = vor.u32 %v12875_v31, %v10426_v34  ;;  %7620 = vmatpush.bf16.msra.mxu3 %v11229_v36 }
 0x538   : > { %v10682_v42 = vld [vmem:[%s13682_s27 + $0x1330] sm:$0xf0] }
 0x539   : > { %v13003_v37 = vld [vmem:[%s13682_s27 + $0x1514] sm:$0xf]  ;;  %v10685_v46 = vor.u32 %v12939_v35, %v10682_v42  ;;  %7582 = vmatpush.bf16.msra.mxu0 %v10429_v43 }
 0x53a   : > { %v10938_v39 = vld [vmem:[%s13682_s27 + $0x1530] sm:$0xf0] }
 0x53b   : > { %v13067_v40 = vld [vmem:[%s13682_s27 + $0x1714] sm:$0xf]  ;;  %v10941_v49 = vor.u32 %v13003_v37, %v10938_v39  ;;  %7595 = vmatpush.bf16.msra.mxu1 %v10685_v46 }
 0x53c   : > { %v11194_v41 = vld [vmem:[%s13682_s27 + $0x1730] sm:$0xf0] }
 0x53d   : > { %v12867_v55 = vld [vmem:[%s13682_s27 + $0x10d4] sm:$0xf]  ;;  %v11197_v61 = vor.u32 %v13067_v40, %v11194_v41  ;;  %7608 = vmatpush.bf16.msra.mxu2 %v10941_v49  ;;  %v7356_v40 = vpop.f32.mrf.mxu2  ;;  %v7369_v49 = vpop.f32.mrf.mxu3 }
 0x53e   : > { %v10394_v57 = vld [vmem:[%s13682_s27 + $0x10f0] sm:$0xf0] }
 0x53f   : > { %v12931_v5 = vld [vmem:[%s13682_s27 + $0x12d4] sm:$0xf]  ;;  %v10397_v50 = vor.u32 %v12867_v55, %v10394_v57  ;;  %7621 = vmatpush.bf16.msra.mxu3 %v11197_v61 }
 0x540   : > { %v10650_v0 = vld [vmem:[%s13682_s27 + $0x12f0] sm:$0xf0] }
 0x541   : > { %v12995_v2 = vld [vmem:[%s13682_s27 + $0x14d4] sm:$0xf]  ;;  %v10653_v25 = vor.u32 %v12931_v5, %v10650_v0  ;;  %7583 = vmatpush.bf16.msra.mxu0 %v10397_v50 }
 0x542   : > { %v10906_v3 = vld [vmem:[%s13682_s27 + $0x14f0] sm:$0xf0] }
 0x543   : > { %v13059_v4 = vld [vmem:[%s13682_s27 + $0x16d4] sm:$0xf]  ;;  %v10909_v51 = vor.u32 %v12995_v2, %v10906_v3  ;;  %7596 = vmatpush.bf16.msra.mxu1 %v10653_v25 }
 0x544   : > { %v11162_v9 = vld [vmem:[%s13682_s27 + $0x16f0] sm:$0xf0] }
 0x545   : > { %v12859_v6 = vld [vmem:[%s13682_s27 + $0x1094] sm:$0xf]  ;;  %v11165_v11 = vor.u32 %v13059_v4, %v11162_v9  ;;  %7609 = vmatpush.bf16.msra.mxu2 %v10909_v51 }
 0x546   : > { %v10362_v7 = vld [vmem:[%s13682_s27 + $0x10b0] sm:$0xf0] }
 0x547   : > { %v12923_v8 = vld [vmem:[%s13682_s27 + $0x1294] sm:$0xf]  ;;  %v10365_v19 = vor.u32 %v12859_v6, %v10362_v7  ;;  %7622 = vmatpush.bf16.msra.mxu3 %v11165_v11 }
 0x548   : > { %v10618_v12 = vld [vmem:[%s13682_s27 + $0x12b0] sm:$0xf0] }
 0x549   : > { %v12987_v54 = vld [vmem:[%s13682_s27 + $0x1494] sm:$0xf]  ;;  %v10621_v30 = vor.u32 %v12923_v8, %v10618_v12  ;;  %7584 = vmatpush.bf16.msra.mxu0 %v10365_v19 }
 0x54a   : > { %v10874_v13 = vld [vmem:[%s13682_s27 + $0x14b0] sm:$0xf0] }
 0x54b   : > { %v13051_v16 = vld [vmem:[%s13682_s27 + $0x1694] sm:$0xf]  ;;  %v10877_v24 = vor.u32 %v12987_v54, %v10874_v13  ;;  %7597 = vmatpush.bf16.msra.mxu1 %v10621_v30 }
 0x54c   : > { %v11130_v17 = vld [vmem:[%s13682_s27 + $0x16b0] sm:$0xf0] }
 0x54d   : > { %v12851_v48 = vld [vmem:[%s13682_s27 + $0x1054] sm:$0xf]  ;;  %v11133_v47 = vor.u32 %v13051_v16, %v11130_v17  ;;  %7610 = vmatpush.bf16.msra.mxu2 %v10877_v24  ;;  %v13436_v24 = vld [vmem:[#allocation1] sm:$0xff] }
 0x54e   : > { %v10330_v56 = vld [vmem:[%s13682_s27 + $0x1070] sm:$0xf0] }
 0x54f   : > { %v12915_v45 = vld [vmem:[%s13682_s27 + $0x1254] sm:$0xf]  ;;  %v10333_v60 = vor.u32 %v12851_v48, %v10330_v56  ;;  %7623 = vmatpush.bf16.msra.mxu3 %v11133_v47  ;;  %v13437_v47 = vld [vmem:[#allocation1 + $0x12] sm:$0xff] }
 0x550   : > { %v10586_v63 = vld [vmem:[%s13682_s27 + $0x1270] sm:$0xf0] }
 0x551   : > { %v12979_v28 = vld [vmem:[%s13682_s27 + $0x1454] sm:$0xf]  ;;  %v10589_v35 = vor.u32 %v12915_v45, %v10586_v63  ;;  %7585 = vmatpush.bf16.msra.mxu0 %v10333_v60  ;;  %v13438_v63 = vld [vmem:[#allocation1 + $0x9] sm:$0xff] }
 0x552   : > { %v10842_v53 = vld [vmem:[%s13682_s27 + $0x1470] sm:$0xf0] }
 0x553   : > { %v13043_v1 = vld [vmem:[%s13682_s27 + $0x1654] sm:$0xf]  ;;  %v10845_v36 = vor.u32 %v12979_v28, %v10842_v53  ;;  %7598 = vmatpush.bf16.msra.mxu1 %v10589_v35 }
 0x554   : > { %v11098_v18 = vld [vmem:[%s13682_s27 + $0x1670] sm:$0xf0] }
 0x555   : > { %v12843_v31 = vld [vmem:[%s13682_s27 + $0x1014] sm:$0xf]  ;;  %v11101_v41 = vor.u32 %v13043_v1, %v11098_v18  ;;  %7611 = vmatpush.bf16.msra.mxu2 %v10845_v36 }
 0x556   : > { %v10298_v34 = vld [vmem:[%s13682_s27 + $0x1030] sm:$0xf0] }
 0x557   : > { %v12907_v42 = vld [vmem:[%s13682_s27 + $0x1214] sm:$0xf]  ;;  %v10301_v58 = vor.u32 %v12843_v31, %v10298_v34  ;;  %7624 = vmatpush.bf16.msra.mxu3 %v11101_v41  ;;  %v7380_v41 = vpop.f32.mrf.mxu0 }
 0x558   : > { %v10554_v37 = vld [vmem:[%s13682_s27 + $0x1230] sm:$0xf0] }
 0x559   : > { %v12971_v39 = vld [vmem:[%s13682_s27 + $0x1414] sm:$0xf]  ;;  %v10557_v2 = vor.u32 %v12907_v42, %v10554_v37  ;;  %7586 = vmatpush.bf16.msra.mxu0 %v10301_v58 }
 0x55a   : > { %v10810_v43 = vld [vmem:[%s13682_s27 + $0x1430] sm:$0xf0] }
 0x55b   : > { %v13035_v44 = vld [vmem:[%s13682_s27 + $0x1614] sm:$0xf]  ;;  %v10813_v3 = vor.u32 %v12971_v39, %v10810_v43  ;;  %7599 = vmatpush.bf16.msra.mxu1 %v10557_v2 }
 0x55c   : > { %v11066_v46 = vld [vmem:[%s13682_s27 + $0x1630] sm:$0xf0]  ;;  %7587 = vmatmul.bf16.vlgmr.msra.gmra.mxu0 %v13436_v24 }
 0x55d   : > { %v13155_v55 = vld [vmem:[%s13682_s27 + $0x19d4] sm:$0xf]  ;;  %v11069_v62 = vor.u32 %v13035_v44, %v11066_v46  ;;  %7612 = vmatpush.bf16.msra.mxu2 %v10813_v3  ;;  %v7381_v46 = vadd.f32 %v7380_v41, %v15311_v52 }
 0x55e   : > { %v11546_v57 = vld [vmem:[%s13682_s27 + $0x19f0] sm:$0xf0]  ;;  %7600 = vmatmul.bf16.vlgmr.msra.gmra.mxu1 %v13438_v63 }
 0x55f   : > { %v13219_v5 = vld [vmem:[%s13682_s27 + $0x1bd4] sm:$0xf]  ;;  %v11549_v50 = vor.u32 %v13155_v55, %v11546_v57  ;;  %7625 = vmatpush.bf16.msra.mxu3 %v11069_v62  ;;  %v7393_v55 = vpop.f32.mrf.mxu1 }
 0x560   : > { %v11802_v59 = vld [vmem:[%s13682_s27 + $0x1bf0] sm:$0xf0]  ;;  %7613 = vmatmul.bf16.vlgmr.msra.gmra.mxu2 %v13437_v47  ;;  %v7394_v2 = vadd.f32 %v7393_v55, %v7381_v46  ;;  %v8480_v55 = vld [vmem:[%s13682_s27 + $0x1d8] sm:$0xf] }
 0x561   : > { %v13283_v61 = vld [vmem:[%s13682_s27 + $0x1dd4] sm:$0xf]  ;;  %v11805_v25 = vor.u32 %v13219_v5, %v11802_v59  ;;  %7631 = vmatpush.bf16.msrb.mxu0 %v11549_v50 }
 0x562   : > { %v12058_v0 = vld [vmem:[%s13682_s27 + $0x1df0] sm:$0xf0] }
 0x563   : > { %v13347_v4 = vld [vmem:[%s13682_s27 + $0x1fd4] sm:$0xf]  ;;  %v12061_v51 = vor.u32 %v13283_v61, %v12058_v0  ;;  %7644 = vmatpush.bf16.msrb.mxu1 %v11805_v25 }
 0x564   : > { %v12314_v9 = vld [vmem:[%s13682_s27 + $0x1ff0] sm:$0xf0] }
 0x565   : > { %v13147_v6 = vld [vmem:[%s13682_s27 + $0x1994] sm:$0xf]  ;;  %v12317_v10 = vor.u32 %v13347_v4, %v12314_v9  ;;  %7657 = vmatpush.bf16.msrb.mxu2 %v12061_v51 }
 0x566   : > { %v11514_v7 = vld [vmem:[%s13682_s27 + $0x19b0] sm:$0xf0] }
 0x567   : > { %v13211_v8 = vld [vmem:[%s13682_s27 + $0x1b94] sm:$0xf]  ;;  %v11517_v15 = vor.u32 %v13147_v6, %v11514_v7  ;;  %7670 = vmatpush.bf16.msrb.mxu3 %v12317_v10 }
 0x568   : > { %v11770_v11 = vld [vmem:[%s13682_s27 + $0x1bb0] sm:$0xf0] }
 0x569   : > { %v13275_v12 = vld [vmem:[%s13682_s27 + $0x1d94] sm:$0xf]  ;;  %v11773_v16 = vor.u32 %v13211_v8, %v11770_v11  ;;  %7632 = vmatpush.bf16.msrb.mxu0 %v11517_v15  ;;  %v7406_v11 = vpop.f32.mrf.mxu2  ;;  %v7419_v15 = vpop.f32.mrf.mxu3 }
 0x56a   : > { %v12026_v54 = vld [vmem:[%s13682_s27 + $0x1db0] sm:$0xf0] }
 0x56b   : > { %v13339_v13 = vld [vmem:[%s13682_s27 + $0x1f94] sm:$0xf]  ;;  %v12029_v17 = vor.u32 %v13275_v12, %v12026_v54  ;;  %7645 = vmatpush.bf16.msrb.mxu1 %v11773_v16 }
 0x56c   : > { %v12282_v14 = vld [vmem:[%s13682_s27 + $0x1fb0] sm:$0xf0] }
 0x56d   : > { %v13139_v19 = vld [vmem:[%s13682_s27 + $0x1954] sm:$0xf]  ;;  %v12285_v48 = vor.u32 %v13339_v13, %v12282_v14  ;;  %7658 = vmatpush.bf16.msrb.mxu2 %v12029_v17  ;;  %v7407_v14 = vadd.f32 %v7406_v11, %v7394_v2  ;;  %v12520_v2 = vld [vmem:[%s13682_s27 + $0x5f4] sm:$0xf0] }
 0x56e   : > { %v11482_v23 = vld [vmem:[%s13682_s27 + $0x1970] sm:$0xf0]  ;;  %v12448_v11 = vld [vmem:[%s13682_s27 + $0x3b4] sm:$0xf0] }
 0x56f   : > { %v13203_v30 = vld [vmem:[%s13682_s27 + $0x1b54] sm:$0xf]  ;;  %v11485_v18 = vor.u32 %v13139_v19, %v11482_v23  ;;  %7671 = vmatpush.bf16.msrb.mxu3 %v12285_v48  ;;  %v7382_v19 = vpop.f32.mrf.mxu0  ;;  %v15378_v24 = vadd.f32 %v7419_v15, %v7407_v14  ;;  %v12576_v14 = vld [vmem:[%s13682_s27 + $0x7b4] sm:$0xf0] }
 0x570   : > { %v11738_v56 = vld [vmem:[%s13682_s27 + $0x1b70] sm:$0xf0]  ;;  %v8416_v19 = vld [vmem:[%s13682_s27 + $0x158] sm:$0xf] }
 0x571   : > { %v13267_v45 = vld [vmem:[%s13682_s27 + $0x1d54] sm:$0xf]  ;;  %v11741_v60 = vor.u32 %v13203_v30, %v11738_v56  ;;  %7633 = vmatpush.bf16.msrb.mxu0 %v11485_v18  ;;  %v7395_v30 = vpop.f32.mrf.mxu1 }
 0x572   : > { %v11994_v27 = vld [vmem:[%s13682_s27 + $0x1d70] sm:$0xf0]  ;;  %v8672_v30 = vld [vmem:[%s13682_s27 + $0x358] sm:$0xf] }
 0x573   : > { %v13331_v28 = vld [vmem:[%s13682_s27 + $0x1f54] sm:$0xf]  ;;  %v11997_v31 = vor.u32 %v13267_v45, %v11994_v27  ;;  %7646 = vmatpush.bf16.msrb.mxu1 %v11741_v60 }
 0x574   : > { %v12250_v53 = vld [vmem:[%s13682_s27 + $0x1f70] sm:$0xf0] }
 0x575   : > { %v13439_v1 = vld [vmem:[#allocation1 + $0x1b] sm:$0xff]  ;;  %v12253_v42 = vor.u32 %v13331_v28, %v12250_v53  ;;  %7659 = vmatpush.bf16.msrb.mxu2 %v11997_v31 }
 0x576   : > { %7626 = vmatmul.bf16.vlgmr.msra.gmra.mxu3 %v13439_v1  ;;  %v13131_v34 = vld [vmem:[%s13682_s27 + $0x1914] sm:$0xf] }
 0x577   : > { %v11450_v35 = vld [vmem:[%s13682_s27 + $0x1930] sm:$0xf0]  ;;  %7672 = vmatpush.bf16.msrb.mxu3 %v12253_v42 }
 0x578   : > { %v13195_v36 = vld [vmem:[%s13682_s27 + $0x1b14] sm:$0xf]  ;;  %v11453_v49 = vor.u32 %v13131_v34, %v11450_v35 }
 0x579   : > { %v11706_v37 = vld [vmem:[%s13682_s27 + $0x1b30] sm:$0xf0] }
 0x57a   : > { %v13259_v39 = vld [vmem:[%s13682_s27 + $0x1d14] sm:$0xf]  ;;  %v11709_v57 = vor.u32 %v13195_v36, %v11706_v37  ;;  %7634 = vmatpush.bf16.msrb.mxu0 %v11453_v49  ;;  %v7408_v49 = vpop.f32.mrf.mxu2 }
 0x57b   : > { %v11962_v40 = vld [vmem:[%s13682_s27 + $0x1d30] sm:$0xf0] }
 0x57c   : > { %v13323_v43 = vld [vmem:[%s13682_s27 + $0x1f14] sm:$0xf]  ;;  %v11965_v5 = vor.u32 %v13259_v39, %v11962_v40  ;;  %7647 = vmatpush.bf16.msrb.mxu1 %v11709_v57  ;;  %v12392_v57 = vld [vmem:[%s13682_s27 + $0x1f4] sm:$0xf0] }
 0x57d   : > { %v12218_v44 = vld [vmem:[%s13682_s27 + $0x1f30] sm:$0xf0] }
 0x57e   : > { %v13123_v58 = vld [vmem:[%s13682_s27 + $0x18d4] sm:$0xf]  ;;  %v12221_v0 = vor.u32 %v13323_v43, %v12218_v44  ;;  %7660 = vmatpush.bf16.msrb.mxu2 %v11965_v5  ;;  %v8736_v5 = vld [vmem:[%s13682_s27 + $0x3d8] sm:$0xf] }
 0x57f   : > { %v11418_v59 = vld [vmem:[%s13682_s27 + $0x18f0] sm:$0xf0] }
 0x580   : > { %v13187_v61 = vld [vmem:[%s13682_s27 + $0x1ad4] sm:$0xf]  ;;  %v11421_v50 = vor.u32 %v13123_v58, %v11418_v59  ;;  %7673 = vmatpush.bf16.msrb.mxu3 %v12221_v0  ;;  %v7421_v58 = vpop.f32.mrf.mxu3  ;;  %v8992_v0 = vld [vmem:[%s13682_s27 + $0x5d8] sm:$0xf] }
 0x581   : > { %v11674_v3 = vld [vmem:[%s13682_s27 + $0x1af0] sm:$0xf0] }
 0x582   : > { %v13251_v4 = vld [vmem:[%s13682_s27 + $0x1cd4] sm:$0xf]  ;;  %v11677_v25 = vor.u32 %v13187_v61, %v11674_v3  ;;  %7635 = vmatpush.bf16.msrb.mxu0 %v11421_v50  ;;  %v12456_v61 = vld [vmem:[%s13682_s27 + $0x3f4] sm:$0xf0]  ;;  %v8481_v50 = vor.u32 %v12392_v57, %v8480_v55  ;;  %v7445_v57 = vpop.f32.mrf.mxu1 }
 0x583   : > { %v11930_v52 = vld [vmem:[%s13682_s27 + $0x1cf0] sm:$0xf0] }
 0x584   : > { %v13315_v9 = vld [vmem:[%s13682_s27 + $0x1ed4] sm:$0xf]  ;;  %v11933_v51 = vor.u32 %v13251_v4, %v11930_v52  ;;  %7648 = vmatpush.bf16.msrb.mxu1 %v11677_v25  ;;  %v9248_v52 = vld [vmem:[%s13682_s27 + $0x7d8] sm:$0xf]  ;;  %v8737_v25 = vor.u32 %v12456_v61, %v8736_v5 }
 0x585   : > { %v12186_v62 = vld [vmem:[%s13682_s27 + $0x1ef0] sm:$0xf0]  ;;  %v12360_v61 = vld [vmem:[%s13682_s27 + $0xf4] sm:$0xf0] }
 0x586   : > { %v13115_v6 = vld [vmem:[%s13682_s27 + $0x1894] sm:$0xf]  ;;  %v12189_v10 = vor.u32 %v13315_v9, %v12186_v62  ;;  %7661 = vmatpush.bf16.msrb.mxu2 %v11933_v51  ;;  %v12584_v9 = vld [vmem:[%s13682_s27 + $0x7f4] sm:$0xf0]  ;;  %v8993_v51 = vor.u32 %v12520_v2, %v8992_v0 }
 0x587   : > { %v11386_v7 = vld [vmem:[%s13682_s27 + $0x18b0] sm:$0xf0]  ;;  %v8608_v0 = vld [vmem:[%s13682_s27 + $0x2d8] sm:$0xf] }
 0x588   : > { %v13179_v8 = vld [vmem:[%s13682_s27 + $0x1a94] sm:$0xf]  ;;  %v11389_v23 = vor.u32 %v13115_v6, %v11386_v7  ;;  %7674 = vmatpush.bf16.msrb.mxu3 %v12189_v10  ;;  %v8448_v6 = vld [vmem:[%s13682_s27 + $0x198] sm:$0xf]  ;;  %v9249_v10 = vor.u32 %v12584_v9, %v9248_v52 }
 0x589   : > { %v11642_v12 = vld [vmem:[%s13682_s27 + $0x1ab0] sm:$0xf0]  ;;  %v12384_v7 = vld [vmem:[%s13682_s27 + $0x1b4] sm:$0xf0] }
 0x58a   : > { %v13243_v54 = vld [vmem:[%s13682_s27 + $0x1c94] sm:$0xf]  ;;  %v11645_v48 = vor.u32 %v13179_v8, %v11642_v12  ;;  %7636 = vmatpush.bf16.msrb.mxu0 %v11389_v23  ;;  %v8704_v8 = vld [vmem:[%s13682_s27 + $0x398] sm:$0xf]  ;;  %v8449_v15 = vor.u32 %v12384_v7, %v8448_v6 }
 0x58b   : > { %v11898_v13 = vld [vmem:[%s13682_s27 + $0x1cb0] sm:$0xf0]  ;;  %v8960_v12 = vld [vmem:[%s13682_s27 + $0x598] sm:$0xf] }
 0x58c   : > { %v13307_v16 = vld [vmem:[%s13682_s27 + $0x1e94] sm:$0xf]  ;;  %v11901_v56 = vor.u32 %v13243_v54, %v11898_v13  ;;  %7649 = vmatpush.bf16.msrb.mxu1 %v11645_v48  ;;  %v12512_v54 = vld [vmem:[%s13682_s27 + $0x5b4] sm:$0xf0]  ;;  %v13440_v48 = vld [vmem:[#allocation1 + $0x24] sm:$0xff] }
 0x58d   : > { %v12154_v17 = vld [vmem:[%s13682_s27 + $0x1eb0] sm:$0xf0]  ;;  %v9216_v13 = vld [vmem:[%s13682_s27 + $0x798] sm:$0xf] }
 0x58e   : > { %v13107_v45 = vld [vmem:[%s13682_s27 + $0x1854] sm:$0xf]  ;;  %v12157_v63 = vor.u32 %v13307_v16, %v12154_v17  ;;  %7662 = vmatpush.bf16.msrb.mxu2 %v11901_v56  ;;  %v8705_v16 = vor.u32 %v12448_v11, %v8704_v8  ;;  %v8961_v17 = vor.u32 %v12512_v54, %v8960_v12  ;;  %v12376_v23 = vld [vmem:[%s13682_s27 + $0x174] sm:$0xf0]  ;;  %v9217_v56 = vor.u32 %v12576_v14, %v9216_v13  ;;  %v7458_v11 = vpop.f32.mrf.mxu2 }
 0x58f   : > { %v11354_v27 = vld [vmem:[%s13682_s27 + $0x1870] sm:$0xf0]  ;;  %v8864_v52 = vld [vmem:[%s13682_s27 + $0x4d8] sm:$0xf] }
 0x590   : > { %v13171_v47 = vld [vmem:[%s13682_s27 + $0x1a54] sm:$0xf]  ;;  %v11357_v31 = vor.u32 %v13107_v45, %v11354_v27  ;;  %7675 = vmatpush.bf16.msrb.mxu3 %v12157_v63  ;;  %v12440_v45 = vld [vmem:[%s13682_s27 + $0x374] sm:$0xf0] }
 0x591   : > { %v11610_v28 = vld [vmem:[%s13682_s27 + $0x1a70] sm:$0xf0]  ;;  %v8928_v27 = vld [vmem:[%s13682_s27 + $0x558] sm:$0xf] }
 0x592   : > { %v13235_v53 = vld [vmem:[%s13682_s27 + $0x1c54] sm:$0xf]  ;;  %v11613_v36 = vor.u32 %v13171_v47, %v11610_v28  ;;  %7637 = vmatpush.bf16.msrb.mxu0 %v11357_v31  ;;  %v12504_v47 = vld [vmem:[%s13682_s27 + $0x574] sm:$0xf0]  ;;  %v13442_v28 = vld [vmem:[#allocation1 + $0x2d] sm:$0xff]  ;;  %v8673_v31 = vor.u32 %v12440_v45, %v8672_v30  ;;  %v7447_v30 = vpop.f32.mrf.mxu1 }
 0x593   : > { %v11866_v1 = vld [vmem:[%s13682_s27 + $0x1c70] sm:$0xf0]  ;;  %v9120_v9 = vld [vmem:[%s13682_s27 + $0x6d8] sm:$0xf] }
 0x594   : > { %v13299_v18 = vld [vmem:[%s13682_s27 + $0x1e54] sm:$0xf]  ;;  %v11869_v42 = vor.u32 %v13235_v53, %v11866_v1  ;;  %7650 = vmatpush.bf16.msrb.mxu1 %v11613_v36  ;;  %v9184_v53 = vld [vmem:[%s13682_s27 + $0x758] sm:$0xf] }
 0x595   : > { %v12122_v60 = vld [vmem:[%s13682_s27 + $0x1e70] sm:$0xf0]  ;;  %v12568_v1 = vld [vmem:[%s13682_s27 + $0x774] sm:$0xf0] }
 0x596   : > { %v13099_v34 = vld [vmem:[%s13682_s27 + $0x1814] sm:$0xf]  ;;  %v12125_v41 = vor.u32 %v13299_v18, %v12122_v60  ;;  %7663 = vmatpush.bf16.msrb.mxu2 %v11869_v42  ;;  %v8417_v60 = vor.u32 %v12376_v23, %v8416_v19  ;;  %v12368_v36 = vld [vmem:[%s13682_s27 + $0x134] sm:$0xf0] }
 0x597   : > { %v11322_v35 = vld [vmem:[%s13682_s27 + $0x1830] sm:$0xf0]  ;;  %v8640_v42 = vld [vmem:[%s13682_s27 + $0x318] sm:$0xf] }
 0x598   : > { %v13163_v37 = vld [vmem:[%s13682_s27 + $0x1a14] sm:$0xf]  ;;  %v11325_v59 = vor.u32 %v13099_v34, %v11322_v35  ;;  %7676 = vmatpush.bf16.msrb.mxu3 %v12125_v41  ;;  %v8929_v34 = vor.u32 %v12504_v47, %v8928_v27  ;;  %v8384_v35 = vld [vmem:[%s13682_s27 + $0x118] sm:$0xf] }
 0x599   : > { %v11578_v39 = vld [vmem:[%s13682_s27 + $0x1a30] sm:$0xf0]  ;;  %v12496_v41 = vld [vmem:[%s13682_s27 + $0x534] sm:$0xf0]  ;;  %v8385_v55 = vor.u32 %v12368_v36, %v8384_v35 }
 0x59a   : > { %v13227_v40 = vld [vmem:[%s13682_s27 + $0x1c14] sm:$0xf]  ;;  %v11581_v3 = vor.u32 %v13163_v37, %v11578_v39  ;;  %7638 = vmatpush.bf16.msrb.mxu0 %v11325_v59  ;;  %v9185_v37 = vor.u32 %v12568_v1, %v9184_v53  ;;  %v12432_v39 = vld [vmem:[%s13682_s27 + $0x334] sm:$0xf0] }
 0x59b   : > { %v11834_v43 = vld [vmem:[%s13682_s27 + $0x1c30] sm:$0xf0]  ;;  %v8641_v5 = vor.u32 %v12432_v39, %v8640_v42  ;;  %v8352_v59 = vld [vmem:[%s13682_s27 + $0xd8] sm:$0xf] }
 0x59c   : > { %v13291_v44 = vld [vmem:[%s13682_s27 + $0x1e14] sm:$0xf]  ;;  %v11837_v4 = vor.u32 %v13227_v40, %v11834_v43  ;;  %7651 = vmatpush.bf16.msrb.mxu1 %v11581_v3  ;;  %v8896_v40 = vld [vmem:[%s13682_s27 + $0x518] sm:$0xf]  ;;  %v7432_v43 = vpop.f32.mrf.mxu0 }
 0x59d   : > { %v12090_v46 = vld [vmem:[%s13682_s27 + $0x1e30] sm:$0xf0]  ;;  %7639 = vmatmul.bf16.vlgmr.msrb.gmra.mxu0 %v13440_v48  ;;  %v7433_v49 = vadd.f32 %v7432_v43, %v15378_v24  ;;  %v8897_v58 = vor.u32 %v12496_v41, %v8896_v40  ;;  %v12488_v24 = vld [vmem:[%s13682_s27 + $0x4f4] sm:$0xf0] }
 0x59e   : > { %v12093_v62 = vor.u32 %v13291_v44, %v12090_v46  ;;  %7664 = vmatpush.bf16.msrb.mxu2 %v11837_v4  ;;  %7683 = vmatpush.bf16.msra.mxu0 %v8481_v50  ;;  %v13441_v63 = vld [vmem:[#allocation1 + $0x36] sm:$0xff]  ;;  %v13443_v18 = vld [vmem:[#allocation1 + $0x3f] sm:$0xff]  ;;  %v8353_v50 = vor.u32 %v12360_v61, %v8352_v59 }
 0x59f   : > { %7652 = vmatmul.bf16.vlgmr.msrb.gmra.mxu1 %v13442_v28  ;;  %v9152_v44 = vld [vmem:[%s13682_s27 + $0x718] sm:$0xf]  ;;  %v7446_v3 = vadd.f32 %v7445_v57, %v7433_v49 }
 0x5a0   : > { %7677 = vmatpush.bf16.msrb.mxu3 %v12093_v62  ;;  %7696 = vmatpush.bf16.msra.mxu1 %v8737_v25  ;;  %v12560_v46 = vld [vmem:[%s13682_s27 + $0x734] sm:$0xf0] }
 0x5a1   : > { %7665 = vmatmul.bf16.vlgmr.msrb.gmra.mxu2 %v13441_v63  ;;  %v9153_v2 = vor.u32 %v12560_v46, %v9152_v44  ;;  %v12424_v4 = vld [vmem:[%s13682_s27 + $0x2f4] sm:$0xf0]  ;;  %v7459_v14 = vadd.f32 %v7458_v11, %v7446_v3 }
 0x5a2   : > { %7709 = vmatpush.bf16.msra.mxu2 %v8993_v51  ;;  %7684 = vmatpush.bf16.msra.mxu0 %v8449_v15  ;;  %v12552_v62 = vld [vmem:[%s13682_s27 + $0x6f4] sm:$0xf0]  ;;  %v8609_v25 = vor.u32 %v12424_v4, %v8608_v0  ;;  %v8865_v51 = vor.u32 %v12488_v24, %v8864_v52  ;;  %v7471_v15 = vpop.f32.mrf.mxu3 }
 0x5a3   : > { %7678 = vmatmul.bf16.vlgmr.msrb.gmra.mxu3 %v13443_v18  ;;  %v8320_v6 = vld [vmem:[%s13682_s27 + $0x98] sm:$0xf]  ;;  %v15445_v48 = vadd.f32 %v7471_v15, %v7459_v14 }
 0x5a4   : > { %7722 = vmatpush.bf16.msra.mxu3 %v9249_v10  ;;  %7697 = vmatpush.bf16.msra.mxu1 %v8705_v16  ;;  %v12352_v7 = vld [vmem:[%s13682_s27 + $0xb4] sm:$0xf0]  ;;  %v9121_v10 = vor.u32 %v12552_v62, %v9120_v9  ;;  %v7434_v19 = vpop.f32.mrf.mxu0 }
 0x5a5   : > { %v8576_v8 = vld [vmem:[%s13682_s27 + $0x298] sm:$0xf]  ;;  %v8321_v23 = vor.u32 %v12352_v7, %v8320_v6 }
 0x5a6   : > { %7710 = vmatpush.bf16.msra.mxu2 %v8961_v17  ;;  %7685 = vmatpush.bf16.msra.mxu0 %v8417_v60  ;;  %v12416_v12 = vld [vmem:[%s13682_s27 + $0x2b4] sm:$0xf0] }
 0x5a7   : > { %v8832_v54 = vld [vmem:[%s13682_s27 + $0x498] sm:$0xf] }
 0x5a8   : > { %7723 = vmatpush.bf16.msra.mxu3 %v9217_v56  ;;  %7698 = vmatpush.bf16.msra.mxu1 %v8673_v31  ;;  %v12480_v13 = vld [vmem:[%s13682_s27 + $0x4b4] sm:$0xf0]  ;;  %v8577_v56 = vor.u32 %v12416_v12, %v8576_v8 }
 0x5a9   : > { %v9088_v16 = vld [vmem:[%s13682_s27 + $0x698] sm:$0xf]  ;;  %v8833_v45 = vor.u32 %v12480_v13, %v8832_v54 }
 0x5aa   : > { %7711 = vmatpush.bf16.msra.mxu2 %v8929_v34  ;;  %7686 = vmatpush.bf16.msra.mxu0 %v8385_v55  ;;  %v12544_v17 = vld [vmem:[%s13682_s27 + $0x6b4] sm:$0xf0]  ;;  %v7460_v55 = vpop.f32.mrf.mxu2  ;;  %v7473_v59 = vpop.f32.mrf.mxu3 }
 0x5ab   : > { %v8288_v27 = vld [vmem:[%s13682_s27 + $0x58] sm:$0xf]  ;;  %v9089_v28 = vor.u32 %v12544_v17, %v9088_v16 }
 0x5ac   : > { %7724 = vmatpush.bf16.msra.mxu3 %v9185_v37  ;;  %7699 = vmatpush.bf16.msra.mxu1 %v8641_v5  ;;  %v12344_v47 = vld [vmem:[%s13682_s27 + $0x74] sm:$0xf0] }
 0x5ad   : > { %v8544_v63 = vld [vmem:[%s13682_s27 + $0x258] sm:$0xf]  ;;  %v8289_v34 = vor.u32 %v12344_v47, %v8288_v27 }
 0x5ae   : > { %7712 = vmatpush.bf16.msra.mxu2 %v8897_v58  ;;  %7687 = vmatpush.bf16.msra.mxu0 %v8353_v50  ;;  %v12408_v53 = vld [vmem:[%s13682_s27 + $0x274] sm:$0xf0] }
 0x5af   : > { %v8800_v1 = vld [vmem:[%s13682_s27 + $0x458] sm:$0xf]  ;;  %v8545_v42 = vor.u32 %v12408_v53, %v8544_v63 }
 0x5b0   : > { %7725 = vmatpush.bf16.msra.mxu3 %v9153_v2  ;;  %7700 = vmatpush.bf16.msra.mxu1 %v8609_v25  ;;  %v12472_v18 = vld [vmem:[%s13682_s27 + $0x474] sm:$0xf0] }
 0x5b1   : > { %v9056_v60 = vld [vmem:[%s13682_s27 + $0x658] sm:$0xf]  ;;  %v8801_v37 = vor.u32 %v12472_v18, %v8800_v1 }
 0x5b2   : > { %7713 = vmatpush.bf16.msra.mxu2 %v8865_v51  ;;  %v12536_v31 = vld [vmem:[%s13682_s27 + $0x674] sm:$0xf0]  ;;  %7688 = vmatpush.bf16.msra.mxu0 %v8321_v23 }
 0x5b3   : > { %v8256_v35 = vld [vmem:[%s13682_s27 + $0x18] sm:$0xf]  ;;  %v9057_v43 = vor.u32 %v12536_v31, %v9056_v60 }
 0x5b4   : > { %7726 = vmatpush.bf16.msra.mxu3 %v9121_v10  ;;  %v12336_v36 = vld [vmem:[%s13682_s27 + $0x34] sm:$0xf0]  ;;  %7701 = vmatpush.bf16.msra.mxu1 %v8577_v56 }
 0x5b5   : > { %v8512_v39 = vld [vmem:[%s13682_s27 + $0x218] sm:$0xf]  ;;  %v8257_v61 = vor.u32 %v12336_v36, %v8256_v35  ;;  %v13444_v35 = vld [vmem:[%s13688_s5] sm:$0xff] }
 0x5b6   : > { %7714 = vmatpush.bf16.msra.mxu2 %v8833_v45  ;;  %v12400_v40 = vld [vmem:[%s13682_s27 + $0x234] sm:$0xf0]  ;;  %7689 = vmatpush.bf16.msra.mxu0 %v8289_v34  ;;  %v1268_v36 = vperm.slane %v13444_v35, 5 }
 0x5b7   : > { %v8768_v41 = vld [vmem:[%s13682_s27 + $0x418] sm:$0xf]  ;;  %v8513_v4 = vor.u32 %v12400_v40, %v8512_v39 }
 0x5b8   : > { %7727 = vmatpush.bf16.msra.mxu3 %v9089_v28  ;;  %v12464_v44 = vld [vmem:[%s13682_s27 + $0x434] sm:$0xf0]  ;;  %7702 = vmatpush.bf16.msra.mxu1 %v8545_v42 }
 0x5b9   : > { %v9024_v46 = vld [vmem:[%s13682_s27 + $0x618] sm:$0xf]  ;;  %v8769_v52 = vor.u32 %v12464_v44, %v8768_v41 }
 0x5ba   : > { %v12528_v49 = vld [vmem:[%s13682_s27 + $0x634] sm:$0xf0]  ;;  %7715 = vmatpush.bf16.msra.mxu2 %v8801_v37  ;;  %7690 = vmatpush.bf16.msra.mxu0 %v8257_v61  ;;  %v7497_v61 = vpop.f32.mrf.mxu1 }
 0x5bb   : > { %v9504_v57 = vld [vmem:[%s13682_s27 + $0x9d8] sm:$0xf]  ;;  %v9025_v62 = vor.u32 %v12528_v49, %v9024_v46  ;;  %v7484_v46 = vpop.f32.mrf.mxu0 }
 0x5bc   : > { %v12648_v5 = vld [vmem:[%s13682_s27 + $0x9f4] sm:$0xf0]  ;;  %7728 = vmatpush.bf16.msra.mxu3 %v9057_v43  ;;  %7703 = vmatpush.bf16.msra.mxu1 %v8513_v4  ;;  %v7485_v59 = vadd.f32 %v7484_v46, %v1268_v36 }
 0x5bd   : > { %v9760_v58 = vld [vmem:[%s13682_s27 + $0xbd8] sm:$0xf]  ;;  %v9505_v50 = vor.u32 %v12648_v5, %v9504_v57  ;;  %7691 = vmatmul.bf16.vlgmr.msra.gmra.mxu0 %v13799_v21 }
 0x5be   : > { %v12712_v0 = vld [vmem:[%s13682_s27 + $0xbf4] sm:$0xf0]  ;;  %7716 = vmatpush.bf16.msra.mxu2 %v8769_v52 }
 0x5bf   : > { %v10016_v2 = vld [vmem:[%s13682_s27 + $0xdd8] sm:$0xf]  ;;  %v9761_v25 = vor.u32 %v12712_v0, %v9760_v58  ;;  %7735 = vmatpush.bf16.msrb.mxu0 %v9505_v50  ;;  %7704 = vmatmul.bf16.vlgmr.msra.gmra.mxu1 %v13806_v26 }
 0x5c0   : > { %v12776_v3 = vld [vmem:[%s13682_s27 + $0xdf4] sm:$0xf0]  ;;  %7729 = vmatpush.bf16.msra.mxu3 %v9025_v62 }
 0x5c1   : > { %v10272_v24 = vld [vmem:[%s13682_s27 + $0xfd8] sm:$0xf]  ;;  %v10017_v51 = vor.u32 %v12776_v3, %v10016_v2  ;;  %7748 = vmatpush.bf16.msrb.mxu1 %v9761_v25  ;;  %7717 = vmatmul.bf16.vlgmr.msra.gmra.mxu2 %v13797_v20 }
 0x5c2   : > { %v12840_v9 = vld [vmem:[%s13682_s27 + $0xff4] sm:$0xf0] }
 0x5c3   : > { %v9472_v6 = vld [vmem:[%s13682_s27 + $0x998] sm:$0xf]  ;;  %v10273_v10 = vor.u32 %v12840_v9, %v10272_v24  ;;  %7761 = vmatpush.bf16.msrb.mxu2 %v10017_v51  ;;  %7730 = vmatmul.bf16.vlgmr.msra.gmra.mxu3 %v13801_v22  ;;  %v7498_v9 = vadd.f32 %v7497_v61, %v7485_v59 }
 0x5c4   : > { %v12640_v7 = vld [vmem:[%s13682_s27 + $0x9b4] sm:$0xf0] }
 0x5c5   : > { %v9728_v8 = vld [vmem:[%s13682_s27 + $0xb98] sm:$0xf]  ;;  %v9473_v15 = vor.u32 %v12640_v7, %v9472_v6  ;;  %7774 = vmatpush.bf16.msrb.mxu3 %v10273_v10 }
 0x5c6   : > { %v12704_v11 = vld [vmem:[%s13682_s27 + $0xbb4] sm:$0xf0] }
 0x5c7   : > { %v9984_v12 = vld [vmem:[%s13682_s27 + $0xd98] sm:$0xf]  ;;  %v9729_v16 = vor.u32 %v12704_v11, %v9728_v8  ;;  %7736 = vmatpush.bf16.msrb.mxu0 %v9473_v15  ;;  %v7510_v8 = vpop.f32.mrf.mxu2 }
 0x5c8   : > { %v12768_v54 = vld [vmem:[%s13682_s27 + $0xdb4] sm:$0xf0] }
 0x5c9   : > { %v10240_v13 = vld [vmem:[%s13682_s27 + $0xf98] sm:$0xf]  ;;  %v9985_v17 = vor.u32 %v12768_v54, %v9984_v12  ;;  %7749 = vmatpush.bf16.msrb.mxu1 %v9729_v16 }
 0x5ca   : > { %v12832_v14 = vld [vmem:[%s13682_s27 + $0xfb4] sm:$0xf0] }
 0x5cb   : > { %v9440_v19 = vld [vmem:[%s13682_s27 + $0x958] sm:$0xf]  ;;  %v10241_v56 = vor.u32 %v12832_v14, %v10240_v13  ;;  %7762 = vmatpush.bf16.msrb.mxu2 %v9985_v17  ;;  %v7511_v13 = vadd.f32 %v7510_v8, %v7498_v9  ;;  %v7523_v14 = vpop.f32.mrf.mxu3 }
 0x5cc   : > { %v12632_v23 = vld [vmem:[%s13682_s27 + $0x974] sm:$0xf0] }
 0x5cd   : > { %v9696_v30 = vld [vmem:[%s13682_s27 + $0xb58] sm:$0xf]  ;;  %v9441_v53 = vor.u32 %v12632_v23, %v9440_v19  ;;  %7775 = vmatpush.bf16.msrb.mxu3 %v10241_v56  ;;  %v15516_v19 = vadd.f32 %v7523_v14, %v7511_v13  ;;  %v7486_v23 = vpop.f32.mrf.mxu0 }
 0x5ce   : > { %v12696_v45 = vld [vmem:[%s13682_s27 + $0xb74] sm:$0xf0] }
 0x5cf   : > { %v9952_v27 = vld [vmem:[%s13682_s27 + $0xd58] sm:$0xf]  ;;  %v9697_v18 = vor.u32 %v12696_v45, %v9696_v30  ;;  %7737 = vmatpush.bf16.msrb.mxu0 %v9441_v53 }
 0x5d0   : > { %v12760_v47 = vld [vmem:[%s13682_s27 + $0xd74] sm:$0xf0] }
 0x5d1   : > { %v10208_v63 = vld [vmem:[%s13682_s27 + $0xf58] sm:$0xf]  ;;  %v9953_v60 = vor.u32 %v12760_v47, %v9952_v27  ;;  %7750 = vmatpush.bf16.msrb.mxu1 %v9697_v18 }
 0x5d2   : > { %v12824_v28 = vld [vmem:[%s13682_s27 + $0xf74] sm:$0xf0] }
 0x5d3   : > { %v9408_v1 = vld [vmem:[%s13682_s27 + $0x918] sm:$0xf]  ;;  %v10209_v42 = vor.u32 %v12824_v28, %v10208_v63  ;;  %7763 = vmatpush.bf16.msrb.mxu2 %v9953_v60  ;;  %v7499_v63 = vpop.f32.mrf.mxu1 }
 0x5d4   : > { %v12624_v31 = vld [vmem:[%s13682_s27 + $0x934] sm:$0xf0] }
 0x5d5   : > { %v9664_v34 = vld [vmem:[%s13682_s27 + $0xb18] sm:$0xf]  ;;  %v9409_v44 = vor.u32 %v12624_v31, %v9408_v1  ;;  %7776 = vmatpush.bf16.msrb.mxu3 %v10209_v42 }
 0x5d6   : > { %v12688_v37 = vld [vmem:[%s13682_s27 + $0xb34] sm:$0xf0] }
 0x5d7   : > { %v9920_v39 = vld [vmem:[%s13682_s27 + $0xd18] sm:$0xf]  ;;  %v9665_v49 = vor.u32 %v12688_v37, %v9664_v34  ;;  %7738 = vmatpush.bf16.msrb.mxu0 %v9409_v44 }
 0x5d8   : > { %v12752_v40 = vld [vmem:[%s13682_s27 + $0xd34] sm:$0xf0] }
 0x5d9   : > { %v10176_v41 = vld [vmem:[%s13682_s27 + $0xf18] sm:$0xf]  ;;  %v9921_v55 = vor.u32 %v12752_v40, %v9920_v39  ;;  %7751 = vmatpush.bf16.msrb.mxu1 %v9665_v49 }
 0x5da   : > { %v12816_v43 = vld [vmem:[%s13682_s27 + $0xf34] sm:$0xf0] }
 0x5db   : > { %v9376_v57 = vld [vmem:[%s13682_s27 + $0x8d8] sm:$0xf]  ;;  %v10177_v0 = vor.u32 %v12816_v43, %v10176_v41  ;;  %7764 = vmatpush.bf16.msrb.mxu2 %v9921_v55  ;;  %v7512_v43 = vpop.f32.mrf.mxu2 }
 0x5dc   : > { %v12616_v5 = vld [vmem:[%s13682_s27 + $0x8f4] sm:$0xf0] }
 0x5dd   : > { %v9632_v58 = vld [vmem:[%s13682_s27 + $0xad8] sm:$0xf]  ;;  %v9377_v62 = vor.u32 %v12616_v5, %v9376_v57  ;;  %7777 = vmatpush.bf16.msrb.mxu3 %v10177_v0  ;;  %v7525_v57 = vpop.f32.mrf.mxu3 }
 0x5de   : > { %v12680_v2 = vld [vmem:[%s13682_s27 + $0xaf4] sm:$0xf0] }
 0x5df   : > { %v9888_v3 = vld [vmem:[%s13682_s27 + $0xcd8] sm:$0xf]  ;;  %v9633_v50 = vor.u32 %v12680_v2, %v9632_v58  ;;  %7739 = vmatpush.bf16.msrb.mxu0 %v9377_v62 }
 0x5e0   : > { %v12744_v4 = vld [vmem:[%s13682_s27 + $0xcf4] sm:$0xf0] }
 0x5e1   : > { %v10144_v52 = vld [vmem:[%s13682_s27 + $0xed8] sm:$0xf]  ;;  %v9889_v25 = vor.u32 %v12744_v4, %v9888_v3  ;;  %7752 = vmatpush.bf16.msrb.mxu1 %v9633_v50 }
 0x5e2   : > { %v12808_v24 = vld [vmem:[%s13682_s27 + $0xef4] sm:$0xf0] }
 0x5e3   : > { %v9344_v51 = vld [vmem:[%s13682_s27 + $0x898] sm:$0xf]  ;;  %v10145_v10 = vor.u32 %v12808_v24, %v10144_v52  ;;  %7765 = vmatpush.bf16.msrb.mxu2 %v9889_v25 }
 0x5e4   : > { %v12608_v6 = vld [vmem:[%s13682_s27 + $0x8b4] sm:$0xf0] }
 0x5e5   : > { %v9600_v7 = vld [vmem:[%s13682_s27 + $0xa98] sm:$0xf]  ;;  %v9345_v17 = vor.u32 %v12608_v6, %v9344_v51  ;;  %7778 = vmatpush.bf16.msrb.mxu3 %v10145_v10 }
 0x5e6   : > { %v12672_v11 = vld [vmem:[%s13682_s27 + $0xab4] sm:$0xf0] }
 0x5e7   : > { %v9856_v12 = vld [vmem:[%s13682_s27 + $0xc98] sm:$0xf]  ;;  %v9601_v30 = vor.u32 %v12672_v11, %v9600_v7  ;;  %7740 = vmatpush.bf16.msrb.mxu0 %v9345_v17 }
 0x5e8   : > { %v12736_v54 = vld [vmem:[%s13682_s27 + $0xcb4] sm:$0xf0] }
 0x5e9   : > { %v10112_v15 = vld [vmem:[%s13682_s27 + $0xe98] sm:$0xf]  ;;  %v9857_v56 = vor.u32 %v12736_v54, %v9856_v12  ;;  %7753 = vmatpush.bf16.msrb.mxu1 %v9601_v30 }
 0x5ea   : > { %v12800_v16 = vld [vmem:[%s13682_s27 + $0xeb4] sm:$0xf0] }
 0x5eb   : > { %v9312_v45 = vld [vmem:[%s13682_s27 + $0x858] sm:$0xf]  ;;  %v10113_v28 = vor.u32 %v12800_v16, %v10112_v15  ;;  %7766 = vmatpush.bf16.msrb.mxu2 %v9857_v56 }
 0x5ec   : > { %v12600_v27 = vld [vmem:[%s13682_s27 + $0x874] sm:$0xf0] }
 0x5ed   : > { %v9568_v47 = vld [vmem:[%s13682_s27 + $0xa58] sm:$0xf]  ;;  %v9313_v34 = vor.u32 %v12600_v27, %v9312_v45  ;;  %7779 = vmatpush.bf16.msrb.mxu3 %v10113_v28 }
 0x5ee   : > { %v12664_v53 = vld [vmem:[%s13682_s27 + $0xa74] sm:$0xf0] }
 0x5ef   : > { %v9824_v1 = vld [vmem:[%s13682_s27 + $0xc58] sm:$0xf]  ;;  %v9569_v42 = vor.u32 %v12664_v53, %v9568_v47  ;;  %7741 = vmatpush.bf16.msrb.mxu0 %v9313_v34 }
 0x5f0   : > { %v12728_v18 = vld [vmem:[%s13682_s27 + $0xc74] sm:$0xf0] }
 0x5f1   : > { %v10080_v60 = vld [vmem:[%s13682_s27 + $0xe58] sm:$0xf]  ;;  %v9825_v37 = vor.u32 %v12728_v18, %v9824_v1  ;;  %7754 = vmatpush.bf16.msrb.mxu1 %v9569_v42 }
 0x5f2   : > { %v12792_v31 = vld [vmem:[%s13682_s27 + $0xe74] sm:$0xf0] }
 0x5f3   : > { %v9280_v35 = vld [vmem:[%s13682_s27 + $0x818] sm:$0xf]  ;;  %v10081_v44 = vor.u32 %v12792_v31, %v10080_v60  ;;  %7767 = vmatpush.bf16.msrb.mxu2 %v9825_v37 }
 0x5f4   : > { %v12592_v36 = vld [vmem:[%s13682_s27 + $0x834] sm:$0xf0] }
 0x5f5   : > { %v9536_v39 = vld [vmem:[%s13682_s27 + $0xa18] sm:$0xf]  ;;  %v9281_v61 = vor.u32 %v12592_v36, %v9280_v35  ;;  %7780 = vmatpush.bf16.msrb.mxu3 %v10081_v44  ;;  %v7536_v44 = vpop.f32.mrf.mxu0 }
 0x5f6   : > { %v12656_v40 = vld [vmem:[%s13682_s27 + $0xa34] sm:$0xf0] }
 0x5f7   : > { %v9792_v41 = vld [vmem:[%s13682_s27 + $0xc18] sm:$0xf]  ;;  %v9537_v4 = vor.u32 %v12656_v40, %v9536_v39  ;;  %7742 = vmatpush.bf16.msrb.mxu0 %v9281_v61 }
 0x5f8   : > { %v12720_v46 = vld [vmem:[%s13682_s27 + $0xc34] sm:$0xf0] }
 0x5f9   : > { %v10048_v49 = vld [vmem:[%s13682_s27 + $0xe18] sm:$0xf]  ;;  %v9793_v52 = vor.u32 %v12720_v46, %v9792_v41  ;;  %7755 = vmatpush.bf16.msrb.mxu1 %v9537_v4 }
 0x5fa   : > { %v12784_v55 = vld [vmem:[%s13682_s27 + $0xe34] sm:$0xf0]  ;;  %7743 = vmatmul.bf16.vlgmr.msrb.gmra.mxu0 %v13856_v32 }
 0x5fb   : > { %v10528_v5 = vld [vmem:[%s13682_s27 + $0x11d8] sm:$0xf]  ;;  %v10049_v62 = vor.u32 %v12784_v55, %v10048_v49  ;;  %7768 = vmatpush.bf16.msrb.mxu2 %v9793_v52 }
 0x5fc   : > { %v12904_v58 = vld [vmem:[%s13682_s27 + $0x11f4] sm:$0xf0]  ;;  %7756 = vmatmul.bf16.vlgmr.msrb.gmra.mxu1 %v13862_v38 }
 0x5fd   : > { %v10784_v59 = vld [vmem:[%s13682_s27 + $0x13d8] sm:$0xf]  ;;  %v10529_v50 = vor.u32 %v12904_v58, %v10528_v5  ;;  %7781 = vmatpush.bf16.msrb.mxu3 %v10049_v62  ;;  %v7537_v58 = vadd.f32 %v7536_v44, %v15516_v19 }
 0x5fe   : > { %v12968_v0 = vld [vmem:[%s13682_s27 + $0x13f4] sm:$0xf0]  ;;  %7769 = vmatmul.bf16.vlgmr.msrb.gmra.mxu2 %v13853_v29 }
 0x5ff   : > { %v11040_v2 = vld [vmem:[%s13682_s27 + $0x15d8] sm:$0xf]  ;;  %v10785_v25 = vor.u32 %v12968_v0, %v10784_v59  ;;  %7787 = vmatpush.bf16.msra.mxu0 %v10529_v50  ;;  %v7549_v59 = vpop.f32.mrf.mxu1 }
 0x600   : > { %v13032_v3 = vld [vmem:[%s13682_s27 + $0x15f4] sm:$0xf0]  ;;  %7782 = vmatmul.bf16.vlgmr.msrb.gmra.mxu3 %v13858_v33 }
 0x601   : > { %v11296_v24 = vld [vmem:[%s13682_s27 + $0x17d8] sm:$0xf]  ;;  %v11041_v51 = vor.u32 %v13032_v3, %v11040_v2  ;;  %7800 = vmatpush.bf16.msra.mxu1 %v10785_v25 }
 0x602   : > { %v13096_v9 = vld [vmem:[%s13682_s27 + $0x17f4] sm:$0xf0] }
 0x603   : > { %v10496_v6 = vld [vmem:[%s13682_s27 + $0x1198] sm:$0xf]  ;;  %v11297_v10 = vor.u32 %v13096_v9, %v11296_v24  ;;  %7813 = vmatpush.bf16.msra.mxu2 %v11041_v51  ;;  %v7550_v24 = vadd.f32 %v7549_v59, %v7537_v58 }
 0x604   : > { %v12896_v7 = vld [vmem:[%s13682_s27 + $0x11b4] sm:$0xf0] }
 0x605   : > { %v10752_v8 = vld [vmem:[%s13682_s27 + $0x1398] sm:$0xf]  ;;  %v10497_v15 = vor.u32 %v12896_v7, %v10496_v6  ;;  %7826 = vmatpush.bf16.msra.mxu3 %v11297_v10  ;;  %v7562_v6 = vpop.f32.mrf.mxu2 }
 0x606   : > { %v12960_v11 = vld [vmem:[%s13682_s27 + $0x13b4] sm:$0xf0] }
 0x607   : > { %v11008_v12 = vld [vmem:[%s13682_s27 + $0x1598] sm:$0xf]  ;;  %v10753_v16 = vor.u32 %v12960_v11, %v10752_v8  ;;  %7788 = vmatpush.bf16.msra.mxu0 %v10497_v15 }
 0x608   : > { %v13024_v54 = vld [vmem:[%s13682_s27 + $0x15b4] sm:$0xf0] }
 0x609   : > { %v11264_v13 = vld [vmem:[%s13682_s27 + $0x1798] sm:$0xf]  ;;  %v11009_v17 = vor.u32 %v13024_v54, %v11008_v12  ;;  %7801 = vmatpush.bf16.msra.mxu1 %v10753_v16  ;;  %v7563_v12 = vadd.f32 %v7562_v6, %v7550_v24  ;;  %v7575_v54 = vpop.f32.mrf.mxu3 }
 0x60a   : > { %v13088_v14 = vld [vmem:[%s13682_s27 + $0x17b4] sm:$0xf0] }
 0x60b   : > { %v10464_v23 = vld [vmem:[%s13682_s27 + $0x1158] sm:$0xf]  ;;  %v11265_v45 = vor.u32 %v13088_v14, %v11264_v13  ;;  %7814 = vmatpush.bf16.msra.mxu2 %v11009_v17  ;;  %v15587_v16 = vadd.f32 %v7575_v54, %v7563_v12  ;;  %v7538_v17 = vpop.f32.mrf.mxu0 }
 0x60c   : > { %v12888_v30 = vld [vmem:[%s13682_s27 + $0x1174] sm:$0xf0] }
 0x60d   : > { %v10720_v56 = vld [vmem:[%s13682_s27 + $0x1358] sm:$0xf]  ;;  %v10465_v1 = vor.u32 %v12888_v30, %v10464_v23  ;;  %7827 = vmatpush.bf16.msra.mxu3 %v11265_v45 }
 0x60e   : > { %v12952_v27 = vld [vmem:[%s13682_s27 + $0x1374] sm:$0xf0] }
 0x60f   : > { %v10976_v47 = vld [vmem:[%s13682_s27 + $0x1558] sm:$0xf]  ;;  %v10721_v18 = vor.u32 %v12952_v27, %v10720_v56  ;;  %7789 = vmatpush.bf16.msra.mxu0 %v10465_v1 }
 0x610   : > { %v13016_v63 = vld [vmem:[%s13682_s27 + $0x1574] sm:$0xf0] }
 0x611   : > { %v11232_v28 = vld [vmem:[%s13682_s27 + $0x1758] sm:$0xf]  ;;  %v10977_v60 = vor.u32 %v13016_v63, %v10976_v47  ;;  %7802 = vmatpush.bf16.msra.mxu1 %v10721_v18  ;;  %v7551_v47 = vpop.f32.mrf.mxu1 }
 0x612   : > { %v13080_v53 = vld [vmem:[%s13682_s27 + $0x1774] sm:$0xf0] }
 0x613   : > { %v10432_v31 = vld [vmem:[%s13682_s27 + $0x1118] sm:$0xf]  ;;  %v11233_v36 = vor.u32 %v13080_v53, %v11232_v28  ;;  %7815 = vmatpush.bf16.msra.mxu2 %v10977_v60 }
 0x614   : > { %v12880_v34 = vld [vmem:[%s13682_s27 + $0x1134] sm:$0xf0] }
 0x615   : > { %v10688_v35 = vld [vmem:[%s13682_s27 + $0x1318] sm:$0xf]  ;;  %v10433_v43 = vor.u32 %v12880_v34, %v10432_v31  ;;  %7828 = vmatpush.bf16.msra.mxu3 %v11233_v36 }
 0x616   : > { %v12944_v42 = vld [vmem:[%s13682_s27 + $0x1334] sm:$0xf0] }
 0x617   : > { %v10944_v37 = vld [vmem:[%s13682_s27 + $0x1518] sm:$0xf]  ;;  %v10689_v46 = vor.u32 %v12944_v42, %v10688_v35  ;;  %7790 = vmatpush.bf16.msra.mxu0 %v10433_v43 }
 0x618   : > { %v13008_v39 = vld [vmem:[%s13682_s27 + $0x1534] sm:$0xf0] }
 0x619   : > { %v11200_v40 = vld [vmem:[%s13682_s27 + $0x1718] sm:$0xf]  ;;  %v10945_v49 = vor.u32 %v13008_v39, %v10944_v37  ;;  %7803 = vmatpush.bf16.msra.mxu1 %v10689_v46 }
 0x61a   : > { %v13072_v41 = vld [vmem:[%s13682_s27 + $0x1734] sm:$0xf0] }
 0x61b   : > { %v10400_v55 = vld [vmem:[%s13682_s27 + $0x10d8] sm:$0xf]  ;;  %v11201_v61 = vor.u32 %v13072_v41, %v11200_v40  ;;  %7816 = vmatpush.bf16.msra.mxu2 %v10945_v49  ;;  %v7564_v41 = vpop.f32.mrf.mxu2 }
 0x61c   : > { %v12872_v57 = vld [vmem:[%s13682_s27 + $0x10f4] sm:$0xf0] }
 0x61d   : > { %v10656_v5 = vld [vmem:[%s13682_s27 + $0x12d8] sm:$0xf]  ;;  %v10401_v9 = vor.u32 %v12872_v57, %v10400_v55  ;;  %7829 = vmatpush.bf16.msra.mxu3 %v11201_v61  ;;  %v7577_v55 = vpop.f32.mrf.mxu3 }
 0x61e   : > { %v12936_v0 = vld [vmem:[%s13682_s27 + $0x12f4] sm:$0xf0] }
 0x61f   : > { %v10912_v2 = vld [vmem:[%s13682_s27 + $0x14d8] sm:$0xf]  ;;  %v10657_v19 = vor.u32 %v12936_v0, %v10656_v5  ;;  %7791 = vmatpush.bf16.msra.mxu0 %v10401_v9 }
 0x620   : > { %v13000_v3 = vld [vmem:[%s13682_s27 + $0x14f4] sm:$0xf0] }
 0x621   : > { %v11168_v4 = vld [vmem:[%s13682_s27 + $0x16d8] sm:$0xf]  ;;  %v10913_v62 = vor.u32 %v13000_v3, %v10912_v2  ;;  %7804 = vmatpush.bf16.msra.mxu1 %v10657_v19 }
 0x622   : > { %v13064_v52 = vld [vmem:[%s13682_s27 + $0x16f4] sm:$0xf0] }
 0x623   : > { %v10368_v50 = vld [vmem:[%s13682_s27 + $0x1098] sm:$0xf]  ;;  %v11169_v7 = vor.u32 %v13064_v52, %v11168_v4  ;;  %7817 = vmatpush.bf16.msra.mxu2 %v10913_v62 }
 0x624   : > { %v12864_v25 = vld [vmem:[%s13682_s27 + $0x10b4] sm:$0xf0] }
 0x625   : > { %v10624_v51 = vld [vmem:[%s13682_s27 + $0x1298] sm:$0xf]  ;;  %v10369_v15 = vor.u32 %v12864_v25, %v10368_v50  ;;  %7830 = vmatpush.bf16.msra.mxu3 %v11169_v7 }
 0x626   : > { %v12928_v8 = vld [vmem:[%s13682_s27 + $0x12b4] sm:$0xf0] }
 0x627   : > { %v10880_v10 = vld [vmem:[%s13682_s27 + $0x1498] sm:$0xf]  ;;  %v10625_v23 = vor.u32 %v12928_v8, %v10624_v51  ;;  %7792 = vmatpush.bf16.msra.mxu0 %v10369_v15 }
 0x628   : > { %v12992_v11 = vld [vmem:[%s13682_s27 + $0x14b4] sm:$0xf0] }
 0x629   : > { %v11136_v13 = vld [vmem:[%s13682_s27 + $0x1698] sm:$0xf]  ;;  %v10881_v30 = vor.u32 %v12992_v11, %v10880_v10  ;;  %7805 = vmatpush.bf16.msra.mxu1 %v10625_v23 }
 0x62a   : > { %v13056_v14 = vld [vmem:[%s13682_s27 + $0x16b4] sm:$0xf0] }
 0x62b   : > { %v10336_v56 = vld [vmem:[%s13682_s27 + $0x1058] sm:$0xf]  ;;  %v11137_v63 = vor.u32 %v13056_v14, %v11136_v13  ;;  %7818 = vmatpush.bf16.msra.mxu2 %v10881_v30 }
 0x62c   : > { %v12856_v45 = vld [vmem:[%s13682_s27 + $0x1074] sm:$0xf0] }
 0x62d   : > { %v10592_v27 = vld [vmem:[%s13682_s27 + $0x1258] sm:$0xf]  ;;  %v10337_v31 = vor.u32 %v12856_v45, %v10336_v56  ;;  %7831 = vmatpush.bf16.msra.mxu3 %v11137_v63 }
 0x62e   : > { %v12920_v28 = vld [vmem:[%s13682_s27 + $0x1274] sm:$0xf0] }
 0x62f   : > { %v10848_v53 = vld [vmem:[%s13682_s27 + $0x1458] sm:$0xf]  ;;  %v10593_v36 = vor.u32 %v12920_v28, %v10592_v27  ;;  %7793 = vmatpush.bf16.msra.mxu0 %v10337_v31  ;;  %v13446_v28 = vld [vmem:[#allocation1 + $0x12] sm:$0xff] }
 0x630   : > { %v12984_v1 = vld [vmem:[%s13682_s27 + $0x1474] sm:$0xf0] }
 0x631   : > { %v11104_v18 = vld [vmem:[%s13682_s27 + $0x1658] sm:$0xf]  ;;  %v10849_v42 = vor.u32 %v12984_v1, %v10848_v53  ;;  %7806 = vmatpush.bf16.msra.mxu1 %v10593_v36  ;;  %v13447_v53 = vld [vmem:[#allocation1 + $0x9] sm:$0xff] }
 0x632   : > { %v13048_v60 = vld [vmem:[%s13682_s27 + $0x1674] sm:$0xf0] }
 0x633   : > { %v10304_v34 = vld [vmem:[%s13682_s27 + $0x1018] sm:$0xf]  ;;  %v11105_v43 = vor.u32 %v13048_v60, %v11104_v18  ;;  %7819 = vmatpush.bf16.msra.mxu2 %v10849_v42 }
 0x634   : > { %v12848_v35 = vld [vmem:[%s13682_s27 + $0x1034] sm:$0xf0] }
 0x635   : > { %v10560_v37 = vld [vmem:[%s13682_s27 + $0x1218] sm:$0xf]  ;;  %v10305_v59 = vor.u32 %v12848_v35, %v10304_v34  ;;  %7832 = vmatpush.bf16.msra.mxu3 %v11105_v43 }
 0x636   : > { %v12912_v39 = vld [vmem:[%s13682_s27 + $0x1234] sm:$0xf0] }
 0x637   : > { %v10816_v40 = vld [vmem:[%s13682_s27 + $0x1418] sm:$0xf]  ;;  %v10561_v3 = vor.u32 %v12912_v39, %v10560_v37  ;;  %7794 = vmatpush.bf16.msra.mxu0 %v10305_v59 }
 0x638   : > { %v12976_v44 = vld [vmem:[%s13682_s27 + $0x1434] sm:$0xf0] }
 0x639   : > { %v11072_v46 = vld [vmem:[%s13682_s27 + $0x1618] sm:$0xf]  ;;  %v10817_v4 = vor.u32 %v12976_v44, %v10816_v40  ;;  %7807 = vmatpush.bf16.msra.mxu1 %v10561_v3  ;;  %v7588_v44 = vpop.f32.mrf.mxu0 }
 0x63a   : > { %v13040_v49 = vld [vmem:[%s13682_s27 + $0x1634] sm:$0xf0]  ;;  %v7589_v55 = vadd.f32 %v7588_v44, %v15587_v16 }
 0x63b   : > { %v11552_v57 = vld [vmem:[%s13682_s27 + $0x19d8] sm:$0xf]  ;;  %v11073_v9 = vor.u32 %v13040_v49, %v11072_v46  ;;  %7820 = vmatpush.bf16.msra.mxu2 %v10817_v4 }
 0x63c   : > { %v13160_v5 = vld [vmem:[%s13682_s27 + $0x19f4] sm:$0xf0]  ;;  %7808 = vmatmul.bf16.vlgmr.msra.gmra.mxu1 %v13447_v53 }
 0x63d   : > { %v11808_v58 = vld [vmem:[%s13682_s27 + $0x1bd8] sm:$0xf]  ;;  %v11553_v19 = vor.u32 %v13160_v5, %v11552_v57  ;;  %7833 = vmatpush.bf16.msra.mxu3 %v11073_v9  ;;  %v7601_v5 = vpop.f32.mrf.mxu1 }
 0x63e   : > { %v13224_v61 = vld [vmem:[%s13682_s27 + $0x1bf4] sm:$0xf0]  ;;  %7821 = vmatmul.bf16.vlgmr.msra.gmra.mxu2 %v13446_v28  ;;  %v7602_v4 = vadd.f32 %v7601_v5, %v7589_v55 }
 0x63f   : > { %v12064_v0 = vld [vmem:[%s13682_s27 + $0x1dd8] sm:$0xf]  ;;  %v11809_v62 = vor.u32 %v13224_v61, %v11808_v58  ;;  %7839 = vmatpush.bf16.msrb.mxu0 %v11553_v19 }
 0x640   : > { %v13288_v2 = vld [vmem:[%s13682_s27 + $0x1df4] sm:$0xf0] }
 0x641   : > { %v12320_v52 = vld [vmem:[%s13682_s27 + $0x1fd8] sm:$0xf]  ;;  %v12065_v50 = vor.u32 %v13288_v2, %v12064_v0  ;;  %7852 = vmatpush.bf16.msrb.mxu1 %v11809_v62 }
 0x642   : > { %v13352_v24 = vld [vmem:[%s13682_s27 + $0x1ff4] sm:$0xf0] }
 0x643   : > { %v11520_v25 = vld [vmem:[%s13682_s27 + $0x1998] sm:$0xf]  ;;  %v12321_v7 = vor.u32 %v13352_v24, %v12320_v52  ;;  %7865 = vmatpush.bf16.msrb.mxu2 %v12065_v50 }
 0x644   : > { %v13152_v51 = vld [vmem:[%s13682_s27 + $0x19b4] sm:$0xf0] }
 0x645   : > { %v11776_v6 = vld [vmem:[%s13682_s27 + $0x1b98] sm:$0xf]  ;;  %v11521_v13 = vor.u32 %v13152_v51, %v11520_v25  ;;  %7878 = vmatpush.bf16.msrb.mxu3 %v12321_v7 }
 0x646   : > { %v13216_v8 = vld [vmem:[%s13682_s27 + $0x1bb4] sm:$0xf0] }
 0x647   : > { %v12032_v10 = vld [vmem:[%s13682_s27 + $0x1d98] sm:$0xf]  ;;  %v11777_v14 = vor.u32 %v13216_v8, %v11776_v6  ;;  %7840 = vmatpush.bf16.msrb.mxu0 %v11521_v13 }
 0x648   : > { %v13280_v11 = vld [vmem:[%s13682_s27 + $0x1db4] sm:$0xf0] }
 0x649   : > { %v12288_v12 = vld [vmem:[%s13682_s27 + $0x1f98] sm:$0xf]  ;;  %v12033_v15 = vor.u32 %v13280_v11, %v12032_v10  ;;  %7853 = vmatpush.bf16.msrb.mxu1 %v11777_v14  ;;  %v7614_v10 = vpop.f32.mrf.mxu2  ;;  %v7627_v14 = vpop.f32.mrf.mxu3 }
 0x64a   : > { %v13344_v54 = vld [vmem:[%s13682_s27 + $0x1fb4] sm:$0xf0]  ;;  %v7615_v13 = vadd.f32 %v7614_v10, %v7602_v4  ;;  %v12516_v4 = vld [vmem:[%s13682_s27 + $0x5dc] sm:$0xf] }
 0x64b   : > { %v11488_v17 = vld [vmem:[%s13682_s27 + $0x1958] sm:$0xf]  ;;  %v12289_v45 = vor.u32 %v13344_v54, %v12288_v12  ;;  %7866 = vmatpush.bf16.msrb.mxu2 %v12033_v15 }
 0x64c   : > { %v13144_v23 = vld [vmem:[%s13682_s27 + $0x1974] sm:$0xf0] }
 0x64d   : > { %v11744_v30 = vld [vmem:[%s13682_s27 + $0x1b58] sm:$0xf]  ;;  %v11489_v31 = vor.u32 %v13144_v23, %v11488_v17  ;;  %7879 = vmatpush.bf16.msrb.mxu3 %v12289_v45  ;;  %v7590_v23 = vpop.f32.mrf.mxu0  ;;  %v15654_v45 = vadd.f32 %v7627_v14, %v7615_v13  ;;  %v12572_v13 = vld [vmem:[%s13682_s27 + $0x79c] sm:$0xf] }
 0x64e   : > { %v13445_v56 = vld [vmem:[#allocation1] sm:$0xff] }
 0x64f   : > { %7795 = vmatmul.bf16.vlgmr.msra.gmra.mxu0 %v13445_v56  ;;  %v13208_v27 = vld [vmem:[%s13682_s27 + $0x1b74] sm:$0xf0]  ;;  %v7603_v56 = vpop.f32.mrf.mxu1  ;;  %v9218_v14 = vld [vmem:[%s13682_s27 + $0x7b8] sm:$0xf0] }
 0x650   : > { %v12000_v47 = vld [vmem:[%s13682_s27 + $0x1d58] sm:$0xf]  ;;  %v11745_v34 = vor.u32 %v13208_v27, %v11744_v30  ;;  %7841 = vmatpush.bf16.msrb.mxu0 %v11489_v31  ;;  %v8418_v56 = vld [vmem:[%s13682_s27 + $0x178] sm:$0xf0] }
 0x651   : > { %v13272_v63 = vld [vmem:[%s13682_s27 + $0x1d74] sm:$0xf0]  ;;  %v7616_v5 = vpop.f32.mrf.mxu2 }
 0x652   : > { %v12256_v1 = vld [vmem:[%s13682_s27 + $0x1f58] sm:$0xf]  ;;  %v12001_v35 = vor.u32 %v13272_v63, %v12000_v47  ;;  %7854 = vmatpush.bf16.msrb.mxu1 %v11745_v34  ;;  %v9154_v5 = vld [vmem:[%s13682_s27 + $0x738] sm:$0xf0] }
 0x653   : > { %v13336_v18 = vld [vmem:[%s13682_s27 + $0x1f74] sm:$0xf0] }
 0x654   : > { %v13448_v60 = vld [vmem:[#allocation1 + $0x1b] sm:$0xff]  ;;  %v12257_v39 = vor.u32 %v13336_v18, %v12256_v1  ;;  %7867 = vmatpush.bf16.msrb.mxu2 %v12001_v35 }
 0x655   : > { %7834 = vmatmul.bf16.vlgmr.msra.gmra.mxu3 %v13448_v60  ;;  %v11456_v36 = vld [vmem:[%s13682_s27 + $0x1918] sm:$0xf] }
 0x656   : > { %v13136_v42 = vld [vmem:[%s13682_s27 + $0x1934] sm:$0xf0]  ;;  %7880 = vmatpush.bf16.msrb.mxu3 %v12257_v39 }
 0x657   : > { %v11712_v37 = vld [vmem:[%s13682_s27 + $0x1b18] sm:$0xf]  ;;  %v11457_v57 = vor.u32 %v13136_v42, %v11456_v36 }
 0x658   : > { %v13200_v40 = vld [vmem:[%s13682_s27 + $0x1b34] sm:$0xf0] }
 0x659   : > { %v11968_v41 = vld [vmem:[%s13682_s27 + $0x1d18] sm:$0xf]  ;;  %v11713_v58 = vor.u32 %v13200_v40, %v11712_v37  ;;  %7842 = vmatpush.bf16.msrb.mxu0 %v11457_v57 }
 0x65a   : > { %v13264_v43 = vld [vmem:[%s13682_s27 + $0x1d34] sm:$0xf0] }
 0x65b   : > { %v12224_v46 = vld [vmem:[%s13682_s27 + $0x1f18] sm:$0xf]  ;;  %v11969_v59 = vor.u32 %v13264_v43, %v11968_v41  ;;  %7855 = vmatpush.bf16.msrb.mxu1 %v11713_v58  ;;  %v12388_v58 = vld [vmem:[%s13682_s27 + $0x1dc] sm:$0xf] }
 0x65c   : > { %v13328_v49 = vld [vmem:[%s13682_s27 + $0x1f34] sm:$0xf0] }
 0x65d   : > { %v11424_v61 = vld [vmem:[%s13682_s27 + $0x18d8] sm:$0xf]  ;;  %v12225_v3 = vor.u32 %v13328_v49, %v12224_v46  ;;  %7868 = vmatpush.bf16.msrb.mxu2 %v11969_v59  ;;  %v8482_v59 = vld [vmem:[%s13682_s27 + $0x1f8] sm:$0xf0] }
 0x65e   : > { %v13128_v0 = vld [vmem:[%s13682_s27 + $0x18f4] sm:$0xf0] }
 0x65f   : > { %v11680_v2 = vld [vmem:[%s13682_s27 + $0x1ad8] sm:$0xf]  ;;  %v11425_v62 = vor.u32 %v13128_v0, %v11424_v61  ;;  %7881 = vmatpush.bf16.msrb.mxu3 %v12225_v3  ;;  %v12452_v61 = vld [vmem:[%s13682_s27 + $0x3dc] sm:$0xf]  ;;  %v7629_v0 = vpop.f32.mrf.mxu3 }
 0x660   : > { %v13192_v52 = vld [vmem:[%s13682_s27 + $0x1af4] sm:$0xf0]  ;;  %v8738_v3 = vld [vmem:[%s13682_s27 + $0x3f8] sm:$0xf0] }
 0x661   : > { %v11936_v24 = vld [vmem:[%s13682_s27 + $0x1cd8] sm:$0xf]  ;;  %v11681_v50 = vor.u32 %v13192_v52, %v11680_v2  ;;  %7843 = vmatpush.bf16.msrb.mxu0 %v11425_v62  ;;  %v8994_v52 = vld [vmem:[%s13682_s27 + $0x5f8] sm:$0xf0] }
 0x662   : > { %v13256_v16 = vld [vmem:[%s13682_s27 + $0x1cf4] sm:$0xf0] }
 0x663   : > { %v12192_v9 = vld [vmem:[%s13682_s27 + $0x1ed8] sm:$0xf]  ;;  %v11937_v25 = vor.u32 %v13256_v16, %v11936_v24  ;;  %7856 = vmatpush.bf16.msrb.mxu1 %v11681_v50  ;;  %v8485_v50 = vor.u32 %v12388_v58, %v8482_v59 }
 0x664   : > { %v13320_v19 = vld [vmem:[%s13682_s27 + $0x1ef4] sm:$0xf0] }
 0x665   : > { %v11392_v51 = vld [vmem:[%s13682_s27 + $0x1898] sm:$0xf]  ;;  %v12193_v8 = vor.u32 %v13320_v19, %v12192_v9  ;;  %7869 = vmatpush.bf16.msrb.mxu2 %v11937_v25  ;;  %v12580_v9 = vld [vmem:[%s13682_s27 + $0x7dc] sm:$0xf]  ;;  %v8741_v25 = vor.u32 %v12452_v61, %v8738_v3  ;;  %v7653_v61 = vpop.f32.mrf.mxu1 }
 0x666   : > { %v13120_v6 = vld [vmem:[%s13682_s27 + $0x18b4] sm:$0xf0]  ;;  %v9250_v19 = vld [vmem:[%s13682_s27 + $0x7f8] sm:$0xf0] }
 0x667   : > { %v11648_v7 = vld [vmem:[%s13682_s27 + $0x1a98] sm:$0xf]  ;;  %v11393_v30 = vor.u32 %v13120_v6, %v11392_v51  ;;  %7882 = vmatpush.bf16.msrb.mxu3 %v12193_v8  ;;  %v8997_v51 = vor.u32 %v12516_v4, %v8994_v52  ;;  %v12380_v6 = vld [vmem:[%s13682_s27 + $0x19c] sm:$0xf]  ;;  %v9253_v10 = vor.u32 %v12580_v9, %v9250_v19 }
 0x668   : > { %v13184_v11 = vld [vmem:[%s13682_s27 + $0x1ab4] sm:$0xf0]  ;;  %v12444_v8 = vld [vmem:[%s13682_s27 + $0x39c] sm:$0xf] }
 0x669   : > { %v11904_v12 = vld [vmem:[%s13682_s27 + $0x1c98] sm:$0xf]  ;;  %v11649_v27 = vor.u32 %v13184_v11, %v11648_v7  ;;  %7844 = vmatpush.bf16.msrb.mxu0 %v11393_v30  ;;  %v8450_v7 = vld [vmem:[%s13682_s27 + $0x1b8] sm:$0xf0] }
 0x66a   : > { %v13248_v54 = vld [vmem:[%s13682_s27 + $0x1cb4] sm:$0xf0]  ;;  %v8706_v11 = vld [vmem:[%s13682_s27 + $0x3b8] sm:$0xf0] }
 0x66b   : > { %v12160_v15 = vld [vmem:[%s13682_s27 + $0x1e98] sm:$0xf]  ;;  %v11905_v47 = vor.u32 %v13248_v54, %v11904_v12  ;;  %7857 = vmatpush.bf16.msrb.mxu1 %v11649_v27  ;;  %v12508_v12 = vld [vmem:[%s13682_s27 + $0x59c] sm:$0xf] }
 0x66c   : > { %v13312_v17 = vld [vmem:[%s13682_s27 + $0x1eb4] sm:$0xf0]  ;;  %v8962_v54 = vld [vmem:[%s13682_s27 + $0x5b8] sm:$0xf0] }
 0x66d   : > { %v11360_v63 = vld [vmem:[%s13682_s27 + $0x1858] sm:$0xf]  ;;  %v12161_v1 = vor.u32 %v13312_v17, %v12160_v15  ;;  %7870 = vmatpush.bf16.msrb.mxu2 %v11905_v47  ;;  %v8453_v15 = vor.u32 %v12380_v6, %v8450_v7  ;;  %v8709_v17 = vor.u32 %v12444_v8, %v8706_v11  ;;  %v8965_v23 = vor.u32 %v12508_v12, %v8962_v54  ;;  %v12372_v30 = vld [vmem:[%s13682_s27 + $0x15c] sm:$0xf]  ;;  %v7666_v12 = vpop.f32.mrf.mxu2 }
 0x66e   : > { %v13112_v28 = vld [vmem:[%s13682_s27 + $0x1874] sm:$0xf0]  ;;  %v12436_v27 = vld [vmem:[%s13682_s27 + $0x35c] sm:$0xf] }
 0x66f   : > { %v11616_v53 = vld [vmem:[%s13682_s27 + $0x1a58] sm:$0xf]  ;;  %v11361_v36 = vor.u32 %v13112_v28, %v11360_v63  ;;  %7883 = vmatpush.bf16.msrb.mxu3 %v12161_v1  ;;  %v13449_v47 = vld [vmem:[#allocation1 + $0x24] sm:$0xff]  ;;  %v9221_v63 = vor.u32 %v12572_v13, %v9218_v14 }
 0x670   : > { %v13176_v18 = vld [vmem:[%s13682_s27 + $0x1a74] sm:$0xf0]  ;;  %v8674_v28 = vld [vmem:[%s13682_s27 + $0x378] sm:$0xf0] }
 0x671   : > { %v11872_v60 = vld [vmem:[%s13682_s27 + $0x1c58] sm:$0xf]  ;;  %v11617_v39 = vor.u32 %v13176_v18, %v11616_v53  ;;  %7845 = vmatpush.bf16.msrb.mxu0 %v11361_v36  ;;  %v12500_v53 = vld [vmem:[%s13682_s27 + $0x55c] sm:$0xf]  ;;  %v13450_v18 = vld [vmem:[#allocation1 + $0x36] sm:$0xff]  ;;  %v8421_v36 = vor.u32 %v12372_v30, %v8418_v56 }
 0x672   : > { %v13240_v31 = vld [vmem:[%s13682_s27 + $0x1c74] sm:$0xf0]  ;;  %v8930_v1 = vld [vmem:[%s13682_s27 + $0x578] sm:$0xf0] }
 0x673   : > { %v12128_v34 = vld [vmem:[%s13682_s27 + $0x1e58] sm:$0xf]  ;;  %v11873_v40 = vor.u32 %v13240_v31, %v11872_v60  ;;  %7858 = vmatpush.bf16.msrb.mxu1 %v11617_v39  ;;  %v13451_v60 = vld [vmem:[#allocation1 + $0x2d] sm:$0xff]  ;;  %v12564_v31 = vld [vmem:[%s13682_s27 + $0x75c] sm:$0xf] }
 0x674   : > { %v13304_v35 = vld [vmem:[%s13682_s27 + $0x1e74] sm:$0xf0]  ;;  %v12364_v39 = vld [vmem:[%s13682_s27 + $0x11c] sm:$0xf] }
 0x675   : > { %v11328_v42 = vld [vmem:[%s13682_s27 + $0x1818] sm:$0xf]  ;;  %v12129_v46 = vor.u32 %v13304_v35, %v12128_v34  ;;  %7871 = vmatpush.bf16.msrb.mxu2 %v11873_v40  ;;  %v9186_v34 = vld [vmem:[%s13682_s27 + $0x778] sm:$0xf0] }
 0x676   : > { %v13104_v37 = vld [vmem:[%s13682_s27 + $0x1834] sm:$0xf0]  ;;  %v8386_v40 = vld [vmem:[%s13682_s27 + $0x138] sm:$0xf0] }
 0x677   : > { %v11584_v41 = vld [vmem:[%s13682_s27 + $0x1a18] sm:$0xf]  ;;  %v11329_v2 = vor.u32 %v13104_v37, %v11328_v42  ;;  %7884 = vmatpush.bf16.msrb.mxu3 %v12129_v46  ;;  %v8677_v42 = vor.u32 %v12436_v27, %v8674_v28  ;;  %v8933_v37 = vor.u32 %v12500_v53, %v8930_v1  ;;  %v12492_v46 = vld [vmem:[%s13682_s27 + $0x51c] sm:$0xf]  ;;  %v8389_v59 = vor.u32 %v12364_v39, %v8386_v40 }
 0x678   : > { %v13168_v43 = vld [vmem:[%s13682_s27 + $0x1a34] sm:$0xf0]  ;;  %v12356_v3 = vld [vmem:[%s13682_s27 + $0xdc] sm:$0xf] }
 0x679   : > { %v11840_v44 = vld [vmem:[%s13682_s27 + $0x1c18] sm:$0xf]  ;;  %v11585_v24 = vor.u32 %v13168_v43, %v11584_v41  ;;  %7846 = vmatpush.bf16.msrb.mxu0 %v11329_v2  ;;  %v12428_v41 = vld [vmem:[%s13682_s27 + $0x31c] sm:$0xf]  ;;  %v9189_v43 = vor.u32 %v12564_v31, %v9186_v34 }
 0x67a   : > { %v13232_v49 = vld [vmem:[%s13682_s27 + $0x1c34] sm:$0xf0]  ;;  %v8354_v4 = vld [vmem:[%s13682_s27 + $0xf8] sm:$0xf0] }
 0x67b   : > { %v12096_v55 = vld [vmem:[%s13682_s27 + $0x1e18] sm:$0xf]  ;;  %v11841_v16 = vor.u32 %v13232_v49, %v11840_v44  ;;  %7859 = vmatpush.bf16.msrb.mxu1 %v11585_v24  ;;  %v8642_v44 = vld [vmem:[%s13682_s27 + $0x338] sm:$0xf0] }
 0x67c   : > { %v13296_v57 = vld [vmem:[%s13682_s27 + $0x1e34] sm:$0xf0]  ;;  %7847 = vmatmul.bf16.vlgmr.msrb.gmra.mxu0 %v13449_v47  ;;  %v8898_v49 = vld [vmem:[%s13682_s27 + $0x538] sm:$0xf0]  ;;  %v8645_v0 = vor.u32 %v12428_v41, %v8642_v44  ;;  %v7655_v47 = vpop.f32.mrf.mxu1 }
 0x67d   : > { %v12097_v62 = vor.u32 %v13296_v57, %v12096_v55  ;;  %7872 = vmatpush.bf16.msrb.mxu2 %v11841_v16  ;;  %7891 = vmatpush.bf16.msra.mxu0 %v8485_v50  ;;  %v13452_v35 = vld [vmem:[#allocation1 + $0x3f] sm:$0xff]  ;;  %v7640_v55 = vpop.f32.mrf.mxu0  ;;  %v8901_v2 = vor.u32 %v12492_v46, %v8898_v49 }
 0x67e   : > { %7860 = vmatmul.bf16.vlgmr.msrb.gmra.mxu1 %v13451_v60  ;;  %v12556_v57 = vld [vmem:[%s13682_s27 + $0x71c] sm:$0xf]  ;;  %v7641_v58 = vadd.f32 %v7640_v55, %v15654_v45 }
 0x67f   : > { %7885 = vmatpush.bf16.msrb.mxu3 %v12097_v62  ;;  %7904 = vmatpush.bf16.msra.mxu1 %v8741_v25  ;;  %v12420_v52 = vld [vmem:[%s13682_s27 + $0x2dc] sm:$0xf]  ;;  %v9157_v24 = vor.u32 %v12556_v57, %v9154_v5  ;;  %v8357_v25 = vor.u32 %v12356_v3, %v8354_v4 }
 0x680   : > { %7873 = vmatmul.bf16.vlgmr.msrb.gmra.mxu2 %v13450_v18  ;;  %v7654_v16 = vadd.f32 %v7653_v61, %v7641_v58  ;;  %v8610_v9 = vld [vmem:[%s13682_s27 + $0x2f8] sm:$0xf0] }
 0x681   : > { %7917 = vmatpush.bf16.msra.mxu2 %v8997_v51  ;;  %7892 = vmatpush.bf16.msra.mxu0 %v8453_v15  ;;  %v12484_v19 = vld [vmem:[%s13682_s27 + $0x4dc] sm:$0xf]  ;;  %v8613_v51 = vor.u32 %v12420_v52, %v8610_v9 }
 0x682   : > { %7886 = vmatmul.bf16.vlgmr.msrb.gmra.mxu3 %v13452_v35  ;;  %v8866_v45 = vld [vmem:[%s13682_s27 + $0x4f8] sm:$0xf0]  ;;  %v7667_v15 = vadd.f32 %v7666_v12, %v7654_v16 }
 0x683   : > { %7930 = vmatpush.bf16.msra.mxu3 %v9253_v10  ;;  %7905 = vmatpush.bf16.msra.mxu1 %v8709_v17  ;;  %v12548_v62 = vld [vmem:[%s13682_s27 + $0x6dc] sm:$0xf]  ;;  %v8869_v6 = vor.u32 %v12484_v19, %v8866_v45  ;;  %v7679_v17 = vpop.f32.mrf.mxu3 }
 0x684   : > { %v9122_v50 = vld [vmem:[%s13682_s27 + $0x6f8] sm:$0xf0] }
 0x685   : > { %7918 = vmatpush.bf16.msra.mxu2 %v8965_v23  ;;  %7893 = vmatpush.bf16.msra.mxu0 %v8421_v36  ;;  %v12348_v7 = vld [vmem:[%s13682_s27 + $0x9c] sm:$0xf]  ;;  %v9125_v11 = vor.u32 %v12548_v62, %v9122_v50  ;;  %v7642_v56 = vpop.f32.mrf.mxu0 }
 0x686   : > { %v8322_v8 = vld [vmem:[%s13682_s27 + $0xb8] sm:$0xf0] }
 0x687   : > { %7931 = vmatpush.bf16.msra.mxu3 %v9221_v63  ;;  %7906 = vmatpush.bf16.msra.mxu1 %v8677_v42  ;;  %v12412_v10 = vld [vmem:[%s13682_s27 + $0x29c] sm:$0xf]  ;;  %v8325_v27 = vor.u32 %v12348_v7, %v8322_v8  ;;  %v7680_v63 = vadd.f32 %v7679_v17, %v7667_v15 }
 0x688   : > { %v8578_v54 = vld [vmem:[%s13682_s27 + $0x2b8] sm:$0xf0] }
 0x689   : > { %7919 = vmatpush.bf16.msra.mxu2 %v8933_v37  ;;  %7894 = vmatpush.bf16.msra.mxu0 %v8389_v59  ;;  %v12476_v13 = vld [vmem:[%s13682_s27 + $0x49c] sm:$0xf]  ;;  %v8581_v28 = vor.u32 %v12412_v10, %v8578_v54  ;;  %v8110_v42 = vrot.slane %v7680_v63, 6 }
 0x68a   : > { %v8834_v14 = vld [vmem:[%s13682_s27 + $0x4b8] sm:$0xf0] }
 0x68b   : > { %7932 = vmatpush.bf16.msra.mxu3 %v9189_v43  ;;  %7907 = vmatpush.bf16.msra.mxu1 %v8645_v0  ;;  %v12540_v23 = vld [vmem:[%s13682_s27 + $0x69c] sm:$0xf]  ;;  %v8837_v53 = vor.u32 %v12476_v13, %v8834_v14  ;;  %v15733_v44 = vsel %vm8113_vm0, %v15445_v48, %v8110_v42  ;;  %v7668_v48 = vpop.f32.mrf.mxu2  ;;  %v7681_v52 = vpop.f32.mrf.mxu3 }
 0x68c   : > { %v9090_v30 = vld [vmem:[%s13682_s27 + $0x6b8] sm:$0xf0] }
 0x68d   : > { %7920 = vmatpush.bf16.msra.mxu2 %v8901_v2  ;;  %7895 = vmatpush.bf16.msra.mxu0 %v8357_v25  ;;  %v12340_v1 = vld [vmem:[%s13682_s27 + $0x5c] sm:$0xf]  ;;  %v9093_v31 = vor.u32 %v12540_v23, %v9090_v30 }
 0x68e   : > { %v8290_v18 = vld [vmem:[%s13682_s27 + $0x78] sm:$0xf0] }
 0x68f   : > { %7933 = vmatpush.bf16.msra.mxu3 %v9157_v24  ;;  %7908 = vmatpush.bf16.msra.mxu1 %v8613_v51  ;;  %v12404_v60 = vld [vmem:[%s13682_s27 + $0x25c] sm:$0xf]  ;;  %v8293_v40 = vor.u32 %v12340_v1, %v8290_v18 }
 0x690   : > { %v8546_v34 = vld [vmem:[%s13682_s27 + $0x278] sm:$0xf0] }
 0x691   : > { %7921 = vmatpush.bf16.msra.mxu2 %v8869_v6  ;;  %v12468_v35 = vld [vmem:[%s13682_s27 + $0x45c] sm:$0xf]  ;;  %7896 = vmatpush.bf16.msra.mxu0 %v8325_v27  ;;  %v8549_v46 = vor.u32 %v12404_v60, %v8546_v34 }
 0x692   : > { %v8802_v36 = vld [vmem:[%s13682_s27 + $0x478] sm:$0xf0] }
 0x693   : > { %7934 = vmatpush.bf16.msra.mxu3 %v9125_v11  ;;  %v12532_v37 = vld [vmem:[%s13682_s27 + $0x65c] sm:$0xf]  ;;  %7909 = vmatpush.bf16.msra.mxu1 %v8581_v28  ;;  %v8805_v49 = vor.u32 %v12468_v35, %v8802_v36 }
 0x694   : > { %v9058_v39 = vld [vmem:[%s13682_s27 + $0x678] sm:$0xf0] }
 0x695   : > { %v12332_v41 = vld [vmem:[%s13682_s27 + $0x1c] sm:$0xf]  ;;  %7922 = vmatpush.bf16.msra.mxu2 %v8837_v53  ;;  %v9061_v58 = vor.u32 %v12532_v37, %v9058_v39  ;;  %7897 = vmatpush.bf16.msra.mxu0 %v8293_v40  ;;  %v15773_v40 = vld [vmem:[%s13688_s5] sm:$0xff] }
 0x696   : > { %v8258_v43 = vld [vmem:[%s13682_s27 + $0x38] sm:$0xf0] }
 0x697   : > { %v12396_v55 = vld [vmem:[%s13682_s27 + $0x21c] sm:$0xf]  ;;  %7935 = vmatpush.bf16.msra.mxu3 %v9093_v31  ;;  %v8261_v24 = vor.u32 %v12332_v41, %v8258_v43  ;;  %7910 = vmatpush.bf16.msra.mxu1 %v8549_v46 }
 0x698   : > { %v8514_v57 = vld [vmem:[%s13682_s27 + $0x238] sm:$0xf0] }
 0x699   : > { %v12460_v5 = vld [vmem:[%s13682_s27 + $0x41c] sm:$0xf]  ;;  %7923 = vmatpush.bf16.msra.mxu2 %v8805_v49  ;;  %v8517_v45 = vor.u32 %v12396_v55, %v8514_v57  ;;  %7898 = vmatpush.bf16.msra.mxu0 %v8261_v24  ;;  %v7692_v57 = vpop.f32.mrf.mxu0 }
 0x69a   : > { %v8770_v59 = vld [vmem:[%s13682_s27 + $0x438] sm:$0xf0] }
 0x69b   : > { %v12524_v61 = vld [vmem:[%s13682_s27 + $0x61c] sm:$0xf]  ;;  %v8773_v62 = vor.u32 %v12460_v5, %v8770_v59  ;;  %7936 = vmatpush.bf16.msra.mxu3 %v9061_v58  ;;  %7911 = vmatpush.bf16.msra.mxu1 %v8517_v45 }
 0x69c   : > { %v9026_v0 = vld [vmem:[%s13682_s27 + $0x638] sm:$0xf0]  ;;  %7899 = vmatmul.bf16.vlgmr.msra.gmra.mxu0 %v13799_v21  ;;  %v1269_v21 = vperm.slane %v15773_v40, 6 }
 0x69d   : > { %v12644_v2 = vld [vmem:[%s13682_s27 + $0x9dc] sm:$0xf]  ;;  %v9029_v51 = vor.u32 %v12524_v61, %v9026_v0  ;;  %7924 = vmatpush.bf16.msra.mxu2 %v8773_v62 }
 0x69e   : > { %v9506_v3 = vld [vmem:[%s13682_s27 + $0x9f8] sm:$0xf0]  ;;  %7912 = vmatmul.bf16.vlgmr.msra.gmra.mxu1 %v13806_v26  ;;  %v7693_v48 = vadd.f32 %v7692_v57, %v1269_v21 }
 0x69f   : > { %v12708_v4 = vld [vmem:[%s13682_s27 + $0xbdc] sm:$0xf]  ;;  %v9509_v6 = vor.u32 %v12644_v2, %v9506_v3  ;;  %7937 = vmatpush.bf16.msra.mxu3 %v9029_v51  ;;  %v7705_v2 = vpop.f32.mrf.mxu1 }
 0x6a0   : > { %v9762_v16 = vld [vmem:[%s13682_s27 + $0xbf8] sm:$0xf0]  ;;  %7925 = vmatmul.bf16.vlgmr.msra.gmra.mxu2 %v13797_v20 }
 0x6a1   : > { %v12772_v9 = vld [vmem:[%s13682_s27 + $0xddc] sm:$0xf]  ;;  %v9765_v7 = vor.u32 %v12708_v4, %v9762_v16  ;;  %7943 = vmatpush.bf16.msrb.mxu0 %v9509_v6 }
 0x6a2   : > { %v10018_v19 = vld [vmem:[%s13682_s27 + $0xdf8] sm:$0xf0]  ;;  %7938 = vmatmul.bf16.vlgmr.msra.gmra.mxu3 %v13801_v22 }
 0x6a3   : > { %v12836_v50 = vld [vmem:[%s13682_s27 + $0xfdc] sm:$0xf]  ;;  %v10021_v8 = vor.u32 %v12772_v9, %v10018_v19  ;;  %7956 = vmatpush.bf16.msrb.mxu1 %v9765_v7  ;;  %v7706_v19 = vadd.f32 %v7705_v2, %v7693_v48  ;;  %v7718_v7 = vpop.f32.mrf.mxu2 }
 0x6a4   : > { %v10274_v25 = vld [vmem:[%s13682_s27 + $0xff8] sm:$0xf0] }
 0x6a5   : > { %v12636_v10 = vld [vmem:[%s13682_s27 + $0x99c] sm:$0xf]  ;;  %v10277_v54 = vor.u32 %v12836_v50, %v10274_v25  ;;  %7969 = vmatpush.bf16.msrb.mxu2 %v10021_v8 }
 0x6a6   : > { %v9474_v11 = vld [vmem:[%s13682_s27 + $0x9b8] sm:$0xf0] }
 0x6a7   : > { %v12700_v12 = vld [vmem:[%s13682_s27 + $0xb9c] sm:$0xf]  ;;  %v9477_v30 = vor.u32 %v12636_v10, %v9474_v11  ;;  %7982 = vmatpush.bf16.msrb.mxu3 %v10277_v54  ;;  %v7719_v54 = vadd.f32 %v7718_v7, %v7706_v19 }
 0x6a8   : > { %v9730_v13 = vld [vmem:[%s13682_s27 + $0xbb8] sm:$0xf0] }
 0x6a9   : > { %v12764_v14 = vld [vmem:[%s13682_s27 + $0xd9c] sm:$0xf]  ;;  %v9733_v56 = vor.u32 %v12700_v12, %v9730_v13  ;;  %7944 = vmatpush.bf16.msrb.mxu0 %v9477_v30  ;;  %v7731_v13 = vpop.f32.mrf.mxu3  ;;  %v7694_v30 = vpop.f32.mrf.mxu0 }
 0x6aa   : > { %v9986_v15 = vld [vmem:[%s13682_s27 + $0xdb8] sm:$0xf0] }
 0x6ab   : > { %v12828_v17 = vld [vmem:[%s13682_s27 + $0xf9c] sm:$0xf]  ;;  %v9989_v27 = vor.u32 %v12764_v14, %v9986_v15  ;;  %7957 = vmatpush.bf16.msrb.mxu1 %v9733_v56 }
 0x6ac   : > { %v10242_v23 = vld [vmem:[%s13682_s27 + $0xfb8] sm:$0xf0] }
 0x6ad   : > { %v12628_v47 = vld [vmem:[%s13682_s27 + $0x95c] sm:$0xf]  ;;  %v10245_v53 = vor.u32 %v12828_v17, %v10242_v23  ;;  %7970 = vmatpush.bf16.msrb.mxu2 %v9989_v27  ;;  %v15797_v23 = vadd.f32 %v7731_v13, %v7719_v54 }
 0x6ae   : > { %v9442_v63 = vld [vmem:[%s13682_s27 + $0x978] sm:$0xf0] }
 0x6af   : > { %v12692_v28 = vld [vmem:[%s13682_s27 + $0xb5c] sm:$0xf]  ;;  %v9445_v35 = vor.u32 %v12628_v47, %v9442_v63  ;;  %7983 = vmatpush.bf16.msrb.mxu3 %v10245_v53  ;;  %v7707_v53 = vpop.f32.mrf.mxu1 }
 0x6b0   : > { %v9698_v1 = vld [vmem:[%s13682_s27 + $0xb78] sm:$0xf0] }
 0x6b1   : > { %v12756_v18 = vld [vmem:[%s13682_s27 + $0xd5c] sm:$0xf]  ;;  %v9701_v42 = vor.u32 %v12692_v28, %v9698_v1  ;;  %7945 = vmatpush.bf16.msrb.mxu0 %v9445_v35  ;;  %v7733_v57 = vpop.f32.mrf.mxu3 }
 0x6b2   : > { %v9954_v60 = vld [vmem:[%s13682_s27 + $0xd78] sm:$0xf0] }
 0x6b3   : > { %v12820_v31 = vld [vmem:[%s13682_s27 + $0xf5c] sm:$0xf]  ;;  %v9957_v20 = vor.u32 %v12756_v18, %v9954_v60  ;;  %7958 = vmatpush.bf16.msrb.mxu1 %v9701_v42 }
 0x6b4   : > { %v10210_v34 = vld [vmem:[%s13682_s27 + $0xf78] sm:$0xf0] }
 0x6b5   : > { %v12620_v36 = vld [vmem:[%s13682_s27 + $0x91c] sm:$0xf]  ;;  %v10213_v22 = vor.u32 %v12820_v31, %v10210_v34  ;;  %7971 = vmatpush.bf16.msrb.mxu2 %v9957_v20 }
 0x6b6   : > { %v9410_v37 = vld [vmem:[%s13682_s27 + $0x938] sm:$0xf0] }
 0x6b7   : > { %v12684_v39 = vld [vmem:[%s13682_s27 + $0xb1c] sm:$0xf]  ;;  %v9413_v55 = vor.u32 %v12620_v36, %v9410_v37  ;;  %7984 = vmatpush.bf16.msrb.mxu3 %v10213_v22 }
 0x6b8   : > { %v9666_v41 = vld [vmem:[%s13682_s27 + $0xb38] sm:$0xf0] }
 0x6b9   : > { %v12748_v43 = vld [vmem:[%s13682_s27 + $0xd1c] sm:$0xf]  ;;  %v9669_v5 = vor.u32 %v12684_v39, %v9666_v41  ;;  %7946 = vmatpush.bf16.msrb.mxu0 %v9413_v55 }
 0x6ba   : > { %v9922_v46 = vld [vmem:[%s13682_s27 + $0xd38] sm:$0xf0] }
 0x6bb   : > { %v12812_v49 = vld [vmem:[%s13682_s27 + $0xf1c] sm:$0xf]  ;;  %v9925_v58 = vor.u32 %v12748_v43, %v9922_v46  ;;  %7959 = vmatpush.bf16.msrb.mxu1 %v9669_v5  ;;  %v7720_v43 = vpop.f32.mrf.mxu2 }
 0x6bc   : > { %v10178_v26 = vld [vmem:[%s13682_s27 + $0xf38] sm:$0xf0] }
 0x6bd   : > { %v12612_v59 = vld [vmem:[%s13682_s27 + $0x8dc] sm:$0xf]  ;;  %v10181_v3 = vor.u32 %v12812_v49, %v10178_v26  ;;  %7972 = vmatpush.bf16.msrb.mxu2 %v9925_v58 }
 0x6be   : > { %v9378_v61 = vld [vmem:[%s13682_s27 + $0x8f8] sm:$0xf0] }
 0x6bf   : > { %v12676_v0 = vld [vmem:[%s13682_s27 + $0xadc] sm:$0xf]  ;;  %v9381_v45 = vor.u32 %v12612_v59, %v9378_v61  ;;  %7985 = vmatpush.bf16.msrb.mxu3 %v10181_v3 }
 0x6c0   : > { %v9634_v4 = vld [vmem:[%s13682_s27 + $0xaf8] sm:$0xf0] }
 0x6c1   : > { %v12740_v52 = vld [vmem:[%s13682_s27 + $0xcdc] sm:$0xf]  ;;  %v9637_v62 = vor.u32 %v12676_v0, %v9634_v4  ;;  %7947 = vmatpush.bf16.msrb.mxu0 %v9381_v45 }
 0x6c2   : > { %v9890_v24 = vld [vmem:[%s13682_s27 + $0xcf8] sm:$0xf0] }
 0x6c3   : > { %v12804_v16 = vld [vmem:[%s13682_s27 + $0xedc] sm:$0xf]  ;;  %v9893_v50 = vor.u32 %v12740_v52, %v9890_v24  ;;  %7960 = vmatpush.bf16.msrb.mxu1 %v9637_v62 }
 0x6c4   : > { %v10146_v9 = vld [vmem:[%s13682_s27 + $0xef8] sm:$0xf0] }
 0x6c5   : > { %v12604_v25 = vld [vmem:[%s13682_s27 + $0x89c] sm:$0xf]  ;;  %v10149_v8 = vor.u32 %v12804_v16, %v10146_v9  ;;  %7973 = vmatpush.bf16.msrb.mxu2 %v9893_v50 }
 0x6c6   : > { %v9346_v51 = vld [vmem:[%s13682_s27 + $0x8b8] sm:$0xf0] }
 0x6c7   : > { %v12668_v6 = vld [vmem:[%s13682_s27 + $0xa9c] sm:$0xf]  ;;  %v9349_v17 = vor.u32 %v12604_v25, %v9346_v51  ;;  %7986 = vmatpush.bf16.msrb.mxu3 %v10149_v8 }
 0x6c8   : > { %v9602_v10 = vld [vmem:[%s13682_s27 + $0xab8] sm:$0xf0] }
 0x6c9   : > { %v12732_v11 = vld [vmem:[%s13682_s27 + $0xc9c] sm:$0xf]  ;;  %v9605_v56 = vor.u32 %v12668_v6, %v9602_v10  ;;  %7948 = vmatpush.bf16.msrb.mxu0 %v9349_v17 }
 0x6ca   : > { %v9858_v12 = vld [vmem:[%s13682_s27 + $0xcb8] sm:$0xf0] }
 0x6cb   : > { %v12796_v14 = vld [vmem:[%s13682_s27 + $0xe9c] sm:$0xf]  ;;  %v9861_v27 = vor.u32 %v12732_v11, %v9858_v12  ;;  %7961 = vmatpush.bf16.msrb.mxu1 %v9605_v56 }
 0x6cc   : > { %v10114_v15 = vld [vmem:[%s13682_s27 + $0xeb8] sm:$0xf0] }
 0x6cd   : > { %v12596_v47 = vld [vmem:[%s13682_s27 + $0x85c] sm:$0xf]  ;;  %v10117_v1 = vor.u32 %v12796_v14, %v10114_v15  ;;  %7974 = vmatpush.bf16.msrb.mxu2 %v9861_v27 }
 0x6ce   : > { %v9314_v63 = vld [vmem:[%s13682_s27 + $0x878] sm:$0xf0] }
 0x6cf   : > { %v12660_v28 = vld [vmem:[%s13682_s27 + $0xa5c] sm:$0xf]  ;;  %v9317_v36 = vor.u32 %v12596_v47, %v9314_v63  ;;  %7987 = vmatpush.bf16.msrb.mxu3 %v10117_v1 }
 0x6d0   : > { %v9570_v18 = vld [vmem:[%s13682_s27 + $0xa78] sm:$0xf0] }
 0x6d1   : > { %v12724_v60 = vld [vmem:[%s13682_s27 + $0xc5c] sm:$0xf]  ;;  %v9573_v37 = vor.u32 %v12660_v28, %v9570_v18  ;;  %7949 = vmatpush.bf16.msrb.mxu0 %v9317_v36 }
 0x6d2   : > { %v9826_v31 = vld [vmem:[%s13682_s27 + $0xc78] sm:$0xf0] }
 0x6d3   : > { %v12788_v34 = vld [vmem:[%s13682_s27 + $0xe5c] sm:$0xf]  ;;  %v9829_v39 = vor.u32 %v12724_v60, %v9826_v31  ;;  %7962 = vmatpush.bf16.msrb.mxu1 %v9573_v37 }
 0x6d4   : > { %v10082_v35 = vld [vmem:[%s13682_s27 + $0xe78] sm:$0xf0] }
 0x6d5   : > { %v12588_v42 = vld [vmem:[%s13682_s27 + $0x81c] sm:$0xf]  ;;  %v10085_v46 = vor.u32 %v12788_v34, %v10082_v35  ;;  %7975 = vmatpush.bf16.msrb.mxu2 %v9829_v39 }
 0x6d6   : > { %v9282_v20 = vld [vmem:[%s13682_s27 + $0x838] sm:$0xf0] }
 0x6d7   : > { %v12652_v21 = vld [vmem:[%s13682_s27 + $0xa1c] sm:$0xf]  ;;  %v9285_v61 = vor.u32 %v12588_v42, %v9282_v20  ;;  %7988 = vmatpush.bf16.msrb.mxu3 %v10085_v46  ;;  %v7744_v20 = vpop.f32.mrf.mxu0  ;;  %v7757_v46 = vpop.f32.mrf.mxu1 }
 0x6d8   : > { %v9538_v22 = vld [vmem:[%s13682_s27 + $0xa38] sm:$0xf0]  ;;  %v7745_v43 = vadd.f32 %v7744_v20, %v15797_v23 }
 0x6d9   : > { %v12716_v41 = vld [vmem:[%s13682_s27 + $0xc1c] sm:$0xf]  ;;  %v9541_v3 = vor.u32 %v12652_v21, %v9538_v22  ;;  %7950 = vmatpush.bf16.msrb.mxu0 %v9285_v61 }
 0x6da   : > { %v9794_v49 = vld [vmem:[%s13682_s27 + $0xc38] sm:$0xf0] }
 0x6db   : > { %v12780_v26 = vld [vmem:[%s13682_s27 + $0xe1c] sm:$0xf]  ;;  %v9797_v4 = vor.u32 %v12716_v41, %v9794_v49  ;;  %7963 = vmatpush.bf16.msrb.mxu1 %v9541_v3 }
 0x6dc   : > { %v10050_v55 = vld [vmem:[%s13682_s27 + $0xe38] sm:$0xf0]  ;;  %7951 = vmatmul.bf16.vlgmr.msrb.gmra.mxu0 %v13856_v32 }
 0x6dd   : > { %v12900_v5 = vld [vmem:[%s13682_s27 + $0x11dc] sm:$0xf]  ;;  %v10053_v16 = vor.u32 %v12780_v26, %v10050_v55  ;;  %7976 = vmatpush.bf16.msrb.mxu2 %v9797_v4  ;;  %v7770_v4 = vpop.f32.mrf.mxu2 }
 0x6de   : > { %v10530_v58 = vld [vmem:[%s13682_s27 + $0x11f8] sm:$0xf0]  ;;  %7964 = vmatmul.bf16.vlgmr.msrb.gmra.mxu1 %v13862_v38 }
 0x6df   : > { %v12964_v59 = vld [vmem:[%s13682_s27 + $0x13dc] sm:$0xf]  ;;  %v10533_v9 = vor.u32 %v12900_v5, %v10530_v58  ;;  %7989 = vmatpush.bf16.msrb.mxu3 %v10053_v16 }
 0x6e0   : > { %v10786_v0 = vld [vmem:[%s13682_s27 + $0x13f8] sm:$0xf0]  ;;  %7977 = vmatmul.bf16.vlgmr.msrb.gmra.mxu2 %v13853_v29 }
 0x6e1   : > { %v13028_v48 = vld [vmem:[%s13682_s27 + $0x15dc] sm:$0xf]  ;;  %v10789_v19 = vor.u32 %v12964_v59, %v10786_v0  ;;  %7995 = vmatpush.bf16.msra.mxu0 %v10533_v9  ;;  %v7758_v59 = vadd.f32 %v7757_v46, %v7745_v43 }
 0x6e2   : > { %v11042_v2 = vld [vmem:[%s13682_s27 + $0x15f8] sm:$0xf0]  ;;  %7990 = vmatmul.bf16.vlgmr.msrb.gmra.mxu3 %v13858_v33 }
 0x6e3   : > { %v13092_v52 = vld [vmem:[%s13682_s27 + $0x17dc] sm:$0xf]  ;;  %v11045_v45 = vor.u32 %v13028_v48, %v11042_v2  ;;  %8008 = vmatpush.bf16.msra.mxu1 %v10789_v19  ;;  %v7771_v19 = vadd.f32 %v7770_v4, %v7758_v59 }
 0x6e4   : > { %v11298_v24 = vld [vmem:[%s13682_s27 + $0x17f8] sm:$0xf0] }
 0x6e5   : > { %v12892_v62 = vld [vmem:[%s13682_s27 + $0x119c] sm:$0xf]  ;;  %v11301_v51 = vor.u32 %v13092_v52, %v11298_v24  ;;  %8021 = vmatpush.bf16.msra.mxu2 %v11045_v45  ;;  %v7783_v45 = vpop.f32.mrf.mxu3 }
 0x6e6   : > { %v10498_v50 = vld [vmem:[%s13682_s27 + $0x11b8] sm:$0xf0] }
 0x6e7   : > { %v12956_v25 = vld [vmem:[%s13682_s27 + $0x139c] sm:$0xf]  ;;  %v10501_v12 = vor.u32 %v12892_v62, %v10498_v50  ;;  %8034 = vmatpush.bf16.msra.mxu3 %v11301_v51  ;;  %v15868_v51 = vadd.f32 %v7783_v45, %v7771_v19 }
 0x6e8   : > { %v10754_v6 = vld [vmem:[%s13682_s27 + $0x13b8] sm:$0xf0] }
 0x6e9   : > { %v13020_v7 = vld [vmem:[%s13682_s27 + $0x159c] sm:$0xf]  ;;  %v10757_v54 = vor.u32 %v12956_v25, %v10754_v6  ;;  %7996 = vmatpush.bf16.msra.mxu0 %v10501_v12  ;;  %v7746_v6 = vpop.f32.mrf.mxu0 }
 0x6ea   : > { %v11010_v8 = vld [vmem:[%s13682_s27 + $0x15b8] sm:$0xf0] }
 0x6eb   : > { %v13084_v10 = vld [vmem:[%s13682_s27 + $0x179c] sm:$0xf]  ;;  %v11013_v13 = vor.u32 %v13020_v7, %v11010_v8  ;;  %8009 = vmatpush.bf16.msra.mxu1 %v10757_v54  ;;  %v7759_v54 = vpop.f32.mrf.mxu1 }
 0x6ec   : > { %v11266_v11 = vld [vmem:[%s13682_s27 + $0x17b8] sm:$0xf0] }
 0x6ed   : > { %v12884_v14 = vld [vmem:[%s13682_s27 + $0x115c] sm:$0xf]  ;;  %v11269_v30 = vor.u32 %v13084_v10, %v11266_v11  ;;  %8022 = vmatpush.bf16.msra.mxu2 %v11013_v13 }
 0x6ee   : > { %v10466_v15 = vld [vmem:[%s13682_s27 + $0x1178] sm:$0xf0] }
 0x6ef   : > { %v12948_v17 = vld [vmem:[%s13682_s27 + $0x135c] sm:$0xf]  ;;  %v10469_v53 = vor.u32 %v12884_v14, %v10466_v15  ;;  %8035 = vmatpush.bf16.msra.mxu3 %v11269_v30 }
 0x6f0   : > { %v10722_v56 = vld [vmem:[%s13682_s27 + $0x1378] sm:$0xf0] }
 0x6f1   : > { %v13012_v27 = vld [vmem:[%s13682_s27 + $0x155c] sm:$0xf]  ;;  %v10725_v29 = vor.u32 %v12948_v17, %v10722_v56  ;;  %7997 = vmatpush.bf16.msra.mxu0 %v10469_v53 }
 0x6f2   : > { %v10978_v47 = vld [vmem:[%s13682_s27 + $0x1578] sm:$0xf0] }
 0x6f3   : > { %v13076_v63 = vld [vmem:[%s13682_s27 + $0x175c] sm:$0xf]  ;;  %v10981_v1 = vor.u32 %v13012_v27, %v10978_v47  ;;  %8010 = vmatpush.bf16.msra.mxu1 %v10725_v29 }
 0x6f4   : > { %v11234_v28 = vld [vmem:[%s13682_s27 + $0x1778] sm:$0xf0] }
 0x6f5   : > { %v12876_v18 = vld [vmem:[%s13682_s27 + $0x111c] sm:$0xf]  ;;  %v11237_v32 = vor.u32 %v13076_v63, %v11234_v28  ;;  %8023 = vmatpush.bf16.msra.mxu2 %v10981_v1 }
 0x6f6   : > { %v10434_v60 = vld [vmem:[%s13682_s27 + $0x1138] sm:$0xf0] }
 0x6f7   : > { %v12940_v31 = vld [vmem:[%s13682_s27 + $0x131c] sm:$0xf]  ;;  %v10437_v38 = vor.u32 %v12876_v18, %v10434_v60  ;;  %8036 = vmatpush.bf16.msra.mxu3 %v11237_v32  ;;  %v7772_v60 = vpop.f32.mrf.mxu2 }
 0x6f8   : > { %v10690_v34 = vld [vmem:[%s13682_s27 + $0x1338] sm:$0xf0]  ;;  %v7809_v60 = vpop.f32.mrf.mxu1 }
 0x6f9   : > { %v13004_v33 = vld [vmem:[%s13682_s27 + $0x151c] sm:$0xf]  ;;  %v10693_v37 = vor.u32 %v12940_v31, %v10690_v34  ;;  %7998 = vmatpush.bf16.msra.mxu0 %v10437_v38 }
 0x6fa   : > { %v10946_v35 = vld [vmem:[%s13682_s27 + $0x1538] sm:$0xf0] }
 0x6fb   : > { %v13068_v36 = vld [vmem:[%s13682_s27 + $0x171c] sm:$0xf]  ;;  %v10949_v39 = vor.u32 %v13004_v33, %v10946_v35  ;;  %8011 = vmatpush.bf16.msra.mxu1 %v10693_v37  ;;  %v7785_v35 = vpop.f32.mrf.mxu3 }
 0x6fc   : > { %v11202_v42 = vld [vmem:[%s13682_s27 + $0x1738] sm:$0xf0] }
 0x6fd   : > { %v12868_v21 = vld [vmem:[%s13682_s27 + $0x10dc] sm:$0xf]  ;;  %v11205_v49 = vor.u32 %v13068_v36, %v11202_v42  ;;  %8024 = vmatpush.bf16.msra.mxu2 %v10949_v39 }
 0x6fe   : > { %v10402_v22 = vld [vmem:[%s13682_s27 + $0x10f8] sm:$0xf0] }
 0x6ff   : > { %v12932_v41 = vld [vmem:[%s13682_s27 + $0x12dc] sm:$0xf]  ;;  %v10405_v61 = vor.u32 %v12868_v21, %v10402_v22  ;;  %8037 = vmatpush.bf16.msra.mxu3 %v11205_v49 }
 0x700   : > { %v10658_v26 = vld [vmem:[%s13682_s27 + $0x12f8] sm:$0xf0] }
 0x701   : > { %v12996_v55 = vld [vmem:[%s13682_s27 + $0x14dc] sm:$0xf]  ;;  %v10661_v23 = vor.u32 %v12932_v41, %v10658_v26  ;;  %7999 = vmatpush.bf16.msra.mxu0 %v10405_v61 }
 0x702   : > { %v10914_v57 = vld [vmem:[%s13682_s27 + $0x14f8] sm:$0xf0] }
 0x703   : > { %v13060_v5 = vld [vmem:[%s13682_s27 + $0x16dc] sm:$0xf]  ;;  %v10917_v0 = vor.u32 %v12996_v55, %v10914_v57  ;;  %8012 = vmatpush.bf16.msra.mxu1 %v10661_v23 }
 0x704   : > { %v11170_v58 = vld [vmem:[%s13682_s27 + $0x16f8] sm:$0xf0] }
 0x705   : > { %v12860_v48 = vld [vmem:[%s13682_s27 + $0x109c] sm:$0xf]  ;;  %v11173_v52 = vor.u32 %v13060_v5, %v11170_v58  ;;  %8025 = vmatpush.bf16.msra.mxu2 %v10917_v0 }
 0x706   : > { %v10370_v2 = vld [vmem:[%s13682_s27 + $0x10b8] sm:$0xf0] }
 0x707   : > { %v12924_v3 = vld [vmem:[%s13682_s27 + $0x129c] sm:$0xf]  ;;  %v10373_v25 = vor.u32 %v12860_v48, %v10370_v2  ;;  %8038 = vmatpush.bf16.msra.mxu3 %v11173_v52 }
 0x708   : > { %v10626_v24 = vld [vmem:[%s13682_s27 + $0x12b8] sm:$0xf0] }
 0x709   : > { %v12988_v16 = vld [vmem:[%s13682_s27 + $0x149c] sm:$0xf]  ;;  %v10629_v7 = vor.u32 %v12924_v3, %v10626_v24  ;;  %8000 = vmatpush.bf16.msra.mxu0 %v10373_v25 }
 0x70a   : > { %v10882_v9 = vld [vmem:[%s13682_s27 + $0x14b8] sm:$0xf0] }
 0x70b   : > { %v13052_v62 = vld [vmem:[%s13682_s27 + $0x169c] sm:$0xf]  ;;  %v10885_v8 = vor.u32 %v12988_v16, %v10882_v9  ;;  %8013 = vmatpush.bf16.msra.mxu1 %v10629_v7  ;;  %v13455_v7 = vld [vmem:[#allocation1 + $0x12] sm:$0xff] }
 0x70c   : > { %v11138_v50 = vld [vmem:[%s13682_s27 + $0x16b8] sm:$0xf0] }
 0x70d   : > { %v12852_v10 = vld [vmem:[%s13682_s27 + $0x105c] sm:$0xf]  ;;  %v11141_v13 = vor.u32 %v13052_v62, %v11138_v50  ;;  %8026 = vmatpush.bf16.msra.mxu2 %v10885_v8  ;;  %v13456_v8 = vld [vmem:[#allocation1 + $0x9] sm:$0xff] }
 0x70e   : > { %v10338_v11 = vld [vmem:[%s13682_s27 + $0x1078] sm:$0xf0] }
 0x70f   : > { %v12916_v12 = vld [vmem:[%s13682_s27 + $0x125c] sm:$0xf]  ;;  %v10341_v27 = vor.u32 %v12852_v10, %v10338_v11  ;;  %8039 = vmatpush.bf16.msra.mxu3 %v11141_v13 }
 0x710   : > { %v10594_v14 = vld [vmem:[%s13682_s27 + $0x1278] sm:$0xf0] }
 0x711   : > { %v12980_v15 = vld [vmem:[%s13682_s27 + $0x145c] sm:$0xf]  ;;  %v10597_v28 = vor.u32 %v12916_v12, %v10594_v14  ;;  %8001 = vmatpush.bf16.msra.mxu0 %v10341_v27  ;;  %v13457_v12 = vld [vmem:[#allocation1 + $0x1b] sm:$0xff] }
 0x712   : > { %v10850_v17 = vld [vmem:[%s13682_s27 + $0x1478] sm:$0xf0] }
 0x713   : > { %v13044_v30 = vld [vmem:[%s13682_s27 + $0x165c] sm:$0xf]  ;;  %v10853_v53 = vor.u32 %v12980_v15, %v10850_v17  ;;  %8014 = vmatpush.bf16.msra.mxu1 %v10597_v28  ;;  %v7796_v28 = vpop.f32.mrf.mxu0 }
 0x714   : > { %v11106_v56 = vld [vmem:[%s13682_s27 + $0x1678] sm:$0xf0] }
 0x715   : > { %v12844_v47 = vld [vmem:[%s13682_s27 + $0x101c] sm:$0xf]  ;;  %v11109_v31 = vor.u32 %v13044_v30, %v11106_v56  ;;  %8027 = vmatpush.bf16.msra.mxu2 %v10853_v53 }
 0x716   : > { %v10306_v63 = vld [vmem:[%s13682_s27 + $0x1038] sm:$0xf0] }
 0x717   : > { %v12908_v29 = vld [vmem:[%s13682_s27 + $0x121c] sm:$0xf]  ;;  %v10309_v20 = vor.u32 %v12844_v47, %v10306_v63  ;;  %8040 = vmatpush.bf16.msra.mxu3 %v11109_v31 }
 0x718   : > { %v10562_v1 = vld [vmem:[%s13682_s27 + $0x1238] sm:$0xf0] }
 0x719   : > { %v12972_v18 = vld [vmem:[%s13682_s27 + $0x141c] sm:$0xf]  ;;  %v10565_v22 = vor.u32 %v12908_v29, %v10562_v1  ;;  %8002 = vmatpush.bf16.msra.mxu0 %v10309_v20  ;;  %v7797_v1 = vadd.f32 %v7796_v28, %v15868_v51 }
 0x71a   : > { %v10818_v32 = vld [vmem:[%s13682_s27 + $0x1438] sm:$0xf0] }
 0x71b   : > { %v13036_v34 = vld [vmem:[%s13682_s27 + $0x161c] sm:$0xf]  ;;  %v10821_v41 = vor.u32 %v12972_v18, %v10818_v32  ;;  %8015 = vmatpush.bf16.msra.mxu1 %v10565_v22 }
 0x71c   : > { %v11074_v33 = vld [vmem:[%s13682_s27 + $0x1638] sm:$0xf0] }
 0x71d   : > { %v13156_v36 = vld [vmem:[%s13682_s27 + $0x19dc] sm:$0xf]  ;;  %v11077_v49 = vor.u32 %v13036_v34, %v11074_v33  ;;  %8028 = vmatpush.bf16.msra.mxu2 %v10821_v41 }
 0x71e   : > { %v11554_v42 = vld [vmem:[%s13682_s27 + $0x19f8] sm:$0xf0]  ;;  %8016 = vmatmul.bf16.vlgmr.msra.gmra.mxu1 %v13456_v8 }
 0x71f   : > { %v13220_v38 = vld [vmem:[%s13682_s27 + $0x1bdc] sm:$0xf]  ;;  %v11557_v26 = vor.u32 %v13156_v36, %v11554_v42  ;;  %8041 = vmatpush.bf16.msra.mxu3 %v11077_v49  ;;  %v7810_v42 = vadd.f32 %v7809_v60, %v7797_v1  ;;  %v13459_v60 = vld [vmem:[#allocation1 + $0x2d] sm:$0xff] }
 0x720   : > { %v11810_v37 = vld [vmem:[%s13682_s27 + $0x1bf8] sm:$0xf0]  ;;  %8029 = vmatmul.bf16.vlgmr.msra.gmra.mxu2 %v13455_v7 }
 0x721   : > { %v13284_v39 = vld [vmem:[%s13682_s27 + $0x1ddc] sm:$0xf]  ;;  %v11813_v55 = vor.u32 %v13220_v38, %v11810_v37  ;;  %8047 = vmatpush.bf16.msrb.mxu0 %v11557_v26 }
 0x722   : > { %v12066_v21 = vld [vmem:[%s13682_s27 + $0x1df8] sm:$0xf0]  ;;  %8042 = vmatmul.bf16.vlgmr.msra.gmra.mxu3 %v13457_v12 }
 0x723   : > { %v13348_v43 = vld [vmem:[%s13682_s27 + $0x1fdc] sm:$0xf]  ;;  %v12069_v57 = vor.u32 %v13284_v39, %v12066_v21  ;;  %8060 = vmatpush.bf16.msrb.mxu1 %v11813_v55  ;;  %v7822_v55 = vpop.f32.mrf.mxu2 }
 0x724   : > { %v12322_v46 = vld [vmem:[%s13682_s27 + $0x1ff8] sm:$0xf0] }
 0x725   : > { %v13148_v5 = vld [vmem:[%s13682_s27 + $0x199c] sm:$0xf]  ;;  %v12325_v61 = vor.u32 %v13348_v43, %v12322_v46  ;;  %8073 = vmatpush.bf16.msrb.mxu2 %v12069_v57 }
 0x726   : > { %v11522_v58 = vld [vmem:[%s13682_s27 + $0x19b8] sm:$0xf0] }
 0x727   : > { %v13212_v59 = vld [vmem:[%s13682_s27 + $0x1b9c] sm:$0xf]  ;;  %v11525_v4 = vor.u32 %v13148_v5, %v11522_v58  ;;  %8086 = vmatpush.bf16.msrb.mxu3 %v12325_v61  ;;  %v7835_v61 = vpop.f32.mrf.mxu3 }
 0x728   : > { %v11778_v23 = vld [vmem:[%s13682_s27 + $0x1bb8] sm:$0xf0] }
 0x729   : > { %v13276_v0 = vld [vmem:[%s13682_s27 + $0x1d9c] sm:$0xf]  ;;  %v11781_v52 = vor.u32 %v13212_v59, %v11778_v23  ;;  %8048 = vmatpush.bf16.msrb.mxu0 %v11525_v4  ;;  %v7823_v59 = vadd.f32 %v7822_v55, %v7810_v42 }
 0x72a   : > { %v12034_v48 = vld [vmem:[%s13682_s27 + $0x1db8] sm:$0xf0] }
 0x72b   : > { %v13340_v2 = vld [vmem:[%s13682_s27 + $0x1f9c] sm:$0xf]  ;;  %v12037_v24 = vor.u32 %v13276_v0, %v12034_v48  ;;  %8061 = vmatpush.bf16.msrb.mxu1 %v11781_v52  ;;  %v7798_v48 = vpop.f32.mrf.mxu0  ;;  %v7836_v4 = vadd.f32 %v7835_v61, %v7823_v59 }
 0x72c   : > { %v12290_v3 = vld [vmem:[%s13682_s27 + $0x1fb8] sm:$0xf0] }
 0x72d   : > { %v13140_v16 = vld [vmem:[%s13682_s27 + $0x195c] sm:$0xf]  ;;  %v12293_v62 = vor.u32 %v13340_v2, %v12290_v3  ;;  %8074 = vmatpush.bf16.msrb.mxu2 %v12037_v24  ;;  %v7811_v3 = vpop.f32.mrf.mxu1 }
 0x72e   : > { %v11490_v9 = vld [vmem:[%s13682_s27 + $0x1978] sm:$0xf0] }
 0x72f   : > { %v13204_v19 = vld [vmem:[%s13682_s27 + $0x1b5c] sm:$0xf]  ;;  %v11493_v54 = vor.u32 %v13140_v16, %v11490_v9  ;;  %8087 = vmatpush.bf16.msrb.mxu3 %v12293_v62 }
 0x730   : > { %v13454_v45 = vld [vmem:[#allocation1] sm:$0xff] }
 0x731   : > { %8003 = vmatmul.bf16.vlgmr.msra.gmra.mxu0 %v13454_v45  ;;  %v11746_v50 = vld [vmem:[%s13682_s27 + $0x1b78] sm:$0xf0] }
 0x732   : > { %v13268_v25 = vld [vmem:[%s13682_s27 + $0x1d5c] sm:$0xf]  ;;  %v11749_v13 = vor.u32 %v13204_v19, %v11746_v50  ;;  %8049 = vmatpush.bf16.msrb.mxu0 %v11493_v54 }
 0x733   : > { %v12002_v6 = vld [vmem:[%s13682_s27 + $0x1d78] sm:$0xf0] }
 0x734   : > { %v13332_v10 = vld [vmem:[%s13682_s27 + $0x1f5c] sm:$0xf]  ;;  %v12005_v14 = vor.u32 %v13268_v25, %v12002_v6  ;;  %8062 = vmatpush.bf16.msrb.mxu1 %v11749_v13 }
 0x735   : > { %v12258_v11 = vld [vmem:[%s13682_s27 + $0x1f78] sm:$0xf0] }
 0x736   : > { %v13132_v15 = vld [vmem:[%s13682_s27 + $0x191c] sm:$0xf]  ;;  %v12261_v56 = vor.u32 %v13332_v10, %v12258_v11  ;;  %8075 = vmatpush.bf16.msrb.mxu2 %v12005_v14 }
 0x737   : > { %v11458_v17 = vld [vmem:[%s13682_s27 + $0x1938] sm:$0xf0] }
 0x738   : > { %v13196_v30 = vld [vmem:[%s13682_s27 + $0x1b1c] sm:$0xf]  ;;  %v11461_v18 = vor.u32 %v13132_v15, %v11458_v17  ;;  %8088 = vmatpush.bf16.msrb.mxu3 %v12261_v56  ;;  %v7824_v56 = vpop.f32.mrf.mxu2 }
 0x739   : > { %v11714_v27 = vld [vmem:[%s13682_s27 + $0x1b38] sm:$0xf0] }
 0x73a   : > { %v13260_v47 = vld [vmem:[%s13682_s27 + $0x1d1c] sm:$0xf]  ;;  %v11717_v31 = vor.u32 %v13196_v30, %v11714_v27  ;;  %8050 = vmatpush.bf16.msrb.mxu0 %v11461_v18 }
 0x73b   : > { %v11970_v63 = vld [vmem:[%s13682_s27 + $0x1d38] sm:$0xf0] }
 0x73c   : > { %v13324_v53 = vld [vmem:[%s13682_s27 + $0x1f1c] sm:$0xf]  ;;  %v11973_v32 = vor.u32 %v13260_v47, %v11970_v63  ;;  %8063 = vmatpush.bf16.msrb.mxu1 %v11717_v31  ;;  %v7837_v63 = vpop.f32.mrf.mxu3  ;;  %v13460_v31 = vld [vmem:[#allocation1 + $0x36] sm:$0xff] }
 0x73d   : > { %v12226_v29 = vld [vmem:[%s13682_s27 + $0x1f38] sm:$0xf0] }
 0x73e   : > { %v13124_v34 = vld [vmem:[%s13682_s27 + $0x18dc] sm:$0xf]  ;;  %v12229_v36 = vor.u32 %v13324_v53, %v12226_v29  ;;  %8076 = vmatpush.bf16.msrb.mxu2 %v11973_v32 }
 0x73f   : > { %v11426_v33 = vld [vmem:[%s13682_s27 + $0x18f8] sm:$0xf0] }
 0x740   : > { %v13188_v35 = vld [vmem:[%s13682_s27 + $0x1adc] sm:$0xf]  ;;  %v11429_v21 = vor.u32 %v13124_v34, %v11426_v33  ;;  %8089 = vmatpush.bf16.msrb.mxu3 %v12229_v36  ;;  %v7848_v34 = vpop.f32.mrf.mxu0  ;;  %v7874_v42 = vpop.f32.mrf.mxu2 }
 0x741   : > { %v11682_v38 = vld [vmem:[%s13682_s27 + $0x1af8] sm:$0xf0]  ;;  %v7849_v33 = vadd.f32 %v7848_v34, %v7836_v4 }
 0x742   : > { %v13252_v20 = vld [vmem:[%s13682_s27 + $0x1cdc] sm:$0xf]  ;;  %v11685_v22 = vor.u32 %v13188_v35, %v11682_v38  ;;  %8051 = vmatpush.bf16.msrb.mxu0 %v11429_v21  ;;  %v7861_v35 = vpop.f32.mrf.mxu1 }
 0x743   : > { %v11938_v51 = vld [vmem:[%s13682_s27 + $0x1cf8] sm:$0xf0]  ;;  %v7862_v36 = vadd.f32 %v7861_v35, %v7849_v33 }
 0x744   : > { %v13316_v37 = vld [vmem:[%s13682_s27 + $0x1edc] sm:$0xf]  ;;  %v11941_v41 = vor.u32 %v13252_v20, %v11938_v51  ;;  %8064 = vmatpush.bf16.msrb.mxu1 %v11685_v22  ;;  %v7887_v20 = vpop.f32.mrf.mxu3 }
 0x745   : > { %v12194_v39 = vld [vmem:[%s13682_s27 + $0x1ef8] sm:$0xf0]  ;;  %v7875_v38 = vadd.f32 %v7874_v42, %v7862_v36 }
 0x746   : > { %v13116_v43 = vld [vmem:[%s13682_s27 + $0x189c] sm:$0xf]  ;;  %v12197_v26 = vor.u32 %v13316_v37, %v12194_v39  ;;  %8077 = vmatpush.bf16.msrb.mxu2 %v11941_v41  ;;  %v1270_v41 = vperm.slane %v15773_v40, 7 }
 0x747   : > { %v11394_v46 = vld [vmem:[%s13682_s27 + $0x18b8] sm:$0xf0]  ;;  %v7888_v39 = vadd.f32 %v7887_v20, %v7875_v38 }
 0x748   : > { %v13180_v49 = vld [vmem:[%s13682_s27 + $0x1a9c] sm:$0xf]  ;;  %v11397_v2 = vor.u32 %v13116_v43, %v11394_v46  ;;  %8090 = vmatpush.bf16.msrb.mxu3 %v12197_v26  ;;  %v7850_v51 = vpop.f32.mrf.mxu0  ;;  %v7876_v21 = vpop.f32.mrf.mxu2 }
 0x749   : > { %v11650_v57 = vld [vmem:[%s13682_s27 + $0x1ab8] sm:$0xf0] }
 0x74a   : > { %v13244_v5 = vld [vmem:[%s13682_s27 + $0x1c9c] sm:$0xf]  ;;  %v11653_v52 = vor.u32 %v13180_v49, %v11650_v57  ;;  %8052 = vmatpush.bf16.msrb.mxu0 %v11397_v2  ;;  %v7863_v37 = vpop.f32.mrf.mxu1 }
 0x74b   : > { %v11906_v58 = vld [vmem:[%s13682_s27 + $0x1cb8] sm:$0xf0] }
 0x74c   : > { %v13308_v23 = vld [vmem:[%s13682_s27 + $0x1e9c] sm:$0xf]  ;;  %v11909_v24 = vor.u32 %v13244_v5, %v11906_v58  ;;  %8065 = vmatpush.bf16.msrb.mxu1 %v11653_v52  ;;  %v7889_v22 = vpop.f32.mrf.mxu3 }
 0x74d   : > { %v12162_v0 = vld [vmem:[%s13682_s27 + $0x1eb8] sm:$0xf0] }
 0x74e   : > { %v13108_v16 = vld [vmem:[%s13682_s27 + $0x185c] sm:$0xf]  ;;  %v12165_v45 = vor.u32 %v13308_v23, %v12162_v0  ;;  %8078 = vmatpush.bf16.msrb.mxu2 %v11909_v24 }
 0x74f   : > { %v11362_v9 = vld [vmem:[%s13682_s27 + $0x1878] sm:$0xf0] }
 0x750   : > { %v13172_v19 = vld [vmem:[%s13682_s27 + $0x1a5c] sm:$0xf]  ;;  %v11365_v8 = vor.u32 %v13108_v16, %v11362_v9  ;;  %8091 = vmatpush.bf16.msrb.mxu3 %v12165_v45  ;;  %v7900_v43 = vpop.f32.mrf.mxu0  ;;  %v7926_v55 = vpop.f32.mrf.mxu2 }
 0x751   : > { %v11618_v62 = vld [vmem:[%s13682_s27 + $0x1a78] sm:$0xf0]  ;;  %v7901_v46 = vadd.f32 %v7900_v43, %v1270_v41 }
 0x752   : > { %v13236_v50 = vld [vmem:[%s13682_s27 + $0x1c5c] sm:$0xf]  ;;  %v11621_v10 = vor.u32 %v13172_v19, %v11618_v62  ;;  %8053 = vmatpush.bf16.msrb.mxu0 %v11365_v8  ;;  %v7913_v49 = vpop.f32.mrf.mxu1 }
 0x753   : > { %v11874_v25 = vld [vmem:[%s13682_s27 + $0x1c78] sm:$0xf0]  ;;  %v7914_v26 = vadd.f32 %v7913_v49, %v7901_v46 }
 0x754   : > { %v13300_v6 = vld [vmem:[%s13682_s27 + $0x1e5c] sm:$0xf]  ;;  %v11877_v11 = vor.u32 %v13236_v50, %v11874_v25  ;;  %8066 = vmatpush.bf16.msrb.mxu1 %v11621_v10  ;;  %v7939_v5 = vpop.f32.mrf.mxu3 }
 0x755   : > { %v12130_v7 = vld [vmem:[%s13682_s27 + $0x1e78] sm:$0xf0]  ;;  %v7927_v57 = vadd.f32 %v7926_v55, %v7914_v26 }
 0x756   : > { %v13100_v12 = vld [vmem:[%s13682_s27 + $0x181c] sm:$0xf]  ;;  %v12133_v14 = vor.u32 %v13300_v6, %v12130_v7  ;;  %8079 = vmatpush.bf16.msrb.mxu2 %v11877_v11 }
 0x757   : > { %v11330_v54 = vld [vmem:[%s13682_s27 + $0x1838] sm:$0xf0]  ;;  %v7940_v58 = vadd.f32 %v7939_v5, %v7927_v57 }
 0x758   : > { %v13164_v13 = vld [vmem:[%s13682_s27 + $0x1a1c] sm:$0xf]  ;;  %v11333_v28 = vor.u32 %v13100_v12, %v11330_v54  ;;  %8092 = vmatpush.bf16.msrb.mxu3 %v12133_v14  ;;  %v7902_v59 = vpop.f32.mrf.mxu0  ;;  %v7928_v23 = vpop.f32.mrf.mxu2 }
 0x759   : > { %v11586_v15 = vld [vmem:[%s13682_s27 + $0x1a38] sm:$0xf0] }
 0x75a   : > { %v13228_v17 = vld [vmem:[%s13682_s27 + $0x1c1c] sm:$0xf]  ;;  %v11589_v53 = vor.u32 %v13164_v13, %v11586_v15  ;;  %8054 = vmatpush.bf16.msrb.mxu0 %v11333_v28  ;;  %v7915_v61 = vpop.f32.mrf.mxu1 }
 0x75b   : > { %v11842_v30 = vld [vmem:[%s13682_s27 + $0x1c38] sm:$0xf0] }
 0x75c   : > { %v13292_v27 = vld [vmem:[%s13682_s27 + $0x1e1c] sm:$0xf]  ;;  %v11845_v29 = vor.u32 %v13228_v17, %v11842_v30  ;;  %8067 = vmatpush.bf16.msrb.mxu1 %v11589_v53  ;;  %v7941_v0 = vpop.f32.mrf.mxu3 }
 0x75d   : > { %v12098_v47 = vld [vmem:[%s13682_s27 + $0x1e38] sm:$0xf0] }
 0x75e   : > { %v12101_v1 = vor.u32 %v13292_v27, %v12098_v47  ;;  %8080 = vmatpush.bf16.msrb.mxu2 %v11845_v29  ;;  %v13458_v18 = vld [vmem:[#allocation1 + $0x24] sm:$0xff] }
 0x75f   : > { %8055 = vmatmul.bf16.vlgmr.msrb.gmra.mxu0 %v13458_v18  ;;  %8068 = vmatmul.bf16.vlgmr.msrb.gmra.mxu1 %v13459_v60  ;;  %v13461_v32 = vld [vmem:[#allocation1 + $0x3f] sm:$0xff]  ;;  %v8111_v18 = vrot.slane %v7888_v39, 4 }
 0x760   : > { %8093 = vmatpush.bf16.msrb.mxu3 %v12101_v1  ;;  %v7952_v48 = vpop.f32.mrf.mxu0 }
 0x761   : > { %8081 = vmatmul.bf16.vlgmr.msrb.gmra.mxu2 %v13460_v31  ;;  %v7953_v45 = vadd.f32 %v7952_v48, %v7940_v58 }
 0x762   : > { %v7965_v2 = vpop.f32.mrf.mxu1 }
 0x763   : > { %8094 = vmatmul.bf16.vlgmr.msrb.gmra.mxu3 %v13461_v32  ;;  %v7978_v3 = vpop.f32.mrf.mxu2  ;;  %v7966_v6 = vadd.f32 %v7965_v2, %v7953_v45 }
 0x765   : > { %v7991_v4 = vpop.f32.mrf.mxu3  ;;  %v7979_v8 = vadd.f32 %v7978_v3, %v7966_v6 }
 0x767   : > { %v7992_v12 = vadd.f32 %v7991_v4, %v7979_v8 }
 0x768   : > { %v7954_v52 = vpop.f32.mrf.mxu0 }
 0x76a   : > { %v7967_v24 = vpop.f32.mrf.mxu1 }
 0x76b   : > { %v7980_v16 = vpop.f32.mrf.mxu2 }
 0x76d   : > { %v7993_v40 = vpop.f32.mrf.mxu3 }
 0x79b   : > { %v8017_v19 = vpop.f32.mrf.mxu1 }
 0x7a3   : > { %v8030_v62 = vpop.f32.mrf.mxu2  ;;  %v8019_v7 = vpop.f32.mrf.mxu1 }
 0x7a5   : > { %v8043_v50 = vpop.f32.mrf.mxu3 }
 0x7ab   : > { %v8032_v10 = vpop.f32.mrf.mxu2 }
 0x7ad   : > { %v8045_v11 = vpop.f32.mrf.mxu3 }
 0x7ae   : > { %v8004_v9 = vpop.f32.mrf.mxu0 }
 0x7af   : > { %v8005_v54 = vadd.f32 %v8004_v9, %v7992_v12 }
 0x7b1   : > { %v8018_v13 = vadd.f32 %v8017_v19, %v8005_v54 }
 0x7b3   : > { %v8031_v14 = vadd.f32 %v8030_v62, %v8018_v13 }
 0x7b5   : > { %v8044_v15 = vadd.f32 %v8043_v50, %v8031_v14 }
 0x7b6   : > { %v8006_v25 = vpop.f32.mrf.mxu0 }
 0x7dc   : > { %v8056_v17 = vpop.f32.mrf.mxu0  ;;  %v8069_v30 = vpop.f32.mrf.mxu1 }
 0x7dd   : > { %v8057_v56 = vadd.f32 %v8056_v17, %v8044_v15 }
 0x7df   : > { %v8070_v27 = vadd.f32 %v8069_v30, %v8057_v56 }
 0x7e4   : > { %v8082_v47 = vpop.f32.mrf.mxu2  ;;  %v8058_v53 = vpop.f32.mrf.mxu0 }
 0x7e5   : > { %v8083_v63 = vadd.f32 %v8082_v47, %v8070_v27  ;;  %v8071_v29 = vpop.f32.mrf.mxu1 }
 0x7e6   : > { %v8095_v28 = vpop.f32.mrf.mxu3 }
 0x7e7   : > { %v8096_v1 = vadd.f32 %v8095_v28, %v8083_v63 }
 0x7e9   : > { %v8112_v60 = vrot.slane %v8096_v1, 2 }
 0x7eb   : > { %v8120_v31 = vsel %vm8115_vm1, %v8111_v18, %v8112_v60 }
 0x7ec   : > { %v8121_v32 = vsel %vm8117_vm2, %v15733_v44, %v8120_v31  ;;  %v8084_v34 = vpop.f32.mrf.mxu2 }
 0x7ed   : > { %8125 = vst [vmem:[%s15173_s11 + $0x8] sm:$0xff] %v8121_v32 }
 0x7ee   : > { %v8097_v33 = vpop.f32.mrf.mxu3 }
 0x7ef PF: > { %p16_p8 = scmp.ge.s32.totalorder %s13605_s17, 4   ;;  %s15977_s12 = smov %s13552_s13 }
 0x7f0   : > { %s15978_s13 = smov %s13556_s14  ;;  %s15979_s14 = smov %s13615_s20 }
 0x7f1   : > { %s15980_s15 = smov %s13605_s17  ;;  %18 = sbr.rel (!%p16_p8) target bundleno = 5 (0x5), region = 85 }
 0x7f6   :  { %8148 = vsyncpa [#allocation3], 1 }
 0x7f7   :  { %8150 = vsyncpa [#allocation3 + $0x1], 1 }
 0x7f8   :  { %8151 = vsyncpa [#allocation5], 1 }
 0x7f9   :  { %8153 = vsyncpa [#allocation5 + $0x1], 1 }

</bundles_post_ra>
